<compile_context>
chip_gen: v7x
topology: tpu7x:2x2x1
jax: 0.10.0
libtpu: 0.0.40
codegen_flags: <defaults>
</compile_context>

<pallas_src>
import jax
import jax.numpy as jnp
from jax.experimental import pallas as pl
from jax.experimental.pallas import tpu as pltpu

L = 20          # sequence length
C_IN = 15       # input channels
C = 128         # conv channels
KTAP = 48       # 3*C_IN rounded up to a multiple of 8 (lane-padded anyway)


# ----------------------------------------------------------------------------
# Kernel
# ----------------------------------------------------------------------------
def _net1_kernel(xw_ref, xm_ref, flat_ref,
                 wc1w, wc1b, wc2w, wc2b, mc1w, mc1b, mc2w, mc2b,
                 d1w, d1b, d2ww, d2wm, d2b, d3ww, d3wm, d3b,
                 d4wa, d4wb, d4wc, d4b, rw, rb,
                 out_ref, tap_ref):
    f32 = jnp.float32
    bf16 = jnp.bfloat16
    TB = xw_ref.shape[1]               # (L, TB, 48)

    def conv1_relu(xt_ref, w_ref, b_ref):
        # Fused-tap conv1 (+ReLU): one (L*TB, 48) @ (48, 128) MXU pass.
        y = jnp.dot(xt_ref[...].reshape(L * TB, KTAP), w_ref[...],
                    preferred_element_type=f32)
        y = jnp.maximum(y + b_ref[...], 0.0)
        return y.astype(bf16).reshape(L, TB, C)

    def conv2_relu(x, w_ref, b_ref):
        # x: (L, TB, 128) bf16.  Write the three tap slabs [prev|center|next]
        # directly into the (L, TB, 384) bf16 scratch (zero boundary rows keep
        # positions from leaking across the padded conv edge), then one
        # (L*TB, 384) @ (384, 128) matmul.
        zrow = jnp.zeros((TB, C), bf16)
        tap_ref[:, :, C:2 * C] = x                      # center tap
        tap_ref[0, :, 0:C] = zrow                       # prev tap, l = 0
        tap_ref[1:, :, 0:C] = x[:L - 1]
        tap_ref[L - 1, :, 2 * C:3 * C] = zrow           # next tap, l = L-1
        tap_ref[:L - 1, :, 2 * C:3 * C] = x[1:]
        y = jnp.dot(tap_ref[...].reshape(L * TB, 3 * C), w_ref[...],
                    preferred_element_type=f32)
        y = jnp.maximum(y + b_ref[...], 0.0)
        return y.astype(bf16).reshape(L, TB, C)

    def pos_flatten(x):
        # (P, TB, 128) -> (TB, P*128): lane-concat of 128-aligned blocks
        # (layout-only copy, column order l*128 + c matches the reordered weights).
        return jnp.concatenate([x[p] for p in range(x.shape[0])], axis=1)

    def pool_flatten(x):
        # MaxPool1d(2) fused with the lane-concat flatten: (L, TB, 128) -> (TB, 10*128).
        return jnp.concatenate(
            [jnp.maximum(x[2 * p], x[2 * p + 1]) for p in range(L // 2)], axis=1)

    w1 = conv1_relu(xw_ref, wc1w, wc1b)        # (L, TB, 128) bf16   wconv1
    m1 = conv1_relu(xm_ref, mc1w, mc1b)        # (L, TB, 128) bf16   mconv1
    w2 = conv2_relu(w1, wc2w, wc2b)            # (L, TB, 128) bf16   wconv2 (pre-pool)
    m2 = conv2_relu(m1, mc2w, mc2b)            # (L, TB, 128) bf16   mconv2 (pre-pool)

    # dense1: raw inputs, pre-flattened (PyTorch NCW order) and pre-cast to bf16.
    fc1 = jnp.maximum(
        jnp.dot(flat_ref[...], d1w[...], preferred_element_type=f32) + d1b[...],
        0.0)                                                          # (TB, 256)

    # dense2: one wide-K matmul per branch (K = 2560).
    fc2 = jnp.maximum(
        jnp.dot(pos_flatten(w1), d2ww[...], preferred_element_type=f32)
        + jnp.dot(pos_flatten(m1), d2wm[...], preferred_element_type=f32)
        + d2b[...], 0.0)                                              # (TB, 256)

    # dense3: MaxPool fused into the flatten; one wide-K matmul per branch (K = 1280).
    fc3 = jnp.maximum(
        jnp.dot(pool_flatten(w2), d3ww[...], preferred_element_type=f32)
        + jnp.dot(pool_flatten(m2), d3wm[...], preferred_element_type=f32)
        + d3b[...], 0.0)                                              # (TB, 256)

    feat = (jnp.dot(fc1.astype(jnp.bfloat16), d4wa[...], preferred_element_type=f32)
            + jnp.dot(fc2.astype(jnp.bfloat16), d4wb[...], preferred_element_type=f32)
            + jnp.dot(fc3.astype(jnp.bfloat16), d4wc[...], preferred_element_type=f32)
            + d4b[...])                                               # (TB, 64)

    pred = jnp.dot(feat, rw[...], preferred_element_type=f32) + rb[...]  # (TB, 1)
    out_ref[...] = pred / (1.0 + jnp.abs(pred))                          # Softsign


# ----------------------------------------------------------------------------
# Wrapper (parameter / input re-layout is plain-JAX glue)
# ----------------------------------------------------------------------------
def net1_forward(params, wild_enc, mut_enc, *, batch_tile=128):
    # batch_tile=128 suits v5e; 256 is fine on v6e/v7x now that the wide-K
    # dense2/dense3 restructure removed the long-lived f32 accumulators.
    B = wild_enc.shape[0]
    bf16 = jnp.bfloat16

    def rup(x, m):
        return ((x + m - 1) // m) * m

    B8 = rup(B, 8)
    TB = min(rup(batch_tile, 8), B8)
    if TB == B8 and B8 > 8:
        # Prefer >= 2 grid tiles so the "parallel" batch axis can shard across
        # TensorCores (v7x has 2 TCs per chip).
        TB = rup((B8 + 1) // 2, 8)
    B_pad = rup(B, TB)
    pad = B_pad - B

    wild = wild_enc.astype(jnp.float32)
    mut = mut_enc.astype(jnp.float32)
    if pad:
        zeros = jnp.zeros((pad, C_IN, L), jnp.float32)
        wild = jnp.concatenate([wild, zeros], axis=0)
        mut = jnp.concatenate([mut, zeros], axis=0)

    def tapify(x_bcl):
        # (B_pad, 15, 20) -> (L, B_pad, 48) bf16 with taps [prev | center | next | 0pad].
        x = jnp.transpose(x_bcl, (2, 0, 1))                 # (L, B_pad, 15)
        z = jnp.zeros((1, B_pad, C_IN), x.dtype)
        prev = jnp.concatenate([z, x[:-1]], axis=0)
        nxt = jnp.concatenate([x[1:], z], axis=0)
        zpad = jnp.zeros((L, B_pad, KTAP - 3 * C_IN), x.dtype)
        return jnp.concatenate([prev, x, nxt, zpad], axis=2).astype(bf16)

    xw = tapify(wild)                                       # (L, B_pad, 48) bf16
    xm = tapify(mut)
    flat = jnp.concatenate([wild.reshape(B_pad, C_IN * L),   # PyTorch flatten order
                            mut.reshape(B_pad, C_IN * L)], axis=1).astype(bf16)

    def conv_w(w, kpad=0):
        # PyTorch (Cout, Cin, K=3) -> fused-tap (3*Cin [+kpad], Cout) bf16,
        # rows ordered [tap x[l-1] | tap x[l] | tap x[l+1]].
        cout, cin, k = w.shape
        wr = jnp.transpose(w, (2, 1, 0)).reshape(k * cin, cout)
        if kpad:
            wr = jnp.concatenate([wr, jnp.zeros((kpad, cout), wr.dtype)], axis=0)
        return wr.astype(bf16)

    def bias(b):
        return b[None, :].astype(jnp.float32)

    kpad1 = KTAP - 3 * C_IN
    wc1w, wc1b = conv_w(params["wconv1_w"], kpad1), bias(params["wconv1_b"])
    wc2w, wc2b = conv_w(params["wconv2_w"]), bias(params["wconv2_b"])
    mc1w, mc1b = conv_w(params["mconv1_w"], kpad1), bias(params["mconv1_b"])
    mc2w, mc2b = conv_w(params["mconv2_w"]), bias(params["mconv2_b"])

    def split_reorder(W, Cc, Lr):
        # W: (2*Cc*Lr, N) acting on cat(flat_wild, flat_mut); PyTorch flat idx is
        # channel-major (c*Lr + l).  Reorder each half to the kernel's lane-concat
        # order (l*Cc + c) and return two (Lr*Cc, N) bf16 matrices.
        N = W.shape[1]
        half = Cc * Lr

        def reord(Wh):
            return (jnp.transpose(Wh.reshape(Cc, Lr, N), (1, 0, 2))
                    .reshape(Lr * Cc, N).astype(bf16))

        return reord(W[:half]), reord(W[half:])

    d1w = params["dense1_w"].astype(bf16)                        # (600, 256)
    d2ww, d2wm = split_reorder(params["dense2_w"], C, L)         # (2560, 256) each
    d3ww, d3wm = split_reorder(params["dense3_w"], C, L // 2)    # (1280, 256) each
    d1b, d2b, d3b = (bias(params["dense1_b"]), bias(params["dense2_b"]),
                     bias(params["dense3_b"]))
    d4w = params["dense4_w"].astype(bf16)                        # (768, 64)
    d4wa, d4wb, d4wc = d4w[:256], d4w[256:512], d4w[512:]
    d4b = bias(params["dense4_b"])
    rw = params["reg_w"].astype(jnp.float32)                     # (64, 1) tiny: keep f32
    rb = bias(params["reg_b"])                                   # (1, 1)

    args = (xw, xm, flat,
            wc1w, wc1b, wc2w, wc2b, mc1w, mc1b, mc2w, mc2b,
            d1w, d1b, d2ww, d2wm, d2b, d3ww, d3wm, d3b,
            d4wa, d4wb, d4wc, d4b, rw, rb)

    # Weights map to block (0,...) every grid step, so Pallas DMAs them only once.
    # TODO(synk): pipeline_mode=pl.Buffered(1) on the weight specs would drop the
    # second (unused) weight buffer (~4.6 MB bf16); left off for lowering safety.
    def wspec(a):
        nd = a.ndim
        return pl.BlockSpec(a.shape, lambda b, nd=nd: (0,) * nd)

    in_specs = [pl.BlockSpec((L, TB, KTAP), lambda b: (0, b, 0)),
                pl.BlockSpec((L, TB, KTAP), lambda b: (0, b, 0)),
                pl.BlockSpec((TB, 2 * C_IN * L), lambda b: (b, 0))]
    in_specs += [wspec(a) for a in args[3:]]

    out = pl.pallas_call(
        _net1_kernel,
        out_shape=jax.ShapeDtypeStruct((B_pad, 1), jnp.float32),
        grid=(B_pad // TB,),
        in_specs=in_specs,
        out_specs=pl.BlockSpec((TB, 1), lambda b: (b, 0)),
        scratch_shapes=[pltpu.VMEM((L, TB, 3 * C), jnp.bfloat16)],   # conv2 tap slabs
        compiler_params=pltpu.CompilerParams(
            dimension_semantics=("parallel",),
            vmem_limit_bytes=40 * 1024 * 1024),
    )(*args)
    return out[:B]


# ----------------------------------------------------------------------------
# Deterministic parameter init (PyTorch default-style U(-1/sqrt(fan_in), ...))
# ----------------------------------------------------------------------------
def init_params(key):
    keys = iter(jax.random.split(key, 32))

    def u(shape, fan_in):
        bound = 1.0 / (fan_in ** 0.5)
        return jax.random.uniform(next(keys), shape, jnp.float32, -bound, bound)

    p = {}
    p["wconv1_w"] = u((128, 15, 3), 45);    p["wconv1_b"] = u((128,), 45)
    p["wconv2_w"] = u((128, 128, 3), 384);  p["wconv2_b"] = u((128,), 384)
    p["mconv1_w"] = u((128, 15, 3), 45);    p["mconv1_b"] = u((128,), 45)
    p["mconv2_w"] = u((128, 128, 3), 384);  p["mconv2_b"] = u((128,), 384)
    p["dense1_w"] = u((600, 256), 600);     p["dense1_b"] = u((256,), 600)
    p["dense2_w"] = u((5120, 256), 5120);   p["dense2_b"] = u((256,), 5120)
    p["dense3_w"] = u((2560, 256), 2560);   p["dense3_b"] = u((256,), 2560)
    p["dense4_w"] = u((768, 64), 768);      p["dense4_b"] = u((64,), 768)
    p["reg_w"] = u((64, 1), 64);            p["reg_b"] = u((1,), 64)
    return p


# ----------------------------------------------------------------------------
# Pure-JAX reference (mirrors the PyTorch forward exactly, NCW layout, f32)
# ----------------------------------------------------------------------------
def net1_reference(params, wild, mut):
    def conv_relu(x, w, b):
        y = jax.lax.conv_general_dilated(
            x, w, window_strides=(1,), padding=((1, 1),),
            dimension_numbers=("NCH", "OIH", "NCH"))
        return jnp.maximum(y + b[None, :, None], 0.0)

    def maxpool2(x):
        B, Cc, Ll = x.shape
        return x.reshape(B, Cc, Ll // 2, 2).max(axis=-1)

    w1 = conv_relu(wild, params["wconv1_w"], params["wconv1_b"])
    w2 = maxpool2(conv_relu(w1, params["wconv2_w"], params["wconv2_b"]))
    m1 = conv_relu(mut, params["mconv1_w"], params["mconv1_b"])
    m2 = maxpool2(conv_relu(m1, params["mconv2_w"], params["mconv2_b"]))

    B = wild.shape[0]
    flat = lambda a: a.reshape(B, -1)
    cat1 = jnp.concatenate([flat(wild), flat(mut)], 1)
    cat2 = jnp.concatenate([flat(w1), flat(m1)], 1)
    cat3 = jnp.concatenate([flat(w2), flat(m2)], 1)
    fc1 = jnp.maximum(cat1 @ params["dense1_w"] + params["dense1_b"], 0.0)
    fc2 = jnp.maximum(cat2 @ params["dense2_w"] + params["dense2_b"], 0.0)
    fc3 = jnp.maximum(cat3 @ params["dense3_w"] + params["dense3_b"], 0.0)
    feat = jnp.concatenate([fc1, fc2, fc3], 1) @ params["dense4_w"] + params["dense4_b"]
    pred = feat @ params["reg_w"] + params["reg_b"]
    return pred / (1.0 + jnp.abs(pred))


if __name__ == "__main__":
    # TODO(synk): training utilities (MSELoss / run_batch pickle loading /
    # train_loop / validate) are host-side orchestration, not kernel work.
    key = jax.random.PRNGKey(0)
    pkey, wkey, mkey = jax.random.split(key, 3)
    params = init_params(pkey)

    B = 2
    wild_enc = jax.random.normal(wkey, (B, 15, 20), jnp.float32)     # (B, C=15, L=20)
    mutant_enc = jax.random.normal(mkey, (B, 15, 20), jnp.float32)

    out = net1_forward(params, wild_enc, mutant_enc)
    out = jax.block_until_ready(out)

    ref = net1_reference(params, wild_enc, mutant_enc)
    assert out.shape == (B, 1)
    max_err = float(jnp.max(jnp.abs(out - ref)))
    # bf16 MXU operands (f32 accumulation) loosen the tolerance vs the f32 reference.
    assert max_err < 2e-2, f"kernel/reference mismatch: {max_err}"
    print("KERNEL_OK")
</pallas_src>

<mosaic_0001>
module attributes {stable_mosaic.version = 11 : i64} {
  func.func @_net1_kernel(%arg0: i32, %arg1: memref<20x8x48xbf16, #tpu.memory_space<vmem>>, %arg2: memref<20x8x48xbf16, #tpu.memory_space<vmem>>, %arg3: memref<8x600xbf16, #tpu.memory_space<vmem>>, %arg4: memref<48x128xbf16, #tpu.memory_space<vmem>>, %arg5: memref<1x128xf32, #tpu.memory_space<vmem>>, %arg6: memref<384x128xbf16, #tpu.memory_space<vmem>>, %arg7: memref<1x128xf32, #tpu.memory_space<vmem>>, %arg8: memref<48x128xbf16, #tpu.memory_space<vmem>>, %arg9: memref<1x128xf32, #tpu.memory_space<vmem>>, %arg10: memref<384x128xbf16, #tpu.memory_space<vmem>>, %arg11: memref<1x128xf32, #tpu.memory_space<vmem>>, %arg12: memref<600x256xbf16, #tpu.memory_space<vmem>>, %arg13: memref<1x256xf32, #tpu.memory_space<vmem>>, %arg14: memref<2560x256xbf16, #tpu.memory_space<vmem>>, %arg15: memref<2560x256xbf16, #tpu.memory_space<vmem>>, %arg16: memref<1x256xf32, #tpu.memory_space<vmem>>, %arg17: memref<1280x256xbf16, #tpu.memory_space<vmem>>, %arg18: memref<1280x256xbf16, #tpu.memory_space<vmem>>, %arg19: memref<1x256xf32, #tpu.memory_space<vmem>>, %arg20: memref<256x64xbf16, #tpu.memory_space<vmem>>, %arg21: memref<256x64xbf16, #tpu.memory_space<vmem>>, %arg22: memref<256x64xbf16, #tpu.memory_space<vmem>>, %arg23: memref<1x64xf32, #tpu.memory_space<vmem>>, %arg24: memref<64x1xf32, #tpu.memory_space<vmem>>, %arg25: memref<1x1xf32, #tpu.memory_space<vmem>>, %arg26: memref<8x1xf32, #tpu.memory_space<vmem>>, %arg27: memref<20x8x384xbf16, #tpu.memory_space<vmem>>) attributes {dimension_semantics = [#tpu.dimension_semantics<parallel>], iteration_bounds = array<i64: 1>, scalar_prefetch = 0 : i64, scratch_operands = 1 : i64, tpu.core_type = #tpu.core_type<tc>, window_params = [{transform_indices = @transform_0, window_bounds = array<i64: 20, 8, 48>}, {transform_indices = @transform_1, window_bounds = array<i64: 20, 8, 48>}, {transform_indices = @transform_2, window_bounds = array<i64: 8, 600>}, {pipeline_mode = #tpu.pipeline_mode<synchronous>, transform_indices = @transform_3, window_bounds = array<i64: 48, 128>}, {pipeline_mode = #tpu.pipeline_mode<synchronous>, transform_indices = @transform_4, window_bounds = array<i64: 1, 128>}, {pipeline_mode = #tpu.pipeline_mode<synchronous>, transform_indices = @transform_5, window_bounds = array<i64: 384, 128>}, {pipeline_mode = #tpu.pipeline_mode<synchronous>, transform_indices = @transform_6, window_bounds = array<i64: 1, 128>}, {pipeline_mode = #tpu.pipeline_mode<synchronous>, transform_indices = @transform_7, window_bounds = array<i64: 48, 128>}, {pipeline_mode = #tpu.pipeline_mode<synchronous>, transform_indices = @transform_8, window_bounds = array<i64: 1, 128>}, {pipeline_mode = #tpu.pipeline_mode<synchronous>, transform_indices = @transform_9, window_bounds = array<i64: 384, 128>}, {pipeline_mode = #tpu.pipeline_mode<synchronous>, transform_indices = @transform_10, window_bounds = array<i64: 1, 128>}, {pipeline_mode = #tpu.pipeline_mode<synchronous>, transform_indices = @transform_11, window_bounds = array<i64: 600, 256>}, {pipeline_mode = #tpu.pipeline_mode<synchronous>, transform_indices = @transform_12, window_bounds = array<i64: 1, 256>}, {pipeline_mode = #tpu.pipeline_mode<synchronous>, transform_indices = @transform_13, window_bounds = array<i64: 2560, 256>}, {pipeline_mode = #tpu.pipeline_mode<synchronous>, transform_indices = @transform_14, window_bounds = array<i64: 2560, 256>}, {pipeline_mode = #tpu.pipeline_mode<synchronous>, transform_indices = @transform_15, window_bounds = array<i64: 1, 256>}, {pipeline_mode = #tpu.pipeline_mode<synchronous>, transform_indices = @transform_16, window_bounds = array<i64: 1280, 256>}, {pipeline_mode = #tpu.pipeline_mode<synchronous>, transform_indices = @transform_17, window_bounds = array<i64: 1280, 256>}, {pipeline_mode = #tpu.pipeline_mode<synchronous>, transform_indices = @transform_18, window_bounds = array<i64: 1, 256>}, {pipeline_mode = #tpu.pipeline_mode<synchronous>, transform_indices = @transform_19, window_bounds = array<i64: 256, 64>}, {pipeline_mode = #tpu.pipeline_mode<synchronous>, transform_indices = @transform_20, window_bounds = array<i64: 256, 64>}, {pipeline_mode = #tpu.pipeline_mode<synchronous>, transform_indices = @transform_21, window_bounds = array<i64: 256, 64>}, {pipeline_mode = #tpu.pipeline_mode<synchronous>, transform_indices = @transform_22, window_bounds = array<i64: 1, 64>}, {pipeline_mode = #tpu.pipeline_mode<synchronous>, transform_indices = @transform_23, window_bounds = array<i64: 64, 1>}, {pipeline_mode = #tpu.pipeline_mode<synchronous>, transform_indices = @transform_24, window_bounds = array<i64: 1, 1>}, {transform_indices = @transform_25, window_bounds = array<i64: 8, 1>}]} {
    %c0 = arith.constant 0 : index
    %c0_0 = arith.constant 0 : index
    %c0_1 = arith.constant 0 : index
    %0 = vector.load %arg1[%c0, %c0_0, %c0_1] : memref<20x8x48xbf16, #tpu.memory_space<vmem>>, vector<20x8x48xbf16>
    %1 = vector.shape_cast %0 : vector<20x8x48xbf16> to vector<160x48xbf16>
    %c0_2 = arith.constant 0 : index
    %c0_3 = arith.constant 0 : index
    %2 = vector.load %arg4[%c0_2, %c0_3] : memref<48x128xbf16, #tpu.memory_space<vmem>>, vector<48x128xbf16>
    %cst = arith.constant dense<0.000000e+00> : vector<160x128xf32>
    %3 = tpu.matmul %1, %2, %cst {dimension_numbers = #tpu.dot_dimension_numbers<[1], [0], [0], [1], [0, 0, 1, 1], [], []>} : vector<160x48xbf16>, vector<48x128xbf16>, vector<160x128xf32> -> vector<160x128xf32>
    %c0_4 = arith.constant 0 : index
    %c0_5 = arith.constant 0 : index
    %4 = vector.load %arg5[%c0_4, %c0_5] : memref<1x128xf32, #tpu.memory_space<vmem>>, vector<1x128xf32>
    %5 = vector.broadcast %4 : vector<1x128xf32> to vector<160x128xf32>
    %6 = arith.addf %3, %5 : vector<160x128xf32>
    %cst_6 = arith.constant 0.000000e+00 : f32
    %7 = vector.broadcast %cst_6 : f32 to vector<160x128xf32>
    %8 = arith.maximumf %6, %7 : vector<160x128xf32>
    %9 = arith.truncf %8 : vector<160x128xf32> to vector<160x128xbf16>
    %10 = vector.shape_cast %9 : vector<160x128xbf16> to vector<20x8x128xbf16>
    %c0_7 = arith.constant 0 : index
    %c0_8 = arith.constant 0 : index
    %c0_9 = arith.constant 0 : index
    %11 = vector.load %arg2[%c0_7, %c0_8, %c0_9] : memref<20x8x48xbf16, #tpu.memory_space<vmem>>, vector<20x8x48xbf16>
    %12 = vector.shape_cast %11 : vector<20x8x48xbf16> to vector<160x48xbf16>
    %c0_10 = arith.constant 0 : index
    %c0_11 = arith.constant 0 : index
    %13 = vector.load %arg8[%c0_10, %c0_11] : memref<48x128xbf16, #tpu.memory_space<vmem>>, vector<48x128xbf16>
    %cst_12 = arith.constant dense<0.000000e+00> : vector<160x128xf32>
    %14 = tpu.matmul %12, %13, %cst_12 {dimension_numbers = #tpu.dot_dimension_numbers<[1], [0], [0], [1], [0, 0, 1, 1], [], []>} : vector<160x48xbf16>, vector<48x128xbf16>, vector<160x128xf32> -> vector<160x128xf32>
    %c0_13 = arith.constant 0 : index
    %c0_14 = arith.constant 0 : index
    %15 = vector.load %arg9[%c0_13, %c0_14] : memref<1x128xf32, #tpu.memory_space<vmem>>, vector<1x128xf32>
    %16 = vector.broadcast %15 : vector<1x128xf32> to vector<160x128xf32>
    %17 = arith.addf %14, %16 : vector<160x128xf32>
    %cst_15 = arith.constant 0.000000e+00 : f32
    %18 = vector.broadcast %cst_15 : f32 to vector<160x128xf32>
    %19 = arith.maximumf %17, %18 : vector<160x128xf32>
    %20 = arith.truncf %19 : vector<160x128xf32> to vector<160x128xbf16>
    %21 = vector.shape_cast %20 : vector<160x128xbf16> to vector<20x8x128xbf16>
    %cst_16 = arith.constant 0.000000e+00 : bf16
    %22 = vector.broadcast %cst_16 : bf16 to vector<8x128xbf16>
    %c0_17 = arith.constant 0 : index
    %c0_18 = arith.constant 0 : index
    %c128 = arith.constant 128 : index
    %23 = vector.load %arg27[%c0_17, %c0_18, %c128] : memref<20x8x384xbf16, #tpu.memory_space<vmem>>, vector<20x8x128xbf16>
    tpu.vector_store %arg27[%c0_17, %c0_18, %c128], %10 {strides = array<i32>} : memref<20x8x384xbf16, #tpu.memory_space<vmem>>, vector<20x8x128xbf16>,
    %c0_19 = arith.constant 0 : index
    %c0_20 = arith.constant 0 : index
    %c0_21 = arith.constant 0 : index
    %24 = vector.load %arg27[%c0_19, %c0_20, %c0_21] : memref<20x8x384xbf16, #tpu.memory_space<vmem>>, vector<1x8x128xbf16>
    %25 = vector.shape_cast %24 : vector<1x8x128xbf16> to vector<8x128xbf16>
    %26 = vector.shape_cast %22 : vector<8x128xbf16> to vector<1x8x128xbf16>
    tpu.vector_store %arg27[%c0_19, %c0_20, %c0_21], %26 {strides = array<i32>} : memref<20x8x384xbf16, #tpu.memory_space<vmem>>, vector<1x8x128xbf16>,
    %27 = vector.extract_strided_slice %10 {offsets = [0, 0, 0], sizes = [19, 8, 128], strides = [1, 1, 1]} : vector<20x8x128xbf16> to vector<19x8x128xbf16>
    %c1 = arith.constant 1 : index
    %c0_22 = arith.constant 0 : index
    %c0_23 = arith.constant 0 : index
    %28 = vector.load %arg27[%c1, %c0_22, %c0_23] : memref<20x8x384xbf16, #tpu.memory_space<vmem>>, vector<19x8x128xbf16>
    tpu.vector_store %arg27[%c1, %c0_22, %c0_23], %27 {strides = array<i32>} : memref<20x8x384xbf16, #tpu.memory_space<vmem>>, vector<19x8x128xbf16>,
    %c19 = arith.constant 19 : index
    %c0_24 = arith.constant 0 : index
    %c256 = arith.constant 256 : index
    %29 = vector.load %arg27[%c19, %c0_24, %c256] : memref<20x8x384xbf16, #tpu.memory_space<vmem>>, vector<1x8x128xbf16>
    %30 = vector.shape_cast %29 : vector<1x8x128xbf16> to vector<8x128xbf16>
    %31 = vector.shape_cast %22 : vector<8x128xbf16> to vector<1x8x128xbf16>
    tpu.vector_store %arg27[%c19, %c0_24, %c256], %31 {strides = array<i32>} : memref<20x8x384xbf16, #tpu.memory_space<vmem>>, vector<1x8x128xbf16>,
    %32 = vector.extract_strided_slice %10 {offsets = [1, 0, 0], sizes = [19, 8, 128], strides = [1, 1, 1]} : vector<20x8x128xbf16> to vector<19x8x128xbf16>
    %c0_25 = arith.constant 0 : index
    %c0_26 = arith.constant 0 : index
    %c256_27 = arith.constant 256 : index
    %33 = vector.load %arg27[%c0_25, %c0_26, %c256_27] : memref<20x8x384xbf16, #tpu.memory_space<vmem>>, vector<19x8x128xbf16>
    tpu.vector_store %arg27[%c0_25, %c0_26, %c256_27], %32 {strides = array<i32>} : memref<20x8x384xbf16, #tpu.memory_space<vmem>>, vector<19x8x128xbf16>,
    %c0_28 = arith.constant 0 : index
    %c0_29 = arith.constant 0 : index
    %c0_30 = arith.constant 0 : index
    %34 = vector.load %arg27[%c0_28, %c0_29, %c0_30] : memref<20x8x384xbf16, #tpu.memory_space<vmem>>, vector<20x8x384xbf16>
    %35 = vector.shape_cast %34 : vector<20x8x384xbf16> to vector<160x384xbf16>
    %c0_31 = arith.constant 0 : index
    %c0_32 = arith.constant 0 : index
    %36 = vector.load %arg6[%c0_31, %c0_32] : memref<384x128xbf16, #tpu.memory_space<vmem>>, vector<384x128xbf16>
    %cst_33 = arith.constant dense<0.000000e+00> : vector<160x128xf32>
    %37 = tpu.matmul %35, %36, %cst_33 {dimension_numbers = #tpu.dot_dimension_numbers<[1], [0], [0], [1], [0, 0, 1, 1], [], []>} : vector<160x384xbf16>, vector<384x128xbf16>, vector<160x128xf32> -> vector<160x128xf32>
    %c0_34 = arith.constant 0 : index
    %c0_35 = arith.constant 0 : index
    %38 = vector.load %arg7[%c0_34, %c0_35] : memref<1x128xf32, #tpu.memory_space<vmem>>, vector<1x128xf32>
    %39 = vector.broadcast %38 : vector<1x128xf32> to vector<160x128xf32>
    %40 = arith.addf %37, %39 : vector<160x128xf32>
    %cst_36 = arith.constant 0.000000e+00 : f32
    %41 = vector.broadcast %cst_36 : f32 to vector<160x128xf32>
    %42 = arith.maximumf %40, %41 : vector<160x128xf32>
    %43 = arith.truncf %42 : vector<160x128xf32> to vector<160x128xbf16>
    %44 = vector.shape_cast %43 : vector<160x128xbf16> to vector<20x8x128xbf16>
    %cst_37 = arith.constant 0.000000e+00 : bf16
    %45 = vector.broadcast %cst_37 : bf16 to vector<8x128xbf16>
    %c0_38 = arith.constant 0 : index
    %c0_39 = arith.constant 0 : index
    %c128_40 = arith.constant 128 : index
    %46 = vector.load %arg27[%c0_38, %c0_39, %c128_40] : memref<20x8x384xbf16, #tpu.memory_space<vmem>>, vector<20x8x128xbf16>
    tpu.vector_store %arg27[%c0_38, %c0_39, %c128_40], %21 {strides = array<i32>} : memref<20x8x384xbf16, #tpu.memory_space<vmem>>, vector<20x8x128xbf16>,
    %c0_41 = arith.constant 0 : index
    %c0_42 = arith.constant 0 : index
    %c0_43 = arith.constant 0 : index
    %47 = vector.load %arg27[%c0_41, %c0_42, %c0_43] : memref<20x8x384xbf16, #tpu.memory_space<vmem>>, vector<1x8x128xbf16>
    %48 = vector.shape_cast %47 : vector<1x8x128xbf16> to vector<8x128xbf16>
    %49 = vector.shape_cast %45 : vector<8x128xbf16> to vector<1x8x128xbf16>
    tpu.vector_store %arg27[%c0_41, %c0_42, %c0_43], %49 {strides = array<i32>} : memref<20x8x384xbf16, #tpu.memory_space<vmem>>, vector<1x8x128xbf16>,
    %50 = vector.extract_strided_slice %21 {offsets = [0, 0, 0], sizes = [19, 8, 128], strides = [1, 1, 1]} : vector<20x8x128xbf16> to vector<19x8x128xbf16>
    %c1_44 = arith.constant 1 : index
    %c0_45 = arith.constant 0 : index
    %c0_46 = arith.constant 0 : index
    %51 = vector.load %arg27[%c1_44, %c0_45, %c0_46] : memref<20x8x384xbf16, #tpu.memory_space<vmem>>, vector<19x8x128xbf16>
    tpu.vector_store %arg27[%c1_44, %c0_45, %c0_46], %50 {strides = array<i32>} : memref<20x8x384xbf16, #tpu.memory_space<vmem>>, vector<19x8x128xbf16>,
    %c19_47 = arith.constant 19 : index
    %c0_48 = arith.constant 0 : index
    %c256_49 = arith.constant 256 : index
    %52 = vector.load %arg27[%c19_47, %c0_48, %c256_49] : memref<20x8x384xbf16, #tpu.memory_space<vmem>>, vector<1x8x128xbf16>
    %53 = vector.shape_cast %52 : vector<1x8x128xbf16> to vector<8x128xbf16>
    %54 = vector.shape_cast %45 : vector<8x128xbf16> to vector<1x8x128xbf16>
    tpu.vector_store %arg27[%c19_47, %c0_48, %c256_49], %54 {strides = array<i32>} : memref<20x8x384xbf16, #tpu.memory_space<vmem>>, vector<1x8x128xbf16>,
    %55 = vector.extract_strided_slice %21 {offsets = [1, 0, 0], sizes = [19, 8, 128], strides = [1, 1, 1]} : vector<20x8x128xbf16> to vector<19x8x128xbf16>
    %c0_50 = arith.constant 0 : index
    %c0_51 = arith.constant 0 : index
    %c256_52 = arith.constant 256 : index
    %56 = vector.load %arg27[%c0_50, %c0_51, %c256_52] : memref<20x8x384xbf16, #tpu.memory_space<vmem>>, vector<19x8x128xbf16>
    tpu.vector_store %arg27[%c0_50, %c0_51, %c256_52], %55 {strides = array<i32>} : memref<20x8x384xbf16, #tpu.memory_space<vmem>>, vector<19x8x128xbf16>,
    %c0_53 = arith.constant 0 : index
    %c0_54 = arith.constant 0 : index
    %c0_55 = arith.constant 0 : index
    %57 = vector.load %arg27[%c0_53, %c0_54, %c0_55] : memref<20x8x384xbf16, #tpu.memory_space<vmem>>, vector<20x8x384xbf16>
    %58 = vector.shape_cast %57 : vector<20x8x384xbf16> to vector<160x384xbf16>
    %c0_56 = arith.constant 0 : index
    %c0_57 = arith.constant 0 : index
    %59 = vector.load %arg10[%c0_56, %c0_57] : memref<384x128xbf16, #tpu.memory_space<vmem>>, vector<384x128xbf16>
    %cst_58 = arith.constant dense<0.000000e+00> : vector<160x128xf32>
    %60 = tpu.matmul %58, %59, %cst_58 {dimension_numbers = #tpu.dot_dimension_numbers<[1], [0], [0], [1], [0, 0, 1, 1], [], []>} : vector<160x384xbf16>, vector<384x128xbf16>, vector<160x128xf32> -> vector<160x128xf32>
    %c0_59 = arith.constant 0 : index
    %c0_60 = arith.constant 0 : index
    %61 = vector.load %arg11[%c0_59, %c0_60] : memref<1x128xf32, #tpu.memory_space<vmem>>, vector<1x128xf32>
    %62 = vector.broadcast %61 : vector<1x128xf32> to vector<160x128xf32>
    %63 = arith.addf %60, %62 : vector<160x128xf32>
    %cst_61 = arith.constant 0.000000e+00 : f32
    %64 = vector.broadcast %cst_61 : f32 to vector<160x128xf32>
    %65 = arith.maximumf %63, %64 : vector<160x128xf32>
    %66 = arith.truncf %65 : vector<160x128xf32> to vector<160x128xbf16>
    %67 = vector.shape_cast %66 : vector<160x128xbf16> to vector<20x8x128xbf16>
    %c0_62 = arith.constant 0 : index
    %c0_63 = arith.constant 0 : index
    %68 = vector.load %arg3[%c0_62, %c0_63] : memref<8x600xbf16, #tpu.memory_space<vmem>>, vector<8x600xbf16>
    %c0_64 = arith.constant 0 : index
    %c0_65 = arith.constant 0 : index
    %69 = vector.load %arg12[%c0_64, %c0_65] : memref<600x256xbf16, #tpu.memory_space<vmem>>, vector<600x256xbf16>
    %cst_66 = arith.constant dense<0.000000e+00> : vector<8x256xf32>
    %70 = tpu.matmul %68, %69, %cst_66 {dimension_numbers = #tpu.dot_dimension_numbers<[1], [0], [0], [1], [0, 0, 1, 1], [], []>} : vector<8x600xbf16>, vector<600x256xbf16>, vector<8x256xf32> -> vector<8x256xf32>
    %c0_67 = arith.constant 0 : index
    %c0_68 = arith.constant 0 : index
    %71 = vector.load %arg13[%c0_67, %c0_68] : memref<1x256xf32, #tpu.memory_space<vmem>>, vector<1x256xf32>
    %72 = vector.broadcast %71 : vector<1x256xf32> to vector<8x256xf32>
    %73 = arith.addf %70, %72 : vector<8x256xf32>
    %cst_69 = arith.constant 0.000000e+00 : f32
    %74 = vector.broadcast %cst_69 : f32 to vector<8x256xf32>
    %75 = arith.maximumf %73, %74 : vector<8x256xf32>
    %76 = vector.extract_strided_slice %10 {offsets = [0, 0, 0], sizes = [1, 8, 128], strides = [1, 1, 1]} : vector<20x8x128xbf16> to vector<1x8x128xbf16>
    %77 = vector.shape_cast %76 : vector<1x8x128xbf16> to vector<8x128xbf16>
    %78 = vector.extract_strided_slice %10 {offsets = [1, 0, 0], sizes = [1, 8, 128], strides = [1, 1, 1]} : vector<20x8x128xbf16> to vector<1x8x128xbf16>
    %79 = vector.shape_cast %78 : vector<1x8x128xbf16> to vector<8x128xbf16>
    %80 = vector.extract_strided_slice %10 {offsets = [2, 0, 0], sizes = [1, 8, 128], strides = [1, 1, 1]} : vector<20x8x128xbf16> to vector<1x8x128xbf16>
    %81 = vector.shape_cast %80 : vector<1x8x128xbf16> to vector<8x128xbf16>
    %82 = vector.extract_strided_slice %10 {offsets = [3, 0, 0], sizes = [1, 8, 128], strides = [1, 1, 1]} : vector<20x8x128xbf16> to vector<1x8x128xbf16>
    %83 = vector.shape_cast %82 : vector<1x8x128xbf16> to vector<8x128xbf16>
    %84 = vector.extract_strided_slice %10 {offsets = [4, 0, 0], sizes = [1, 8, 128], strides = [1, 1, 1]} : vector<20x8x128xbf16> to vector<1x8x128xbf16>
    %85 = vector.shape_cast %84 : vector<1x8x128xbf16> to vector<8x128xbf16>
    %86 = vector.extract_strided_slice %10 {offsets = [5, 0, 0], sizes = [1, 8, 128], strides = [1, 1, 1]} : vector<20x8x128xbf16> to vector<1x8x128xbf16>
    %87 = vector.shape_cast %86 : vector<1x8x128xbf16> to vector<8x128xbf16>
    %88 = vector.extract_strided_slice %10 {offsets = [6, 0, 0], sizes = [1, 8, 128], strides = [1, 1, 1]} : vector<20x8x128xbf16> to vector<1x8x128xbf16>
    %89 = vector.shape_cast %88 : vector<1x8x128xbf16> to vector<8x128xbf16>
    %90 = vector.extract_strided_slice %10 {offsets = [7, 0, 0], sizes = [1, 8, 128], strides = [1, 1, 1]} : vector<20x8x128xbf16> to vector<1x8x128xbf16>
    %91 = vector.shape_cast %90 : vector<1x8x128xbf16> to vector<8x128xbf16>
    %92 = vector.extract_strided_slice %10 {offsets = [8, 0, 0], sizes = [1, 8, 128], strides = [1, 1, 1]} : vector<20x8x128xbf16> to vector<1x8x128xbf16>
    %93 = vector.shape_cast %92 : vector<1x8x128xbf16> to vector<8x128xbf16>
    %94 = vector.extract_strided_slice %10 {offsets = [9, 0, 0], sizes = [1, 8, 128], strides = [1, 1, 1]} : vector<20x8x128xbf16> to vector<1x8x128xbf16>
    %95 = vector.shape_cast %94 : vector<1x8x128xbf16> to vector<8x128xbf16>
    %96 = vector.extract_strided_slice %10 {offsets = [10, 0, 0], sizes = [1, 8, 128], strides = [1, 1, 1]} : vector<20x8x128xbf16> to vector<1x8x128xbf16>
    %97 = vector.shape_cast %96 : vector<1x8x128xbf16> to vector<8x128xbf16>
    %98 = vector.extract_strided_slice %10 {offsets = [11, 0, 0], sizes = [1, 8, 128], strides = [1, 1, 1]} : vector<20x8x128xbf16> to vector<1x8x128xbf16>
    %99 = vector.shape_cast %98 : vector<1x8x128xbf16> to vector<8x128xbf16>
    %100 = vector.extract_strided_slice %10 {offsets = [12, 0, 0], sizes = [1, 8, 128], strides = [1, 1, 1]} : vector<20x8x128xbf16> to vector<1x8x128xbf16>
    %101 = vector.shape_cast %100 : vector<1x8x128xbf16> to vector<8x128xbf16>
    %102 = vector.extract_strided_slice %10 {offsets = [13, 0, 0], sizes = [1, 8, 128], strides = [1, 1, 1]} : vector<20x8x128xbf16> to vector<1x8x128xbf16>
    %103 = vector.shape_cast %102 : vector<1x8x128xbf16> to vector<8x128xbf16>
    %104 = vector.extract_strided_slice %10 {offsets = [14, 0, 0], sizes = [1, 8, 128], strides = [1, 1, 1]} : vector<20x8x128xbf16> to vector<1x8x128xbf16>
    %105 = vector.shape_cast %104 : vector<1x8x128xbf16> to vector<8x128xbf16>
    %106 = vector.extract_strided_slice %10 {offsets = [15, 0, 0], sizes = [1, 8, 128], strides = [1, 1, 1]} : vector<20x8x128xbf16> to vector<1x8x128xbf16>
    %107 = vector.shape_cast %106 : vector<1x8x128xbf16> to vector<8x128xbf16>
    %108 = vector.extract_strided_slice %10 {offsets = [16, 0, 0], sizes = [1, 8, 128], strides = [1, 1, 1]} : vector<20x8x128xbf16> to vector<1x8x128xbf16>
    %109 = vector.shape_cast %108 : vector<1x8x128xbf16> to vector<8x128xbf16>
    %110 = vector.extract_strided_slice %10 {offsets = [17, 0, 0], sizes = [1, 8, 128], strides = [1, 1, 1]} : vector<20x8x128xbf16> to vector<1x8x128xbf16>
    %111 = vector.shape_cast %110 : vector<1x8x128xbf16> to vector<8x128xbf16>
    %112 = vector.extract_strided_slice %10 {offsets = [18, 0, 0], sizes = [1, 8, 128], strides = [1, 1, 1]} : vector<20x8x128xbf16> to vector<1x8x128xbf16>
    %113 = vector.shape_cast %112 : vector<1x8x128xbf16> to vector<8x128xbf16>
    %114 = vector.extract_strided_slice %10 {offsets = [19, 0, 0], sizes = [1, 8, 128], strides = [1, 1, 1]} : vector<20x8x128xbf16> to vector<1x8x128xbf16>
    %115 = vector.shape_cast %114 : vector<1x8x128xbf16> to vector<8x128xbf16>
    %116 = tpu.concatenate %77, %79, %81, %83, %85, %87, %89, %91, %93, %95, %97, %99, %101, %103, %105, %107 in 1 : vector<8x128xbf16>, vector<8x128xbf16>, vector<8x128xbf16>, vector<8x128xbf16>, vector<8x128xbf16>, vector<8x128xbf16>, vector<8x128xbf16>, vector<8x128xbf16>, vector<8x128xbf16>, vector<8x128xbf16>, vector<8x128xbf16>, vector<8x128xbf16>, vector<8x128xbf16>, vector<8x128xbf16>, vector<8x128xbf16>, vector<8x128xbf16> -> vector<8x2048xbf16>
    %117 = tpu.concatenate %109, %111, %113, %115 in 1 : vector<8x128xbf16>, vector<8x128xbf16>, vector<8x128xbf16>, vector<8x128xbf16> -> vector<8x512xbf16>
    %118 = tpu.concatenate %116, %117 in 1 : vector<8x2048xbf16>, vector<8x512xbf16> -> vector<8x2560xbf16>
    %c0_70 = arith.constant 0 : index
    %c0_71 = arith.constant 0 : index
    %119 = vector.load %arg14[%c0_70, %c0_71] : memref<2560x256xbf16, #tpu.memory_space<vmem>>, vector<2560x256xbf16>
    %cst_72 = arith.constant dense<0.000000e+00> : vector<8x256xf32>
    %120 = tpu.matmul %118, %119, %cst_72 {dimension_numbers = #tpu.dot_dimension_numbers<[1], [0], [0], [1], [0, 0, 1, 1], [], []>} : vector<8x2560xbf16>, vector<2560x256xbf16>, vector<8x256xf32> -> vector<8x256xf32>
    %121 = vector.extract_strided_slice %21 {offsets = [0, 0, 0], sizes = [1, 8, 128], strides = [1, 1, 1]} : vector<20x8x128xbf16> to vector<1x8x128xbf16>
    %122 = vector.shape_cast %121 : vector<1x8x128xbf16> to vector<8x128xbf16>
    %123 = vector.extract_strided_slice %21 {offsets = [1, 0, 0], sizes = [1, 8, 128], strides = [1, 1, 1]} : vector<20x8x128xbf16> to vector<1x8x128xbf16>
    %124 = vector.shape_cast %123 : vector<1x8x128xbf16> to vector<8x128xbf16>
    %125 = vector.extract_strided_slice %21 {offsets = [2, 0, 0], sizes = [1, 8, 128], strides = [1, 1, 1]} : vector<20x8x128xbf16> to vector<1x8x128xbf16>
    %126 = vector.shape_cast %125 : vector<1x8x128xbf16> to vector<8x128xbf16>
    %127 = vector.extract_strided_slice %21 {offsets = [3, 0, 0], sizes = [1, 8, 128], strides = [1, 1, 1]} : vector<20x8x128xbf16> to vector<1x8x128xbf16>
    %128 = vector.shape_cast %127 : vector<1x8x128xbf16> to vector<8x128xbf16>
    %129 = vector.extract_strided_slice %21 {offsets = [4, 0, 0], sizes = [1, 8, 128], strides = [1, 1, 1]} : vector<20x8x128xbf16> to vector<1x8x128xbf16>
    %130 = vector.shape_cast %129 : vector<1x8x128xbf16> to vector<8x128xbf16>
    %131 = vector.extract_strided_slice %21 {offsets = [5, 0, 0], sizes = [1, 8, 128], strides = [1, 1, 1]} : vector<20x8x128xbf16> to vector<1x8x128xbf16>
    %132 = vector.shape_cast %131 : vector<1x8x128xbf16> to vector<8x128xbf16>
    %133 = vector.extract_strided_slice %21 {offsets = [6, 0, 0], sizes = [1, 8, 128], strides = [1, 1, 1]} : vector<20x8x128xbf16> to vector<1x8x128xbf16>
    %134 = vector.shape_cast %133 : vector<1x8x128xbf16> to vector<8x128xbf16>
    %135 = vector.extract_strided_slice %21 {offsets = [7, 0, 0], sizes = [1, 8, 128], strides = [1, 1, 1]} : vector<20x8x128xbf16> to vector<1x8x128xbf16>
    %136 = vector.shape_cast %135 : vector<1x8x128xbf16> to vector<8x128xbf16>
    %137 = vector.extract_strided_slice %21 {offsets = [8, 0, 0], sizes = [1, 8, 128], strides = [1, 1, 1]} : vector<20x8x128xbf16> to vector<1x8x128xbf16>
    %138 = vector.shape_cast %137 : vector<1x8x128xbf16> to vector<8x128xbf16>
    %139 = vector.extract_strided_slice %21 {offsets = [9, 0, 0], sizes = [1, 8, 128], strides = [1, 1, 1]} : vector<20x8x128xbf16> to vector<1x8x128xbf16>
    %140 = vector.shape_cast %139 : vector<1x8x128xbf16> to vector<8x128xbf16>
    %141 = vector.extract_strided_slice %21 {offsets = [10, 0, 0], sizes = [1, 8, 128], strides = [1, 1, 1]} : vector<20x8x128xbf16> to vector<1x8x128xbf16>
    %142 = vector.shape_cast %141 : vector<1x8x128xbf16> to vector<8x128xbf16>
    %143 = vector.extract_strided_slice %21 {offsets = [11, 0, 0], sizes = [1, 8, 128], strides = [1, 1, 1]} : vector<20x8x128xbf16> to vector<1x8x128xbf16>
    %144 = vector.shape_cast %143 : vector<1x8x128xbf16> to vector<8x128xbf16>
    %145 = vector.extract_strided_slice %21 {offsets = [12, 0, 0], sizes = [1, 8, 128], strides = [1, 1, 1]} : vector<20x8x128xbf16> to vector<1x8x128xbf16>
    %146 = vector.shape_cast %145 : vector<1x8x128xbf16> to vector<8x128xbf16>
    %147 = vector.extract_strided_slice %21 {offsets = [13, 0, 0], sizes = [1, 8, 128], strides = [1, 1, 1]} : vector<20x8x128xbf16> to vector<1x8x128xbf16>
    %148 = vector.shape_cast %147 : vector<1x8x128xbf16> to vector<8x128xbf16>
    %149 = vector.extract_strided_slice %21 {offsets = [14, 0, 0], sizes = [1, 8, 128], strides = [1, 1, 1]} : vector<20x8x128xbf16> to vector<1x8x128xbf16>
    %150 = vector.shape_cast %149 : vector<1x8x128xbf16> to vector<8x128xbf16>
    %151 = vector.extract_strided_slice %21 {offsets = [15, 0, 0], sizes = [1, 8, 128], strides = [1, 1, 1]} : vector<20x8x128xbf16> to vector<1x8x128xbf16>
    %152 = vector.shape_cast %151 : vector<1x8x128xbf16> to vector<8x128xbf16>
    %153 = vector.extract_strided_slice %21 {offsets = [16, 0, 0], sizes = [1, 8, 128], strides = [1, 1, 1]} : vector<20x8x128xbf16> to vector<1x8x128xbf16>
    %154 = vector.shape_cast %153 : vector<1x8x128xbf16> to vector<8x128xbf16>
    %155 = vector.extract_strided_slice %21 {offsets = [17, 0, 0], sizes = [1, 8, 128], strides = [1, 1, 1]} : vector<20x8x128xbf16> to vector<1x8x128xbf16>
    %156 = vector.shape_cast %155 : vector<1x8x128xbf16> to vector<8x128xbf16>
    %157 = vector.extract_strided_slice %21 {offsets = [18, 0, 0], sizes = [1, 8, 128], strides = [1, 1, 1]} : vector<20x8x128xbf16> to vector<1x8x128xbf16>
    %158 = vector.shape_cast %157 : vector<1x8x128xbf16> to vector<8x128xbf16>
    %159 = vector.extract_strided_slice %21 {offsets = [19, 0, 0], sizes = [1, 8, 128], strides = [1, 1, 1]} : vector<20x8x128xbf16> to vector<1x8x128xbf16>
    %160 = vector.shape_cast %159 : vector<1x8x128xbf16> to vector<8x128xbf16>
    %161 = tpu.concatenate %122, %124, %126, %128, %130, %132, %134, %136, %138, %140, %142, %144, %146, %148, %150, %152 in 1 : vector<8x128xbf16>, vector<8x128xbf16>, vector<8x128xbf16>, vector<8x128xbf16>, vector<8x128xbf16>, vector<8x128xbf16>, vector<8x128xbf16>, vector<8x128xbf16>, vector<8x128xbf16>, vector<8x128xbf16>, vector<8x128xbf16>, vector<8x128xbf16>, vector<8x128xbf16>, vector<8x128xbf16>, vector<8x128xbf16>, vector<8x128xbf16> -> vector<8x2048xbf16>
    %162 = tpu.concatenate %154, %156, %158, %160 in 1 : vector<8x128xbf16>, vector<8x128xbf16>, vector<8x128xbf16>, vector<8x128xbf16> -> vector<8x512xbf16>
    %163 = tpu.concatenate %161, %162 in 1 : vector<8x2048xbf16>, vector<8x512xbf16> -> vector<8x2560xbf16>
    %c0_73 = arith.constant 0 : index
    %c0_74 = arith.constant 0 : index
    %164 = vector.load %arg15[%c0_73, %c0_74] : memref<2560x256xbf16, #tpu.memory_space<vmem>>, vector<2560x256xbf16>
    %cst_75 = arith.constant dense<0.000000e+00> : vector<8x256xf32>
    %165 = tpu.matmul %163, %164, %cst_75 {dimension_numbers = #tpu.dot_dimension_numbers<[1], [0], [0], [1], [0, 0, 1, 1], [], []>} : vector<8x2560xbf16>, vector<2560x256xbf16>, vector<8x256xf32> -> vector<8x256xf32>
    %166 = arith.addf %120, %165 : vector<8x256xf32>
    %c0_76 = arith.constant 0 : index
    %c0_77 = arith.constant 0 : index
    %167 = vector.load %arg16[%c0_76, %c0_77] : memref<1x256xf32, #tpu.memory_space<vmem>>, vector<1x256xf32>
    %168 = vector.broadcast %167 : vector<1x256xf32> to vector<8x256xf32>
    %169 = arith.addf %166, %168 : vector<8x256xf32>
    %cst_78 = arith.constant 0.000000e+00 : f32
    %170 = vector.broadcast %cst_78 : f32 to vector<8x256xf32>
    %171 = arith.maximumf %169, %170 : vector<8x256xf32>
    %172 = vector.extract_strided_slice %44 {offsets = [0, 0, 0], sizes = [1, 8, 128], strides = [1, 1, 1]} : vector<20x8x128xbf16> to vector<1x8x128xbf16>
    %173 = vector.shape_cast %172 : vector<1x8x128xbf16> to vector<8x128xbf16>
    %174 = vector.extract_strided_slice %44 {offsets = [1, 0, 0], sizes = [1, 8, 128], strides = [1, 1, 1]} : vector<20x8x128xbf16> to vector<1x8x128xbf16>
    %175 = vector.shape_cast %174 : vector<1x8x128xbf16> to vector<8x128xbf16>
    %176 = arith.maximumf %173, %175 : vector<8x128xbf16>
    %177 = vector.extract_strided_slice %44 {offsets = [2, 0, 0], sizes = [1, 8, 128], strides = [1, 1, 1]} : vector<20x8x128xbf16> to vector<1x8x128xbf16>
    %178 = vector.shape_cast %177 : vector<1x8x128xbf16> to vector<8x128xbf16>
    %179 = vector.extract_strided_slice %44 {offsets = [3, 0, 0], sizes = [1, 8, 128], strides = [1, 1, 1]} : vector<20x8x128xbf16> to vector<1x8x128xbf16>
    %180 = vector.shape_cast %179 : vector<1x8x128xbf16> to vector<8x128xbf16>
    %181 = arith.maximumf %178, %180 : vector<8x128xbf16>
    %182 = vector.extract_strided_slice %44 {offsets = [4, 0, 0], sizes = [1, 8, 128], strides = [1, 1, 1]} : vector<20x8x128xbf16> to vector<1x8x128xbf16>
    %183 = vector.shape_cast %182 : vector<1x8x128xbf16> to vector<8x128xbf16>
    %184 = vector.extract_strided_slice %44 {offsets = [5, 0, 0], sizes = [1, 8, 128], strides = [1, 1, 1]} : vector<20x8x128xbf16> to vector<1x8x128xbf16>
    %185 = vector.shape_cast %184 : vector<1x8x128xbf16> to vector<8x128xbf16>
    %186 = arith.maximumf %183, %185 : vector<8x128xbf16>
    %187 = vector.extract_strided_slice %44 {offsets = [6, 0, 0], sizes = [1, 8, 128], strides = [1, 1, 1]} : vector<20x8x128xbf16> to vector<1x8x128xbf16>
    %188 = vector.shape_cast %187 : vector<1x8x128xbf16> to vector<8x128xbf16>
    %189 = vector.extract_strided_slice %44 {offsets = [7, 0, 0], sizes = [1, 8, 128], strides = [1, 1, 1]} : vector<20x8x128xbf16> to vector<1x8x128xbf16>
    %190 = vector.shape_cast %189 : vector<1x8x128xbf16> to vector<8x128xbf16>
    %191 = arith.maximumf %188, %190 : vector<8x128xbf16>
    %192 = vector.extract_strided_slice %44 {offsets = [8, 0, 0], sizes = [1, 8, 128], strides = [1, 1, 1]} : vector<20x8x128xbf16> to vector<1x8x128xbf16>
    %193 = vector.shape_cast %192 : vector<1x8x128xbf16> to vector<8x128xbf16>
    %194 = vector.extract_strided_slice %44 {offsets = [9, 0, 0], sizes = [1, 8, 128], strides = [1, 1, 1]} : vector<20x8x128xbf16> to vector<1x8x128xbf16>
    %195 = vector.shape_cast %194 : vector<1x8x128xbf16> to vector<8x128xbf16>
    %196 = arith.maximumf %193, %195 : vector<8x128xbf16>
    %197 = vector.extract_strided_slice %44 {offsets = [10, 0, 0], sizes = [1, 8, 128], strides = [1, 1, 1]} : vector<20x8x128xbf16> to vector<1x8x128xbf16>
    %198 = vector.shape_cast %197 : vector<1x8x128xbf16> to vector<8x128xbf16>
    %199 = vector.extract_strided_slice %44 {offsets = [11, 0, 0], sizes = [1, 8, 128], strides = [1, 1, 1]} : vector<20x8x128xbf16> to vector<1x8x128xbf16>
    %200 = vector.shape_cast %199 : vector<1x8x128xbf16> to vector<8x128xbf16>
    %201 = arith.maximumf %198, %200 : vector<8x128xbf16>
    %202 = vector.extract_strided_slice %44 {offsets = [12, 0, 0], sizes = [1, 8, 128], strides = [1, 1, 1]} : vector<20x8x128xbf16> to vector<1x8x128xbf16>
    %203 = vector.shape_cast %202 : vector<1x8x128xbf16> to vector<8x128xbf16>
    %204 = vector.extract_strided_slice %44 {offsets = [13, 0, 0], sizes = [1, 8, 128], strides = [1, 1, 1]} : vector<20x8x128xbf16> to vector<1x8x128xbf16>
    %205 = vector.shape_cast %204 : vector<1x8x128xbf16> to vector<8x128xbf16>
    %206 = arith.maximumf %203, %205 : vector<8x128xbf16>
    %207 = vector.extract_strided_slice %44 {offsets = [14, 0, 0], sizes = [1, 8, 128], strides = [1, 1, 1]} : vector<20x8x128xbf16> to vector<1x8x128xbf16>
    %208 = vector.shape_cast %207 : vector<1x8x128xbf16> to vector<8x128xbf16>
    %209 = vector.extract_strided_slice %44 {offsets = [15, 0, 0], sizes = [1, 8, 128], strides = [1, 1, 1]} : vector<20x8x128xbf16> to vector<1x8x128xbf16>
    %210 = vector.shape_cast %209 : vector<1x8x128xbf16> to vector<8x128xbf16>
    %211 = arith.maximumf %208, %210 : vector<8x128xbf16>
    %212 = vector.extract_strided_slice %44 {offsets = [16, 0, 0], sizes = [1, 8, 128], strides = [1, 1, 1]} : vector<20x8x128xbf16> to vector<1x8x128xbf16>
    %213 = vector.shape_cast %212 : vector<1x8x128xbf16> to vector<8x128xbf16>
    %214 = vector.extract_strided_slice %44 {offsets = [17, 0, 0], sizes = [1, 8, 128], strides = [1, 1, 1]} : vector<20x8x128xbf16> to vector<1x8x128xbf16>
    %215 = vector.shape_cast %214 : vector<1x8x128xbf16> to vector<8x128xbf16>
    %216 = arith.maximumf %213, %215 : vector<8x128xbf16>
    %217 = vector.extract_strided_slice %44 {offsets = [18, 0, 0], sizes = [1, 8, 128], strides = [1, 1, 1]} : vector<20x8x128xbf16> to vector<1x8x128xbf16>
    %218 = vector.shape_cast %217 : vector<1x8x128xbf16> to vector<8x128xbf16>
    %219 = vector.extract_strided_slice %44 {offsets = [19, 0, 0], sizes = [1, 8, 128], strides = [1, 1, 1]} : vector<20x8x128xbf16> to vector<1x8x128xbf16>
    %220 = vector.shape_cast %219 : vector<1x8x128xbf16> to vector<8x128xbf16>
    %221 = arith.maximumf %218, %220 : vector<8x128xbf16>
    %222 = tpu.concatenate %176, %181, %186, %191, %196, %201, %206, %211, %216, %221 in 1 : vector<8x128xbf16>, vector<8x128xbf16>, vector<8x128xbf16>, vector<8x128xbf16>, vector<8x128xbf16>, vector<8x128xbf16>, vector<8x128xbf16>, vector<8x128xbf16>, vector<8x128xbf16>, vector<8x128xbf16> -> vector<8x1280xbf16>
    %c0_79 = arith.constant 0 : index
    %c0_80 = arith.constant 0 : index
    %223 = vector.load %arg17[%c0_79, %c0_80] : memref<1280x256xbf16, #tpu.memory_space<vmem>>, vector<1280x256xbf16>
    %cst_81 = arith.constant dense<0.000000e+00> : vector<8x256xf32>
    %224 = tpu.matmul %222, %223, %cst_81 {dimension_numbers = #tpu.dot_dimension_numbers<[1], [0], [0], [1], [0, 0, 1, 1], [], []>} : vector<8x1280xbf16>, vector<1280x256xbf16>, vector<8x256xf32> -> vector<8x256xf32>
    %225 = vector.extract_strided_slice %67 {offsets = [0, 0, 0], sizes = [1, 8, 128], strides = [1, 1, 1]} : vector<20x8x128xbf16> to vector<1x8x128xbf16>
    %226 = vector.shape_cast %225 : vector<1x8x128xbf16> to vector<8x128xbf16>
    %227 = vector.extract_strided_slice %67 {offsets = [1, 0, 0], sizes = [1, 8, 128], strides = [1, 1, 1]} : vector<20x8x128xbf16> to vector<1x8x128xbf16>
    %228 = vector.shape_cast %227 : vector<1x8x128xbf16> to vector<8x128xbf16>
    %229 = arith.maximumf %226, %228 : vector<8x128xbf16>
    %230 = vector.extract_strided_slice %67 {offsets = [2, 0, 0], sizes = [1, 8, 128], strides = [1, 1, 1]} : vector<20x8x128xbf16> to vector<1x8x128xbf16>
    %231 = vector.shape_cast %230 : vector<1x8x128xbf16> to vector<8x128xbf16>
    %232 = vector.extract_strided_slice %67 {offsets = [3, 0, 0], sizes = [1, 8, 128], strides = [1, 1, 1]} : vector<20x8x128xbf16> to vector<1x8x128xbf16>
    %233 = vector.shape_cast %232 : vector<1x8x128xbf16> to vector<8x128xbf16>
    %234 = arith.maximumf %231, %233 : vector<8x128xbf16>
    %235 = vector.extract_strided_slice %67 {offsets = [4, 0, 0], sizes = [1, 8, 128], strides = [1, 1, 1]} : vector<20x8x128xbf16> to vector<1x8x128xbf16>
    %236 = vector.shape_cast %235 : vector<1x8x128xbf16> to vector<8x128xbf16>
    %237 = vector.extract_strided_slice %67 {offsets = [5, 0, 0], sizes = [1, 8, 128], strides = [1, 1, 1]} : vector<20x8x128xbf16> to vector<1x8x128xbf16>
    %238 = vector.shape_cast %237 : vector<1x8x128xbf16> to vector<8x128xbf16>
    %239 = arith.maximumf %236, %238 : vector<8x128xbf16>
    %240 = vector.extract_strided_slice %67 {offsets = [6, 0, 0], sizes = [1, 8, 128], strides = [1, 1, 1]} : vector<20x8x128xbf16> to vector<1x8x128xbf16>
    %241 = vector.shape_cast %240 : vector<1x8x128xbf16> to vector<8x128xbf16>
    %242 = vector.extract_strided_slice %67 {offsets = [7, 0, 0], sizes = [1, 8, 128], strides = [1, 1, 1]} : vector<20x8x128xbf16> to vector<1x8x128xbf16>
    %243 = vector.shape_cast %242 : vector<1x8x128xbf16> to vector<8x128xbf16>
    %244 = arith.maximumf %241, %243 : vector<8x128xbf16>
    %245 = vector.extract_strided_slice %67 {offsets = [8, 0, 0], sizes = [1, 8, 128], strides = [1, 1, 1]} : vector<20x8x128xbf16> to vector<1x8x128xbf16>
    %246 = vector.shape_cast %245 : vector<1x8x128xbf16> to vector<8x128xbf16>
    %247 = vector.extract_strided_slice %67 {offsets = [9, 0, 0], sizes = [1, 8, 128], strides = [1, 1, 1]} : vector<20x8x128xbf16> to vector<1x8x128xbf16>
    %248 = vector.shape_cast %247 : vector<1x8x128xbf16> to vector<8x128xbf16>
    %249 = arith.maximumf %246, %248 : vector<8x128xbf16>
    %250 = vector.extract_strided_slice %67 {offsets = [10, 0, 0], sizes = [1, 8, 128], strides = [1, 1, 1]} : vector<20x8x128xbf16> to vector<1x8x128xbf16>
    %251 = vector.shape_cast %250 : vector<1x8x128xbf16> to vector<8x128xbf16>
    %252 = vector.extract_strided_slice %67 {offsets = [11, 0, 0], sizes = [1, 8, 128], strides = [1, 1, 1]} : vector<20x8x128xbf16> to vector<1x8x128xbf16>
    %253 = vector.shape_cast %252 : vector<1x8x128xbf16> to vector<8x128xbf16>
    %254 = arith.maximumf %251, %253 : vector<8x128xbf16>
    %255 = vector.extract_strided_slice %67 {offsets = [12, 0, 0], sizes = [1, 8, 128], strides = [1, 1, 1]} : vector<20x8x128xbf16> to vector<1x8x128xbf16>
    %256 = vector.shape_cast %255 : vector<1x8x128xbf16> to vector<8x128xbf16>
    %257 = vector.extract_strided_slice %67 {offsets = [13, 0, 0], sizes = [1, 8, 128], strides = [1, 1, 1]} : vector<20x8x128xbf16> to vector<1x8x128xbf16>
    %258 = vector.shape_cast %257 : vector<1x8x128xbf16> to vector<8x128xbf16>
    %259 = arith.maximumf %256, %258 : vector<8x128xbf16>
    %260 = vector.extract_strided_slice %67 {offsets = [14, 0, 0], sizes = [1, 8, 128], strides = [1, 1, 1]} : vector<20x8x128xbf16> to vector<1x8x128xbf16>
    %261 = vector.shape_cast %260 : vector<1x8x128xbf16> to vector<8x128xbf16>
    %262 = vector.extract_strided_slice %67 {offsets = [15, 0, 0], sizes = [1, 8, 128], strides = [1, 1, 1]} : vector<20x8x128xbf16> to vector<1x8x128xbf16>
    %263 = vector.shape_cast %262 : vector<1x8x128xbf16> to vector<8x128xbf16>
    %264 = arith.maximumf %261, %263 : vector<8x128xbf16>
    %265 = vector.extract_strided_slice %67 {offsets = [16, 0, 0], sizes = [1, 8, 128], strides = [1, 1, 1]} : vector<20x8x128xbf16> to vector<1x8x128xbf16>
    %266 = vector.shape_cast %265 : vector<1x8x128xbf16> to vector<8x128xbf16>
    %267 = vector.extract_strided_slice %67 {offsets = [17, 0, 0], sizes = [1, 8, 128], strides = [1, 1, 1]} : vector<20x8x128xbf16> to vector<1x8x128xbf16>
    %268 = vector.shape_cast %267 : vector<1x8x128xbf16> to vector<8x128xbf16>
    %269 = arith.maximumf %266, %268 : vector<8x128xbf16>
    %270 = vector.extract_strided_slice %67 {offsets = [18, 0, 0], sizes = [1, 8, 128], strides = [1, 1, 1]} : vector<20x8x128xbf16> to vector<1x8x128xbf16>
    %271 = vector.shape_cast %270 : vector<1x8x128xbf16> to vector<8x128xbf16>
    %272 = vector.extract_strided_slice %67 {offsets = [19, 0, 0], sizes = [1, 8, 128], strides = [1, 1, 1]} : vector<20x8x128xbf16> to vector<1x8x128xbf16>
    %273 = vector.shape_cast %272 : vector<1x8x128xbf16> to vector<8x128xbf16>
    %274 = arith.maximumf %271, %273 : vector<8x128xbf16>
    %275 = tpu.concatenate %229, %234, %239, %244, %249, %254, %259, %264, %269, %274 in 1 : vector<8x128xbf16>, vector<8x128xbf16>, vector<8x128xbf16>, vector<8x128xbf16>, vector<8x128xbf16>, vector<8x128xbf16>, vector<8x128xbf16>, vector<8x128xbf16>, vector<8x128xbf16>, vector<8x128xbf16> -> vector<8x1280xbf16>
    %c0_82 = arith.constant 0 : index
    %c0_83 = arith.constant 0 : index
    %276 = vector.load %arg18[%c0_82, %c0_83] : memref<1280x256xbf16, #tpu.memory_space<vmem>>, vector<1280x256xbf16>
    %cst_84 = arith.constant dense<0.000000e+00> : vector<8x256xf32>
    %277 = tpu.matmul %275, %276, %cst_84 {dimension_numbers = #tpu.dot_dimension_numbers<[1], [0], [0], [1], [0, 0, 1, 1], [], []>} : vector<8x1280xbf16>, vector<1280x256xbf16>, vector<8x256xf32> -> vector<8x256xf32>
    %278 = arith.addf %224, %277 : vector<8x256xf32>
    %c0_85 = arith.constant 0 : index
    %c0_86 = arith.constant 0 : index
    %279 = vector.load %arg19[%c0_85, %c0_86] : memref<1x256xf32, #tpu.memory_space<vmem>>, vector<1x256xf32>
    %280 = vector.broadcast %279 : vector<1x256xf32> to vector<8x256xf32>
    %281 = arith.addf %278, %280 : vector<8x256xf32>
    %cst_87 = arith.constant 0.000000e+00 : f32
    %282 = vector.broadcast %cst_87 : f32 to vector<8x256xf32>
    %283 = arith.maximumf %281, %282 : vector<8x256xf32>
    %284 = arith.truncf %75 : vector<8x256xf32> to vector<8x256xbf16>
    %c0_88 = arith.constant 0 : index
    %c0_89 = arith.constant 0 : index
    %285 = vector.load %arg20[%c0_88, %c0_89] : memref<256x64xbf16, #tpu.memory_space<vmem>>, vector<256x64xbf16>
    %cst_90 = arith.constant dense<0.000000e+00> : vector<8x64xf32>
    %286 = tpu.matmul %284, %285, %cst_90 {dimension_numbers = #tpu.dot_dimension_numbers<[1], [0], [0], [1], [0, 0, 1, 1], [], []>} : vector<8x256xbf16>, vector<256x64xbf16>, vector<8x64xf32> -> vector<8x64xf32>
    %287 = arith.truncf %171 : vector<8x256xf32> to vector<8x256xbf16>
    %c0_91 = arith.constant 0 : index
    %c0_92 = arith.constant 0 : index
    %288 = vector.load %arg21[%c0_91, %c0_92] : memref<256x64xbf16, #tpu.memory_space<vmem>>, vector<256x64xbf16>
    %cst_93 = arith.constant dense<0.000000e+00> : vector<8x64xf32>
    %289 = tpu.matmul %287, %288, %cst_93 {dimension_numbers = #tpu.dot_dimension_numbers<[1], [0], [0], [1], [0, 0, 1, 1], [], []>} : vector<8x256xbf16>, vector<256x64xbf16>, vector<8x64xf32> -> vector<8x64xf32>
    %290 = arith.addf %286, %289 : vector<8x64xf32>
    %291 = arith.truncf %283 : vector<8x256xf32> to vector<8x256xbf16>
    %c0_94 = arith.constant 0 : index
    %c0_95 = arith.constant 0 : index
    %292 = vector.load %arg22[%c0_94, %c0_95] : memref<256x64xbf16, #tpu.memory_space<vmem>>, vector<256x64xbf16>
    %cst_96 = arith.constant dense<0.000000e+00> : vector<8x64xf32>
    %293 = tpu.matmul %291, %292, %cst_96 {dimension_numbers = #tpu.dot_dimension_numbers<[1], [0], [0], [1], [0, 0, 1, 1], [], []>} : vector<8x256xbf16>, vector<256x64xbf16>, vector<8x64xf32> -> vector<8x64xf32>
    %294 = arith.addf %290, %293 : vector<8x64xf32>
    %c0_97 = arith.constant 0 : index
    %c0_98 = arith.constant 0 : index
    %295 = vector.load %arg23[%c0_97, %c0_98] : memref<1x64xf32, #tpu.memory_space<vmem>>, vector<1x64xf32>
    %296 = vector.broadcast %295 : vector<1x64xf32> to vector<8x64xf32>
    %297 = arith.addf %294, %296 : vector<8x64xf32>
    %c0_99 = arith.constant 0 : index
    %c0_100 = arith.constant 0 : index
    %298 = vector.load %arg24[%c0_99, %c0_100] : memref<64x1xf32, #tpu.memory_space<vmem>>, vector<64x1xf32>
    %cst_101 = arith.constant dense<0.000000e+00> : vector<8x1xf32>
    %299 = tpu.matmul %297, %298, %cst_101 {dimension_numbers = #tpu.dot_dimension_numbers<[1], [0], [0], [1], [0, 0, 1, 1], [], []>} : vector<8x64xf32>, vector<64x1xf32>, vector<8x1xf32> -> vector<8x1xf32>
    %c0_102 = arith.constant 0 : index
    %c0_103 = arith.constant 0 : index
    %300 = vector.load %arg25[%c0_102, %c0_103] : memref<1x1xf32, #tpu.memory_space<vmem>>, vector<1x1xf32>
    %301 = vector.broadcast %300 : vector<1x1xf32> to vector<8x1xf32>
    %302 = arith.addf %299, %301 : vector<8x1xf32>
    %303 = math.absf %302 : vector<8x1xf32>
    %cst_104 = arith.constant 1.000000e+00 : f32
    %304 = vector.broadcast %cst_104 : f32 to vector<8x1xf32>
    %305 = arith.addf %304, %303 : vector<8x1xf32>
    %306 = arith.divf %302, %305 : vector<8x1xf32>
    %c0_105 = arith.constant 0 : index
    %c0_106 = arith.constant 0 : index
    %307 = vector.load %arg26[%c0_105, %c0_106] : memref<8x1xf32, #tpu.memory_space<vmem>>, vector<8x1xf32>
    tpu.vector_store %arg26[%c0_105, %c0_106], %306 {strides = array<i32>} : memref<8x1xf32, #tpu.memory_space<vmem>>, vector<8x1xf32>,
    return
  }
  func.func @transform_0(%arg0: i32) -> (i32, i32, i32) {
    %c0_i32 = arith.constant 0 : i32
    %c0_i32_0 = arith.constant 0 : i32
    %c0_i32_1 = arith.constant 0 : i32
    return %c0_i32, %arg0, %c0_i32_0 : i32, i32, i32
  }
  func.func @transform_1(%arg0: i32) -> (i32, i32, i32) {
    %c0_i32 = arith.constant 0 : i32
    %c0_i32_0 = arith.constant 0 : i32
    %c0_i32_1 = arith.constant 0 : i32
    return %c0_i32, %arg0, %c0_i32_0 : i32, i32, i32
  }
  func.func @transform_2(%arg0: i32) -> (i32, i32) {
    %c0_i32 = arith.constant 0 : i32
    %c0_i32_0 = arith.constant 0 : i32
    return %arg0, %c0_i32 : i32, i32
  }
  func.func @transform_3(%arg0: i32) -> (i32, i32) {
    %c0_i32 = arith.constant 0 : i32
    %c0_i32_0 = arith.constant 0 : i32
    %c0_i32_1 = arith.constant 0 : i32
    return %c0_i32, %c0_i32_0 : i32, i32
  }
  func.func @transform_4(%arg0: i32) -> (i32, i32) {
    %c0_i32 = arith.constant 0 : i32
    %c0_i32_0 = arith.constant 0 : i32
    %c0_i32_1 = arith.constant 0 : i32
    return %c0_i32, %c0_i32_0 : i32, i32
  }
  func.func @transform_5(%arg0: i32) -> (i32, i32) {
    %c0_i32 = arith.constant 0 : i32
    %c0_i32_0 = arith.constant 0 : i32
    %c0_i32_1 = arith.constant 0 : i32
    return %c0_i32, %c0_i32_0 : i32, i32
  }
  func.func @transform_6(%arg0: i32) -> (i32, i32) {
    %c0_i32 = arith.constant 0 : i32
    %c0_i32_0 = arith.constant 0 : i32
    %c0_i32_1 = arith.constant 0 : i32
    return %c0_i32, %c0_i32_0 : i32, i32
  }
  func.func @transform_7(%arg0: i32) -> (i32, i32) {
    %c0_i32 = arith.constant 0 : i32
    %c0_i32_0 = arith.constant 0 : i32
    %c0_i32_1 = arith.constant 0 : i32
    return %c0_i32, %c0_i32_0 : i32, i32
  }
  func.func @transform_8(%arg0: i32) -> (i32, i32) {
    %c0_i32 = arith.constant 0 : i32
    %c0_i32_0 = arith.constant 0 : i32
    %c0_i32_1 = arith.constant 0 : i32
    return %c0_i32, %c0_i32_0 : i32, i32
  }
  func.func @transform_9(%arg0: i32) -> (i32, i32) {
    %c0_i32 = arith.constant 0 : i32
    %c0_i32_0 = arith.constant 0 : i32
    %c0_i32_1 = arith.constant 0 : i32
    return %c0_i32, %c0_i32_0 : i32, i32
  }
  func.func @transform_10(%arg0: i32) -> (i32, i32) {
    %c0_i32 = arith.constant 0 : i32
    %c0_i32_0 = arith.constant 0 : i32
    %c0_i32_1 = arith.constant 0 : i32
    return %c0_i32, %c0_i32_0 : i32, i32
  }
  func.func @transform_11(%arg0: i32) -> (i32, i32) {
    %c0_i32 = arith.constant 0 : i32
    %c0_i32_0 = arith.constant 0 : i32
    %c0_i32_1 = arith.constant 0 : i32
    return %c0_i32, %c0_i32_0 : i32, i32
  }
  func.func @transform_12(%arg0: i32) -> (i32, i32) {
    %c0_i32 = arith.constant 0 : i32
    %c0_i32_0 = arith.constant 0 : i32
    %c0_i32_1 = arith.constant 0 : i32
    return %c0_i32, %c0_i32_0 : i32, i32
  }
  func.func @transform_13(%arg0: i32) -> (i32, i32) {
    %c0_i32 = arith.constant 0 : i32
    %c0_i32_0 = arith.constant 0 : i32
    %c0_i32_1 = arith.constant 0 : i32
    return %c0_i32, %c0_i32_0 : i32, i32
  }
  func.func @transform_14(%arg0: i32) -> (i32, i32) {
    %c0_i32 = arith.constant 0 : i32
    %c0_i32_0 = arith.constant 0 : i32
    %c0_i32_1 = arith.constant 0 : i32
    return %c0_i32, %c0_i32_0 : i32, i32
  }
  func.func @transform_15(%arg0: i32) -> (i32, i32) {
    %c0_i32 = arith.constant 0 : i32
    %c0_i32_0 = arith.constant 0 : i32
    %c0_i32_1 = arith.constant 0 : i32
    return %c0_i32, %c0_i32_0 : i32, i32
  }
  func.func @transform_16(%arg0: i32) -> (i32, i32) {
    %c0_i32 = arith.constant 0 : i32
    %c0_i32_0 = arith.constant 0 : i32
    %c0_i32_1 = arith.constant 0 : i32
    return %c0_i32, %c0_i32_0 : i32, i32
  }
  func.func @transform_17(%arg0: i32) -> (i32, i32) {
    %c0_i32 = arith.constant 0 : i32
    %c0_i32_0 = arith.constant 0 : i32
    %c0_i32_1 = arith.constant 0 : i32
    return %c0_i32, %c0_i32_0 : i32, i32
  }
  func.func @transform_18(%arg0: i32) -> (i32, i32) {
    %c0_i32 = arith.constant 0 : i32
    %c0_i32_0 = arith.constant 0 : i32
    %c0_i32_1 = arith.constant 0 : i32
    return %c0_i32, %c0_i32_0 : i32, i32
  }
  func.func @transform_19(%arg0: i32) -> (i32, i32) {
    %c0_i32 = arith.constant 0 : i32
    %c0_i32_0 = arith.constant 0 : i32
    %c0_i32_1 = arith.constant 0 : i32
    return %c0_i32, %c0_i32_0 : i32, i32
  }
  func.func @transform_20(%arg0: i32) -> (i32, i32) {
    %c0_i32 = arith.constant 0 : i32
    %c0_i32_0 = arith.constant 0 : i32
    %c0_i32_1 = arith.constant 0 : i32
    return %c0_i32, %c0_i32_0 : i32, i32
  }
  func.func @transform_21(%arg0: i32) -> (i32, i32) {
    %c0_i32 = arith.constant 0 : i32
    %c0_i32_0 = arith.constant 0 : i32
    %c0_i32_1 = arith.constant 0 : i32
    return %c0_i32, %c0_i32_0 : i32, i32
  }
  func.func @transform_22(%arg0: i32) -> (i32, i32) {
    %c0_i32 = arith.constant 0 : i32
    %c0_i32_0 = arith.constant 0 : i32
    %c0_i32_1 = arith.constant 0 : i32
    return %c0_i32, %c0_i32_0 : i32, i32
  }
  func.func @transform_23(%arg0: i32) -> (i32, i32) {
    %c0_i32 = arith.constant 0 : i32
    %c0_i32_0 = arith.constant 0 : i32
    %c0_i32_1 = arith.constant 0 : i32
    return %c0_i32, %c0_i32_0 : i32, i32
  }
  func.func @transform_24(%arg0: i32) -> (i32, i32) {
    %c0_i32 = arith.constant 0 : i32
    %c0_i32_0 = arith.constant 0 : i32
    %c0_i32_1 = arith.constant 0 : i32
    return %c0_i32, %c0_i32_0 : i32, i32
  }
  func.func @transform_25(%arg0: i32) -> (i32, i32) {
    %c0_i32 = arith.constant 0 : i32
    %c0_i32_0 = arith.constant 0 : i32
    return %arg0, %c0_i32 : i32, i32
  }
}

</mosaic_0001>

<bundles_post_ra>
// kernel: tpu_custom_call.1
= control target key start
LH: loop header
LB: loop body
LE: loop exit
PB: predicated region body
PF: predicated region fallthrough
CT: control target
= control target key end

     0   :  { %s16389_s0 = inlined_call_operand.hbm [shape: bf16[20,8,48], index: 0, kind: input, shape index: {}]   ;;  %s16390_s1 = inlined_call_operand.hbm [shape: bf16[20,8,48], index: 1, kind: input, shape index: {}]   ;;  %s16391_s2 = inlined_call_operand.hbm [shape: bf16[8,600], index: 2, kind: input, shape index: {}]   ;;  %s16392_s3 = inlined_call_operand.hbm [shape: bf16[48,128], index: 3, kind: input, shape index: {}]   ;;  %s16393_s4 = inlined_call_operand.hbm [shape: f32[1,128], index: 4, kind: input, shape index: {}]   ;;  %s16394_s5 = inlined_call_operand.hbm [shape: bf16[384,128], index: 5, kind: input, shape index: {}]   ;;  %s16395_s6 = inlined_call_operand.hbm [shape: f32[1,128], index: 6, kind: input, shape index: {}]   ;;  %s16396_s7 = inlined_call_operand.hbm [shape: bf16[48,128], index: 7, kind: input, shape index: {}]   ;;  %s16397_s8 = inlined_call_operand.hbm [shape: f32[1,128], index: 8, kind: input, shape index: {}]   ;;  %s16398_s9 = inlined_call_operand.hbm [shape: bf16[384,128], index: 9, kind: input, shape index: {}]   ;;  %s16399_s10 = inlined_call_operand.hbm [shape: f32[1,128], index: 10, kind: input, shape index: {}]   ;;  %s16400_s11 = inlined_call_operand.hbm [shape: bf16[600,256], index: 11, kind: input, shape index: {}]   ;;  %s16401_s12 = inlined_call_operand.hbm [shape: f32[1,256], index: 12, kind: input, shape index: {}]   ;;  %s16402_s13 = inlined_call_operand.hbm [shape: bf16[2560,256], index: 13, kind: input, shape index: {}]   ;;  %s16403_s14 = inlined_call_operand.hbm [shape: bf16[2560,256], index: 14, kind: input, shape index: {}]   ;;  %s16404_s15 = inlined_call_operand.hbm [shape: f32[1,256], index: 15, kind: input, shape index: {}]   ;;  %s16405_s16 = inlined_call_operand.hbm [shape: bf16[1280,256], index: 16, kind: input, shape index: {}]   ;;  %s16406_s17 = inlined_call_operand.hbm [shape: bf16[1280,256], index: 17, kind: input, shape index: {}]   ;;  %s16407_s18 = inlined_call_operand.hbm [shape: f32[1,256], index: 18, kind: input, shape index: {}]   ;;  %s16408_s19 = inlined_call_operand.vmem [shape: bf16[256,64], index: 19, kind: input, shape index: {}]   ;;  %s16409_s20 = inlined_call_operand.vmem [shape: bf16[256,64], index: 20, kind: input, shape index: {}]   ;;  %s16410_s21 = inlined_call_operand.vmem [shape: bf16[256,64], index: 21, kind: input, shape index: {}]   ;;  %s16411_s22 = inlined_call_operand.hbm [shape: f32[1,64], index: 22, kind: input, shape index: {}]   ;;  %s16412_s23 = inlined_call_operand.vmem [shape: f32[64,1], index: 23, kind: input, shape index: {}]   ;;  %s16413_s24 = inlined_call_operand.<no memory space> [shape: f32[1,1], index: 24, kind: input, shape index: {}]   ;;  %s16414_s25 = inlined_call_operand.vmem [shape: f32[8,1], index: 25, kind: output, shape index: {}]  }
   0x1   :  { %16453 = sst [smem:[#allocation73_spill]] %s16389_s0  ;;  %v30_v0 = vstv %s16413_s24 }
   0x2   :  { %16454 = sst [smem:[#allocation74_spill]] %s16390_s1  ;;  %31 = vst [vmem:[#allocation3] sm:$0x1] %v30_v0 }
   0x3   :  { %16455 = sst [smem:[#allocation75_spill]] %s16391_s2 }
   0x4   :  { %16456 = sst [smem:[#allocation76_spill]] %s16392_s3 }
   0x5   :  { %16457 = sst [smem:[#allocation77_spill]] %s16393_s4 }
   0x6   :  { %16458 = sst [smem:[#allocation78_spill]] %s16394_s5 }
   0x7   :  { %16459 = sst [smem:[#allocation79_spill]] %s16395_s6 }
   0x8   :  { %16460 = sst [smem:[#allocation80_spill]] %s16396_s7 }
   0x9   :  { %16461 = sst [smem:[#allocation81_spill]] %s16397_s8 }
   0xa   :  { %16462 = sst [smem:[#allocation82_spill]] %s16398_s9 }
   0xb   :  { %16463 = sst [smem:[#allocation83_spill]] %s16412_s23 }
   0xc   :  { %16464 = sst [smem:[#allocation84_spill]] %s16414_s25 }
   0xd   :  { %32 = vsyncpa [#allocation5], 0 }
   0xe   :  { %33 = vsyncpa [#allocation7], 0 }
   0xf   :  { %34 = vsyncpa [#allocation10], 0 }
  0x10   :  { %35 = vsyncpa [#allocation13], 0 }
  0x11   :  { %36 = vsyncpa [#allocation16], 0 }
  0x12   :  { %37 = vsyncpa [#allocation19], 0 }
  0x13   :  { %38 = vsyncpa [#allocation22], 0 }
  0x14   :  { %39 = vsyncpa [#allocation25], 0 }
  0x15   :  { %40 = vsyncpa [#allocation28], 0 }
  0x16   :  { %41 = vsyncpa [#allocation31], 0 }
  0x17   :  { %42 = vsyncpa [#allocation34], 0  ;;  %s15002_s6 = smov [#allocation6]   ;;  %s15003_s7 = smov [#allocation9]  }
  0x18   :  { %s60_s30 = sshll.u32 %s15002_s6, 4  ;;  %s82_s3 = sshll.u32 %s15003_s7, 4  ;;  %s61_s30 = int_to_ptr.vmem [resolvable:$true] %s60_s30  ;;  %s15163_s3 = int_to_ptr.vmem [resolvable:$true] %s82_s3 }
  0x19   :  { %s16465_s1 = sld [smem:[#allocation74_spill]] }
  0x1f   :  { %s14540_s8 = scalar_lea.hbm %s16465_s1, 1280 }
  0x20   :  { %p14541_p0 = scmp.ne.s32.totalorder %s16465_s1, %s14540_s8  ;;  %p14544_p1 = scmp.lt.u32.totalorder %s14540_s8, %s16465_s1 }
  0x22   :  { %p14546_p2 = pnand %p14544_p1, %p14541_p0 }
  0x24   :  { %14549 = shalt.err (!%p14546_p2)
}
  0x25   :  { %s14550_s5 = scalar_lea.vmem %s61_s30, 1280  ;;  %p14555_p4 = scmp.lt.s32.totalorder %s61_s30, %s61_s30 }
  0x26   :  { %p14551_p3 = scmp.ne.s32.totalorder %s61_s30, %s14550_s5  ;;  %p14556_p5 = scmp.lt.s32.totalorder %s14550_s5, %s14550_s5 }
  0x28   :  { %p14557_p6 = por %p14556_p5, %p14555_p4 }
  0x2a   :  { %p14558_p7 = pnand %p14557_p6, %p14551_p3 }
  0x2c   :  { %14561 = shalt.err (!%p14558_p7)
}
  0x2d   :  { %s15004_s0 = smov 64   ;;  %s15005_s29 = smov 4  }
  0x2e   :  { %66 = dma.hbm_to_vmem [thread:$0]  %s16465_s1, 1280, %s61_s30, [#allocation7], %s15004_s0, %s15004_s0, %s15005_s29  }
  0x2f   :  { %s16466_s26 = sld [smem:[#allocation76_spill]] }
  0x35   :  { %s14562_s8 = scalar_lea.hbm %s16466_s26, 384 }
  0x36   :  { %p14563_p8 = scmp.ne.s32.totalorder %s16466_s26, %s14562_s8  ;;  %p14566_p9 = scmp.lt.u32.totalorder %s14562_s8, %s16466_s26 }
  0x38   :  { %p14568_p10 = pnand %p14566_p9, %p14563_p8 }
  0x3a   :  { %14571 = shalt.err (!%p14568_p10)
}
  0x3b   :  { %s14572_s5 = scalar_lea.vmem %s15163_s3, 384  ;;  %p14577_p12 = scmp.lt.s32.totalorder %s15163_s3, %s15163_s3 }
  0x3c   :  { %p14573_p11 = scmp.ne.s32.totalorder %s15163_s3, %s14572_s5  ;;  %p14578_p13 = scmp.lt.s32.totalorder %s14572_s5, %s14572_s5 }
  0x3e   :  { %p14579_p0 = por %p14578_p13, %p14577_p12 }
  0x40   :  { %p14580_p1 = pnand %p14579_p0, %p14573_p11 }
  0x42   :  { %14583 = shalt.err (!%p14580_p1)
}
  0x43   :  { %88 = dma.hbm_to_vmem [thread:$0]  %s16466_s26, 384, %s15163_s3, [#allocation10], %s15004_s0, %s15004_s0, %s15005_s29  }
  0x44   :  { %s15006_s2 = smov [#allocation12]   ;;  %s15007_s7 = smov [#allocation15]  }
  0x45   :  { %s104_s6 = sshll.u32 %s15006_s2, 4  ;;  %s126_s24 = sshll.u32 %s15007_s7, 4  ;;  %s105_s6 = int_to_ptr.vmem [resolvable:$true] %s104_s6  ;;  %s15200_s24 = int_to_ptr.vmem [resolvable:$true] %s126_s24 }
  0x46   :  { %s16467_s4 = sld [smem:[#allocation78_spill]] }
  0x4c   :  { %s14584_s28 = scalar_lea.hbm %s16467_s4, 3072 }
  0x4d   :  { %p14585_p2 = scmp.ne.s32.totalorder %s16467_s4, %s14584_s28  ;;  %p14588_p3 = scmp.lt.u32.totalorder %s14584_s28, %s16467_s4 }
  0x4f   :  { %p14590_p4 = pnand %p14588_p3, %p14585_p2 }
  0x51   :  { %14593 = shalt.err (!%p14590_p4)
}
  0x52   :  { %s14594_s3 = scalar_lea.vmem %s105_s6, 3072  ;;  %p14599_p6 = scmp.lt.s32.totalorder %s105_s6, %s105_s6 }
  0x53   :  { %p14595_p5 = scmp.ne.s32.totalorder %s105_s6, %s14594_s3  ;;  %p14600_p7 = scmp.lt.s32.totalorder %s14594_s3, %s14594_s3 }
  0x55   :  { %p14601_p8 = por %p14600_p7, %p14599_p6 }
  0x57   :  { %p14602_p9 = pnand %p14601_p8, %p14595_p5 }
  0x59   :  { %14605 = shalt.err (!%p14602_p9)
}
  0x5a   :  { %110 = dma.hbm_to_vmem [thread:$0]  %s16467_s4, 3072, %s105_s6, [#allocation13], %s15004_s0, %s15004_s0, %s15005_s29  }
  0x5b   :  { %s16468_s23 = sld [smem:[#allocation80_spill]] }
  0x61   :  { %s14606_s25 = scalar_lea.hbm %s16468_s23, 384 }
  0x62   :  { %p14607_p10 = scmp.ne.s32.totalorder %s16468_s23, %s14606_s25  ;;  %p14610_p11 = scmp.lt.u32.totalorder %s14606_s25, %s16468_s23 }
  0x64   :  { %p14612_p12 = pnand %p14610_p11, %p14607_p10 }
  0x66   :  { %14615 = shalt.err (!%p14612_p12)
}
  0x67   :  { %s14616_s9 = scalar_lea.vmem %s15200_s24, 384  ;;  %p14621_p0 = scmp.lt.s32.totalorder %s15200_s24, %s15200_s24 }
  0x68   :  { %p14617_p13 = scmp.ne.s32.totalorder %s15200_s24, %s14616_s9  ;;  %p14622_p1 = scmp.lt.s32.totalorder %s14616_s9, %s14616_s9 }
  0x6a   :  { %p14623_p2 = por %p14622_p1, %p14621_p0 }
  0x6c   :  { %p14624_p3 = pnand %p14623_p2, %p14617_p13 }
  0x6e   :  { %14627 = shalt.err (!%p14624_p3)
}
  0x6f   :  { %132 = dma.hbm_to_vmem [thread:$0]  %s16468_s23, 384, %s15200_s24, [#allocation16], %s15004_s0, %s15004_s0, %s15005_s29  }
  0x70   :  { %s15008_s5 = smov [#allocation18]   ;;  %s15009_s26 = smov [#allocation21]  }
  0x71   :  { %s148_s3 = sshll.u32 %s15008_s5, 4  ;;  %s170_s30 = sshll.u32 %s15009_s26, 4  ;;  %s149_s3 = int_to_ptr.vmem [resolvable:$true] %s148_s3  ;;  %s15237_s30 = int_to_ptr.vmem [resolvable:$true] %s170_s30 }
  0x72   :  { %s16469_s25 = sld [smem:[#allocation82_spill]] }
  0x78   :  { %s14628_s7 = scalar_lea.hbm %s16469_s25, 3072 }
  0x79   :  { %p14629_p4 = scmp.ne.s32.totalorder %s16469_s25, %s14628_s7  ;;  %p14632_p5 = scmp.lt.u32.totalorder %s14628_s7, %s16469_s25 }
  0x7b   :  { %p14634_p6 = pnand %p14632_p5, %p14629_p4 }
  0x7d   :  { %14637 = shalt.err (!%p14634_p6)
}
  0x7e   :  { %s14638_s24 = scalar_lea.vmem %s149_s3, 3072  ;;  %p14643_p8 = scmp.lt.s32.totalorder %s149_s3, %s149_s3 }
  0x7f   :  { %p14639_p7 = scmp.ne.s32.totalorder %s149_s3, %s14638_s24  ;;  %p14644_p9 = scmp.lt.s32.totalorder %s14638_s24, %s14638_s24 }
  0x81   :  { %p14645_p10 = por %p14644_p9, %p14643_p8 }
  0x83   :  { %p14646_p11 = pnand %p14645_p10, %p14639_p7 }
  0x85   :  { %14649 = shalt.err (!%p14646_p11)
}
  0x86   :  { %154 = dma.hbm_to_vmem [thread:$0]  %s16469_s25, 3072, %s149_s3, [#allocation19], %s15004_s0, %s15004_s0, %s15005_s29  }
  0x87   :  { %s14650_s26 = scalar_lea.hbm %s16400_s11, 9600 }
  0x88   :  { %p14651_p12 = scmp.ne.s32.totalorder %s16400_s11, %s14650_s26  ;;  %p14654_p13 = scmp.lt.u32.totalorder %s14650_s26, %s16400_s11 }
  0x8a   :  { %p14656_p0 = pnand %p14654_p13, %p14651_p12 }
  0x8c   :  { %14659 = shalt.err (!%p14656_p0)
}
  0x8d   :  { %s14660_s27 = scalar_lea.vmem %s15237_s30, 9600  ;;  %p14665_p2 = scmp.lt.s32.totalorder %s15237_s30, %s15237_s30 }
  0x8e   :  { %p14661_p1 = scmp.ne.s32.totalorder %s15237_s30, %s14660_s27  ;;  %p14666_p3 = scmp.lt.s32.totalorder %s14660_s27, %s14660_s27 }
  0x90   :  { %p14667_p4 = por %p14666_p3, %p14665_p2 }
  0x92   :  { %p14668_p5 = pnand %p14667_p4, %p14661_p1 }
  0x94   :  { %14671 = shalt.err (!%p14668_p5)
}
  0x95   :  { %s15010_s3 = smov 128   ;;  %s15011_s25 = smov 8  }
  0x96   :  { %176 = dma.hbm_to_vmem [thread:$0]  %s16400_s11, 9600, %s15237_s30, [#allocation22], %s15010_s3, %s15010_s3, %s15011_s25  }
  0x97   :  { %s15012_s24 = smov [#allocation24]   ;;  %s15013_s6 = smov [#allocation27]  }
  0x98   :  { %s192_s23 = sshll.u32 %s15012_s24, 4  ;;  %s217_s4 = sshll.u32 %s15013_s6, 4  ;;  %s193_s23 = int_to_ptr.vmem [resolvable:$true] %s192_s23  ;;  %s218_s4 = int_to_ptr.vmem [resolvable:$true] %s217_s4 }
  0x99   :  { %s14672_s1 = scalar_lea.hbm %s16402_s13, 40960 }
  0x9a   :  { %p14673_p6 = scmp.ne.s32.totalorder %s16402_s13, %s14672_s1  ;;  %p14676_p7 = scmp.lt.u32.totalorder %s14672_s1, %s16402_s13 }
  0x9c   :  { %p14678_p8 = pnand %p14676_p7, %p14673_p6 }
  0x9e   :  { %14681 = shalt.err (!%p14678_p8)
}
  0x9f   :  { %s14682_s11 = scalar_lea.vmem %s193_s23, 40960  ;;  %p14687_p10 = scmp.lt.s32.totalorder %s193_s23, %s193_s23 }
  0xa0   :  { %p14683_p9 = scmp.ne.s32.totalorder %s193_s23, %s14682_s11  ;;  %p14688_p11 = scmp.lt.s32.totalorder %s14682_s11, %s14682_s11 }
  0xa2   :  { %p14689_p12 = por %p14688_p11, %p14687_p10 }
  0xa4   :  { %p14690_p13 = pnand %p14689_p12, %p14683_p9 }
  0xa6   :  { %14693 = shalt.err (!%p14690_p13)
}
  0xa7   :  { %198 = dma.hbm_to_vmem [thread:$0]  %s16402_s13, 40960, %s193_s23, [#allocation25], %s15010_s3, %s15010_s3, %s15011_s25  }
  0xa8   :  { %s14694_s6 = scalar_lea.hbm %s16404_s15, 32 }
  0xa9   :  { %p14695_p0 = scmp.ne.s32.totalorder %s16404_s15, %s14694_s6  ;;  %p14698_p1 = scmp.lt.u32.totalorder %s14694_s6, %s16404_s15 }
  0xab   :  { %p14700_p2 = pnand %p14698_p1, %p14695_p0 }
  0xad   :  { %14703 = shalt.err (!%p14700_p2)
}
  0xae   :  { %s14704_s7 = scalar_lea.vmem %s218_s4, 32  ;;  %p14709_p4 = scmp.lt.s32.totalorder %s218_s4, %s218_s4 }
  0xaf   :  { %p14705_p3 = scmp.ne.s32.totalorder %s218_s4, %s14704_s7  ;;  %p14710_p5 = scmp.lt.s32.totalorder %s14704_s7, %s14704_s7 }
  0xb1   :  { %p14711_p6 = por %p14710_p5, %p14709_p4 }
  0xb3   :  { %p14712_p7 = pnand %p14711_p6, %p14705_p3 }
  0xb5   :  { %14715 = shalt.err (!%p14712_p7)
}
  0xb6   :  { %220 = dma.hbm_to_vmem [thread:$0]  %s16404_s15, 32, %s218_s4, [#allocation28]  }
  0xb7   :  { %s15014_s8 = smov [#allocation30]   ;;  %s15015_s11 = smov [#allocation4]  }
  0xb8   :  { %s238_s27 = sshll.u32 %s15014_s8, 4  ;;  %s48_s30 = sshll.u32 %s15015_s11, 4  ;;  %s239_s27 = int_to_ptr.vmem [resolvable:$true] %s238_s27  ;;  %s15301_s30 = int_to_ptr.vmem [resolvable:$true] %s48_s30 }
  0xb9   :  { %s14716_s24 = scalar_lea.hbm %s16406_s17, 20480 }
  0xba   :  { %p14717_p8 = scmp.ne.s32.totalorder %s16406_s17, %s14716_s24  ;;  %p14720_p9 = scmp.lt.u32.totalorder %s14716_s24, %s16406_s17 }
  0xbc   :  { %p14722_p10 = pnand %p14720_p9, %p14717_p8 }
  0xbe   :  { %14725 = shalt.err (!%p14722_p10)
}
  0xbf   :  { %s14726_s15 = scalar_lea.vmem %s239_s27, 20480  ;;  %p14731_p12 = scmp.lt.s32.totalorder %s239_s27, %s239_s27 }
  0xc0   :  { %p14727_p11 = scmp.ne.s32.totalorder %s239_s27, %s14726_s15  ;;  %p14732_p13 = scmp.lt.s32.totalorder %s14726_s15, %s14726_s15 }
  0xc2   :  { %p14733_p0 = por %p14732_p13, %p14731_p12 }
  0xc4   :  { %p14734_p1 = pnand %p14733_p0, %p14727_p11 }
  0xc6   :  { %14737 = shalt.err (!%p14734_p1)
}
  0xc7   :  { %244 = dma.hbm_to_vmem [thread:$0]  %s16406_s17, 20480, %s239_s27, [#allocation31], %s15010_s3, %s15010_s3, %s15011_s25  }
  0xc8   :  { %s16470_s23 = sld [smem:[#allocation73_spill]] }
  0xce   :  { %s14738_s8 = scalar_lea.hbm %s16470_s23, 1280 }
  0xcf   :  { %p14739_p2 = scmp.ne.s32.totalorder %s16470_s23, %s14738_s8  ;;  %p14742_p3 = scmp.lt.u32.totalorder %s14738_s8, %s16470_s23 }
  0xd1   :  { %p14744_p4 = pnand %p14742_p3, %p14739_p2 }
  0xd3   :  { %14747 = shalt.err (!%p14744_p4)
}
  0xd4   :  { %s14748_s6 = scalar_lea.vmem %s15301_s30, 1280  ;;  %p14753_p6 = scmp.lt.s32.totalorder %s15301_s30, %s15301_s30 }
  0xd5   :  { %p14749_p5 = scmp.ne.s32.totalorder %s15301_s30, %s14748_s6  ;;  %p14754_p7 = scmp.lt.s32.totalorder %s14748_s6, %s14748_s6 }
  0xd7   :  { %p14755_p8 = por %p14754_p7, %p14753_p6 }
  0xd9   :  { %p14756_p9 = pnand %p14755_p8, %p14749_p5 }
  0xdb   :  { %14759 = shalt.err (!%p14756_p9)
}
  0xdc   :  { %54 = dma.hbm_to_vmem [thread:$0]  %s16470_s23, 1280, %s15301_s30, [#allocation5], %s15004_s0, %s15004_s0, %s15005_s29  }
  0xdd   :  { %s15016_s5 = smov [#allocation8]   ;;  %s15017_s1 = smov [#allocation11]  }
  0xde   :  { %s73_s26 = sshll.u32 %s15016_s5, 4  ;;  %s95_s15 = sshll.u32 %s15017_s1, 4  ;;  %s74_s26 = int_to_ptr.vmem [resolvable:$true] %s73_s26  ;;  %s96_s15 = int_to_ptr.vmem [resolvable:$true] %s95_s15 }
  0xdf   :  { %s16471_s7 = sld [smem:[#allocation75_spill]] }
  0xe5   :  { %s14760_s13 = scalar_lea.hbm %s16471_s7, 320 }
  0xe6   :  { %p14761_p10 = scmp.ne.s32.totalorder %s16471_s7, %s14760_s13  ;;  %p14764_p11 = scmp.lt.u32.totalorder %s14760_s13, %s16471_s7 }
  0xe8   :  { %p14766_p12 = pnand %p14764_p11, %p14761_p10 }
  0xea   :  { %14769 = shalt.err (!%p14766_p12)
}
  0xeb   :  { %s14770_s0 = scalar_lea.vmem %s74_s26, 320  ;;  %p14775_p0 = scmp.lt.s32.totalorder %s74_s26, %s74_s26 }
  0xec   :  { %p14771_p13 = scmp.ne.s32.totalorder %s74_s26, %s14770_s0  ;;  %p14776_p1 = scmp.lt.s32.totalorder %s14770_s0, %s14770_s0 }
  0xee   :  { %p14777_p2 = por %p14776_p1, %p14775_p0 }
  0xf0   :  { %p14778_p3 = pnand %p14777_p2, %p14771_p13 }
  0xf2   :  { %14781 = shalt.err (!%p14778_p3)
}
  0xf3   :  { %76 = dma.hbm_to_vmem [thread:$0]  %s16471_s7, 320, %s74_s26, [#allocation7]  }
  0xf4   :  { %s16472_s6 = sld [smem:[#allocation77_spill]] }
  0xfa   :  { %s14782_s17 = scalar_lea.hbm %s16472_s6, 16 }
  0xfb   :  { %p14783_p4 = scmp.ne.s32.totalorder %s16472_s6, %s14782_s17  ;;  %p14786_p5 = scmp.lt.u32.totalorder %s14782_s17, %s16472_s6 }
  0xfd   :  { %p14788_p6 = pnand %p14786_p5, %p14783_p4 }
  0xff   :  { %14791 = shalt.err (!%p14788_p6)
}
 0x100   :  { %s14792_s2 = scalar_lea.vmem %s96_s15, 16  ;;  %s14796_s13 = scalar_lea.vmem %s96_s15, 32 }
 0x101   :  { %p14793_p7 = scmp.ne.s32.totalorder %s96_s15, %s14792_s2  ;;  %p14797_p8 = scmp.lt.s32.totalorder %s96_s15, %s96_s15 }
 0x102   :  { %p14798_p9 = scmp.lt.s32.totalorder %s14796_s13, %s14792_s2 }
 0x104   :  { %p14799_p10 = por %p14798_p9, %p14797_p8 }
 0x106   :  { %p14800_p11 = pnand %p14799_p10, %p14793_p7 }
 0x108   :  { %14803 = shalt.err (!%p14800_p11)
}
 0x109   :  { %98 = dma.hbm_to_vmem [thread:$0]  %s16472_s6, 16, %s96_s15, [#allocation10]  }
 0x10a   :  { %s15018_s8 = smov [#allocation14]   ;;  %s15019_s28 = smov [#allocation17]  }
 0x10b   :  { %s117_s11 = sshll.u32 %s15018_s8, 4  ;;  %s139_s9 = sshll.u32 %s15019_s28, 4  ;;  %s118_s11 = int_to_ptr.vmem [resolvable:$true] %s117_s11  ;;  %s140_s9 = int_to_ptr.vmem [resolvable:$true] %s139_s9 }
 0x10c   :  { %s16473_s30 = sld [smem:[#allocation79_spill]] }
 0x112   :  { %s14804_s23 = scalar_lea.hbm %s16473_s30, 16 }
 0x113   :  { %p14805_p12 = scmp.ne.s32.totalorder %s16473_s30, %s14804_s23  ;;  %p14808_p13 = scmp.lt.u32.totalorder %s14804_s23, %s16473_s30 }
 0x115   :  { %p14810_p0 = pnand %p14808_p13, %p14805_p12 }
 0x117   :  { %14813 = shalt.err (!%p14810_p0)
}
 0x118   :  { %s14814_s15 = scalar_lea.vmem %s118_s11, 16  ;;  %s14818_s6 = scalar_lea.vmem %s118_s11, 32 }
 0x119   :  { %p14815_p1 = scmp.ne.s32.totalorder %s118_s11, %s14814_s15  ;;  %p14819_p2 = scmp.lt.s32.totalorder %s118_s11, %s118_s11 }
 0x11a   :  { %p14820_p3 = scmp.lt.s32.totalorder %s14818_s6, %s14814_s15 }
 0x11c   :  { %p14821_p4 = por %p14820_p3, %p14819_p2 }
 0x11e   :  { %p14822_p5 = pnand %p14821_p4, %p14815_p1 }
 0x120   :  { %14825 = shalt.err (!%p14822_p5)
}
 0x121   :  { %120 = dma.hbm_to_vmem [thread:$0]  %s16473_s30, 16, %s118_s11, [#allocation13]  }
 0x122   :  { %s16474_s26 = sld [smem:[#allocation81_spill]] }
 0x128   :  { %s14826_s7 = scalar_lea.hbm %s16474_s26, 16 }
 0x129   :  { %p14827_p6 = scmp.ne.s32.totalorder %s16474_s26, %s14826_s7  ;;  %p14830_p7 = scmp.lt.u32.totalorder %s14826_s7, %s16474_s26 }
 0x12b   :  { %p14832_p8 = pnand %p14830_p7, %p14827_p6 }
 0x12d   :  { %14835 = shalt.err (!%p14832_p8)
}
 0x12e   :  { %s14836_s23 = scalar_lea.vmem %s140_s9, 16  ;;  %s14840_s24 = scalar_lea.vmem %s140_s9, 32 }
 0x12f   :  { %p14837_p9 = scmp.ne.s32.totalorder %s140_s9, %s14836_s23  ;;  %p14841_p10 = scmp.lt.s32.totalorder %s140_s9, %s140_s9 }
 0x130   :  { %p14842_p11 = scmp.lt.s32.totalorder %s14840_s24, %s14836_s23 }
 0x132   :  { %p14843_p12 = por %p14842_p11, %p14841_p10 }
 0x134   :  { %p14844_p13 = pnand %p14843_p12, %p14837_p9 }
 0x136   :  { %14847 = shalt.err (!%p14844_p13)
}
 0x137   :  { %142 = dma.hbm_to_vmem [thread:$0]  %s16474_s26, 16, %s140_s9, [#allocation16]  }
 0x138   :  { %s15020_s17 = smov [#allocation20]   ;;  %s15021_s5 = smov [#allocation23]  }
 0x139   :  { %s161_s27 = sshll.u32 %s15020_s17, 4  ;;  %s183_s15 = sshll.u32 %s15021_s5, 4  ;;  %s162_s27 = int_to_ptr.vmem [resolvable:$true] %s161_s27  ;;  %s184_s15 = int_to_ptr.vmem [resolvable:$true] %s183_s15 }
 0x13a   :  { %s14848_s4 = scalar_lea.hbm %s16399_s10, 16 }
 0x13b   :  { %p14849_p0 = scmp.ne.s32.totalorder %s16399_s10, %s14848_s4  ;;  %p14852_p1 = scmp.lt.u32.totalorder %s14848_s4, %s16399_s10 }
 0x13d   :  { %p14854_p2 = pnand %p14852_p1, %p14849_p0 }
 0x13f   :  { %14857 = shalt.err (!%p14854_p2)
}
 0x140   :  { %s14858_s9 = scalar_lea.vmem %s162_s27, 16  ;;  %s14862_s26 = scalar_lea.vmem %s162_s27, 32 }
 0x141   :  { %p14859_p3 = scmp.ne.s32.totalorder %s162_s27, %s14858_s9  ;;  %p14863_p4 = scmp.lt.s32.totalorder %s162_s27, %s162_s27 }
 0x142   :  { %p14864_p5 = scmp.lt.s32.totalorder %s14862_s26, %s14858_s9 }
 0x144   :  { %p14865_p6 = por %p14864_p5, %p14863_p4 }
 0x146   :  { %p14866_p7 = pnand %p14865_p6, %p14859_p3 }
 0x148   :  { %14869 = shalt.err (!%p14866_p7)
}
 0x149   :  { %164 = dma.hbm_to_vmem [thread:$0]  %s16399_s10, 16, %s162_s27, [#allocation19]  }
 0x14a   :  { %s14870_s24 = scalar_lea.hbm %s16401_s12, 32 }
 0x14b   :  { %p14871_p8 = scmp.ne.s32.totalorder %s16401_s12, %s14870_s24  ;;  %p14874_p9 = scmp.lt.u32.totalorder %s14870_s24, %s16401_s12 }
 0x14d   :  { %p14876_p10 = pnand %p14874_p9, %p14871_p8 }
 0x14f   :  { %14879 = shalt.err (!%p14876_p10)
}
 0x150   :  { %s14880_s6 = scalar_lea.vmem %s184_s15, 32  ;;  %p14885_p12 = scmp.lt.s32.totalorder %s184_s15, %s184_s15 }
 0x151   :  { %p14881_p11 = scmp.ne.s32.totalorder %s184_s15, %s14880_s6  ;;  %p14886_p13 = scmp.lt.s32.totalorder %s14880_s6, %s14880_s6 }
 0x153   :  { %p14887_p0 = por %p14886_p13, %p14885_p12 }
 0x155   :  { %p14888_p1 = pnand %p14887_p0, %p14881_p11 }
 0x157   :  { %14891 = shalt.err (!%p14888_p1)
}
 0x158   :  { %186 = dma.hbm_to_vmem [thread:$0]  %s16401_s12, 32, %s184_s15, [#allocation22]  }
 0x159   :  { %s15022_s1 = smov [#allocation26]   ;;  %s15023_s2 = smov [#allocation29]  }
 0x15a   :  { %s204_s4 = sshll.u32 %s15022_s1, 4  ;;  %s226_s13 = sshll.u32 %s15023_s2, 4  ;;  %s205_s4 = int_to_ptr.vmem [resolvable:$true] %s204_s4  ;;  %s15410_s13 = int_to_ptr.vmem [resolvable:$true] %s226_s13 }
 0x15b   :  { %s14892_s9 = scalar_lea.hbm %s16403_s14, 40960 }
 0x15c   :  { %p14893_p2 = scmp.ne.s32.totalorder %s16403_s14, %s14892_s9  ;;  %p14896_p3 = scmp.lt.u32.totalorder %s14892_s9, %s16403_s14 }
 0x15e   :  { %p14898_p4 = pnand %p14896_p3, %p14893_p2 }
 0x160   :  { %14901 = shalt.err (!%p14898_p4)
}
 0x161   :  { %s14902_s12 = scalar_lea.vmem %s205_s4, 40960  ;;  %p14907_p6 = scmp.lt.s32.totalorder %s205_s4, %s205_s4 }
 0x162   :  { %p14903_p5 = scmp.ne.s32.totalorder %s205_s4, %s14902_s12  ;;  %p14908_p7 = scmp.lt.s32.totalorder %s14902_s12, %s14902_s12 }
 0x164   :  { %p14909_p8 = por %p14908_p7, %p14907_p6 }
 0x166   :  { %p14910_p9 = pnand %p14909_p8, %p14903_p5 }
 0x168   :  { %14913 = shalt.err (!%p14910_p9)
}
 0x169   :  { %210 = dma.hbm_to_vmem [thread:$0]  %s16403_s14, 40960, %s205_s4, [#allocation25], %s15010_s3, %s15010_s3, %s15011_s25  }
 0x16a   :  { %s14914_s30 = scalar_lea.hbm %s16405_s16, 20480 }
 0x16b   :  { %p14915_p10 = scmp.ne.s32.totalorder %s16405_s16, %s14914_s30  ;;  %p14918_p11 = scmp.lt.u32.totalorder %s14914_s30, %s16405_s16 }
 0x16d   :  { %p14920_p12 = pnand %p14918_p11, %p14915_p10 }
 0x16f   :  { %14923 = shalt.err (!%p14920_p12)
}
 0x170   :  { %s14924_s27 = scalar_lea.vmem %s15410_s13, 20480  ;;  %p14929_p0 = scmp.lt.s32.totalorder %s15410_s13, %s15410_s13 }
 0x171   :  { %p14925_p13 = scmp.ne.s32.totalorder %s15410_s13, %s14924_s27  ;;  %p14930_p1 = scmp.lt.s32.totalorder %s14924_s27, %s14924_s27 }
 0x173   :  { %p14931_p2 = por %p14930_p1, %p14929_p0 }
 0x175   :  { %p14932_p3 = pnand %p14931_p2, %p14925_p13 }
 0x177   :  { %14935 = shalt.err (!%p14932_p3)
}
 0x178   :  { %232 = dma.hbm_to_vmem [thread:$0]  %s16405_s16, 20480, %s15410_s13, [#allocation28], %s15010_s3, %s15010_s3, %s15011_s25  }
 0x179   :  { %s15024_s4 = smov [#allocation32]   ;;  %s15025_s7 = smov [#allocation33]  }
 0x17a   :  { %s251_s2 = sshll.u32 %s15024_s4, 4  ;;  %s267_s8 = sshll.u32 %s15025_s7, 4  ;;  %s252_s2 = int_to_ptr.vmem [resolvable:$true] %s251_s2  ;;  %s268_s8 = int_to_ptr.vmem [resolvable:$true] %s267_s8 }
 0x17b   :  { %s14936_s28 = scalar_lea.hbm %s16407_s18, 32 }
 0x17c   :  { %p14937_p4 = scmp.ne.s32.totalorder %s16407_s18, %s14936_s28  ;;  %p14940_p5 = scmp.lt.u32.totalorder %s14936_s28, %s16407_s18 }
 0x17e   :  { %p14942_p6 = pnand %p14940_p5, %p14937_p4 }
 0x180   :  { %14945 = shalt.err (!%p14942_p6)
}
 0x181   :  { %s14946_s16 = scalar_lea.vmem %s252_s2, 32  ;;  %p14951_p8 = scmp.lt.s32.totalorder %s252_s2, %s252_s2 }
 0x182   :  { %p14947_p7 = scmp.ne.s32.totalorder %s252_s2, %s14946_s16  ;;  %p14952_p9 = scmp.lt.s32.totalorder %s14946_s16, %s14946_s16 }
 0x184   :  { %p14953_p10 = por %p14952_p9, %p14951_p8 }
 0x186   :  { %p14954_p11 = pnand %p14953_p10, %p14947_p7 }
 0x188   :  { %14957 = shalt.err (!%p14954_p11)
}
 0x189   :  { %254 = dma.hbm_to_vmem [thread:$0]  %s16407_s18, 32, %s252_s2, [#allocation31]  }
 0x18a   :  { %s14958_s24 = scalar_lea.hbm %s16411_s22, 16 }
 0x18b   :  { %p14959_p12 = scmp.ne.s32.totalorder %s16411_s22, %s14958_s24  ;;  %p14962_p13 = scmp.lt.u32.totalorder %s14958_s24, %s16411_s22 }
 0x18d   :  { %p14964_p0 = pnand %p14962_p13, %p14959_p12 }
 0x18f   :  { %14967 = shalt.err (!%p14964_p0)
}
 0x190   :  { %s14968_s6 = scalar_lea.vmem %s268_s8, 16  ;;  %s14972_s10 = scalar_lea.vmem %s268_s8, 32 }
 0x191   :  { %p14969_p1 = scmp.ne.s32.totalorder %s268_s8, %s14968_s6  ;;  %p14973_p2 = scmp.lt.s32.totalorder %s268_s8, %s268_s8 }
 0x192   :  { %p14974_p3 = scmp.lt.s32.totalorder %s14972_s10, %s14968_s6 }
 0x194   :  { %p14975_p4 = por %p14974_p3, %p14973_p2 }
 0x196   :  { %p14976_p5 = pnand %p14975_p4, %p14969_p1 }
 0x198   :  { %14979 = shalt.err (!%p14976_p5)
}
 0x199   :  { %270 = dma.hbm_to_vmem [thread:$0]  %s16411_s22, 16, %s268_s8, [#allocation34]  }
 0x19a   :  { %14980 = dma.done.wait [#allocation5], 1280  }
 0x19b   :  { %14981 = vsyncadd [#allocation5], 4294966016 }
 0x19c   :  { %14982 = dma.done.wait [#allocation7], 1600  }
 0x19d   :  { %14983 = vsyncadd [#allocation7], 4294965696 }
 0x19e   :  { %14984 = dma.done.wait [#allocation10], 400  }
 0x19f   :  { %14985 = vsyncadd [#allocation10], 4294966896 }
 0x1a0   :  { %14986 = dma.done.wait [#allocation13], 3088  }
 0x1a1   :  { %14987 = vsyncadd [#allocation13], 4294964208 }
 0x1a2   :  { %14988 = dma.done.wait [#allocation16], 400  }
 0x1a3   :  { %14989 = vsyncadd [#allocation16], 4294966896 }
 0x1a4   :  { %14990 = dma.done.wait [#allocation19], 3088  }
 0x1a5   :  { %14991 = vsyncadd [#allocation19], 4294964208 }
 0x1a6   :  { %14992 = dma.done.wait [#allocation22], 9632  }
 0x1a7   :  { %14993 = vsyncadd [#allocation22], 4294957664 }
 0x1a8   :  { %14994 = dma.done.wait [#allocation25], 81920  }
 0x1a9   :  { %14995 = vsyncadd [#allocation25], 4294885376 }
 0x1aa   :  { %14996 = dma.done.wait [#allocation28], 20512  }
 0x1ab   :  { %14997 = vsyncadd [#allocation28], 4294946784 }
 0x1ac   :  { %14998 = dma.done.wait [#allocation31], 20512  }
 0x1ad   :  { %14999 = vsyncadd [#allocation31], 4294946784 }
 0x1ae   :  { %15000 = dma.done.wait [#allocation34], 16  }
 0x1af   :  { %15001 = vsyncadd [#allocation34], 4294967280  ;;  %v12786_v1 = vld [vmem:[#allocation9] sm:$0xff]   ;;  %v12787_v2 = vld [vmem:[#allocation9 + $0x8] sm:$0xff]   ;;  %vm437_vm0 = vcmask 392192   ;;  %v15026_v44 = vmov 0  }
 0x1b0   :  { %12587 = vmatprep.subr.bf16.mxu0 %v12786_v1  ;;  %12742 = vmatprep.subr.bf16.mxu1 %v12786_v1  ;;  %v12789_v3 = vld [vmem:[#allocation4] sm:$0xff]   ;;  %v12790_v5 = vld [vmem:[#allocation4 + $0x8] sm:$0xff]   ;;  %v12796_v7 = vld [vmem:[#allocation15] sm:$0xff]   ;;  %1045 = vst [vmem:[#allocation2] sm:$0xf] %v15026_v44  ;;  %vm3083_vm1 = vcmask 1043456  }
 0x1b1   :  { %12588 = vmatpush3.bf16.msra.mxu0 %v12786_v1  ;;  %12745 = vmatpush3.bf16.msra.mxu1 %v12786_v1  ;;  %v12788_v4 = vld [vmem:[#allocation9 + $0x10] sm:$0xff]   ;;  %v12791_v8 = vld [vmem:[#allocation4 + $0x10] sm:$0xff]   ;;  %v12800_v10 = vld [vmem:[#allocation15 + $0x8] sm:$0xff]   ;;  %1067 = vst [vmem:[#allocation2 + $0xec] sm:$0xf] %v15026_v44  ;;  %vm3079_vm2 = vcmask 719872  }
 0x1b2   :  { %12589 = vmatprep.subr.bf16.mxu0 %v12787_v2  ;;  %12743 = vmatprep.subr.bf16.mxu1 %v12787_v2  ;;  %v12795_v6 = vld [vmem:[#allocation4 + $0x40] sm:$0xff]   ;;  %v12798_v9 = vld [vmem:[#allocation4 + $0x48] sm:$0xff]   ;;  %v12802_v12 = vld [vmem:[#allocation6] sm:$0xff]   ;;  %s16547_s29 = sld [smem:[#allocation83_spill]]  ;;  %vm15028_vm3 = vmmov 0   ;;  %vm10791_vm4 = vcmask 523264  }
 0x1b3   :  { %12593 = vmatprep.mubr.msk.bf16.mxu0 %vm437_vm0, %v12789_v3  ;;  %12609 = vmatprep.mubr.msk.bf16.mxu1 %vm437_vm0, %v12795_v6  ;;  %v12801_v11 = vld [vmem:[#allocation15 + $0x10] sm:$0xff]   ;;  %v12792_v13 = vld [vmem:[#allocation4 + $0x18] sm:$0xff]   ;;  %v12794_v17 = vld [vmem:[#allocation4 + $0x28] sm:$0xff]   ;;  %vm10869_vm5 = vcmask 7168   ;;  %s16548_s18 = sld [smem:[#allocation84_spill]] }
 0x1b4   :  { %v12793_v14 = vld [vmem:[#allocation4 + $0x20] sm:$0xff]   ;;  %v12803_v15 = vld [vmem:[#allocation6 + $0x8] sm:$0xff]   ;;  %v12797_v18 = vld [vmem:[#allocation4 + $0x30] sm:$0xff]  }
 0x1b5   :  { %12590 = vmatpush3.bf16.msra.mxu0 %v12787_v2  ;;  %12746 = vmatpush3.bf16.msra.mxu1 %v12787_v2  ;;  %v12804_v16 = vld [vmem:[#allocation6 + $0x10] sm:$0xff]   ;;  %v12812_v19 = vld [vmem:[#allocation12 + $0x80] sm:$0xff]   ;;  %v12815_v24 = vld [vmem:[#allocation12 + $0x88] sm:$0xff]  }
 0x1b6   :  { %12591 = vmatprep.subr.bf16.mxu0 %v12788_v4  ;;  %12744 = vmatprep.subr.bf16.mxu1 %v12788_v4  ;;  %v12813_v20 = vld [vmem:[#allocation12 + $0x40] sm:$0xff]   ;;  %v12816_v25 = vld [vmem:[#allocation12 + $0x48] sm:$0xff]   ;;  %v12818_v28 = vld [vmem:[#allocation12 + $0x90] sm:$0xff]  }
 0x1b7   :  { %v12805_v21 = vld [vmem:[#allocation6 + $0x18] sm:$0xff]   ;;  %v12806_v23 = vld [vmem:[#allocation6 + $0x20] sm:$0xff]   ;;  %v12799_v27 = vld [vmem:[#allocation4 + $0x38] sm:$0xff]  }
 0x1b8   :  { %v12814_v22 = vld [vmem:[#allocation12] sm:$0xff]   ;;  %v12817_v26 = vld [vmem:[#allocation12 + $0x8] sm:$0xff]   ;;  %v12819_v29 = vld [vmem:[#allocation12 + $0x50] sm:$0xff]  }
 0x1b9   :  { %12592 = vmatpush3.bf16.msra.mxu0 %v12788_v4  ;;  %12747 = vmatpush3.bf16.msra.mxu1 %v12788_v4  ;;  %v12820_v30 = vld [vmem:[#allocation12 + $0x10] sm:$0xff]   ;;  %v12809_v33 = vld [vmem:[#allocation6 + $0x38] sm:$0xff]   ;;  %v12810_v34 = vld [vmem:[#allocation6 + $0x40] sm:$0xff]  }
 0x1ba   :  { %12613 = vmatprep.subr.bf16.mxu1 %v12796_v7  ;;  %12324 = vmatprep.subr.bf16.mxu0 %v12813_v20  ;;  %v12807_v31 = vld [vmem:[#allocation6 + $0x28] sm:$0xff]   ;;  %v12808_v32 = vld [vmem:[#allocation6 + $0x30] sm:$0xff]   ;;  %v12824_v38 = vld [vmem:[#allocation12 + $0x60] sm:$0xff]  }
 0x1bb   :  { %v12811_v35 = vld [vmem:[#allocation6 + $0x48] sm:$0xff]   ;;  %v12822_v36 = vld [vmem:[#allocation12 + $0x58] sm:$0xff]   ;;  %v12826_v40 = vld [vmem:[#allocation12 + $0x20] sm:$0xff]  }
 0x1bc   :  { %12594 = vmatmul.mubr.msk.bf16.vlgmr.msra.gmra.mrb[0].mxu0 %vm437_vm0, %v12790_v5  ;;  %12610 = vmatmul.mubr.msk.bf16.vlgmr.msra.gmra.mrb[0].mxu1 %vm437_vm0, %v12798_v9  ;;  %v12823_v37 = vld [vmem:[#allocation12 + $0x18] sm:$0xff]   ;;  %v12827_v41 = vld [vmem:[#allocation12 + $0x68] sm:$0xff]   ;;  %v12825_v42 = vld [vmem:[#allocation12 + $0xa0] sm:$0xff]  }
 0x1bd   :  { %12597 = vmatprep.mubr.msk.bf16.mxu0 %vm437_vm0, %v12791_v8  ;;  %12614 = vmatpush3.bf16.msra.mxu1 %v12796_v7  ;;  %v12821_v39 = vld [vmem:[#allocation12 + $0x98] sm:$0xff]   ;;  %v12828_v43 = vld [vmem:[#allocation12 + $0x28] sm:$0xff]   ;;  %v12830_v45 = vld [vmem:[#allocation12 + $0x70] sm:$0xff]  }
 0x1be   :  { %12615 = vmatprep.subr.bf16.mxu1 %v12800_v10  ;;  %12619 = vmatprep.mubr.msk.bf16.mxu1 %vm437_vm0, %v12802_v12  ;;  %v12829_v46 = vld [vmem:[#allocation12 + $0xa8] sm:$0xff]   ;;  %v12831_v47 = vld [vmem:[#allocation12 + $0x30] sm:$0xff]   ;;  %v12833_v48 = vld [vmem:[#allocation12 + $0x78] sm:$0xff]  }
 0x1bf   :  { %12325 = vmatpush3.bf16.msra.mxu0 %v12814_v22  ;;  %v12832_v49 = vld [vmem:[#allocation12 + $0xb0] sm:$0xff]   ;;  %v12834_v50 = vld [vmem:[#allocation12 + $0x38] sm:$0xff]  }
 0x1c0   :  { %12326 = vmatprep.subr.bf16.mxu0 %v12816_v25  ;;  %v12837_v51 = vld [vmem:[#allocation12 + $0xb8] sm:$0xff]  }
 0x1c1   :  { %12616 = vmatpush3.bf16.msra.mxu1 %v12800_v10  ;;  %v15493_v52 = vld [vmem:[#allocation18 + $0x80] sm:$0xff]  }
 0x1c2   :  { %12617 = vmatprep.subr.bf16.mxu1 %v12801_v11  ;;  %v12842_v53 = vld [vmem:[#allocation18 + $0x40] sm:$0xff]  }
 0x1c3   :  { %12327 = vmatpush3.bf16.msra.mxu0 %v12817_v26  ;;  %v15496_v54 = vld [vmem:[#allocation11] ss:$0 sm:$0xff] }
 0x1c4   :  { %12598 = vmatmul.mubr.msk.bf16.gmra.mrb[4].mxu0 %vm437_vm0, %v12792_v13  ;;  %12328 = vmatprep.subr.bf16.mxu0 %v12819_v29 }
 0x1c5   :  { %12601 = vmatprep.mubr.msk.bf16.mxu0 %vm437_vm0, %v12793_v14  ;;  %12618 = vmatpush3.bf16.msra.mxu1 %v12801_v11 }
 0x1c6   :  { %12639 = vmatprep.subr.bf16.mxu1 %v12812_v19 }
 0x1c7   :  { %12329 = vmatpush3.bf16.msra.mxu0 %v12820_v30 }
 0x1c8   :  { %12620 = vmatmul.mubr.msk.bf16.vlgmr.msra.gmra.mrb[4].mxu1 %vm437_vm0, %v12803_v15  ;;  %12330 = vmatprep.subr.bf16.mxu0 %v12822_v36 }
 0x1c9   :  { %12623 = vmatprep.mubr.msk.bf16.mxu1 %vm437_vm0, %v12804_v16  ;;  %12640 = vmatpush3.bf16.msra.mxu1 %v12812_v19 }
 0x1ca   :  { %12641 = vmatprep.subr.bf16.mxu1 %v12815_v24 }
 0x1cb   :  { %12331 = vmatpush3.bf16.msra.mxu0 %v12823_v37 }
 0x1cc   :  { %12602 = vmatmul.mubr.msk.bf16.gmra.mrb[8].mxu0 %vm437_vm0, %v12794_v17  ;;  %12332 = vmatprep.subr.bf16.mxu0 %v12824_v38 }
 0x1cd   :  { %12605 = vmatprep.mubr.msk.bf16.mxu0 %vm437_vm0, %v12797_v18  ;;  %12642 = vmatpush3.bf16.msra.mxu1 %v12815_v24 }
 0x1ce   :  { %12643 = vmatprep.subr.bf16.mxu1 %v12818_v28 }
 0x1cf   :  { %12333 = vmatpush3.bf16.msra.mxu0 %v12826_v40 }
 0x1d0   :  { %12624 = vmatmul.mubr.msk.bf16.gmra.mrb[8].mxu1 %vm437_vm0, %v12805_v21  ;;  %12334 = vmatprep.subr.bf16.mxu0 %v12827_v41 }
 0x1d1   :  { %12627 = vmatprep.mubr.msk.bf16.mxu1 %vm437_vm0, %v12806_v23  ;;  %12644 = vmatpush3.bf16.msra.mxu1 %v12818_v28  ;;  %v15546_v28 = vld [vmem:[#allocation17] ss:$0 sm:$0xff] }
 0x1d2   :  { %12645 = vmatprep.subr.bf16.mxu1 %v12821_v39 }
 0x1d3   :  { %12335 = vmatpush3.bf16.msra.mxu0 %v12828_v43 }
 0x1d4   :  { %12606 = vmatmul.mubr.msk.bf16.gmra.mrb[12].mxu0 %vm437_vm0, %v12799_v27  ;;  %12336 = vmatprep.subr.bf16.mxu0 %v12830_v45 }
 0x1d5   :  { %12646 = vmatpush3.bf16.msra.mxu1 %v12821_v39 }
 0x1d6   :  { %12647 = vmatprep.subr.bf16.mxu1 %v12825_v42 }
 0x1d7   :  { %12337 = vmatpush3.bf16.msra.mxu0 %v12831_v47 }
 0x1d8   :  { %12628 = vmatmul.mubr.msk.bf16.gmra.mrb[12].mxu1 %vm437_vm0, %v12807_v31  ;;  %12338 = vmatprep.subr.bf16.mxu0 %v12833_v48 }
 0x1d9   :  { %12631 = vmatprep.mubr.msk.bf16.mxu1 %vm437_vm0, %v12808_v32  ;;  %12648 = vmatpush3.bf16.msra.mxu1 %v12825_v42 }
 0x1da   :  { %12649 = vmatprep.subr.bf16.mxu1 %v12829_v46 }
 0x1db   :  { %12339 = vmatpush3.bf16.msra.mxu0 %v12834_v50 }
 0x1dc   :  { %12675 = vmatprep.subr.bf16.mxu0 %v15493_v52 }
 0x1dd   :  { %12650 = vmatpush3.bf16.msra.mxu1 %v12829_v46 }
 0x1de   :  { %12651 = vmatprep.subr.bf16.mxu1 %v12832_v49 }
 0x1e0   :  { %12632 = vmatmul.mubr.msk.bf16.gmra.mrb[16].mxu1 %vm437_vm0, %v12809_v33 }
 0x1e1   :  { %12635 = vmatprep.mubr.msk.bf16.mxu1 %vm437_vm0, %v12810_v34  ;;  %12652 = vmatpush3.bf16.msra.mxu1 %v12832_v49 }
 0x1e2   :  { %12653 = vmatprep.subr.bf16.mxu1 %v12837_v51 }
 0x1e5   :  { %12654 = vmatpush3.bf16.msra.mxu1 %v12837_v51  ;;  %v15567_v51 = vld [vmem:[#allocation18 + $0x88] sm:$0xff]  }
 0x1e6   :  { %12418 = vmatprep.subr.bf16.mxu1 %v12842_v53 }
 0x1e8   :  { %12636 = vmatmul.mubr.msk.bf16.gmra.mrb[20].mxu1 %vm437_vm0, %v12811_v35 }
 0x28f   :  { %v12595_v55 = vpop.f32.mrb[0].mxu0  ;;  %v12611_v56 = vpop.f32.mrb[0].mxu1 }
 0x290   :  { %v511_v57 = vadd.f32 %v12595_v55, %v15496_v54  ;;  %v502_v58 = vpop.f32.mrb[1].mxu0  ;;  %v575_v59 = vadd.f32 %v12611_v56, %v15496_v54  ;;  %v566_v60 = vpop.f32.mrb[1].mxu1 }
 0x291   :  { %v503_v61 = vadd.f32 %v15496_v54, %v502_v58  ;;  %v12596_v62 = vpop.f32.mrb[2].mxu0  ;;  %v567_v63 = vadd.f32 %v15496_v54, %v566_v60  ;;  %v12612_v0 = vpop.f32.mrb[2].mxu1 }
 0x292   :  { %v583_v1 = vmax.f32 %v511_v57, 0.0  ;;  %v514_v2 = vadd.f32 %v12596_v62, %v15496_v54  ;;  %v505_v3 = vpop.f32.mrb[3].mxu0  ;;  %v599_v4 = vmax.f32 %v575_v59, 0.0  ;;  %v578_v5 = vadd.f32 %v12612_v0, %v15496_v54  ;;  %v569_v6 = vpop.f32.mrb[3].mxu1 }
 0x293   :  { %v581_v7 = vmax.f32 %v503_v61, 0.0  ;;  %v506_v8 = vadd.f32 %v15496_v54, %v505_v3  ;;  %v597_v9 = vmax.f32 %v567_v63, 0.0  ;;  %v570_v10 = vadd.f32 %v15496_v54, %v569_v6 }
 0x294   :  { %v15506_v11 = vpack.c.bf16 %v583_v1, %v583_v1  ;;  %v584_v12 = vmax.f32 %v514_v2, 0.0  ;;  %v15508_v13 = vpack.c.bf16 %v599_v4, %v599_v4  ;;  %v600_v14 = vmax.f32 %v578_v5, 0.0 }
 0x295   :  { %v15510_v15 = vpack.c.bf16 %v581_v7, %v581_v7  ;;  %v582_v16 = vmax.f32 %v506_v8, 0.0  ;;  %v15512_v17 = vpack.c.bf16 %v597_v9, %v597_v9  ;;  %v598_v18 = vmax.f32 %v570_v10, 0.0  ;;  %v12844_v10 = vld [vmem:[#allocation18] sm:$0xff]  }
 0x296   :  { %16475 = vst [vmem:[#allocation46_spill] sm:$0xff] %v15508_v13  ;;  %1027 = vst [vmem:[#allocation2 + $0x1c] sm:$0xf] %v15506_v11  ;;  %v15517_v19 = vpack.c.bf16 %v584_v12, %v584_v12  ;;  %v15522_v20 = vpack.c.bf16 %v600_v14, %v600_v14 }
 0x297   :  { %16476 = vst [vmem:[#allocation47_spill] sm:$0xff] %v15512_v17  ;;  %1049 = vst [vmem:[#allocation2 + $0x24] sm:$0xf] %v15506_v11  ;;  %v15526_v21 = vpack.c.bf16 %v582_v16, %v582_v16  ;;  %v12599_v22 = vpop.f32.mrb[4].mxu0  ;;  %v15531_v23 = vpack.c.bf16 %v598_v18, %v598_v18 }
 0x298   :  { %1069 = vst [vmem:[#allocation2 + $0x14] sm:$0xf] %v15506_v11  ;;  %1043 = vst [vmem:[#allocation2 + $0xdc] sm:$0xf] %v15508_v13  ;;  %v527_v24 = vadd.f32 %v12599_v22, %v15496_v54  ;;  %v518_v25 = vpop.f32.mrb[5].mxu0 }
 0x299   :  { %1065 = vst [vmem:[#allocation2 + $0xe4] sm:$0xf] %v15508_v13  ;;  %1085 = vst [vmem:[#allocation2 + $0xd4] sm:$0xf] %v15508_v13  ;;  %v519_v26 = vadd.f32 %v15496_v54, %v518_v25  ;;  %v12600_v27 = vpop.f32.mrb[6].mxu0 }
 0x29a   :  { %16477 = vst [vmem:[#allocation48_spill] sm:$0xff] %v15522_v20  ;;  %1025 = vst [vmem:[#allocation2 + $0x4] sm:$0xf] %v15510_v15  ;;  %v587_v29 = vmax.f32 %v527_v24, 0.0  ;;  %v530_v30 = vadd.f32 %v12600_v27, %v15496_v54  ;;  %v521_v31 = vpop.f32.mrb[7].mxu0 }
 0x29b   :  { %1047 = vst [vmem:[#allocation2 + $0xc] sm:$0xf] %v15510_v15  ;;  %1041 = vst [vmem:[#allocation2 + $0xc4] sm:$0xf] %v15512_v17  ;;  %v585_v32 = vmax.f32 %v519_v26, 0.0  ;;  %v522_v33 = vadd.f32 %v15496_v54, %v521_v31  ;;  %v12621_v34 = vpop.f32.mrb[4].mxu1 }
 0x29c   :  { %1063 = vst [vmem:[#allocation2 + $0xcc] sm:$0xf] %v15512_v17  ;;  %1083 = vst [vmem:[#allocation2 + $0xbc] sm:$0xf] %v15512_v17  ;;  %v15550_v35 = vpack.c.bf16 %v587_v29, %v587_v29  ;;  %v588_v36 = vmax.f32 %v530_v30, 0.0  ;;  %v855_v37 = vadd.f32 %v12621_v34, %v15546_v28  ;;  %v846_v38 = vpop.f32.mrb[5].mxu1 }
 0x29d   :  { %16478 = vst [vmem:[#allocation49_spill] sm:$0xff] %v15531_v23  ;;  %1028 = vst [vmem:[#allocation2 + $0x28] sm:$0xf] %v15517_v19  ;;  %v15553_v39 = vpack.c.bf16 %v585_v32, %v585_v32  ;;  %v586_v40 = vmax.f32 %v522_v33, 0.0  ;;  %v847_v41 = vadd.f32 %v15546_v28, %v846_v38  ;;  %v12622_v42 = vpop.f32.mrb[6].mxu1  ;;  %v12849_v29 = vld [vmem:[#allocation18 + $0x48] sm:$0xff]  }
 0x29e   :  { %1050 = vst [vmem:[#allocation2 + $0x30] sm:$0xf] %v15517_v19  ;;  %1070 = vst [vmem:[#allocation2 + $0x20] sm:$0xf] %v15517_v19  ;;  %v15559_v43 = vpack.c.bf16 %v588_v36, %v588_v36  ;;  %v927_v45 = vmax.f32 %v855_v37, 0.0  ;;  %v858_v46 = vadd.f32 %v12622_v42, %v15546_v28  ;;  %v849_v47 = vpop.f32.mrb[7].mxu1 }
 0x29f   :  { %1044 = vst [vmem:[#allocation2 + $0xe8] sm:$0xf] %v15522_v20  ;;  %1086 = vst [vmem:[#allocation2 + $0xe0] sm:$0xf] %v15522_v20  ;;  %v15565_v48 = vpack.c.bf16 %v586_v40, %v586_v40  ;;  %v12603_v49 = vpop.f32.mrb[8].mxu0  ;;  %v925_v53 = vmax.f32 %v847_v41, 0.0  ;;  %v850_v55 = vadd.f32 %v15546_v28, %v849_v47 }
 0x2a0   :  { %1026 = vst [vmem:[#allocation2 + $0x10] sm:$0xf] %v15526_v21  ;;  %1048 = vst [vmem:[#allocation2 + $0x18] sm:$0xf] %v15526_v21  ;;  %v543_v56 = vadd.f32 %v12603_v49, %v15496_v54  ;;  %v534_v57 = vpop.f32.mrb[9].mxu0  ;;  %v15574_v60 = vpack.c.bf16 %v927_v45, %v927_v45  ;;  %v928_v6 = vmax.f32 %v858_v46, 0.0 }
 0x2a1   :  { %1068 = vst [vmem:[#allocation2 + $0x8] sm:$0xf] %v15526_v21  ;;  %1042 = vst [vmem:[#allocation2 + $0xd0] sm:$0xf] %v15531_v23  ;;  %v1087_v50 = vld [vmem:[#allocation2] sm:$0xff]  ;;  %v535_v61 = vadd.f32 %v15496_v54, %v534_v57  ;;  %v12604_v62 = vpop.f32.mrb[10].mxu0  ;;  %v15581_v2 = vpack.c.bf16 %v925_v53, %v925_v53 }
 0x2a2   :  { %1064 = vst [vmem:[#allocation2 + $0xd8] sm:$0xf] %v15531_v23  ;;  %1084 = vst [vmem:[#allocation2 + $0xc8] sm:$0xf] %v15531_v23  ;;  %v591_v3 = vmax.f32 %v543_v56, 0.0  ;;  %v546_v4 = vadd.f32 %v12604_v62, %v15496_v54  ;;  %v537_v5 = vpop.f32.mrb[11].mxu0  ;;  %v15593_v18 = vpack.c.bf16 %v928_v6, %v928_v6 }
 0x2a3   :  { %1031 = vst [vmem:[#allocation2 + $0x4c] sm:$0xf] %v15550_v35  ;;  %1053 = vst [vmem:[#allocation2 + $0x54] sm:$0xf] %v15550_v35  ;;  %v926_v7 = vmax.f32 %v850_v55, 0.0  ;;  %v589_v8 = vmax.f32 %v535_v61, 0.0  ;;  %v538_v9 = vadd.f32 %v15496_v54, %v537_v5 }
 0x2a4   :  { %1073 = vst [vmem:[#allocation2 + $0x44] sm:$0xf] %v15550_v35  ;;  %1029 = vst [vmem:[#allocation2 + $0x34] sm:$0xf] %v15553_v39  ;;  %v12839_v1 = vld [vmem:[#allocation2 + $0x1c] ss:$12 sps:$4 sm:$0xff]   ;;  %v15590_v14 = vpack.c.bf16 %v591_v3, %v591_v3 }
 0x2a5   :  { %1051 = vst [vmem:[#allocation2 + $0x3c] sm:$0xf] %v15553_v39  ;;  %1071 = vst [vmem:[#allocation2 + $0x2c] sm:$0xf] %v15553_v39  ;;  %v12625_v12 = vpop.f32.mrb[8].mxu1  ;;  %v592_v16 = vmax.f32 %v546_v4, 0.0  ;;  %v15595_v22 = vpack.c.bf16 %v926_v7, %v926_v7  ;;  %v15599_v26 = vpack.c.bf16 %v589_v8, %v589_v8 }
 0x2a6   :  { %1032 = vst [vmem:[#allocation2 + $0x58] sm:$0xf] %v15559_v43  ;;  %1054 = vst [vmem:[#allocation2 + $0x60] sm:$0xf] %v15559_v43  ;;  %v862_v24 = vpop.f32.mrb[9].mxu1  ;;  %v590_v27 = vmax.f32 %v538_v9, 0.0  ;;  %v871_v30 = vadd.f32 %v12625_v12, %v15546_v28 }
 0x2a7   :  { %1074 = vst [vmem:[#allocation2 + $0x50] sm:$0xf] %v15559_v43  ;;  %v1089_v58 = vld [vmem:[#allocation2 + $0xc] sm:$0xff]  ;;  %1030 = vst [vmem:[#allocation2 + $0x40] sm:$0xf] %v15565_v48  ;;  %v863_v31 = vadd.f32 %v15546_v28, %v862_v24  ;;  %v15610_v33 = vpack.c.bf16 %v592_v16, %v592_v16  ;;  %v12607_v40 = vpop.f32.mrb[12].mxu0 }
 0x2a8   :  { %v12835_v59 = vld [vmem:[#allocation2 + $0x4] ss:$12 sps:$4 sm:$0xff]   ;;  %1052 = vst [vmem:[#allocation2 + $0x48] sm:$0xf] %v15565_v48  ;;  %1072 = vst [vmem:[#allocation2 + $0x38] sm:$0xf] %v15565_v48  ;;  %v10975_v0 = vcombine.low %v1087_v50, %v1089_v58  ;;  %v15620_v38 = vpack.c.bf16 %v590_v27, %v590_v27  ;;  %v559_v47 = vadd.f32 %v12607_v40, %v15496_v54 }
 0x2a9   :  { %1832 = vst [vmem:[#allocation2] sm:$0xf] %v15026_v44  ;;  %v12838_v63 = vld [vmem:[#allocation2 + $0x8] ss:$12 sps:$4 sm:$0xff]   ;;  %1518 = vmatprep.mubr.bf16.mxu0 %v12835_v59  ;;  %1814 = vst [vmem:[#allocation2 + $0x1c] sm:$0xf] %v15574_v60 }
 0x2aa   :  { %1835 = vst [vmem:[#allocation2 + $0x24] sm:$0xf] %v15574_v60  ;;  %1854 = vst [vmem:[#allocation2 + $0x14] sm:$0xf] %v15574_v60  ;;  %12655 = vmatprep.mubr.bf16.mxu1 %v12838_v63  ;;  %1519 = vmatmul.mubr.bf16.vlgmr.msra.gmra.mrb[16].mxu0 %v10975_v0  ;;  %v15597_v25 = vld [vmem:[#allocation2 + $0xe0] ss:$12 sps:$4 sm:$0xff]  }
 0x2ab   :  { %1812 = vst [vmem:[#allocation2 + $0x4] sm:$0xf] %v15581_v2  ;;  %1833 = vst [vmem:[#allocation2 + $0xc] sm:$0xf] %v15581_v2  ;;  %1526 = vmatprep.mubr.bf16.mxu0 %v12839_v1  ;;  %12676 = vmatpush3.bf16.msra.mxu0 %v15493_v52  ;;  %v15604_v32 = vld [vmem:[#allocation18 + $0x90] sm:$0xff]   ;;  %v12626_v52 = vpop.f32.mrb[10].mxu1 }
 0x2ac   :  { %12677 = vmatprep.subr.bf16.mxu0 %v15567_v51  ;;  %1852 = vst [vmem:[#allocation2 + $0xec] sm:$0xf] %v15026_v44  ;;  %1035 = vst [vmem:[#allocation2 + $0x7c] sm:$0xf] %v15590_v14  ;;  %v12843_v34 = vld [vmem:[#allocation2 + $0x20] ss:$12 sps:$4 sm:$0xff]   ;;  %v874_v36 = vadd.f32 %v12626_v52, %v15546_v28 }
 0x2ad   :  { %1057 = vst [vmem:[#allocation2 + $0x84] sm:$0xf] %v15590_v14  ;;  %1077 = vst [vmem:[#allocation2 + $0x74] sm:$0xf] %v15590_v14  ;;  %v865_v37 = vpop.f32.mrb[11].mxu1  ;;  %v12850_v41 = vld [vmem:[#allocation18 + $0x8] sm:$0xff]   ;;  %12656 = vmatmul.mubr.bf16.vlgmr.msra.gmra.mrb[24].mxu1 %v12843_v34 }
 0x2ae   :  { %1815 = vst [vmem:[#allocation2 + $0x28] sm:$0xf] %v15593_v18  ;;  %1813 = vst [vmem:[#allocation2 + $0x10] sm:$0xf] %v15595_v22  ;;  %v931_v42 = vmax.f32 %v871_v30, 0.0  ;;  %v929_v45 = vmax.f32 %v863_v31, 0.0  ;;  %v866_v46 = vadd.f32 %v15546_v28, %v865_v37  ;;  %12419 = vmatpush3.bf16.msra.mxu1 %v12844_v10 }
 0x2af   :  { %1834 = vst [vmem:[#allocation2 + $0x18] sm:$0xf] %v15595_v22  ;;  %1853 = vst [vmem:[#allocation2 + $0x8] sm:$0xf] %v15595_v22  ;;  %v550_v49 = vpop.f32.mrb[13].mxu0  ;;  %12678 = vmatpush3.bf16.msra.mxu0 %v15567_v51  ;;  %v12853_v53 = vld [vmem:[#allocation18 + $0x50] sm:$0xff]   ;;  %12420 = vmatprep.subr.bf16.mxu1 %v12849_v29 }
 0x2b0   :  { %1033 = vst [vmem:[#allocation2 + $0x64] sm:$0xf] %v15599_v26  ;;  %1055 = vst [vmem:[#allocation2 + $0x6c] sm:$0xf] %v15599_v26  ;;  %v12845_v50 = vld [vmem:[#allocation2 + $0x38] ss:$12 sps:$4 sm:$0xff]   ;;  %v551_v55 = vadd.f32 %v15496_v54, %v550_v49  ;;  %v15633_v59 = vpack.c.bf16 %v931_v42, %v931_v42  ;;  %v15635_v61 = vpack.c.bf16 %v929_v45, %v929_v45  ;;  %12679 = vmatprep.subr.bf16.mxu0 %v15604_v32 }
 0x2b1   :  { %1075 = vst [vmem:[#allocation2 + $0x5c] sm:$0xf] %v15599_v26  ;;  %1855 = vst [vmem:[#allocation2 + $0x20] sm:$0xf] %v15593_v18  ;;  %v12608_v56 = vpop.f32.mrb[14].mxu0  ;;  %v12872_v51 = vld [vmem:[#allocation18 + $0x98] sm:$0xff]   ;;  %12659 = vmatprep.mubr.bf16.mxu1 %v12845_v50 }
 0x2b2   :  { %1036 = vst [vmem:[#allocation2 + $0x88] sm:$0xf] %v15610_v33  ;;  %1058 = vst [vmem:[#allocation2 + $0x90] sm:$0xf] %v15610_v33  ;;  %v12847_v58 = vld [vmem:[#allocation2 + $0x34] ss:$12 sps:$4 sm:$0xff]   ;;  %v562_v63 = vadd.f32 %v12608_v56, %v15496_v54  ;;  %12421 = vmatpush3.bf16.msra.mxu1 %v12850_v41 }
 0x2b3   :  { %1078 = vst [vmem:[#allocation2 + $0x80] sm:$0xf] %v15610_v33  ;;  %1034 = vst [vmem:[#allocation2 + $0x70] sm:$0xf] %v15620_v38  ;;  %v595_v62 = vmax.f32 %v559_v47, 0.0  ;;  %v553_v0 = vpop.f32.mrb[15].mxu0  ;;  %12680 = vmatpush3.bf16.msra.mxu0 %v15604_v32  ;;  %12422 = vmatprep.subr.bf16.mxu1 %v12853_v53 }
 0x2b4   :  { %1056 = vst [vmem:[#allocation2 + $0x78] sm:$0xf] %v15620_v38  ;;  %1076 = vst [vmem:[#allocation2 + $0x68] sm:$0xf] %v15620_v38  ;;  %v15639_v1 = vld [vmem:[#allocation2 + $0x4c] ss:$12 sps:$4 sm:$0xff]   ;;  %v554_v6 = vadd.f32 %v15496_v54, %v553_v0  ;;  %12681 = vmatprep.subr.bf16.mxu0 %v12872_v51 }
 0x2b5   :  { %1836 = vst [vmem:[#allocation2 + $0x30] sm:$0xf] %v15593_v18  ;;  %v932_v3 = vmax.f32 %v874_v36, 0.0  ;;  %v930_v4 = vmax.f32 %v866_v46, 0.0  ;;  %v593_v5 = vmax.f32 %v551_v55, 0.0  ;;  %v12855_v7 = vld [vmem:[#allocation18 + $0x10] sm:$0xff]   ;;  %v15651_v10 = vpack.c.bf16 %v595_v62, %v595_v62 }
 0x2b6   :  { %v12846_v57 = vld [vmem:[#allocation2 + $0x18] ss:$12 sps:$4 sm:$0xff]   ;;  %1818 = vst [vmem:[#allocation2 + $0x4c] sm:$0xf] %v15633_v59  ;;  %1839 = vst [vmem:[#allocation2 + $0x54] sm:$0xf] %v15633_v59  ;;  %12423 = vmatpush3.bf16.msra.mxu1 %v12855_v7 }
 0x2b7   :  { %1527 = vmatmul.mubr.bf16.gmra.mrb[20].mxu0 %v12846_v57  ;;  %1858 = vst [vmem:[#allocation2 + $0x44] sm:$0xf] %v15633_v59  ;;  %1816 = vst [vmem:[#allocation2 + $0x34] sm:$0xf] %v15635_v61  ;;  %v12629_v8 = vpop.f32.mrb[12].mxu1  ;;  %v15649_v9 = vld [vmem:[#allocation18 + $0xa0] sm:$0xff]   ;;  %v15653_v12 = vpack.c.bf16 %v932_v3, %v932_v3  ;;  %v15656_v16 = vpack.c.bf16 %v930_v4, %v930_v4  ;;  %v15658_v27 = vpack.c.bf16 %v593_v5, %v593_v5 }
 0x2b8   :  { %1837 = vst [vmem:[#allocation2 + $0x3c] sm:$0xf] %v15635_v61  ;;  %1856 = vst [vmem:[#allocation2 + $0x2c] sm:$0xf] %v15635_v61  ;;  %v596_v54 = vmax.f32 %v562_v63, 0.0  ;;  %1534 = vmatprep.mubr.bf16.mxu0 %v12847_v58  ;;  %v878_v24 = vpop.f32.mrb[13].mxu1  ;;  %v887_v30 = vadd.f32 %v12629_v8, %v15546_v28  ;;  %12682 = vmatpush3.bf16.msra.mxu0 %v12872_v51 }
 0x2b9   :  { %16479 = vst [vmem:[#allocation50_spill] sm:$0xff] %v15651_v10  ;;  %v594_v29 = vmax.f32 %v554_v6, 0.0  ;;  %v879_v31 = vadd.f32 %v15546_v28, %v878_v24  ;;  %v12630_v52 = vpop.f32.mrb[14].mxu1  ;;  %1039 = vst [vmem:[#allocation2 + $0xac] sm:$0xf] %v15651_v10  ;;  %v12859_v36 = vld [vmem:[#allocation18 + $0x58] sm:$0xff]   ;;  %12683 = vmatprep.subr.bf16.mxu0 %v15649_v9 }
 0x2ba   :  { %1061 = vst [vmem:[#allocation2 + $0xb4] sm:$0xf] %v15651_v10  ;;  %1081 = vst [vmem:[#allocation2 + $0xa4] sm:$0xf] %v15651_v10  ;;  %v15665_v32 = vpack.c.bf16 %v596_v54, %v596_v54  ;;  %v12852_v34 = vld [vmem:[#allocation2 + $0x50] ss:$12 sps:$4 sm:$0xff]   ;;  %v890_v37 = vadd.f32 %v12630_v52, %v15546_v28  ;;  %12424 = vmatprep.subr.bf16.mxu1 %v12859_v36 }
 0x2bb   :  { %1819 = vst [vmem:[#allocation2 + $0x58] sm:$0xf] %v15653_v12  ;;  %1817 = vst [vmem:[#allocation2 + $0x40] sm:$0xf] %v15656_v16  ;;  %v881_v40 = vpop.f32.mrb[15].mxu1  ;;  %v15675_v41 = vpack.c.bf16 %v594_v29, %v594_v29  ;;  %v935_v42 = vmax.f32 %v887_v30, 0.0  ;;  %12660 = vmatmul.mubr.bf16.gmra.mrb[28].mxu1 %v12852_v34 }
 0x2bc   :  { %1838 = vst [vmem:[#allocation2 + $0x48] sm:$0xf] %v15656_v16  ;;  %1857 = vst [vmem:[#allocation2 + $0x38] sm:$0xf] %v15656_v16  ;;  %v933_v45 = vmax.f32 %v879_v31, 0.0  ;;  %v882_v46 = vadd.f32 %v15546_v28, %v881_v40  ;;  %v12860_v49 = vld [vmem:[#allocation18 + $0x18] sm:$0xff]   ;;  %12684 = vmatpush3.bf16.msra.mxu0 %v15649_v9 }
 0x2bd   :  { %1037 = vst [vmem:[#allocation2 + $0x94] sm:$0xf] %v15658_v27  ;;  %1059 = vst [vmem:[#allocation2 + $0x9c] sm:$0xf] %v15658_v27  ;;  %v12854_v47 = vld [vmem:[#allocation2 + $0x68] ss:$12 sps:$4 sm:$0xff]   ;;  %v15687_v56 = vpack.c.bf16 %v935_v42, %v935_v42  ;;  %12425 = vmatpush3.bf16.msra.mxu1 %v12860_v49 }
 0x2be   :  { %1079 = vst [vmem:[#allocation2 + $0x8c] sm:$0xf] %v15658_v27  ;;  %1859 = vst [vmem:[#allocation2 + $0x50] sm:$0xf] %v15653_v12  ;;  %v936_v50 = vmax.f32 %v890_v37, 0.0  ;;  %v15689_v57 = vpack.c.bf16 %v933_v45, %v933_v45  ;;  %v934_v58 = vmax.f32 %v882_v46, 0.0  ;;  %12663 = vmatprep.mubr.bf16.mxu1 %v12854_v47 }
 0x2bf   :  { %1040 = vst [vmem:[#allocation2 + $0xb8] sm:$0xf] %v15665_v32  ;;  %1062 = vst [vmem:[#allocation2 + $0xc0] sm:$0xf] %v15665_v32  ;;  %v12856_v53 = vld [vmem:[#allocation2 + $0x30] ss:$12 sps:$4 sm:$0xff]  }
 0x2c0   :  { %1082 = vst [vmem:[#allocation2 + $0xb0] sm:$0xf] %v15665_v32  ;;  %1038 = vst [vmem:[#allocation2 + $0xa0] sm:$0xf] %v15675_v41  ;;  %v15685_v55 = vld [vmem:[#allocation2 + $0x64] ss:$12 sps:$4 sm:$0xff]   ;;  %v15695_v0 = vpack.c.bf16 %v936_v50, %v936_v50  ;;  %1535 = vmatmul.mubr.bf16.gmra.mrb[24].mxu0 %v12856_v53  ;;  %v15703_v4 = vpack.c.bf16 %v934_v58, %v934_v58 }
 0x2c1   :  { %1060 = vst [vmem:[#allocation2 + $0xa8] sm:$0xf] %v15675_v41  ;;  %1080 = vst [vmem:[#allocation2 + $0x98] sm:$0xf] %v15675_v41  ;;  %v12896_v62 = vld [vmem:[#allocation18 + $0xa8] sm:$0xff]   ;;  %v12864_v51 = vld [vmem:[#allocation18 + $0x60] sm:$0xff]   ;;  %1542 = vmatprep.mubr.bf16.mxu0 %v15639_v1 }
 0x2c2   :  { %1840 = vst [vmem:[#allocation2 + $0x60] sm:$0xf] %v15653_v12  ;;  %v15693_v63 = vld [vmem:[#allocation2 + $0x7c] ss:$12 sps:$4 sm:$0xff]   ;;  %1843 = vst [vmem:[#allocation2 + $0x84] sm:$0xf] %v15687_v56  ;;  %12685 = vmatprep.subr.bf16.mxu0 %v12896_v62  ;;  %12426 = vmatprep.subr.bf16.mxu1 %v12864_v51 }
 0x2c3   :  { %v12867_v3 = vld [vmem:[#allocation18 + $0x20] sm:$0xff]   ;;  %1822 = vst [vmem:[#allocation2 + $0x7c] sm:$0xf] %v15687_v56  ;;  %1862 = vst [vmem:[#allocation2 + $0x74] sm:$0xf] %v15687_v56  ;;  %v12633_v5 = vpop.f32.mrb[16].mxu1  ;;  %12686 = vmatpush3.bf16.msra.mxu0 %v12896_v62 }
 0x2c4   :  { %1820 = vst [vmem:[#allocation2 + $0x64] sm:$0xf] %v15689_v57  ;;  %1841 = vst [vmem:[#allocation2 + $0x6c] sm:$0xf] %v15689_v57  ;;  %v12869_v6 = vld [vmem:[#allocation18 + $0x68] sm:$0xff]   ;;  %v903_v7 = vadd.f32 %v12633_v5, %v15546_v28  ;;  %v894_v8 = vpop.f32.mrb[17].mxu1  ;;  %12427 = vmatpush3.bf16.msra.mxu1 %v12867_v3 }
 0x2c5   :  { %1860 = vst [vmem:[#allocation2 + $0x5c] sm:$0xf] %v15689_v57  ;;  %1823 = vst [vmem:[#allocation2 + $0x88] sm:$0xf] %v15695_v0  ;;  %v12911_v54 = vld [vmem:[#allocation18 + $0xb0] sm:$0xff]   ;;  %v1101_v24 = vld [vmem:[#allocation2 + $0x54] sm:$0xff]  ;;  %v895_v1 = vadd.f32 %v15546_v28, %v894_v8  ;;  %12428 = vmatprep.subr.bf16.mxu1 %v12869_v6 }
 0x2c6   :  { %1821 = vst [vmem:[#allocation2 + $0x70] sm:$0xf] %v15703_v4  ;;  %1842 = vst [vmem:[#allocation2 + $0x78] sm:$0xf] %v15703_v4  ;;  %v12634_v29 = vpop.f32.mrb[18].mxu1  ;;  %v1099_v30 = vld [vmem:[#allocation2 + $0x48] sm:$0xff]  ;;  %12687 = vmatprep.subr.bf16.mxu0 %v12911_v54 }
 0x2c7   :  { %1861 = vst [vmem:[#allocation2 + $0x68] sm:$0xf] %v15703_v4  ;;  %v12861_v31 = vld [vmem:[#allocation2 + $0x80] ss:$12 sps:$4 sm:$0xff]   ;;  %v939_v9 = vmax.f32 %v903_v7, 0.0  ;;  %v906_v52 = vadd.f32 %v12634_v29, %v15546_v28  ;;  %v937_v34 = vmax.f32 %v895_v1, 0.0  ;;  %v10984_v45 = vcombine.low %v1099_v30, %v1101_v24  ;;  %12688 = vmatpush3.bf16.msra.mxu0 %v12911_v54 }
 0x2c8   :  { %1863 = vst [vmem:[#allocation2 + $0x80] sm:$0xf] %v15695_v0  ;;  %12664 = vmatmul.mubr.bf16.gmra.mrb[32].mxu1 %v12861_v31  ;;  %v12863_v36 = vld [vmem:[#allocation2 + $0x98] ss:$12 sps:$4 sm:$0xff]   ;;  %v15717_v46 = vld [vmem:[#allocation2 + $0x94] ss:$12 sps:$4 sm:$0xff]  }
 0x2c9   :  { %v12871_v37 = vld [vmem:[#allocation18 + $0x28] sm:$0xff]   ;;  %v15715_v40 = vpack.c.bf16 %v939_v9, %v939_v9  ;;  %v940_v42 = vmax.f32 %v906_v52, 0.0  ;;  %v15719_v47 = vld [vmem:[#allocation2 + $0xac] ss:$12 sps:$4 sm:$0xff]   ;;  %v15721_v49 = vpack.c.bf16 %v937_v34, %v937_v34  ;;  %v897_v50 = vpop.f32.mrb[19].mxu1  ;;  %12667 = vmatprep.mubr.bf16.mxu1 %v12863_v36  ;;  %1543 = vmatmul.mubr.bf16.gmra.mrb[28].mxu0 %v10984_v45 }
 0x2ca   :  { %v12923_v53 = vld [vmem:[#allocation18 + $0xb8] sm:$0xff]   ;;  %v12875_v51 = vld [vmem:[#allocation18 + $0x70] sm:$0xff]   ;;  %1844 = vst [vmem:[#allocation2 + $0x90] sm:$0xf] %v15695_v0  ;;  %v898_v3 = vadd.f32 %v15546_v28, %v897_v50  ;;  %v12637_v7 = vpop.f32.mrb[20].mxu1  ;;  %1550 = vmatprep.mubr.bf16.mxu0 %v15685_v55  ;;  %12429 = vmatpush3.bf16.msra.mxu1 %v12871_v37 }
 0x2cb   :  { %v12868_v58 = vld [vmem:[#allocation2 + $0xb0] ss:$12 sps:$4 sm:$0xff]   ;;  %1826 = vst [vmem:[#allocation2 + $0xac] sm:$0xf] %v15715_v40  ;;  %1847 = vst [vmem:[#allocation2 + $0xb4] sm:$0xf] %v15715_v40  ;;  %v15727_v62 = vpack.c.bf16 %v940_v42, %v940_v42  ;;  %v919_v1 = vadd.f32 %v12637_v7, %v15546_v28  ;;  %12689 = vmatprep.subr.bf16.mxu0 %v12923_v53  ;;  %12430 = vmatprep.subr.bf16.mxu1 %v12875_v51 }
 0x2cc   :  { %1866 = vst [vmem:[#allocation2 + $0xa4] sm:$0xf] %v15715_v40  ;;  %v12876_v5 = vld [vmem:[#allocation18 + $0x30] sm:$0xff]   ;;  %1824 = vst [vmem:[#allocation2 + $0x94] sm:$0xf] %v15721_v49  ;;  %v12878_v8 = vld [vmem:[#allocation18 + $0x78] sm:$0xff]   ;;  %12690 = vmatpush3.bf16.msra.mxu0 %v12923_v53 }
 0x2cd   :  { %1845 = vst [vmem:[#allocation2 + $0x9c] sm:$0xf] %v15721_v49  ;;  %1864 = vst [vmem:[#allocation2 + $0x8c] sm:$0xf] %v15721_v49  ;;  %v15733_v6 = vld [vmem:[#allocation2 + $0xc4] ss:$12 sps:$4 sm:$0xff]  }
 0x2ce   :  { %1827 = vst [vmem:[#allocation2 + $0xb8] sm:$0xf] %v15727_v62  ;;  %1867 = vst [vmem:[#allocation2 + $0xb0] sm:$0xf] %v15727_v62  ;;  %v938_v24 = vmax.f32 %v898_v3, 0.0  ;;  %v910_v29 = vpop.f32.mrb[21].mxu1  ;;  %12431 = vmatpush3.bf16.msra.mxu1 %v12876_v5 }
 0x2cf   :  { %1848 = vst [vmem:[#allocation2 + $0xc0] sm:$0xf] %v15727_v62  ;;  %v12870_v30 = vld [vmem:[#allocation2 + $0xc8] ss:$12 sps:$4 sm:$0xff]   ;;  %v911_v31 = vadd.f32 %v15546_v28, %v910_v29  ;;  %v12638_v9 = vpop.f32.mrb[22].mxu1  ;;  %v1105_v55 = vld [vmem:[#allocation2 + $0x6c] sm:$0xff]  ;;  %12432 = vmatprep.subr.bf16.mxu1 %v12878_v8 }
 0x2d0   :  { %v12936_v52 = vld [vmem:[#allocation26 + $0x4] ss:$8 sps:$4 sm:$0xff]   ;;  %v15741_v34 = vpack.c.bf16 %v938_v24, %v938_v24  ;;  %v943_v36 = vmax.f32 %v919_v1, 0.0  ;;  %v922_v42 = vadd.f32 %v12638_v9, %v15546_v28  ;;  %v913_v45 = vpop.f32.mrb[23].mxu1  ;;  %v12879_v54 = vld [vmem:[#allocation18 + $0x38] sm:$0xff]   ;;  %12668 = vmatmul.mubr.bf16.gmra.mrb[36].mxu1 %v12868_v58 }
 0x2d1   :  { %v1103_v50 = vld [vmem:[#allocation2 + $0x60] sm:$0xff]  ;;  %v941_v3 = vmax.f32 %v911_v31, 0.0  ;;  %v914_v7 = vadd.f32 %v15546_v28, %v913_v45  ;;  %12671 = vmatprep.mubr.bf16.mxu1 %v12870_v30  ;;  %v15750_v29 = vld [vmem:[#allocation2 + $0xdc] ss:$12 sps:$4 sm:$0xff]   ;;  %5455 = vmatprep.subr.bf16.mxu0 %v12936_v52 }
 0x2d2   :  { %1825 = vst [vmem:[#allocation2 + $0xa0] sm:$0xf] %v15741_v34  ;;  %1846 = vst [vmem:[#allocation2 + $0xa8] sm:$0xf] %v15741_v34  ;;  %v15748_v37 = vpack.c.bf16 %v943_v36, %v943_v36  ;;  %v944_v51 = vmax.f32 %v922_v42, 0.0  ;;  %v10987_v24 = vcombine.low %v1103_v50, %v1105_v55  ;;  %12433 = vmatpush3.bf16.msra.mxu1 %v12879_v54  ;;  %v1107_v8 = vld [vmem:[#allocation2 + $0x78] sm:$0xff] }
 0x2d3   :  { %1865 = vst [vmem:[#allocation2 + $0x98] sm:$0xf] %v15741_v34  ;;  %v12888_v1 = vld [vmem:[#allocation21 + $0x4] ss:$8 sps:$4 sm:$0xff]   ;;  %v15752_v31 = vpack.c.bf16 %v941_v3, %v941_v3  ;;  %v942_v28 = vmax.f32 %v914_v7, 0.0  ;;  %v1111_v45 = vld [vmem:[#allocation2 + $0x90] sm:$0xff] }
 0x2d4   :  { %1830 = vst [vmem:[#allocation2 + $0xdc] sm:$0xf] %v15748_v37  ;;  %1851 = vst [vmem:[#allocation2 + $0xe4] sm:$0xf] %v15748_v37  ;;  %v15757_v58 = vpack.c.bf16 %v944_v51, %v944_v51  ;;  %1551 = vmatmul.mubr.bf16.gmra.mrb[32].mxu0 %v10987_v24  ;;  %v12884_v5 = vld [vmem:[#allocation2 + $0x4] ss:$12 sps:$4 sm:$0xff]   ;;  %3090 = vmatprep.subr.bf16.mxu1 %v12888_v1 }
 0x2d5   :  { %1870 = vst [vmem:[#allocation2 + $0xd4] sm:$0xf] %v15748_v37  ;;  %1828 = vst [vmem:[#allocation2 + $0xc4] sm:$0xf] %v15752_v31  ;;  %v15762_v53 = vpack.c.bf16 %v942_v28, %v942_v28  ;;  %1558 = vmatprep.mubr.bf16.mxu0 %v15693_v63  ;;  %v1109_v30 = vld [vmem:[#allocation2 + $0x84] sm:$0xff]  ;;  %v1117_v51 = vld [vmem:[#allocation2 + $0xb4] sm:$0xff] }
 0x2d6   :  { %1849 = vst [vmem:[#allocation2 + $0xcc] sm:$0xf] %v15752_v31  ;;  %1868 = vst [vmem:[#allocation2 + $0xbc] sm:$0xf] %v15752_v31  ;;  %v10990_v9 = vcombine.low %v1107_v8, %v1109_v30  ;;  %v12886_v63 = vld [vmem:[#allocation21] ss:$8 sps:$4 sm:$0xff]  }
 0x2d7   :  { %1831 = vst [vmem:[#allocation2 + $0xe8] sm:$0xf] %v15757_v58  ;;  %1871 = vst [vmem:[#allocation2 + $0xe0] sm:$0xf] %v15757_v58  ;;  %v12882_v55 = vld [vmem:[#allocation2] ss:$12 sps:$4 sm:$0xff]  }
 0x2d8   :  { %1829 = vst [vmem:[#allocation2 + $0xd0] sm:$0xf] %v15762_v53  ;;  %1850 = vst [vmem:[#allocation2 + $0xd8] sm:$0xf] %v15762_v53  ;;  %12672 = vmatmul.mubr.bf16.gmra.mrb[40].mxu1 %v15597_v25  ;;  %v12895_v36 = vld [vmem:[#allocation21 + $0x14] ss:$8 sps:$4 sm:$0xff]  }
 0x2d9   :  { %1869 = vst [vmem:[#allocation2 + $0xc8] sm:$0xf] %v15762_v53  ;;  %2303 = vmatprep.mubr.bf16.mxu1 %v12884_v5  ;;  %v1113_v52 = vld [vmem:[#allocation2 + $0x9c] sm:$0xff]  ;;  %v12893_v54 = vld [vmem:[#allocation21 + $0x10] ss:$8 sps:$4 sm:$0xff]  }
 0x2da   :  { %v12889_v42 = vld [vmem:[#allocation2 + $0x1c] ss:$12 sps:$4 sm:$0xff]   ;;  %v10993_v50 = vcombine.low %v1111_v45, %v1113_v52  ;;  %v12897_v24 = vld [vmem:[#allocation2 + $0x18] ss:$12 sps:$4 sm:$0xff]   ;;  %v12898_v1 = vld [vmem:[#allocation2 + $0x34] ss:$12 sps:$4 sm:$0xff]  }
 0x2db   :  { %v12902_v3 = vld [vmem:[#allocation21 + $0x24] ss:$8 sps:$4 sm:$0xff]   ;;  %v12900_v25 = vld [vmem:[#allocation21 + $0x20] ss:$8 sps:$4 sm:$0xff]   ;;  %v12907_v7 = vld [vmem:[#allocation21 + $0x34] ss:$8 sps:$4 sm:$0xff]  }
 0x2dc   :  { %1559 = vmatmul.mubr.bf16.gmra.mrb[36].mxu0 %v10990_v9  ;;  %v12905_v5 = vld [vmem:[#allocation21 + $0x30] ss:$8 sps:$4 sm:$0xff]   ;;  %v12914_v8 = vld [vmem:[#allocation21 + $0x44] ss:$8 sps:$4 sm:$0xff]   ;;  %v12920_v30 = vld [vmem:[#allocation21 + $0x54] ss:$8 sps:$4 sm:$0xff]  }
 0x2dd   :  { %1566 = vmatprep.mubr.bf16.mxu0 %v15717_v46  ;;  %v1115_v46 = vld [vmem:[#allocation2 + $0xa8] sm:$0xff]  ;;  %v1119_v9 = vld [vmem:[#allocation2 + $0xc0] sm:$0xff]  ;;  %v12908_v52 = vld [vmem:[#allocation2 + $0x30] ss:$12 sps:$4 sm:$0xff]  }
 0x2de   :  { %v10996_v28 = vcombine.low %v1115_v46, %v1117_v51  ;;  %v12927_v45 = vld [vmem:[#allocation21 + $0x64] ss:$8 sps:$4 sm:$0xff]   ;;  %v12931_v51 = vld [vmem:[#allocation21 + $0x70] ss:$8 sps:$4 sm:$0xff]  }
 0x2df   :  { %v13215_v17 = vld [vmem:[#allocation26 + $0x2c0] ss:$8 sps:$4 sm:$0xff]  }
 0x2e0   :  { %2304 = vmatmul.mubr.bf16.vlgmr.msra.gmra.mrb[44].mxu1 %v12882_v55  ;;  %v12909_v55 = vld [vmem:[#allocation2 + $0x4c] ss:$12 sps:$4 sm:$0xff]  }
 0x2e1   :  { %3091 = vmatpush1.bf16.msra.mxu1 %v12886_v63  ;;  %2311 = vmatprep.mubr.bf16.mxu1 %v12889_v42  ;;  %v1121_v63 = vld [vmem:[#allocation2 + $0xcc] sm:$0xff] }
 0x2e2   :  { %3092 = vmatprep.subr.bf16.mxu1 %v12895_v36  ;;  %v10999_v36 = vcombine.low %v1119_v9, %v1121_v63  ;;  %v12918_v42 = vld [vmem:[#allocation21 + $0x50] ss:$8 sps:$4 sm:$0xff]  }
 0x2e3   :  { %v12941_v9 = vld [vmem:[#allocation26 + $0x14] ss:$8 sps:$4 sm:$0xff]  }
 0x2e4   :  { %1567 = vmatmul.mubr.bf16.gmra.mrb[40].mxu0 %v10993_v50  ;;  %v1125_v50 = vld [vmem:[#allocation2 + $0xe4] sm:$0xff]  ;;  %v12953_v63 = vld [vmem:[#allocation21 + $0x90] ss:$8 sps:$4 sm:$0xff]  }
 0x2e5   :  { %1574 = vmatprep.mubr.bf16.mxu0 %v15719_v47  ;;  %3093 = vmatpush1.bf16.msra.mxu1 %v12893_v54  ;;  %v12912_v47 = vld [vmem:[#allocation21 + $0x40] ss:$8 sps:$4 sm:$0xff]   ;;  %v12933_v54 = vld [vmem:[#allocation21 + $0x74] ss:$8 sps:$4 sm:$0xff]  }
 0x2e6   :  { %3094 = vmatprep.subr.bf16.mxu1 %v12902_v3  ;;  %v1123_v3 = vld [vmem:[#allocation2 + $0xd8] sm:$0xff] }
 0x2e7   :  { %v11002_v46 = vcombine.low %v1123_v3, %v1125_v50  ;;  %v12972_v50 = vld [vmem:[#allocation21 + $0xb4] ss:$8 sps:$4 sm:$0xff]  }
 0x2e8   :  { %2312 = vmatmul.mubr.bf16.gmra.mrb[48].mxu1 %v12897_v24  ;;  %v12944_v24 = vld [vmem:[#allocation21 + $0x84] ss:$8 sps:$4 sm:$0xff]  }
 0x2e9   :  { %2319 = vmatprep.mubr.bf16.mxu1 %v12898_v1  ;;  %3095 = vmatpush1.bf16.msra.mxu1 %v12900_v25  ;;  %v12917_v25 = vld [vmem:[#allocation2 + $0x48] ss:$12 sps:$4 sm:$0xff]  }
 0x2ea   :  { %3096 = vmatprep.subr.bf16.mxu1 %v12907_v7  ;;  %v12921_v7 = vld [vmem:[#allocation2 + $0x64] ss:$12 sps:$4 sm:$0xff]   ;;  %v12924_v1 = vld [vmem:[#allocation2 + $0x8] ss:$12 sps:$4 sm:$0xff]  }
 0x2eb   :  { %v12948_v3 = vld [vmem:[#allocation26 + $0x20] ss:$8 sps:$4 sm:$0xff]  }
 0x2ec   :  { %1575 = vmatmul.mubr.bf16.gmra.mrb[44].mxu0 %v10996_v28  ;;  %v12928_v28 = vld [vmem:[#allocation2 + $0x60] ss:$12 sps:$4 sm:$0xff]  }
 0x2ed   :  { %1582 = vmatprep.mubr.bf16.mxu0 %v15733_v6  ;;  %3097 = vmatpush1.bf16.msra.mxu1 %v12905_v5  ;;  %v12925_v6 = vld [vmem:[#allocation21 + $0x60] ss:$8 sps:$4 sm:$0xff]   ;;  %v12955_v5 = vld [vmem:[#allocation21 + $0x94] ss:$8 sps:$4 sm:$0xff]  }
 0x2ee   :  { %3098 = vmatprep.subr.bf16.mxu1 %v12914_v8  ;;  %v12929_v8 = vld [vmem:[#allocation2 + $0x7c] ss:$12 sps:$4 sm:$0xff]  }
 0x2f0   :  { %2320 = vmatmul.mubr.bf16.gmra.mrb[52].mxu1 %v12908_v52  ;;  %v12938_v52 = vld [vmem:[#allocation2 + $0x38] ss:$12 sps:$4 sm:$0xff]  }
 0x2f1   :  { %2327 = vmatprep.mubr.bf16.mxu1 %v12909_v55  ;;  %3099 = vmatpush1.bf16.msra.mxu1 %v12912_v47  ;;  %v12934_v47 = vld [vmem:[#allocation26] ss:$8 sps:$4 sm:$0xff]  }
 0x2f2   :  { %3100 = vmatprep.subr.bf16.mxu1 %v12920_v30  ;;  %v12937_v30 = vld [vmem:[#allocation2 + $0x20] ss:$12 sps:$4 sm:$0xff]  }
 0x2f3   :  { %v12964_v55 = vld [vmem:[#allocation21 + $0xa4] ss:$8 sps:$4 sm:$0xff]  }
 0x2f4   :  { %1583 = vmatmul.mubr.bf16.gmra.mrb[48].mxu0 %v10999_v36  ;;  %v12939_v36 = vld [vmem:[#allocation26 + $0x10] ss:$8 sps:$4 sm:$0xff]  }
 0x2f5   :  { %1590 = vmatprep.mubr.bf16.mxu0 %v15750_v29  ;;  %3101 = vmatpush1.bf16.msra.mxu1 %v12918_v42  ;;  %v12942_v29 = vld [vmem:[#allocation21 + $0x80] ss:$8 sps:$4 sm:$0xff]  }
 0x2f6   :  { %3102 = vmatprep.subr.bf16.mxu1 %v12927_v45  ;;  %v12950_v42 = vld [vmem:[#allocation26 + $0x24] ss:$8 sps:$4 sm:$0xff]  }
 0x2f7   :  { %v12962_v45 = vld [vmem:[#allocation21 + $0xa0] ss:$8 sps:$4 sm:$0xff]  }
 0x2f8   :  { %2328 = vmatmul.mubr.bf16.gmra.mrb[56].mxu1 %v12917_v25  ;;  %v12958_v25 = vld [vmem:[#allocation26 + $0x34] ss:$8 sps:$4 sm:$0xff]  }
 0x2f9   :  { %2335 = vmatprep.mubr.bf16.mxu1 %v12921_v7  ;;  %3103 = vmatpush1.bf16.msra.mxu1 %v12925_v6  ;;  %v12945_v6 = vld [vmem:[#allocation2 + $0x78] ss:$12 sps:$4 sm:$0xff]  }
 0x2fa   :  { %3104 = vmatprep.subr.bf16.mxu1 %v12933_v54  ;;  %v12946_v54 = vld [vmem:[#allocation2 + $0x94] ss:$12 sps:$4 sm:$0xff]  }
 0x2fb   :  { %v12970_v7 = vld [vmem:[#allocation21 + $0xb0] ss:$8 sps:$4 sm:$0xff]  }
 0x2fc   :  { %1591 = vmatmul.mubr.bf16.gmra.mrb[52].mxu0 %v11002_v46  ;;  %v12951_v46 = vld [vmem:[#allocation2 + $0x50] ss:$12 sps:$4 sm:$0xff]  }
 0x2fd   :  { %12691 = vmatprep.mubr.bf16.mxu0 %v12924_v1  ;;  %3105 = vmatpush1.bf16.msra.mxu1 %v12931_v51  ;;  %v12952_v51 = vld [vmem:[#allocation2 + $0x68] ss:$12 sps:$4 sm:$0xff]  }
 0x2fe   :  { %3106 = vmatprep.subr.bf16.mxu1 %v12944_v24  ;;  %v12956_v24 = vld [vmem:[#allocation26 + $0x30] ss:$8 sps:$4 sm:$0xff]  }
 0x2ff   :  { %v12985_v1 = vld [vmem:[#allocation21 + $0xc4] ss:$8 sps:$4 sm:$0xff]  }
 0x300   :  { %2336 = vmatmul.mubr.bf16.gmra.mrb[60].mxu1 %v12928_v28  ;;  %v12959_v28 = vld [vmem:[#allocation2 + $0x90] ss:$12 sps:$4 sm:$0xff]  }
 0x301   :  { %2343 = vmatprep.mubr.bf16.mxu1 %v12929_v8  ;;  %3107 = vmatpush1.bf16.msra.mxu1 %v12942_v29  ;;  %v12967_v29 = vld [vmem:[#allocation26 + $0x44] ss:$8 sps:$4 sm:$0xff]  }
 0x302   :  { %3108 = vmatprep.subr.bf16.mxu1 %v12955_v5  ;;  %v12983_v5 = vld [vmem:[#allocation21 + $0xc0] ss:$8 sps:$4 sm:$0xff]   ;;  %v12993_v8 = vld [vmem:[#allocation21 + $0xd4] ss:$8 sps:$4 sm:$0xff]  }
 0x304   :  { %12692 = vmatmul.mubr.bf16.vlgmr.msra.gmra.mrb[56].mxu0 %v12937_v30  ;;  %v12960_v30 = vld [vmem:[#allocation2 + $0xac] ss:$12 sps:$4 sm:$0xff]  }
 0x305   :  { %5456 = vmatpush1.bf16.msra.mxu0 %v12934_v47  ;;  %12695 = vmatprep.mubr.bf16.mxu0 %v12938_v52  ;;  %v12965_v47 = vld [vmem:[#allocation26 + $0x40] ss:$8 sps:$4 sm:$0xff]  }
 0x306   :  { %5457 = vmatprep.subr.bf16.mxu0 %v12941_v9  ;;  %3109 = vmatpush1.bf16.msra.mxu1 %v12953_v63  ;;  %v12975_v9 = vld [vmem:[#allocation26 + $0x54] ss:$8 sps:$4 sm:$0xff]  }
 0x307   :  { %3110 = vmatprep.subr.bf16.mxu1 %v12964_v55  ;;  %v12968_v63 = vld [vmem:[#allocation2 + $0x80] ss:$12 sps:$4 sm:$0xff]   ;;  %v12969_v55 = vld [vmem:[#allocation2 + $0x98] ss:$12 sps:$4 sm:$0xff]  }
 0x308   :  { %2344 = vmatmul.mubr.bf16.gmra.mrb[64].mxu1 %v12945_v6  ;;  %v12991_v52 = vld [vmem:[#allocation21 + $0xd0] ss:$8 sps:$4 sm:$0xff]  }
 0x309   :  { %5458 = vmatpush1.bf16.msra.mxu0 %v12939_v36  ;;  %2351 = vmatprep.mubr.bf16.mxu1 %v12946_v54  ;;  %v12973_v36 = vld [vmem:[#allocation26 + $0x50] ss:$8 sps:$4 sm:$0xff]  }
 0x30a   :  { %5459 = vmatprep.subr.bf16.mxu0 %v12950_v42  ;;  %3111 = vmatpush1.bf16.msra.mxu1 %v12962_v45  ;;  %v13002_v42 = vld [vmem:[#allocation21 + $0xe4] ss:$8 sps:$4 sm:$0xff]   ;;  %v13009_v54 = vld [vmem:[#allocation21 + $0xf4] ss:$8 sps:$4 sm:$0xff]  }
 0x30b   :  { %3112 = vmatprep.subr.bf16.mxu1 %v12972_v50  ;;  %v12981_v45 = vld [vmem:[#allocation26 + $0x64] ss:$8 sps:$4 sm:$0xff]   ;;  %v12976_v6 = vld [vmem:[#allocation2 + $0xa8] ss:$12 sps:$4 sm:$0xff]  }
 0x30c   :  { %12696 = vmatmul.mubr.bf16.gmra.mrb[60].mxu0 %v12951_v46  ;;  %v13000_v50 = vld [vmem:[#allocation21 + $0xe0] ss:$8 sps:$4 sm:$0xff]  }
 0x30d   :  { %5460 = vmatpush1.bf16.msra.mxu0 %v12948_v3  ;;  %12699 = vmatprep.mubr.bf16.mxu0 %v12952_v51  ;;  %v12979_v3 = vld [vmem:[#allocation26 + $0x60] ss:$8 sps:$4 sm:$0xff]  }
 0x30e   :  { %5461 = vmatprep.subr.bf16.mxu0 %v12958_v25  ;;  %3113 = vmatpush1.bf16.msra.mxu1 %v12970_v7  ;;  %v12977_v25 = vld [vmem:[#allocation2 + $0xc4] ss:$12 sps:$4 sm:$0xff]   ;;  %v12986_v46 = vld [vmem:[#allocation2 + $0xc8] ss:$12 sps:$4 sm:$0xff]  }
 0x30f   :  { %3114 = vmatprep.subr.bf16.mxu1 %v12985_v1  ;;  %v12989_v7 = vld [vmem:[#allocation26 + $0x74] ss:$8 sps:$4 sm:$0xff]  }
 0x310   :  { %2352 = vmatmul.mubr.bf16.gmra.mrb[68].mxu1 %v12959_v28  ;;  %v13007_v51 = vld [vmem:[#allocation21 + $0xf0] ss:$8 sps:$4 sm:$0xff]   ;;  %v13020_v1 = vld [vmem:[#allocation21 + $0x104] ss:$8 sps:$4 sm:$0xff]  }
 0x311   :  { %5462 = vmatpush1.bf16.msra.mxu0 %v12956_v24  ;;  %2359 = vmatprep.mubr.bf16.mxu1 %v12960_v30  ;;  %v12982_v24 = vld [vmem:[#allocation2 + $0xb0] ss:$12 sps:$4 sm:$0xff]  }
 0x312   :  { %5463 = vmatprep.subr.bf16.mxu0 %v12967_v29  ;;  %3115 = vmatpush1.bf16.msra.mxu1 %v12983_v5  ;;  %v12987_v28 = vld [vmem:[#allocation26 + $0x70] ss:$8 sps:$4 sm:$0xff]   ;;  %v12998_v29 = vld [vmem:[#allocation26 + $0x84] ss:$8 sps:$4 sm:$0xff]   ;;  %v13005_v30 = vld [vmem:[#allocation26 + $0x94] ss:$8 sps:$4 sm:$0xff]  }
 0x313   :  { %3116 = vmatprep.subr.bf16.mxu1 %v12993_v8  ;;  %v12990_v5 = vld [vmem:[#allocation2 + $0xc0] ss:$12 sps:$4 sm:$0xff]  }
 0x314   :  { %12700 = vmatmul.mubr.bf16.gmra.mrb[64].mxu0 %v12968_v63  ;;  %v12996_v8 = vld [vmem:[#allocation26 + $0x80] ss:$8 sps:$4 sm:$0xff]  }
 0x315   :  { %5464 = vmatpush1.bf16.msra.mxu0 %v12965_v47  ;;  %12703 = vmatprep.mubr.bf16.mxu0 %v12969_v55  ;;  %v12994_v47 = vld [vmem:[#allocation2 + $0xdc] ss:$12 sps:$4 sm:$0xff]   ;;  %v12999_v63 = vld [vmem:[#allocation2 + $0xe0] ss:$12 sps:$4 sm:$0xff]  }
 0x316   :  { %5465 = vmatprep.subr.bf16.mxu0 %v12975_v9  ;;  %3117 = vmatpush1.bf16.msra.mxu1 %v12991_v52  ;;  %v2597_v9 = vld [vmem:[#allocation8] sm:$0xff]  ;;  %v13012_v55 = vld [vmem:[#allocation26 + $0xa4] ss:$8 sps:$4 sm:$0xff]  }
 0x317   :  { %3118 = vmatprep.subr.bf16.mxu1 %v13002_v42  ;;  %v13003_v52 = vld [vmem:[#allocation26 + $0x90] ss:$8 sps:$4 sm:$0xff]   ;;  %v11125_v42 = vcombine.high %v2597_v9, %v2597_v9 }
 0x318   :  { %2360 = vmatmul.mubr.bf16.gmra.mrb[72].mxu1 %v12976_v6  ;;  %v13013_v6 = vld [vmem:[#allocation26 + $0xb0] ss:$8 sps:$4 sm:$0xff]  }
 0x319   :  { %5466 = vmatpush1.bf16.msra.mxu0 %v12973_v36  ;;  %2367 = vmatprep.mubr.bf16.mxu1 %v12977_v25  ;;  %v13006_v36 = vld [vmem:[#allocation2 + $0xd8] ss:$12 sps:$4 sm:$0xff]  }
 0x31a   :  { %5467 = vmatprep.subr.bf16.mxu0 %v12981_v45  ;;  %3119 = vmatpush1.bf16.msra.mxu1 %v13000_v50  ;;  %v13010_v45 = vld [vmem:[#allocation26 + $0xa0] ss:$8 sps:$4 sm:$0xff]   ;;  %v13015_v50 = vld [vmem:[#allocation26 + $0xb4] ss:$8 sps:$4 sm:$0xff]  }
 0x31b   :  { %3120 = vmatprep.subr.bf16.mxu1 %v13009_v54  ;;  %v15776_v54 = vld [vmem:[#allocation8 + $0x8] sm:$0xff] }
 0x31c   :  { %12704 = vmatmul.mubr.bf16.gmra.mrb[68].mxu0 %v12982_v24  ;;  %v13018_v25 = vld [vmem:[#allocation21 + $0x100] ss:$8 sps:$4 sm:$0xff]   ;;  %v13024_v24 = vld [vmem:[#allocation21 + $0x110] ss:$8 sps:$4 sm:$0xff]  }
 0x31d   :  { %5468 = vmatpush1.bf16.msra.mxu0 %v12979_v3  ;;  %12707 = vmatprep.mubr.bf16.mxu0 %v12986_v46  ;;  %v11124_v3 = vcombine.low %v2597_v9, %v2597_v9  ;;  %v11127_v46 = vcombine.high %v15776_v54, %v15776_v54  ;;  %v13036_v9 = vld [vmem:[#allocation21 + $0x130] ss:$8 sps:$4 sm:$0xff]  }
 0x31e   :  { %5469 = vmatprep.subr.bf16.mxu0 %v12989_v7  ;;  %3121 = vmatpush1.bf16.msra.mxu1 %v13007_v51  ;;  %v13023_v7 = vld [vmem:[#allocation26 + $0xc4] ss:$8 sps:$4 sm:$0xff]   ;;  %v13021_v51 = vld [vmem:[#allocation26 + $0xc0] ss:$8 sps:$4 sm:$0xff]  }
 0x31f   :  { %3131 = vmatprep.subr.bf16.mxu1 %v13020_v1  ;;  %v13029_v1 = vld [vmem:[#allocation26 + $0xd4] ss:$8 sps:$4 sm:$0xff]  }
 0x320   :  { %2368 = vmatmul.mubr.bf16.gmra.mrb[76].mxu1 %v12990_v5  ;;  %v13030_v5 = vld [vmem:[#allocation21 + $0x120] ss:$8 sps:$4 sm:$0xff]  }
 0x321   :  { %5470 = vmatpush1.bf16.msra.mxu0 %v12987_v28  ;;  %2375 = vmatprep.mubr.bf16.mxu1 %v12994_v47  ;;  %v13032_v28 = vld [vmem:[#allocation21 + $0x124] ss:$8 sps:$4 sm:$0xff]   ;;  %v13038_v47 = vld [vmem:[#allocation21 + $0x134] ss:$8 sps:$4 sm:$0xff]  }
 0x322   :  { %5471 = vmatprep.subr.bf16.mxu0 %v12998_v29  ;;  %v13027_v29 = vld [vmem:[#allocation26 + $0xd0] ss:$8 sps:$4 sm:$0xff]  }
 0x324   :  { %12708 = vmatmul.mubr.bf16.gmra.mrb[72].mxu0 %v12999_v63  ;;  %v13041_v63 = vld [vmem:[#allocation26 + $0xf4] ss:$8 sps:$4 sm:$0xff]  }
 0x325   :  { %5472 = vmatpush1.bf16.msra.mxu0 %v12996_v8  ;;  %5487 = vmatprep.mubr.bf16.mxu0 %v15595_v22  ;;  %v13026_v22 = vld [vmem:[#allocation21 + $0x114] ss:$8 sps:$4 sm:$0xff]  }
 0x326   :  { %5473 = vmatprep.subr.bf16.mxu0 %v13005_v30  ;;  %v13035_v8 = vld [vmem:[#allocation26 + $0xe4] ss:$8 sps:$4 sm:$0xff]   ;;  %v13033_v30 = vld [vmem:[#allocation26 + $0xe0] ss:$8 sps:$4 sm:$0xff]  }
 0x328   :  { %2376 = vmatmul.mubr.bf16.gmra.mrb[80].mxu1 %v13006_v36  ;;  %v13042_v36 = vld [vmem:[#allocation21 + $0x140] ss:$8 sps:$4 sm:$0xff]  }
 0x329   :  { %5474 = vmatpush1.bf16.msra.mxu0 %v13003_v52  ;;  %3122 = vmatprep.mubr.bf16.mxu1 %v11125_v42  ;;  %v13044_v52 = vld [vmem:[#allocation21 + $0x144] ss:$8 sps:$4 sm:$0xff]  }
 0x32a   :  { %5475 = vmatprep.subr.bf16.mxu0 %v13012_v55  ;;  %v13039_v55 = vld [vmem:[#allocation26 + $0xf0] ss:$8 sps:$4 sm:$0xff]   ;;  %v13047_v42 = vld [vmem:[#allocation26 + $0x104] ss:$8 sps:$4 sm:$0xff]  }
 0x32d   :  { %5476 = vmatpush1.bf16.msra.mxu0 %v13010_v45  ;;  %v13050_v45 = vld [vmem:[#allocation21 + $0x154] ss:$8 sps:$4 sm:$0xff]  }
 0x32e   :  { %5477 = vmatprep.subr.bf16.mxu0 %v13015_v50  ;;  %v13045_v50 = vld [vmem:[#allocation26 + $0x100] ss:$8 sps:$4 sm:$0xff]  }
 0x330   :  { %3123 = vmatmul.mubr.bf16.vlgmr.msra.gmra.mrb[84].mxu1 %v11124_v3  ;;  %v13053_v3 = vld [vmem:[#allocation26 + $0x114] ss:$8 sps:$4 sm:$0xff]  }
 0x331   :  { %5478 = vmatpush1.bf16.msra.mxu0 %v13013_v6  ;;  %3132 = vmatpush1.bf16.msra.mxu1 %v13018_v25  ;;  %v13048_v6 = vld [vmem:[#allocation21 + $0x150] ss:$8 sps:$4 sm:$0xff]   ;;  %v13056_v25 = vld [vmem:[#allocation21 + $0x164] ss:$8 sps:$4 sm:$0xff]  }
 0x332   :  { %5479 = vmatprep.subr.bf16.mxu0 %v13023_v7  ;;  %3133 = vmatprep.subr.bf16.mxu1 %v13026_v22  ;;  %v13051_v7 = vld [vmem:[#allocation26 + $0x110] ss:$8 sps:$4 sm:$0xff]  }
 0x333   :  { %3163 = vmatprep.mubr.bf16.mxu1 %v11127_v46  ;;  %v13054_v22 = vld [vmem:[#allocation21 + $0x160] ss:$8 sps:$4 sm:$0xff]  }
 0x334   :  { %v13059_v46 = vld [vmem:[#allocation26 + $0x124] ss:$8 sps:$4 sm:$0xff]  }
 0x335   :  { %5480 = vmatpush1.bf16.msra.mxu0 %v13021_v51  ;;  %3134 = vmatpush1.bf16.msra.mxu1 %v13024_v24  ;;  %v13062_v51 = vld [vmem:[#allocation21 + $0x174] ss:$8 sps:$4 sm:$0xff]  }
 0x336   :  { %5481 = vmatprep.subr.bf16.mxu0 %v13029_v1  ;;  %3135 = vmatprep.subr.bf16.mxu1 %v13032_v28  ;;  %v13057_v24 = vld [vmem:[#allocation26 + $0x120] ss:$8 sps:$4 sm:$0xff]   ;;  %v13065_v28 = vld [vmem:[#allocation26 + $0x134] ss:$8 sps:$4 sm:$0xff]  }
 0x337   :  { %v13060_v1 = vld [vmem:[#allocation21 + $0x170] ss:$8 sps:$4 sm:$0xff]  }
 0x339   :  { %5482 = vmatpush1.bf16.msra.mxu0 %v13027_v29  ;;  %3136 = vmatpush1.bf16.msra.mxu1 %v13030_v5  ;;  %v13068_v29 = vld [vmem:[#allocation21 + $0x184] ss:$8 sps:$4 sm:$0xff]  }
 0x33a   :  { %5483 = vmatprep.subr.bf16.mxu0 %v13035_v8  ;;  %3137 = vmatprep.subr.bf16.mxu1 %v13038_v47  ;;  %v13063_v5 = vld [vmem:[#allocation26 + $0x130] ss:$8 sps:$4 sm:$0xff]   ;;  %v13071_v8 = vld [vmem:[#allocation26 + $0x144] ss:$8 sps:$4 sm:$0xff]   ;;  %v13069_v47 = vld [vmem:[#allocation26 + $0x140] ss:$8 sps:$4 sm:$0xff]  }
 0x33d   :  { %5484 = vmatpush1.bf16.msra.mxu0 %v13033_v30  ;;  %3138 = vmatpush1.bf16.msra.mxu1 %v13036_v9  ;;  %v13072_v30 = vld [vmem:[#allocation21 + $0x190] ss:$8 sps:$4 sm:$0xff]  }
 0x33e   :  { %5485 = vmatprep.subr.bf16.mxu0 %v13041_v63  ;;  %3139 = vmatprep.subr.bf16.mxu1 %v13044_v52  ;;  %v13077_v9 = vld [vmem:[#allocation26 + $0x154] ss:$8 sps:$4 sm:$0xff]   ;;  %v13075_v52 = vld [vmem:[#allocation26 + $0x150] ss:$8 sps:$4 sm:$0xff]  }
 0x33f   :  { %v13080_v63 = vld [vmem:[#allocation21 + $0x1a4] ss:$8 sps:$4 sm:$0xff]  }
 0x341   :  { %5486 = vmatpush1.bf16.msra.mxu0 %v13039_v55  ;;  %3140 = vmatpush1.bf16.msra.mxu1 %v13042_v36  ;;  %v13078_v55 = vld [vmem:[#allocation21 + $0x1a0] ss:$8 sps:$4 sm:$0xff]  }
 0x342   :  { %5496 = vmatprep.subr.bf16.mxu0 %v13047_v42  ;;  %3141 = vmatprep.subr.bf16.mxu1 %v13050_v45  ;;  %v13083_v36 = vld [vmem:[#allocation26 + $0x164] ss:$8 sps:$4 sm:$0xff]   ;;  %v13081_v45 = vld [vmem:[#allocation26 + $0x160] ss:$8 sps:$4 sm:$0xff]  }
 0x343   :  { %v13086_v42 = vld [vmem:[#allocation21 + $0x1b4] ss:$8 sps:$4 sm:$0xff]  }
 0x344   :  { %5488 = vmatmul.mubr.bf16.vlgmr.msra.gmra.mrb[76].mxu0 %v15581_v2  ;;  %v13066_v2 = vld [vmem:[#allocation21 + $0x180] ss:$8 sps:$4 sm:$0xff]  }
 0x345   :  { %5497 = vmatpush1.bf16.msra.mxu0 %v13045_v50  ;;  %5528 = vmatprep.mubr.bf16.mxu0 %v15593_v18  ;;  %v13074_v18 = vld [vmem:[#allocation21 + $0x194] ss:$8 sps:$4 sm:$0xff]   ;;  %v13084_v50 = vld [vmem:[#allocation21 + $0x1b0] ss:$8 sps:$4 sm:$0xff]  }
 0x346   :  { %3142 = vmatpush1.bf16.msra.mxu1 %v13048_v6  ;;  %5498 = vmatprep.subr.bf16.mxu0 %v13053_v3  ;;  %v13089_v6 = vld [vmem:[#allocation26 + $0x174] ss:$8 sps:$4 sm:$0xff]  }
 0x347   :  { %3143 = vmatprep.subr.bf16.mxu1 %v13056_v25  ;;  %v13092_v3 = vld [vmem:[#allocation21 + $0x1c4] ss:$8 sps:$4 sm:$0xff]  }
 0x348   :  { %v13087_v25 = vld [vmem:[#allocation26 + $0x170] ss:$8 sps:$4 sm:$0xff]  }
 0x349   :  { %5499 = vmatpush1.bf16.msra.mxu0 %v13051_v7  ;;  %v13090_v7 = vld [vmem:[#allocation21 + $0x1c0] ss:$8 sps:$4 sm:$0xff]  }
 0x34a   :  { %3144 = vmatpush1.bf16.msra.mxu1 %v13054_v22  ;;  %5500 = vmatprep.subr.bf16.mxu0 %v13059_v46  ;;  %v13095_v22 = vld [vmem:[#allocation26 + $0x184] ss:$8 sps:$4 sm:$0xff]  }
 0x34b   :  { %3145 = vmatprep.subr.bf16.mxu1 %v13062_v51  ;;  %v13098_v46 = vld [vmem:[#allocation21 + $0x1d4] ss:$8 sps:$4 sm:$0xff]  }
 0x34c   :  { %v13093_v51 = vld [vmem:[#allocation26 + $0x180] ss:$8 sps:$4 sm:$0xff]  }
 0x34d   :  { %5501 = vmatpush1.bf16.msra.mxu0 %v13057_v24  ;;  %v13096_v24 = vld [vmem:[#allocation21 + $0x1d0] ss:$8 sps:$4 sm:$0xff]  }
 0x34e   :  { %3146 = vmatpush1.bf16.msra.mxu1 %v13060_v1  ;;  %5502 = vmatprep.subr.bf16.mxu0 %v13065_v28  ;;  %v13101_v1 = vld [vmem:[#allocation26 + $0x194] ss:$8 sps:$4 sm:$0xff]  }
 0x34f   :  { %3147 = vmatprep.subr.bf16.mxu1 %v13068_v29  ;;  %v13104_v28 = vld [vmem:[#allocation21 + $0x1e4] ss:$8 sps:$4 sm:$0xff]  }
 0x350   :  { %v13099_v29 = vld [vmem:[#allocation26 + $0x190] ss:$8 sps:$4 sm:$0xff]  }
 0x351   :  { %5503 = vmatpush1.bf16.msra.mxu0 %v13063_v5  ;;  %v13102_v5 = vld [vmem:[#allocation21 + $0x1e0] ss:$8 sps:$4 sm:$0xff]  }
 0x352   :  { %3148 = vmatpush1.bf16.msra.mxu1 %v13066_v2  ;;  %5504 = vmatprep.subr.bf16.mxu0 %v13071_v8  ;;  %v13107_v2 = vld [vmem:[#allocation26 + $0x1a4] ss:$8 sps:$4 sm:$0xff]  }
 0x353   :  { %3149 = vmatprep.subr.bf16.mxu1 %v13074_v18  ;;  %v13110_v8 = vld [vmem:[#allocation21 + $0x1f4] ss:$8 sps:$4 sm:$0xff]  }
 0x354   :  { %v13105_v18 = vld [vmem:[#allocation26 + $0x1a0] ss:$8 sps:$4 sm:$0xff]  }
 0x355   :  { %5505 = vmatpush1.bf16.msra.mxu0 %v13069_v47  ;;  %v13108_v47 = vld [vmem:[#allocation21 + $0x1f0] ss:$8 sps:$4 sm:$0xff]  }
 0x356   :  { %3150 = vmatpush1.bf16.msra.mxu1 %v13072_v30  ;;  %5506 = vmatprep.subr.bf16.mxu0 %v13077_v9  ;;  %v13113_v30 = vld [vmem:[#allocation26 + $0x1b4] ss:$8 sps:$4 sm:$0xff]  }
 0x357   :  { %3151 = vmatprep.subr.bf16.mxu1 %v13080_v63  ;;  %v13118_v9 = vld [vmem:[#allocation21 + $0x204] ss:$8 sps:$4 sm:$0xff]  }
 0x358   :  { %v13111_v63 = vld [vmem:[#allocation26 + $0x1b0] ss:$8 sps:$4 sm:$0xff]  }
 0x359   :  { %5507 = vmatpush1.bf16.msra.mxu0 %v13075_v52  ;;  %v11126_v52 = vcombine.low %v15776_v54, %v15776_v54  ;;  %v13128_v54 = vld [vmem:[#allocation21 + $0x220] ss:$8 sps:$4 sm:$0xff]  }
 0x35a   :  { %3152 = vmatpush1.bf16.msra.mxu1 %v13078_v55  ;;  %5508 = vmatprep.subr.bf16.mxu0 %v13083_v36  ;;  %v13116_v55 = vld [vmem:[#allocation21 + $0x200] ss:$8 sps:$4 sm:$0xff]  }
 0x35b   :  { %3153 = vmatprep.subr.bf16.mxu1 %v13086_v42  ;;  %v13121_v36 = vld [vmem:[#allocation26 + $0x1c4] ss:$8 sps:$4 sm:$0xff]  }
 0x35c   :  { %v13124_v42 = vld [vmem:[#allocation21 + $0x214] ss:$8 sps:$4 sm:$0xff]  }
 0x35d   :  { %5509 = vmatpush1.bf16.msra.mxu0 %v13081_v45  ;;  %v13119_v45 = vld [vmem:[#allocation26 + $0x1c0] ss:$8 sps:$4 sm:$0xff]  }
 0x35e   :  { %3154 = vmatpush1.bf16.msra.mxu1 %v13084_v50  ;;  %5510 = vmatprep.subr.bf16.mxu0 %v13089_v6  ;;  %v13122_v50 = vld [vmem:[#allocation21 + $0x210] ss:$8 sps:$4 sm:$0xff]  }
 0x35f   :  { %3155 = vmatprep.subr.bf16.mxu1 %v13092_v3  ;;  %v13127_v6 = vld [vmem:[#allocation26 + $0x1d4] ss:$8 sps:$4 sm:$0xff]  }
 0x360   :  { %v13130_v3 = vld [vmem:[#allocation21 + $0x224] ss:$8 sps:$4 sm:$0xff]  }
 0x361   :  { %5511 = vmatpush1.bf16.msra.mxu0 %v13087_v25  ;;  %v13125_v25 = vld [vmem:[#allocation26 + $0x1d0] ss:$8 sps:$4 sm:$0xff]  }
 0x362   :  { %3156 = vmatpush1.bf16.msra.mxu1 %v13090_v7  ;;  %5512 = vmatprep.subr.bf16.mxu0 %v13095_v22  ;;  %v13133_v7 = vld [vmem:[#allocation26 + $0x1e4] ss:$8 sps:$4 sm:$0xff]  }
 0x363   :  { %3157 = vmatprep.subr.bf16.mxu1 %v13098_v46  ;;  %v13136_v22 = vld [vmem:[#allocation21 + $0x234] ss:$8 sps:$4 sm:$0xff]  }
 0x364   :  { %v13131_v46 = vld [vmem:[#allocation26 + $0x1e0] ss:$8 sps:$4 sm:$0xff]  }
 0x365   :  { %5513 = vmatpush1.bf16.msra.mxu0 %v13093_v51  ;;  %v13134_v51 = vld [vmem:[#allocation21 + $0x230] ss:$8 sps:$4 sm:$0xff]  }
 0x366   :  { %3158 = vmatpush1.bf16.msra.mxu1 %v13096_v24  ;;  %5514 = vmatprep.subr.bf16.mxu0 %v13101_v1  ;;  %v13139_v24 = vld [vmem:[#allocation26 + $0x1f4] ss:$8 sps:$4 sm:$0xff]  }
 0x367   :  { %3159 = vmatprep.subr.bf16.mxu1 %v13104_v28  ;;  %v13142_v1 = vld [vmem:[#allocation21 + $0x244] ss:$8 sps:$4 sm:$0xff]   ;;  %v2674_v28 = vld [vmem:[#allocation21 + $0x250] sm:$0xff] }
 0x369   :  { %5515 = vmatpush1.bf16.msra.mxu0 %v13099_v29  ;;  %v13137_v29 = vld [vmem:[#allocation26 + $0x1f0] ss:$8 sps:$4 sm:$0xff]  }
 0x36a   :  { %3160 = vmatpush1.bf16.msra.mxu1 %v13102_v5  ;;  %5516 = vmatprep.subr.bf16.mxu0 %v13107_v2  ;;  %v13145_v5 = vld [vmem:[#allocation26 + $0x204] ss:$8 sps:$4 sm:$0xff]   ;;  %v11204_v2 = vcombine.high %v2674_v28, %v2674_v28 }
 0x36b   :  { %3161 = vmatprep.subr.bf16.mxu1 %v13110_v8  ;;  %v11203_v8 = vcombine.low %v2674_v28, %v2674_v28 }
 0x36d   :  { %5517 = vmatpush1.bf16.msra.mxu0 %v13105_v18  ;;  %v13143_v18 = vld [vmem:[#allocation26 + $0x200] ss:$8 sps:$4 sm:$0xff]  }
 0x36e   :  { %3162 = vmatpush1.bf16.msra.mxu1 %v13108_v47  ;;  %5518 = vmatprep.subr.bf16.mxu0 %v13113_v30  ;;  %v13150_v47 = vld [vmem:[#allocation26 + $0x214] ss:$8 sps:$4 sm:$0xff]   ;;  %v13154_v30 = vld [vmem:[#allocation26 + $0x304] ss:$8 sps:$4 sm:$0xff]  }
 0x36f   :  { %3172 = vmatprep.subr.bf16.mxu1 %v13118_v9  ;;  %v3085_v9 = vsel %vm3083_vm1, %v11203_v8, 0  ;;  %v13172_v8 = vld [vmem:[#allocation26 + $0x334] ss:$8 sps:$4 sm:$0xff]  }
 0x371   :  { %5519 = vmatpush1.bf16.msra.mxu0 %v13111_v63  ;;  %3164 = vmatmul.mubr.bf16.vlgmr.msra.gmra.mrb[84].mxu1 %v11126_v52  ;;  %v13148_v63 = vld [vmem:[#allocation26 + $0x210] ss:$8 sps:$4 sm:$0xff]   ;;  %v13151_v52 = vld [vmem:[#allocation8 + $0x10] ss:$0 sps:$4 sm:$0xff]  }
 0x372   :  { %3173 = vmatpush1.bf16.msra.mxu1 %v13116_v55  ;;  %5520 = vmatprep.subr.bf16.mxu0 %v13121_v36  ;;  %v13152_v55 = vld [vmem:[#allocation26 + $0x300] ss:$8 sps:$4 sm:$0xff]   ;;  %v13157_v36 = vld [vmem:[#allocation26 + $0x224] ss:$8 sps:$4 sm:$0xff]  }
 0x373   :  { %3174 = vmatprep.subr.bf16.mxu1 %v13124_v42  ;;  %3204 = vmatprep.mubr.bf16.mxu1 %v15026_v44  ;;  %v13140_v44 = vld [vmem:[#allocation21 + $0x240] ss:$8 sps:$4 sm:$0xff]   ;;  %v13160_v42 = vld [vmem:[#allocation26 + $0x314] ss:$8 sps:$4 sm:$0xff]  }
 0x375   :  { %5521 = vmatpush1.bf16.msra.mxu0 %v13119_v45 }
 0x376   :  { %3175 = vmatpush1.bf16.msra.mxu1 %v13122_v50  ;;  %5522 = vmatprep.subr.bf16.mxu0 %v13127_v6  ;;  %v15787_v6 = vld [vmem:[#allocation14] ss:$0 sm:$0xff] }
 0x377   :  { %3176 = vmatprep.subr.bf16.mxu1 %v13130_v3 }
 0x379   :  { %5523 = vmatpush1.bf16.msra.mxu0 %v13125_v25 }
 0x37a   :  { %3177 = vmatpush1.bf16.msra.mxu1 %v13128_v54  ;;  %5524 = vmatprep.subr.bf16.mxu0 %v13133_v7  ;;  %v13158_v54 = vld [vmem:[#allocation26 + $0x310] ss:$8 sps:$4 sm:$0xff]   ;;  %v13163_v7 = vld [vmem:[#allocation26 + $0x234] ss:$8 sps:$4 sm:$0xff]  }
 0x37b   :  { %3178 = vmatprep.subr.bf16.mxu1 %v13136_v22  ;;  %v13166_v22 = vld [vmem:[#allocation26 + $0x324] ss:$8 sps:$4 sm:$0xff]  }
 0x37d   :  { %5525 = vmatpush1.bf16.msra.mxu0 %v13131_v46  ;;  %v12340_v45 = vpop.f32.mrb[16].mxu0 }
 0x37e   :  { %3179 = vmatpush1.bf16.msra.mxu1 %v13134_v51  ;;  %5526 = vmatprep.subr.bf16.mxu0 %v13139_v24  ;;  %v12341_v50 = vpop.f32.mrb[17].mxu0 }
 0x37f   :  { %3180 = vmatprep.subr.bf16.mxu1 %v13142_v1  ;;  %v12342_v3 = vadd.f32 %v12341_v50, %v12340_v45  ;;  %v12343_v25 = vpop.f32.mrb[18].mxu0 }
 0x380   :  { %v12657_v24 = vpop.f32.mrb[24].mxu1 }
 0x381   :  { %5527 = vmatpush1.bf16.msra.mxu0 %v13137_v29  ;;  %v1521_v51 = vadd.f32 %v12342_v3, %v15787_v6  ;;  %v1633_v1 = vpop.f32.mrb[25].mxu1  ;;  %v13161_v29 = vld [vmem:[#allocation26 + $0x230] ss:$8 sps:$4 sm:$0xff]   ;;  %v13175_v3 = vld [vmem:[#allocation26 + $0x254] ss:$8 sps:$4 sm:$0xff]  }
 0x382   :  { %3181 = vmatpush1.bf16.msra.mxu1 %v13140_v44  ;;  %5537 = vmatprep.subr.bf16.mxu0 %v13145_v5  ;;  %v13164_v44 = vld [vmem:[#allocation26 + $0x320] ss:$8 sps:$4 sm:$0xff]  }
 0x383   :  { %11205 = vmatprep.subr.msk.bf16.mxu1 %vm3083_vm1, %v11204_v2  ;;  %v1634_v5 = vadd.f32 %v1633_v1, %v1521_v51  ;;  %v12658_v2 = vpop.f32.mrb[26].mxu1  ;;  %v13176_v51 = vld [vmem:[#allocation26 + $0x340] ss:$8 sps:$4 sm:$0xff]  }
 0x384   :  { %5529 = vmatmul.mubr.bf16.vlgmr.msra.gmra.mrb[80].mxu0 %v15574_v60  ;;  %v13155_v60 = vld [vmem:[#allocation26 + $0x220] ss:$8 sps:$4 sm:$0xff]  }
 0x385   :  { %5538 = vmatpush1.bf16.msra.mxu0 %v13143_v18  ;;  %5569 = vmatprep.mubr.bf16.mxu0 %v15656_v16  ;;  %v12344_v16 = vpop.f32.mrb[19].mxu0 }
 0x386   :  { %3183 = vmatpush1.bf16.msra.mxu1 %v3085_v9  ;;  %5539 = vmatprep.subr.bf16.mxu0 %v13150_v47  ;;  %v12345_v46 = vadd.f32 %v12344_v16, %v12343_v25  ;;  %v1636_v47 = vpop.f32.mrb[27].mxu1  ;;  %v13178_v25 = vld [vmem:[#allocation26 + $0x344] ss:$8 sps:$4 sm:$0xff]   ;;  %v13173_v16 = vld [vmem:[#allocation26 + $0x250] ss:$8 sps:$4 sm:$0xff]  }
 0x387   :  { %5578 = vmatprep.subr.bf16.mxu1 %v13154_v30  ;;  %v1712_v30 = vmax.f32 %v1634_v5, 0.0  ;;  %v13184_v5 = vld [vmem:[#allocation26 + $0x354] ss:$8 sps:$4 sm:$0xff]  }
 0x388   :  { %v1524_v28 = vadd.f32 %v12345_v46, %v15787_v6 }
 0x389   :  { %11206 = vmatmul.mubr.msk.bf16.vlgmr.msra.gmra.mrb[84].mxu1 %vm3079_vm2, %v13151_v52  ;;  %5540 = vmatpush1.bf16.msra.mxu0 %v13148_v63 }
 0x38a   :  { %5579 = vmatpush1.bf16.msra.mxu1 %v13152_v55  ;;  %5610 = vmatprep.mubr.bf16.mxu1 %v15653_v12  ;;  %v13169_v12 = vld [vmem:[#allocation26 + $0x244] ss:$8 sps:$4 sm:$0xff]   ;;  %v12346_v18 = vpop.f32.mrb[20].mxu0  ;;  %v1637_v9 = vadd.f32 %v1636_v47, %v1524_v28 }
 0x38b   :  { %5541 = vmatprep.subr.bf16.mxu0 %v13157_v36  ;;  %5580 = vmatprep.subr.bf16.mxu1 %v13160_v42  ;;  %v12347_v63 = vpop.f32.mrb[21].mxu0  ;;  %v13167_v36 = vld [vmem:[#allocation26 + $0x240] ss:$8 sps:$4 sm:$0xff]   ;;  %v13170_v42 = vld [vmem:[#allocation26 + $0x330] ss:$8 sps:$4 sm:$0xff]  }
 0x38c   :  { %v12348_v52 = vadd.f32 %v12347_v63, %v12346_v18  ;;  %v12349_v55 = vpop.f32.mrb[22].mxu0  ;;  %v1713_v45 = vmax.f32 %v1637_v9, 0.0 }
 0x38d   :  { %5542 = vmatpush1.bf16.msra.mxu0 %v13155_v60  ;;  %v12350_v50 = vpop.f32.mrb[23].mxu0 }
 0x38e   :  { %5581 = vmatpush1.bf16.msra.mxu1 %v13158_v54  ;;  %5543 = vmatprep.subr.bf16.mxu0 %v13163_v7  ;;  %v1529_v60 = vadd.f32 %v12348_v52, %v15787_v6  ;;  %v12351_v54 = vadd.f32 %v12350_v50, %v12349_v55  ;;  %v15793_v7 = vpack.c.bf16 %v1712_v30, %v1712_v30  ;;  %v15797_v46 = vpop.f32.mrb[28].mxu1 }
 0x38f   :  { %5582 = vmatprep.subr.bf16.mxu1 %v13166_v22  ;;  %v15795_v22 = vpack.c.bf16 %v1713_v45, %v1713_v45  ;;  %v13182_v45 = vld [vmem:[#allocation26 + $0x350] ss:$8 sps:$4 sm:$0xff]  }
 0x390   :  { %16480 = vst [vmem:[#allocation51_spill] sm:$0xff] %v15793_v7  ;;  %v1642_v1 = vadd.f32 %v12657_v24, %v1529_v60  ;;  %v1532_v28 = vadd.f32 %v12351_v54, %v15787_v6  ;;  %v13187_v60 = vld [vmem:[#allocation26 + $0x274] ss:$8 sps:$4 sm:$0xff]   ;;  %v13194_v7 = vld [vmem:[#allocation26 + $0x370] ss:$8 sps:$4 sm:$0xff]  }
 0x391   :  { %5544 = vmatpush1.bf16.msra.mxu0 %v13161_v29  ;;  %16481 = vst [vmem:[#allocation52_spill] sm:$0xff] %v15795_v22  ;;  %v1649_v29 = vpop.f32.mrb[29].mxu1 }
 0x392   :  { %5583 = vmatpush1.bf16.msra.mxu1 %v13164_v44  ;;  %5545 = vmatprep.subr.bf16.mxu0 %v13169_v12  ;;  %v13181_v44 = vld [vmem:[#allocation26 + $0x264] ss:$8 sps:$4 sm:$0xff]   ;;  %v1714_v18 = vmax.f32 %v1642_v1, 0.0  ;;  %v1645_v47 = vadd.f32 %v12658_v2, %v1532_v28  ;;  %v13191_v12 = vld [vmem:[#allocation26 + $0x280] ss:$8 sps:$4 sm:$0xff]  }
 0x393   :  { %5584 = vmatprep.subr.bf16.mxu1 %v13172_v8  ;;  %v15802_v8 = vpop.f32.mrb[30].mxu1  ;;  %v12352_v30 = vpop.f32.mrb[24].mxu0 }
 0x394   :  { %v1652_v9 = vpop.f32.mrb[31].mxu1  ;;  %v12353_v63 = vpop.f32.mrb[25].mxu0  ;;  %v1715_v24 = vmax.f32 %v1645_v47, 0.0  ;;  %v15804_v54 = vpack.c.bf16 %v1714_v18, %v1714_v18  ;;  %v13199_v18 = vld [vmem:[#allocation26 + $0x294] ss:$8 sps:$4 sm:$0xff]  }
 0x395   :  { %5546 = vmatpush1.bf16.msra.mxu0 %v13167_v36  ;;  %v12354_v52 = vadd.f32 %v12353_v63, %v12352_v30  ;;  %v12355_v55 = vpop.f32.mrb[26].mxu0  ;;  %v13179_v36 = vld [vmem:[#allocation26 + $0x260] ss:$8 sps:$4 sm:$0xff]   ;;  %v13193_v63 = vld [vmem:[#allocation26 + $0x284] ss:$8 sps:$4 sm:$0xff]  }
 0x396   :  { %5585 = vmatpush1.bf16.msra.mxu1 %v13170_v42  ;;  %5547 = vmatprep.subr.bf16.mxu0 %v13175_v3  ;;  %v12356_v50 = vpop.f32.mrb[27].mxu0  ;;  %v13190_v42 = vld [vmem:[#allocation26 + $0x364] ss:$8 sps:$4 sm:$0xff]   ;;  %16482 = vst [vmem:[#allocation53_spill] sm:$0xff] %v15804_v54  ;;  %v15806_v3 = vpack.c.bf16 %v1715_v24, %v1715_v24  ;;  %v13196_v24 = vld [vmem:[#allocation26 + $0x374] ss:$8 sps:$4 sm:$0xff]  }
 0x397   :  { %5586 = vmatprep.subr.bf16.mxu1 %v13178_v25  ;;  %v1537_v2 = vadd.f32 %v12354_v52, %v15787_v6  ;;  %v12357_v1 = vadd.f32 %v12356_v50, %v12355_v55 }
 0x398   :  { %16483 = vst [vmem:[#allocation54_spill] sm:$0xff] %v15806_v3  ;;  %v13203_v3 = vld [vmem:[#allocation26 + $0x2a0] ss:$8 sps:$4 sm:$0xff]  }
 0x399   :  { %5548 = vmatpush1.bf16.msra.mxu0 %v13173_v16  ;;  %v1650_v28 = vadd.f32 %v1649_v29, %v1537_v2  ;;  %v1540_v16 = vadd.f32 %v12357_v1, %v15787_v6 }
 0x39a   :  { %5587 = vmatpush1.bf16.msra.mxu1 %v13176_v51  ;;  %5549 = vmatprep.subr.bf16.mxu0 %v13181_v44  ;;  %v13185_v51 = vld [vmem:[#allocation26 + $0x270] ss:$8 sps:$4 sm:$0xff]   ;;  %v13188_v44 = vld [vmem:[#allocation26 + $0x360] ss:$8 sps:$4 sm:$0xff]  }
 0x39b   :  { %5588 = vmatprep.subr.bf16.mxu1 %v13184_v5  ;;  %v15809_v25 = vpop.f32.mrb[32].mxu1  ;;  %v1716_v5 = vmax.f32 %v1650_v28, 0.0  ;;  %v1653_v52 = vadd.f32 %v1652_v9, %v1540_v16 }
 0x39c   :  { %v15812_v47 = vpop.f32.mrb[33].mxu1  ;;  %v12358_v55 = vpop.f32.mrb[28].mxu0 }
 0x39d   :  { %5550 = vmatpush1.bf16.msra.mxu0 %v13179_v36  ;;  %v15816_v30 = vpop.f32.mrb[34].mxu1  ;;  %v12359_v36 = vpop.f32.mrb[29].mxu0  ;;  %v1717_v50 = vmax.f32 %v1653_v52, 0.0  ;;  %v15820_v22 = vpack.c.bf16 %v1716_v5, %v1716_v5  ;;  %v13206_v5 = vld [vmem:[#allocation26 + $0x390] ss:$8 sps:$4 sm:$0xff]  }
 0x39e   :  { %5589 = vmatpush1.bf16.msra.mxu1 %v13182_v45  ;;  %5551 = vmatprep.subr.bf16.mxu0 %v13187_v60  ;;  %v15818_v29 = vpop.f32.mrb[35].mxu1  ;;  %v12360_v2 = vadd.f32 %v12359_v36, %v12358_v55  ;;  %v12361_v1 = vpop.f32.mrb[30].mxu0  ;;  %v13202_v60 = vld [vmem:[#allocation26 + $0x384] ss:$8 sps:$4 sm:$0xff]   ;;  %v13200_v55 = vld [vmem:[#allocation26 + $0x380] ss:$8 sps:$4 sm:$0xff]  }
 0x39f   :  { %5590 = vmatprep.subr.bf16.mxu1 %v13190_v42  ;;  %v12362_v45 = vpop.f32.mrb[31].mxu0  ;;  %16484 = vst [vmem:[#allocation55_spill] sm:$0xff] %v15820_v22  ;;  %v15822_v28 = vpack.c.bf16 %v1717_v50, %v1717_v50  ;;  %v13205_v50 = vld [vmem:[#allocation26 + $0x2a4] ss:$8 sps:$4 sm:$0xff]  }
 0x3a0   :  { %v1545_v9 = vadd.f32 %v12360_v2, %v15787_v6  ;;  %v12363_v16 = vadd.f32 %v12362_v45, %v12361_v1  ;;  %v13214_v22 = vld [vmem:[#allocation26 + $0x3a4] ss:$8 sps:$4 sm:$0xff]  }
 0x3a1   :  { %5552 = vmatpush1.bf16.msra.mxu0 %v13185_v51  ;;  %16485 = vst [vmem:[#allocation56_spill] sm:$0xff] %v15822_v28 }
 0x3a2   :  { %5591 = vmatpush1.bf16.msra.mxu1 %v13188_v44  ;;  %5553 = vmatprep.subr.bf16.mxu0 %v13193_v63  ;;  %v1658_v51 = vadd.f32 %v15797_v46, %v1545_v9  ;;  %v1548_v52 = vadd.f32 %v12363_v16, %v15787_v6  ;;  %v13197_v63 = vld [vmem:[#allocation26 + $0x290] ss:$8 sps:$4 sm:$0xff]  }
 0x3a3   :  { %5592 = vmatprep.subr.bf16.mxu1 %v13196_v24  ;;  %v15825_v42 = vpop.f32.mrb[36].mxu1  ;;  %v13208_v24 = vld [vmem:[#allocation26 + $0x394] ss:$8 sps:$4 sm:$0xff]  }
 0x3a4   :  { %v15829_v44 = vpop.f32.mrb[37].mxu1  ;;  %v1718_v2 = vmax.f32 %v1658_v51, 0.0  ;;  %v1661_v1 = vadd.f32 %v15802_v8, %v1548_v52 }
 0x3a5   :  { %5554 = vmatpush1.bf16.msra.mxu0 %v13191_v12  ;;  %v15833_v36 = vpop.f32.mrb[38].mxu1 }
 0x3a6   :  { %5593 = vmatpush1.bf16.msra.mxu1 %v13194_v7  ;;  %5555 = vmatprep.subr.bf16.mxu0 %v13199_v18  ;;  %v15836_v45 = vpop.f32.mrb[39].mxu1  ;;  %v1719_v9 = vmax.f32 %v1661_v1, 0.0  ;;  %v13211_v18 = vld [vmem:[#allocation26 + $0x2b4] ss:$8 sps:$4 sm:$0xff]   ;;  %v15838_v28 = vpack.c.bf16 %v1718_v2, %v1718_v2  ;;  %v13218_v2 = vld [vmem:[#allocation26 + $0x3b0] ss:$8 sps:$4 sm:$0xff]  }
 0x3a7   :  { %v12364_v46 = vpop.f32.mrb[32].mxu0  ;;  %5594 = vmatprep.subr.bf16.mxu1 %v13202_v60 }
 0x3a8   :  { %v12365_v12 = vpop.f32.mrb[33].mxu0  ;;  %16486 = vst [vmem:[#allocation57_spill] sm:$0xff] %v15838_v28  ;;  %v15840_v51 = vpack.c.bf16 %v1719_v9, %v1719_v9  ;;  %v13226_v28 = vld [vmem:[#allocation26 + $0x3c4] ss:$8 sps:$4 sm:$0xff]  }
 0x3a9   :  { %v12366_v16 = vadd.f32 %v12365_v12, %v12364_v46  ;;  %5556 = vmatpush1.bf16.msra.mxu0 %v13197_v63  ;;  %v12367_v54 = vpop.f32.mrb[34].mxu0  ;;  %v13212_v46 = vld [vmem:[#allocation26 + $0x3a0] ss:$8 sps:$4 sm:$0xff]  }
 0x3aa   :  { %5595 = vmatpush1.bf16.msra.mxu1 %v13200_v55  ;;  %v12368_v7 = vpop.f32.mrb[35].mxu0  ;;  %5557 = vmatprep.subr.bf16.mxu0 %v13205_v50  ;;  %16487 = vst [vmem:[#allocation58_spill] sm:$0xff] %v15840_v51  ;;  %v13209_v50 = vld [vmem:[#allocation26 + $0x2b0] ss:$8 sps:$4 sm:$0xff]  }
 0x3ab   :  { %v1553_v8 = vadd.f32 %v12366_v16, %v15787_v6  ;;  %v12369_v52 = vadd.f32 %v12368_v7, %v12367_v54  ;;  %5596 = vmatprep.subr.bf16.mxu1 %v13208_v24  ;;  %v15843_v60 = vpop.f32.mrb[40].mxu1  ;;  %v13217_v54 = vld [vmem:[#allocation26 + $0x2c4] ss:$8 sps:$4 sm:$0xff]   ;;  %v13220_v24 = vld [vmem:[#allocation26 + $0x3b4] ss:$8 sps:$4 sm:$0xff]  }
 0x3ac   :  { %v15847_v55 = vpop.f32.mrb[41].mxu1 }
 0x3ad   :  { %v1666_v63 = vadd.f32 %v15812_v47, %v1553_v8  ;;  %v1556_v1 = vadd.f32 %v12369_v52, %v15787_v6  ;;  %5558 = vmatpush1.bf16.msra.mxu0 %v13203_v3  ;;  %v15851_v12 = vpop.f32.mrb[42].mxu1 }
 0x3ae   :  { %5597 = vmatpush1.bf16.msra.mxu1 %v13206_v5  ;;  %5559 = vmatprep.subr.bf16.mxu0 %v13211_v18  ;;  %v15854_v7 = vpop.f32.mrb[43].mxu1  ;;  %v13223_v18 = vld [vmem:[#allocation26 + $0x2d4] ss:$8 sps:$4 sm:$0xff]  }
 0x3af   :  { %v1720_v9 = vmax.f32 %v1666_v63, 0.0  ;;  %v1669_v16 = vadd.f32 %v15818_v29, %v1556_v1  ;;  %v12370_v47 = vpop.f32.mrb[36].mxu0  ;;  %5598 = vmatprep.subr.bf16.mxu1 %v13214_v22 }
 0x3b0   :  { %v12371_v3 = vpop.f32.mrb[37].mxu0 }
 0x3b1   :  { %v1721_v8 = vmax.f32 %v1669_v16, 0.0  ;;  %v12372_v52 = vadd.f32 %v12371_v3, %v12370_v47  ;;  %5560 = vmatpush1.bf16.msra.mxu0 %v13209_v50  ;;  %v12373_v13 = vpop.f32.mrb[38].mxu0  ;;  %v15856_v51 = vpack.c.bf16 %v1720_v9, %v1720_v9  ;;  %v13224_v3 = vld [vmem:[#allocation26 + $0x3c0] ss:$8 sps:$4 sm:$0xff]  }
 0x3b2   :  { %5599 = vmatpush1.bf16.msra.mxu1 %v13212_v46  ;;  %v12374_v5 = vpop.f32.mrb[39].mxu0  ;;  %5561 = vmatprep.subr.bf16.mxu0 %v13217_v54  ;;  %v13221_v46 = vld [vmem:[#allocation26 + $0x2d0] ss:$8 sps:$4 sm:$0xff]  }
 0x3b3   :  { %16488 = vst [vmem:[#allocation59_spill] sm:$0xff] %v15856_v51  ;;  %v15858_v63 = vpack.c.bf16 %v1721_v8, %v1721_v8  ;;  %v1561_v29 = vadd.f32 %v12372_v52, %v15787_v6  ;;  %v12375_v1 = vadd.f32 %v12374_v5, %v12373_v13  ;;  %5600 = vmatprep.subr.bf16.mxu1 %v13220_v24  ;;  %v12434_v22 = vpop.f32.mrb[44].mxu1  ;;  %v13229_v52 = vld [vmem:[#allocation26 + $0x2e4] ss:$8 sps:$4 sm:$0xff]   ;;  %v13232_v13 = vld [vmem:[#allocation26 + $0x3d4] ss:$8 sps:$4 sm:$0xff]  }
 0x3b4   :  { %v12435_v47 = vpop.f32.mrb[45].mxu1  ;;  %v13238_v51 = vld [vmem:[#allocation26 + $0x3e4] ss:$8 sps:$4 sm:$0xff]  }
 0x3b5   :  { %16489 = vst [vmem:[#allocation60_spill] sm:$0xff] %v15858_v63  ;;  %v1674_v16 = vadd.f32 %v15809_v25, %v1561_v29  ;;  %v1564_v50 = vadd.f32 %v12375_v1, %v15787_v6  ;;  %5562 = vmatpush1.bf16.msra.mxu0 %v13215_v17  ;;  %v15865_v9 = vadd.f32 %v12435_v47, %v12434_v22  ;;  %v12437_v8 = vpop.f32.mrb[46].mxu1  ;;  %v13227_v22 = vld [vmem:[#allocation26 + $0x2e0] ss:$8 sps:$4 sm:$0xff]   ;;  %v13230_v47 = vld [vmem:[#allocation26 + $0x3d0] ss:$8 sps:$4 sm:$0xff]  }
 0x3b6   :  { %5601 = vmatpush1.bf16.msra.mxu1 %v13218_v2  ;;  %5563 = vmatprep.subr.bf16.mxu0 %v13223_v18  ;;  %v12438_v29 = vpop.f32.mrb[47].mxu1  ;;  %v13235_v18 = vld [vmem:[#allocation26 + $0x2f4] ss:$8 sps:$4 sm:$0xff]   ;;  %v13242_v63 = vld [vmem:[#allocation26 + $0x3f0] ss:$8 sps:$4 sm:$0xff]  }
 0x3b7   :  { %v1722_v24 = vmax.f32 %v1674_v16, 0.0  ;;  %v1677_v5 = vadd.f32 %v15816_v30, %v1564_v50  ;;  %v12376_v25 = vpop.f32.mrb[40].mxu0  ;;  %5602 = vmatprep.subr.bf16.mxu1 %v13226_v28  ;;  %v15868_v17 = vadd.f32 %v12438_v29, %v12437_v8  ;;  %v13236_v29 = vld [vmem:[#allocation26 + $0x3e0] ss:$8 sps:$4 sm:$0xff]  }
 0x3b8   :  { %v12377_v1 = vpop.f32.mrb[41].mxu0 }
 0x3b9   :  { %v1723_v20 = vmax.f32 %v1677_v5, 0.0  ;;  %v12378_v10 = vadd.f32 %v12377_v1, %v12376_v25  ;;  %5564 = vmatpush1.bf16.msra.mxu0 %v13221_v46  ;;  %v12379_v54 = vpop.f32.mrb[42].mxu0  ;;  %v15870_v16 = vpack.c.bf16 %v1722_v24, %v1722_v24 }
 0x3ba   :  { %5603 = vmatpush1.bf16.msra.mxu1 %v13224_v3  ;;  %v12380_v2 = vpop.f32.mrb[43].mxu0  ;;  %5565 = vmatprep.subr.bf16.mxu0 %v13229_v52  ;;  %v13233_v3 = vld [vmem:[#allocation26 + $0x2f0] ss:$8 sps:$4 sm:$0xff]  }
 0x3bb   :  { %16490 = vst [vmem:[#allocation61_spill] sm:$0xff] %v15870_v16  ;;  %v15872_v30 = vpack.c.bf16 %v1723_v20, %v1723_v20  ;;  %v1569_v28 = vadd.f32 %v12378_v10, %v15787_v6  ;;  %v12381_v50 = vadd.f32 %v12380_v2, %v12379_v54  ;;  %5604 = vmatprep.subr.bf16.mxu1 %v13232_v13  ;;  %v12440_v8 = vpop.f32.mrb[48].mxu1  ;;  %v13241_v10 = vld [vmem:[#allocation26 + $0x404] ss:$8 sps:$4 sm:$0xff]   ;;  %v13244_v54 = vld [vmem:[#allocation26 + $0x3f4] ss:$8 sps:$4 sm:$0xff]  }
 0x3bc   :  { %v12441_v25 = vpop.f32.mrb[49].mxu1  ;;  %v13320_v16 = vld [vmem:[#allocation26 + $0x5c0] ss:$8 sps:$4 sm:$0xff]  }
 0x3bd   :  { %16491 = vst [vmem:[#allocation62_spill] sm:$0xff] %v15872_v30  ;;  %v1682_v5 = vadd.f32 %v15829_v44, %v1569_v28  ;;  %v1572_v46 = vadd.f32 %v12381_v50, %v15787_v6  ;;  %5566 = vmatpush1.bf16.msra.mxu0 %v13227_v22  ;;  %v15879_v24 = vadd.f32 %v12441_v25, %v12440_v8  ;;  %v12443_v20 = vpop.f32.mrb[50].mxu1  ;;  %v13239_v22 = vld [vmem:[#allocation26 + $0x400] ss:$8 sps:$4 sm:$0xff]   ;;  %v13250_v25 = vld [vmem:[#allocation26 + $0x504] ss:$8 sps:$4 sm:$0xff]  }
 0x3be   :  { %5605 = vmatpush1.bf16.msra.mxu1 %v13230_v47  ;;  %5567 = vmatprep.subr.bf16.mxu0 %v13235_v18  ;;  %v12444_v2 = vpop.f32.mrb[51].mxu1  ;;  %v13247_v47 = vld [vmem:[#allocation26 + $0x414] ss:$8 sps:$4 sm:$0xff]  }
 0x3bf   :  { %v1724_v13 = vmax.f32 %v1682_v5, 0.0  ;;  %v1685_v1 = vadd.f32 %v15836_v45, %v1572_v46  ;;  %v12382_v44 = vpop.f32.mrb[44].mxu0  ;;  %5606 = vmatprep.subr.bf16.mxu1 %v13238_v51  ;;  %v15882_v28 = vadd.f32 %v12444_v2, %v12443_v20 }
 0x3c0   :  { %v12383_v50 = vpop.f32.mrb[45].mxu0 }
 0x3c1   :  { %v1725_v23 = vmax.f32 %v1685_v1, 0.0  ;;  %v12384_v52 = vadd.f32 %v12383_v50, %v12382_v44  ;;  %5568 = vmatpush1.bf16.msra.mxu0 %v13233_v3  ;;  %v12385_v8 = vpop.f32.mrb[46].mxu0  ;;  %v15884_v5 = vpack.c.bf16 %v1724_v13, %v1724_v13  ;;  %v13248_v13 = vld [vmem:[#allocation26 + $0x500] ss:$8 sps:$4 sm:$0xff]  }
 0x3c2   :  { %5607 = vmatpush1.bf16.msra.mxu1 %v13236_v29  ;;  %v12386_v18 = vpop.f32.mrb[47].mxu0  ;;  %5619 = vmatprep.subr.bf16.mxu0 %v13241_v10  ;;  %v13245_v10 = vld [vmem:[#allocation26 + $0x410] ss:$8 sps:$4 sm:$0xff]  }
 0x3c3   :  { %16492 = vst [vmem:[#allocation63_spill] sm:$0xff] %v15884_v5  ;;  %v15886_v45 = vpack.c.bf16 %v1725_v23, %v1725_v23  ;;  %v1577_v51 = vadd.f32 %v12384_v52, %v15787_v6  ;;  %v12387_v46 = vadd.f32 %v12386_v18, %v12385_v8  ;;  %5608 = vmatprep.subr.bf16.mxu1 %v13244_v54  ;;  %v12446_v20 = vpop.f32.mrb[52].mxu1  ;;  %v13256_v54 = vld [vmem:[#allocation26 + $0x514] ss:$8 sps:$4 sm:$0xff]  }
 0x3c4   :  { %5570 = vmatmul.mubr.bf16.vlgmr.msra.gmra.mrb[84].mxu0 %v15635_v61  ;;  %v12447_v29 = vpop.f32.mrb[53].mxu1  ;;  %v13253_v61 = vld [vmem:[#allocation26 + $0x424] ss:$8 sps:$4 sm:$0xff]   ;;  %v13280_v5 = vld [vmem:[#allocation26 + $0x554] ss:$8 sps:$4 sm:$0xff]  }
 0x3c5   :  { %16493 = vst [vmem:[#allocation64_spill] sm:$0xff] %v15886_v45  ;;  %v1690_v1 = vadd.f32 %v15825_v42, %v1577_v51  ;;  %v1580_v3 = vadd.f32 %v12387_v46, %v15787_v6  ;;  %5620 = vmatpush1.bf16.msra.mxu0 %v13239_v22  ;;  %5651 = vmatprep.mubr.bf16.mxu0 %v15703_v4  ;;  %v12449_v52 = vpop.f32.mrb[54].mxu1  ;;  %v13296_v45 = vld [vmem:[#allocation26 + $0x580] ss:$8 sps:$4 sm:$0xff]  }
 0x3c6   :  { %v15895_v44 = vadd.f32 %v12447_v29, %v12446_v20  ;;  %5609 = vmatpush1.bf16.msra.mxu1 %v13242_v63  ;;  %5621 = vmatprep.subr.bf16.mxu0 %v13247_v47  ;;  %v12450_v22 = vpop.f32.mrb[55].mxu1  ;;  %v13251_v63 = vld [vmem:[#allocation26 + $0x420] ss:$8 sps:$4 sm:$0xff]   ;;  %v13254_v20 = vld [vmem:[#allocation26 + $0x510] ss:$8 sps:$4 sm:$0xff]  }
 0x3c7   :  { %v1726_v2 = vmax.f32 %v1690_v1, 0.0  ;;  %v1693_v42 = vadd.f32 %v15833_v36, %v1580_v3  ;;  %v12388_v50 = vpop.f32.mrb[48].mxu0  ;;  %5660 = vmatprep.subr.bf16.mxu1 %v13250_v25  ;;  %v15898_v4 = vadd.f32 %v12450_v22, %v12449_v52  ;;  %v13259_v1 = vld [vmem:[#allocation26 + $0x434] ss:$8 sps:$4 sm:$0xff]   ;;  %v13262_v3 = vld [vmem:[#allocation26 + $0x524] ss:$8 sps:$4 sm:$0xff]  }
 0x3c8   :  { %v12389_v8 = vpop.f32.mrb[49].mxu0 }
 0x3c9   :  { %v1727_v18 = vmax.f32 %v1693_v42, 0.0  ;;  %v12390_v51 = vadd.f32 %v12389_v8, %v12388_v50  ;;  %5611 = vmatmul.mubr.bf16.vlgmr.msra.gmra.mrb[88].mxu1 %v15633_v59  ;;  %5622 = vmatpush1.bf16.msra.mxu0 %v13245_v10  ;;  %v12391_v46 = vpop.f32.mrb[50].mxu0  ;;  %v15901_v47 = vpack.c.bf16 %v1726_v2, %v1726_v2  ;;  %v13260_v50 = vld [vmem:[#allocation26 + $0x520] ss:$8 sps:$4 sm:$0xff]  }
 0x3ca   :  { %5661 = vmatpush1.bf16.msra.mxu1 %v13248_v13  ;;  %5692 = vmatprep.mubr.bf16.mxu1 %v15695_v0  ;;  %v12392_v36 = vpop.f32.mrb[51].mxu0  ;;  %v13257_v13 = vld [vmem:[#allocation26 + $0x430] ss:$8 sps:$4 sm:$0xff]   ;;  %v13274_v0 = vld [vmem:[#allocation26 + $0x544] ss:$8 sps:$4 sm:$0xff]  }
 0x3cb   :  { %16494 = vst [vmem:[#allocation65_spill] sm:$0xff] %v15901_v47  ;;  %v15904_v25 = vpack.c.bf16 %v1727_v18, %v1727_v18  ;;  %v1585_v29 = vadd.f32 %v12390_v51, %v15787_v6  ;;  %v12393_v52 = vadd.f32 %v12392_v36, %v12391_v46  ;;  %5623 = vmatprep.subr.bf16.mxu0 %v13253_v61  ;;  %v12452_v59 = vpop.f32.mrb[56].mxu1  ;;  %v13265_v18 = vld [vmem:[#allocation26 + $0x444] ss:$8 sps:$4 sm:$0xff]   ;;  %v13268_v61 = vld [vmem:[#allocation26 + $0x534] ss:$8 sps:$4 sm:$0xff]  }
 0x3cc   :  { %5662 = vmatprep.subr.bf16.mxu1 %v13256_v54  ;;  %v12453_v2 = vpop.f32.mrb[57].mxu1 }
 0x3cd   :  { %16495 = vst [vmem:[#allocation66_spill] sm:$0xff] %v15904_v25  ;;  %v1698_v10 = vadd.f32 %v15847_v55, %v1585_v29  ;;  %v1588_v42 = vadd.f32 %v12393_v52, %v15787_v6  ;;  %5624 = vmatpush1.bf16.msra.mxu0 %v13251_v63  ;;  %v15911_v22 = vadd.f32 %v12453_v2, %v12452_v59  ;;  %v12455_v8 = vpop.f32.mrb[58].mxu1  ;;  %v13263_v59 = vld [vmem:[#allocation26 + $0x440] ss:$8 sps:$4 sm:$0xff]   ;;  %v13266_v2 = vld [vmem:[#allocation26 + $0x530] ss:$8 sps:$4 sm:$0xff]  }
 0x3ce   :  { %5663 = vmatpush1.bf16.msra.mxu1 %v13254_v20  ;;  %5625 = vmatprep.subr.bf16.mxu0 %v13259_v1  ;;  %v12456_v46 = vpop.f32.mrb[59].mxu1  ;;  %v15916_v1 = vld [vmem:[#allocation20] ss:$0 sm:$0xff] }
 0x3cf   :  { %v1728_v54 = vmax.f32 %v1698_v10, 0.0  ;;  %v1701_v51 = vadd.f32 %v15854_v7, %v1588_v42  ;;  %v12394_v55 = vpop.f32.mrb[52].mxu0  ;;  %5664 = vmatprep.subr.bf16.mxu1 %v13262_v3  ;;  %v15914_v63 = vadd.f32 %v12456_v46, %v12455_v8  ;;  %v13271_v10 = vld [vmem:[#allocation26 + $0x454] ss:$8 sps:$4 sm:$0xff]  }
 0x3d0   :  { %v12395_v36 = vpop.f32.mrb[53].mxu0 }
 0x3d1   :  { %v1729_v29 = vmax.f32 %v1701_v51, 0.0  ;;  %v12396_v52 = vadd.f32 %v12395_v36, %v12394_v55  ;;  %5626 = vmatpush1.bf16.msra.mxu0 %v13257_v13  ;;  %v12397_v23 = vpop.f32.mrb[54].mxu0  ;;  %v15918_v7 = vpack.c.bf16 %v1728_v54, %v1728_v54  ;;  %v13269_v51 = vld [vmem:[#allocation26 + $0x450] ss:$8 sps:$4 sm:$0xff]   ;;  %v13272_v55 = vld [vmem:[#allocation26 + $0x540] ss:$8 sps:$4 sm:$0xff]  }
 0x3d2   :  { %5665 = vmatpush1.bf16.msra.mxu1 %v13260_v50  ;;  %v12398_v20 = vpop.f32.mrb[55].mxu0  ;;  %5627 = vmatprep.subr.bf16.mxu0 %v13265_v18  ;;  %v13277_v36 = vld [vmem:[#allocation26 + $0x464] ss:$8 sps:$4 sm:$0xff]  }
 0x3d3   :  { %16496 = vst [vmem:[#allocation67_spill] sm:$0xff] %v15918_v7  ;;  %v15920_v42 = vpack.c.bf16 %v1729_v29, %v1729_v29  ;;  %v1593_v3 = vadd.f32 %v12396_v52, %v15787_v6  ;;  %v12399_v8 = vadd.f32 %v12398_v20, %v12397_v23  ;;  %5666 = vmatprep.subr.bf16.mxu1 %v13268_v61  ;;  %v12458_v13 = vpop.f32.mrb[60].mxu1 }
 0x3d4   :  { %v12459_v18 = vpop.f32.mrb[61].mxu1  ;;  %v2314_v23 = vadd.f32 %v15879_v24, %v15916_v1 }
 0x3d5   :  { %16497 = vst [vmem:[#allocation68_spill] sm:$0xff] %v15920_v42  ;;  %v1706_v46 = vadd.f32 %v15843_v60, %v1593_v3  ;;  %v1596_v50 = vadd.f32 %v12399_v8, %v15787_v6  ;;  %5628 = vmatpush1.bf16.msra.mxu0 %v13263_v59  ;;  %v15927_v29 = vadd.f32 %v12459_v18, %v12458_v13  ;;  %v12461_v52 = vpop.f32.mrb[62].mxu1 }
 0x3d6   :  { %5667 = vmatpush1.bf16.msra.mxu1 %v13266_v2  ;;  %5629 = vmatprep.subr.bf16.mxu0 %v13271_v10  ;;  %v12462_v60 = vpop.f32.mrb[63].mxu1  ;;  %v2306_v6 = vadd.f32 %v15865_v9, %v15916_v1  ;;  %v2317_v2 = vadd.f32 %v15882_v28, %v15916_v1  ;;  %v13275_v10 = vld [vmem:[#allocation26 + $0x460] ss:$8 sps:$4 sm:$0xff]  }
 0x3d7   :  { %v1709_v61 = vadd.f32 %v15851_v12, %v1596_v50  ;;  %v12693_v20 = vpop.f32.mrb[56].mxu0  ;;  %5668 = vmatprep.subr.bf16.mxu1 %v13274_v0  ;;  %v1730_v59 = vmax.f32 %v1706_v46, 0.0  ;;  %v15934_v3 = vadd.f32 %v12462_v60, %v12461_v52  ;;  %v2309_v12 = vadd.f32 %v15868_v17, %v15916_v1  ;;  %v13278_v50 = vld [vmem:[#allocation26 + $0x550] ss:$8 sps:$4 sm:$0xff]   ;;  %v13283_v46 = vld [vmem:[#allocation26 + $0x474] ss:$8 sps:$4 sm:$0xff]  }
 0x3d8   :  { %v2427_v8 = vadd.f32 %v12693_v20, %v2314_v23  ;;  %v2418_v13 = vpop.f32.mrb[57].mxu0  ;;  %v13286_v52 = vld [vmem:[#allocation26 + $0x564] ss:$8 sps:$4 sm:$0xff]  }
 0x3d9   :  { %v1731_v18 = vmax.f32 %v1709_v61, 0.0  ;;  %v2419_v54 = vadd.f32 %v2418_v13, %v2306_v6  ;;  %5630 = vmatpush1.bf16.msra.mxu0 %v13269_v51  ;;  %v12694_v24 = vpop.f32.mrb[58].mxu0  ;;  %v15942_v61 = vpack.c.bf16 %v1730_v59, %v1730_v59  ;;  %v13284_v13 = vld [vmem:[#allocation26 + $0x560] ss:$8 sps:$4 sm:$0xff]   ;;  %v13292_v59 = vld [vmem:[#allocation26 + $0x574] ss:$8 sps:$4 sm:$0xff]  }
 0x3da   :  { %v2499_v7 = vmax.f32 %v2427_v8, 0.0  ;;  %v2430_v9 = vadd.f32 %v12694_v24, %v2317_v2  ;;  %5669 = vmatpush1.bf16.msra.mxu1 %v13272_v55  ;;  %v2421_v0 = vpop.f32.mrb[59].mxu0  ;;  %5631 = vmatprep.subr.bf16.mxu0 %v13277_v36  ;;  %v2330_v55 = vadd.f32 %v15911_v22, %v15916_v1  ;;  %v13281_v36 = vld [vmem:[#allocation26 + $0x470] ss:$8 sps:$4 sm:$0xff]   ;;  %v2322_v22 = vadd.f32 %v15895_v44, %v15916_v1  ;;  %v13287_v44 = vld [vmem:[#allocation26 + $0x480] ss:$8 sps:$4 sm:$0xff]  }
 0x3db   :  { %v15940_v23 = vpack.c.bf16 %v1731_v18, %v1731_v18  ;;  %v2497_v60 = vmax.f32 %v2419_v54, 0.0  ;;  %v2422_v28 = vadd.f32 %v2421_v0, %v2309_v12  ;;  %5670 = vmatprep.subr.bf16.mxu1 %v13280_v5  ;;  %16499 = vst [vmem:[#allocation70_spill] sm:$0xff] %v15942_v61  ;;  %v12464_v20 = vpop.f32.mrb[64].mxu1  ;;  %v13289_v5 = vld [vmem:[#allocation26 + $0x484] ss:$8 sps:$4 sm:$0xff]  }
 0x3dc   :  { %v2500_v51 = vmax.f32 %v2430_v9, 0.0  ;;  %v15944_v6 = vpack.c.bf16 %v2499_v7, %v2499_v7  ;;  %v12465_v8 = vpop.f32.mrb[65].mxu1 }
 0x3dd   :  { %16498 = vst [vmem:[#allocation69_spill] sm:$0xff] %v15940_v23  ;;  %v2498_v17 = vmax.f32 %v2422_v28, 0.0  ;;  %5632 = vmatpush1.bf16.msra.mxu0 %v13275_v10  ;;  %v12466_v18 = vadd.f32 %v12465_v8, %v12464_v20  ;;  %v12467_v54 = vpop.f32.mrb[66].mxu1  ;;  %v15952_v24 = vpack.c.bf16 %v2497_v60, %v2497_v60  ;;  %v2325_v8 = vadd.f32 %v15898_v4, %v15916_v1  ;;  %v13293_v4 = vld [vmem:[#allocation26 + $0x490] ss:$8 sps:$4 sm:$0xff]  }
 0x3de   :  { %v15948_v2 = vpack.c.bf16 %v2500_v51, %v2500_v51  ;;  %5671 = vmatpush1.bf16.msra.mxu1 %v13278_v50  ;;  %5633 = vmatprep.subr.bf16.mxu0 %v13283_v46  ;;  %v12468_v10 = vpop.f32.mrb[67].mxu1  ;;  %v2333_v51 = vadd.f32 %v15914_v63, %v15916_v1  ;;  %v13298_v63 = vld [vmem:[#allocation26 + $0x584] ss:$8 sps:$4 sm:$0xff]   ;;  %v13308_v23 = vld [vmem:[#allocation26 + $0x5a0] ss:$8 sps:$4 sm:$0xff]  }
 0x3df   :  { %v15954_v12 = vpack.c.bf16 %v2498_v17, %v2498_v17  ;;  %v12697_v9 = vpop.f32.mrb[60].mxu0  ;;  %5672 = vmatprep.subr.bf16.mxu1 %v13286_v52  ;;  %v12469_v0 = vadd.f32 %v12468_v10, %v12467_v54  ;;  %v13295_v54 = vld [vmem:[#allocation26 + $0x494] ss:$8 sps:$4 sm:$0xff]  }
 0x3e0   :  { %v2443_v46 = vadd.f32 %v12697_v9, %v2330_v55  ;;  %v2434_v28 = vpop.f32.mrb[61].mxu0  ;;  %v13290_v55 = vld [vmem:[#allocation26 + $0x570] ss:$8 sps:$4 sm:$0xff]  }
 0x3e1   :  { %v2435_v20 = vadd.f32 %v2434_v28, %v2322_v22  ;;  %5634 = vmatpush1.bf16.msra.mxu0 %v13281_v36  ;;  %v12698_v17 = vpop.f32.mrb[62].mxu0  ;;  %v2346_v28 = vadd.f32 %v12466_v18, %v15916_v1  ;;  %v2338_v18 = vadd.f32 %v15927_v29, %v15916_v1  ;;  %v13302_v29 = vld [vmem:[#allocation26 + $0x590] ss:$8 sps:$4 sm:$0xff]  }
 0x3e2   :  { %v2503_v52 = vmax.f32 %v2443_v46, 0.0  ;;  %v2446_v7 = vadd.f32 %v12698_v17, %v2333_v51  ;;  %5673 = vmatpush1.bf16.msra.mxu1 %v13284_v13  ;;  %v2437_v50 = vpop.f32.mrb[63].mxu0  ;;  %5635 = vmatprep.subr.bf16.mxu0 %v13289_v5 }
 0x3e3   :  { %v2501_v10 = vmax.f32 %v2435_v20, 0.0  ;;  %v2438_v9 = vadd.f32 %v2437_v50, %v2325_v8  ;;  %5674 = vmatprep.subr.bf16.mxu1 %v13292_v59  ;;  %v12470_v60 = vpop.f32.mrb[68].mxu1  ;;  %v13301_v50 = vld [vmem:[#allocation26 + $0x4a4] ss:$8 sps:$4 sm:$0xff]   ;;  %v13304_v59 = vld [vmem:[#allocation26 + $0x594] ss:$8 sps:$4 sm:$0xff]  }
 0x3e4   :  { %v2504_v42 = vmax.f32 %v2446_v7, 0.0  ;;  %v12471_v36 = vpop.f32.mrb[69].mxu1  ;;  %v15967_v46 = vpack.c.bf16 %v2503_v52, %v2503_v52 }
 0x3e5   :  { %v2502_v22 = vmax.f32 %v2438_v9, 0.0  ;;  %5636 = vmatpush1.bf16.msra.mxu0 %v13287_v44  ;;  %v12472_v5 = vadd.f32 %v12471_v36, %v12470_v60  ;;  %v12473_v51 = vpop.f32.mrb[70].mxu1  ;;  %v15971_v20 = vpack.c.bf16 %v2501_v10, %v2501_v10  ;;  %v13299_v36 = vld [vmem:[#allocation26 + $0x4a0] ss:$8 sps:$4 sm:$0xff]  }
 0x3e6   :  { %v15969_v13 = vpack.c.bf16 %v2504_v42, %v2504_v42  ;;  %5675 = vmatpush1.bf16.msra.mxu1 %v13290_v55  ;;  %5637 = vmatprep.subr.bf16.mxu0 %v13295_v54  ;;  %v12474_v17 = vpop.f32.mrb[71].mxu1  ;;  %v2349_v55 = vadd.f32 %v12469_v0, %v15916_v1 }
 0x3e7   :  { %v15973_v7 = vpack.c.bf16 %v2502_v22, %v2502_v22  ;;  %v12701_v8 = vpop.f32.mrb[64].mxu0  ;;  %5676 = vmatprep.subr.bf16.mxu1 %v13298_v63  ;;  %v12475_v44 = vadd.f32 %v12474_v17, %v12473_v51  ;;  %v2341_v22 = vadd.f32 %v15934_v3, %v15916_v1  ;;  %v13310_v51 = vld [vmem:[#allocation26 + $0x5a4] ss:$8 sps:$4 sm:$0xff]  }
 0x3e8   :  { %v2459_v60 = vadd.f32 %v12701_v8, %v2346_v28  ;;  %v2450_v52 = vpop.f32.mrb[65].mxu0  ;;  %v13307_v28 = vld [vmem:[#allocation26 + $0x4b4] ss:$8 sps:$4 sm:$0xff]  }
 0x3e9   :  { %v2451_v10 = vadd.f32 %v2450_v52, %v2338_v18  ;;  %5638 = vmatpush1.bf16.msra.mxu0 %v13293_v4  ;;  %v12702_v9 = vpop.f32.mrb[66].mxu0  ;;  %v13305_v52 = vld [vmem:[#allocation26 + $0x4b0] ss:$8 sps:$4 sm:$0xff]  }
 0x3ea   :  { %v2507_v63 = vmax.f32 %v2459_v60, 0.0  ;;  %v2462_v61 = vadd.f32 %v12702_v9, %v2349_v55  ;;  %5677 = vmatpush1.bf16.msra.mxu1 %v13296_v45  ;;  %v2453_v42 = vpop.f32.mrb[67].mxu0  ;;  %5639 = vmatprep.subr.bf16.mxu0 %v13301_v50  ;;  %v13313_v50 = vld [vmem:[#allocation26 + $0x4c4] ss:$8 sps:$4 sm:$0xff]   ;;  %v13316_v55 = vld [vmem:[#allocation26 + $0x5b4] ss:$8 sps:$4 sm:$0xff]   ;;  %v2354_v9 = vadd.f32 %v12472_v5, %v15916_v1 }
 0x3eb   :  { %v2505_v17 = vmax.f32 %v2451_v10, 0.0  ;;  %v2454_v0 = vadd.f32 %v2453_v42, %v2341_v22  ;;  %5678 = vmatprep.subr.bf16.mxu1 %v13304_v59  ;;  %v12476_v54 = vpop.f32.mrb[72].mxu1 }
 0x3ec   :  { %v2508_v8 = vmax.f32 %v2462_v61, 0.0  ;;  %v12477_v4 = vpop.f32.mrb[73].mxu1  ;;  %v15984_v3 = vpack.c.bf16 %v2507_v63, %v2507_v63 }
 0x3ed   :  { %v2506_v18 = vmax.f32 %v2454_v0, 0.0  ;;  %5640 = vmatpush1.bf16.msra.mxu0 %v13299_v36  ;;  %v12478_v60 = vadd.f32 %v12477_v4, %v12476_v54  ;;  %v12479_v45 = vpop.f32.mrb[74].mxu1  ;;  %v15988_v10 = vpack.c.bf16 %v2505_v17, %v2505_v17  ;;  %v2357_v0 = vadd.f32 %v12475_v44, %v15916_v1  ;;  %v13317_v44 = vld [vmem:[#allocation26 + $0x4d0] ss:$8 sps:$4 sm:$0xff]  }
 0x3ee   :  { %v15986_v47 = vpack.c.bf16 %v2508_v8, %v2508_v8  ;;  %5679 = vmatpush1.bf16.msra.mxu1 %v13302_v29  ;;  %5641 = vmatprep.subr.bf16.mxu0 %v13307_v28  ;;  %v12480_v61 = vpop.f32.mrb[75].mxu1  ;;  %v13311_v8 = vld [vmem:[#allocation26 + $0x4c0] ss:$8 sps:$4 sm:$0xff]  }
 0x3ef   :  { %v15990_v59 = vpack.c.bf16 %v2506_v18, %v2506_v18  ;;  %v12705_v42 = vpop.f32.mrb[68].mxu0  ;;  %5680 = vmatprep.subr.bf16.mxu1 %v13310_v51  ;;  %v12481_v36 = vadd.f32 %v12480_v61, %v12479_v45  ;;  %v2362_v54 = vadd.f32 %v12478_v60, %v15916_v1  ;;  %v13314_v18 = vld [vmem:[#allocation26 + $0x5b0] ss:$8 sps:$4 sm:$0xff]   ;;  %v13319_v45 = vld [vmem:[#allocation26 + $0x4d4] ss:$8 sps:$4 sm:$0xff]  }
 0x3f0   :  { %v2466_v29 = vpop.f32.mrb[69].mxu0  ;;  %v13322_v61 = vld [vmem:[#allocation26 + $0x5c4] ss:$8 sps:$4 sm:$0xff]  }
 0x3f1   :  { %v2467_v28 = vadd.f32 %v2466_v29, %v2354_v9  ;;  %5642 = vmatpush1.bf16.msra.mxu0 %v13305_v52  ;;  %v12706_v17 = vpop.f32.mrb[70].mxu0  ;;  %v2475_v4 = vadd.f32 %v12705_v42, %v2362_v54  ;;  %v2365_v5 = vadd.f32 %v12481_v36, %v15916_v1 }
 0x3f2   :  { %5681 = vmatpush1.bf16.msra.mxu1 %v13308_v23  ;;  %v2469_v51 = vpop.f32.mrb[71].mxu0  ;;  %5643 = vmatprep.subr.bf16.mxu0 %v13313_v50  ;;  %v13325_v23 = vld [vmem:[#allocation26 + $0x4e4] ss:$8 sps:$4 sm:$0xff]   ;;  %v13328_v50 = vld [vmem:[#allocation26 + $0x5d4] ss:$8 sps:$4 sm:$0xff]  }
 0x3f3   :  { %v2509_v60 = vmax.f32 %v2467_v28, 0.0  ;;  %v2470_v22 = vadd.f32 %v2469_v51, %v2357_v0  ;;  %5682 = vmatprep.subr.bf16.mxu1 %v13316_v55  ;;  %v2511_v25 = vmax.f32 %v2475_v4, 0.0  ;;  %v2478_v63 = vadd.f32 %v12706_v17, %v2365_v5  ;;  %v12482_v9 = vpop.f32.mrb[76].mxu1  ;;  %v13323_v51 = vld [vmem:[#allocation26 + $0x4e0] ss:$8 sps:$4 sm:$0xff]  }
 0x3f4   :  { %v12483_v29 = vpop.f32.mrb[77].mxu1 }
 0x3f5   :  { %v2510_v52 = vmax.f32 %v2470_v22, 0.0  ;;  %5644 = vmatpush1.bf16.msra.mxu0 %v13311_v8  ;;  %v2512_v30 = vmax.f32 %v2478_v63, 0.0  ;;  %v12484_v42 = vadd.f32 %v12483_v29, %v12482_v9  ;;  %v12485_v36 = vpop.f32.mrb[78].mxu1  ;;  %v16000_v54 = vpack.c.bf16 %v2509_v60, %v2509_v60 }
 0x3f6   :  { %5683 = vmatpush1.bf16.msra.mxu1 %v13314_v18  ;;  %5645 = vmatprep.subr.bf16.mxu0 %v13319_v45  ;;  %v12486_v55 = vpop.f32.mrb[79].mxu1  ;;  %v16004_v17 = vpack.c.bf16 %v2511_v25, %v2511_v25  ;;  %v13326_v45 = vld [vmem:[#allocation26 + $0x5d0] ss:$8 sps:$4 sm:$0xff]   ;;  %v13332_v18 = vld [vmem:[#allocation26 + $0x5e0] ss:$8 sps:$4 sm:$0xff]  }
 0x3f7   :  { %16500 = vst [vmem:[#allocation71_spill] sm:$0xff] %v16000_v54  ;;  %v16002_v28 = vpack.c.bf16 %v2510_v52, %v2510_v52  ;;  %v12709_v0 = vpop.f32.mrb[72].mxu0  ;;  %5684 = vmatprep.subr.bf16.mxu1 %v13322_v61  ;;  %v16006_v22 = vpack.c.bf16 %v2512_v30, %v2512_v30  ;;  %v12487_v8 = vadd.f32 %v12486_v55, %v12485_v36  ;;  %v13331_v61 = vld [vmem:[#allocation26 + $0x4f4] ss:$8 sps:$4 sm:$0xff]   ;;  %v13334_v52 = vld [vmem:[#allocation26 + $0x5e4] ss:$8 sps:$4 sm:$0xff]  }
 0x3f8   :  { %v2370_v63 = vadd.f32 %v12484_v42, %v15916_v1  ;;  %v2482_v4 = vpop.f32.mrb[73].mxu0  ;;  %v13329_v55 = vld [vmem:[#allocation26 + $0x4f0] ss:$8 sps:$4 sm:$0xff]  }
 0x3f9   :  { %16501 = vst [vmem:[#allocation72_spill] sm:$0xff] %v16002_v28  ;;  %5646 = vmatpush1.bf16.msra.mxu0 %v13317_v44  ;;  %v12710_v5 = vpop.f32.mrb[74].mxu0  ;;  %v2373_v25 = vadd.f32 %v12487_v8, %v15916_v1 }
 0x3fa   :  { %v2483_v9 = vadd.f32 %v2482_v4, %v2370_v63  ;;  %5685 = vmatpush1.bf16.msra.mxu1 %v13320_v16  ;;  %v2485_v30 = vpop.f32.mrb[75].mxu0  ;;  %5647 = vmatprep.subr.bf16.mxu0 %v13325_v23  ;;  %v13337_v16 = vld [vmem:[#allocation26 + $0x604] ss:$8 sps:$4 sm:$0xff]   ;;  %v13340_v63 = vld [vmem:[#allocation26 + $0x5f4] ss:$8 sps:$4 sm:$0xff]  }
 0x3fb   :  { %5686 = vmatprep.subr.bf16.mxu1 %v13328_v50  ;;  %v2486_v42 = vadd.f32 %v2485_v30, %v2373_v25  ;;  %v12488_v36 = vpop.f32.mrb[80].mxu1  ;;  %v13335_v23 = vld [vmem:[#allocation26 + $0x600] ss:$8 sps:$4 sm:$0xff]   ;;  %v13338_v25 = vld [vmem:[#allocation26 + $0x5f0] ss:$8 sps:$4 sm:$0xff]  }
 0x3fc   :  { %v2513_v29 = vmax.f32 %v2483_v9, 0.0  ;;  %v12489_v44 = vpop.f32.mrb[81].mxu1  ;;  %v13343_v30 = vld [vmem:[#allocation26 + $0x614] ss:$8 sps:$4 sm:$0xff]  }
 0x3fd   :  { %5648 = vmatpush1.bf16.msra.mxu0 %v13323_v51  ;;  %v2514_v54 = vmax.f32 %v2486_v42, 0.0  ;;  %v12490_v28 = vadd.f32 %v12489_v44, %v12488_v36  ;;  %v12491_v60 = vpop.f32.mrb[82].mxu1  ;;  %v13346_v42 = vld [vmem:[#allocation26 + $0x704] ss:$8 sps:$4 sm:$0xff]  }
 0x3fe   :  { %5687 = vmatpush1.bf16.msra.mxu1 %v13326_v45  ;;  %5649 = vmatprep.subr.bf16.mxu0 %v13331_v61  ;;  %v12492_v8 = vpop.f32.mrb[83].mxu1  ;;  %v16014_v4 = vpack.c.bf16 %v2513_v29, %v2513_v29  ;;  %v13349_v44 = vld [vmem:[#allocation26 + $0x624] ss:$8 sps:$4 sm:$0xff]  }
 0x3ff   :  { %5688 = vmatprep.subr.bf16.mxu1 %v13334_v52  ;;  %v16016_v50 = vpack.c.bf16 %v2514_v54, %v2514_v54  ;;  %v2378_v9 = vadd.f32 %v12490_v28, %v15916_v1  ;;  %v12493_v51 = vadd.f32 %v12492_v8, %v12491_v60  ;;  %v13341_v54 = vld [vmem:[#allocation26 + $0x610] ss:$8 sps:$4 sm:$0xff]   ;;  %v13344_v28 = vld [vmem:[#allocation26 + $0x700] ss:$8 sps:$4 sm:$0xff]  }
 0x400   :  { %v13356_v8 = vld [vmem:[#allocation26 + $0x720] ss:$8 sps:$4 sm:$0xff]  }
 0x401   :  { %5650 = vmatpush1.bf16.msra.mxu0 %v13329_v55  ;;  %v8069_v45 = vmax.bf16 %v16016_v50, %v16014_v4  ;;  %v2491_v61 = vadd.f32 %v12709_v0, %v2378_v9  ;;  %v2381_v36 = vadd.f32 %v12493_v51, %v15916_v1  ;;  %v13352_v55 = vld [vmem:[#allocation26 + $0x714] ss:$8 sps:$4 sm:$0xff]   ;;  %v13359_v9 = vld [vmem:[#allocation26 + $0x640] ss:$8 sps:$4 sm:$0xff]   ;;  %v13362_v51 = vld [vmem:[#allocation26 + $0x730] ss:$8 sps:$4 sm:$0xff]  }
 0x402   :  { %5689 = vmatpush1.bf16.msra.mxu1 %v13332_v18  ;;  %5701 = vmatprep.subr.bf16.mxu0 %v13337_v16  ;;  %v13347_v18 = vld [vmem:[#allocation26 + $0x620] ss:$8 sps:$4 sm:$0xff]  }
 0x403   :  { %5690 = vmatprep.subr.bf16.mxu1 %v13340_v63  ;;  %v2515_v52 = vmax.f32 %v2491_v61, 0.0  ;;  %v2494_v29 = vadd.f32 %v12710_v5, %v2381_v36  ;;  %v13358_v5 = vld [vmem:[#allocation26 + $0x724] ss:$8 sps:$4 sm:$0xff]   ;;  %v13353_v63 = vld [vmem:[#allocation26 + $0x630] ss:$8 sps:$4 sm:$0xff]  }
 0x404   :  { %5652 = vmatmul.mubr.bf16.vlgmr.msra.gmra.mrb[88].mxu0 %v15689_v57  ;;  %v13350_v57 = vld [vmem:[#allocation26 + $0x710] ss:$8 sps:$4 sm:$0xff]   ;;  %v13373_v61 = vld [vmem:[#allocation26 + $0x664] ss:$8 sps:$4 sm:$0xff]   ;;  %v13376_v36 = vld [vmem:[#allocation26 + $0x754] ss:$8 sps:$4 sm:$0xff]  }
 0x405   :  { %5702 = vmatpush1.bf16.msra.mxu0 %v13335_v23  ;;  %5733 = vmatprep.mubr.bf16.mxu0 %v15741_v34  ;;  %v2516_v60 = vmax.f32 %v2494_v29, 0.0  ;;  %v16024_v0 = vpack.c.bf16 %v2515_v52, %v2515_v52  ;;  %v13355_v34 = vld [vmem:[#allocation26 + $0x634] ss:$8 sps:$4 sm:$0xff]   ;;  %v13361_v23 = vld [vmem:[#allocation26 + $0x644] ss:$8 sps:$4 sm:$0xff]  }
 0x406   :  { %5691 = vmatpush1.bf16.msra.mxu1 %v13338_v25  ;;  %5703 = vmatprep.subr.bf16.mxu0 %v13343_v30  ;;  %v13370_v25 = vld [vmem:[#allocation26 + $0x744] ss:$8 sps:$4 sm:$0xff]   ;;  %v13365_v30 = vld [vmem:[#allocation26 + $0x650] ss:$8 sps:$4 sm:$0xff]  }
 0x407   :  { %5742 = vmatprep.subr.bf16.mxu1 %v13346_v42  ;;  %v16026_v1 = vpack.c.bf16 %v2516_v60, %v2516_v60  ;;  %v13368_v42 = vld [vmem:[#allocation26 + $0x740] ss:$8 sps:$4 sm:$0xff]   ;;  %v13374_v60 = vld [vmem:[#allocation26 + $0x750] ss:$8 sps:$4 sm:$0xff]  }
 0x408   :  { %v16526_v4 = vld [vmem:[#allocation62_spill] sm:$0xff]  ;;  %v16527_v50 = vld [vmem:[#allocation61_spill] sm:$0xff] }
 0x409   :  { %5693 = vmatmul.mubr.bf16.vlgmr.msra.gmra.mrb[92].mxu1 %v15687_v56  ;;  %5704 = vmatpush1.bf16.msra.mxu0 %v13341_v54  ;;  %v8070_v16 = vmax.bf16 %v16026_v1, %v16024_v0  ;;  %v13364_v56 = vld [vmem:[#allocation26 + $0x734] ss:$8 sps:$4 sm:$0xff]   ;;  %v13371_v54 = vld [vmem:[#allocation26 + $0x660] ss:$8 sps:$4 sm:$0xff]  }
 0x40a   :  { %5743 = vmatpush1.bf16.msra.mxu1 %v13344_v28  ;;  %5774 = vmatprep.mubr.bf16.mxu1 %v15727_v62  ;;  %v13367_v62 = vld [vmem:[#allocation26 + $0x654] ss:$8 sps:$4 sm:$0xff]  }
 0x40b   :  { %5705 = vmatprep.subr.bf16.mxu0 %v13349_v44  ;;  %5744 = vmatprep.subr.bf16.mxu1 %v13352_v55  ;;  %v13379_v44 = vld [vmem:[#allocation26 + $0x674] ss:$8 sps:$4 sm:$0xff]  }
 0x40c   :  { %v14214_v0 = vld [vmem:[#allocation29 + $0x10] ss:$8 sps:$4 sm:$0xff]   ;;  %v14219_v1 = vld [vmem:[#allocation30 + $0x434] ss:$8 sps:$4 sm:$0xff]  }
 0x40d   :  { %5706 = vmatpush1.bf16.msra.mxu0 %v13347_v18  ;;  %v13382_v18 = vld [vmem:[#allocation26 + $0x764] ss:$8 sps:$4 sm:$0xff]  }
 0x40e   :  { %5745 = vmatpush1.bf16.msra.mxu1 %v13350_v57  ;;  %5707 = vmatprep.subr.bf16.mxu0 %v13355_v34  ;;  %v13377_v57 = vld [vmem:[#allocation26 + $0x670] ss:$8 sps:$4 sm:$0xff]   ;;  %v13380_v34 = vld [vmem:[#allocation26 + $0x760] ss:$8 sps:$4 sm:$0xff]  }
 0x40f   :  { %5746 = vmatprep.subr.bf16.mxu1 %v13358_v5  ;;  %v13385_v5 = vld [vmem:[#allocation26 + $0x684] ss:$8 sps:$4 sm:$0xff]  }
 0x411   :  { %5708 = vmatpush1.bf16.msra.mxu0 %v13353_v63  ;;  %v13388_v63 = vld [vmem:[#allocation26 + $0x774] ss:$8 sps:$4 sm:$0xff]  }
 0x412   :  { %5747 = vmatpush1.bf16.msra.mxu1 %v13356_v8  ;;  %5709 = vmatprep.subr.bf16.mxu0 %v13361_v23  ;;  %v13383_v8 = vld [vmem:[#allocation26 + $0x680] ss:$8 sps:$4 sm:$0xff]   ;;  %v13386_v23 = vld [vmem:[#allocation26 + $0x770] ss:$8 sps:$4 sm:$0xff]  }
 0x413   :  { %5748 = vmatprep.subr.bf16.mxu1 %v13364_v56  ;;  %v13391_v56 = vld [vmem:[#allocation26 + $0x694] ss:$8 sps:$4 sm:$0xff]  }
 0x415   :  { %5710 = vmatpush1.bf16.msra.mxu0 %v13359_v9  ;;  %v13394_v9 = vld [vmem:[#allocation26 + $0x784] ss:$8 sps:$4 sm:$0xff]  }
 0x416   :  { %5749 = vmatpush1.bf16.msra.mxu1 %v13362_v51  ;;  %5711 = vmatprep.subr.bf16.mxu0 %v13367_v62  ;;  %v13389_v51 = vld [vmem:[#allocation26 + $0x690] ss:$8 sps:$4 sm:$0xff]   ;;  %v13392_v62 = vld [vmem:[#allocation26 + $0x780] ss:$8 sps:$4 sm:$0xff]  }
 0x417   :  { %v16032_v52 = vpop.f32.mrb[76].mxu0  ;;  %5750 = vmatprep.subr.bf16.mxu1 %v13370_v25  ;;  %v13397_v25 = vld [vmem:[#allocation26 + $0x6a4] ss:$8 sps:$4 sm:$0xff]  }
 0x418   :  { %v16034_v29 = vpop.f32.mrb[77].mxu0 }
 0x419   :  { %v5493_v28 = vpop.f32.mrb[78].mxu0  ;;  %5712 = vmatpush1.bf16.msra.mxu0 %v13365_v30  ;;  %v13400_v30 = vld [vmem:[#allocation26 + $0x794] ss:$8 sps:$4 sm:$0xff]  }
 0x41a   :  { %v5494_v55 = vpop.f32.mrb[79].mxu0  ;;  %5751 = vmatpush1.bf16.msra.mxu1 %v13368_v42  ;;  %5713 = vmatprep.subr.bf16.mxu0 %v13373_v61  ;;  %v13395_v42 = vld [vmem:[#allocation26 + $0x6a0] ss:$8 sps:$4 sm:$0xff]   ;;  %v13398_v61 = vld [vmem:[#allocation26 + $0x790] ss:$8 sps:$4 sm:$0xff]  }
 0x41b   :  { %5752 = vmatprep.subr.bf16.mxu1 %v13376_v36  ;;  %v13403_v36 = vld [vmem:[#allocation26 + $0x6b4] ss:$8 sps:$4 sm:$0xff]   ;;  %v13401_v28 = vld [vmem:[#allocation26 + $0x6b0] ss:$8 sps:$4 sm:$0xff]  }
 0x41c   :  { %v13412_v55 = vld [vmem:[#allocation26 + $0x7b4] ss:$8 sps:$4 sm:$0xff]  }
 0x41d   :  { %5714 = vmatpush1.bf16.msra.mxu0 %v13371_v54  ;;  %v13406_v54 = vld [vmem:[#allocation26 + $0x7a4] ss:$8 sps:$4 sm:$0xff]  }
 0x41e   :  { %5753 = vmatpush1.bf16.msra.mxu1 %v13374_v60  ;;  %5715 = vmatprep.subr.bf16.mxu0 %v13379_v44  ;;  %v13404_v60 = vld [vmem:[#allocation26 + $0x7a0] ss:$8 sps:$4 sm:$0xff]   ;;  %v13409_v44 = vld [vmem:[#allocation26 + $0x6c4] ss:$8 sps:$4 sm:$0xff]  }
 0x41f   :  { %5754 = vmatprep.subr.bf16.mxu1 %v13382_v18  ;;  %v13407_v18 = vld [vmem:[#allocation26 + $0x6c0] ss:$8 sps:$4 sm:$0xff]  }
 0x421   :  { %5716 = vmatpush1.bf16.msra.mxu0 %v13377_v57  ;;  %v13410_v57 = vld [vmem:[#allocation26 + $0x7b0] ss:$8 sps:$4 sm:$0xff]  }
 0x422   :  { %5755 = vmatpush1.bf16.msra.mxu1 %v13380_v34  ;;  %5717 = vmatprep.subr.bf16.mxu0 %v13385_v5  ;;  %v13415_v34 = vld [vmem:[#allocation26 + $0x6d4] ss:$8 sps:$4 sm:$0xff]   ;;  %v13418_v5 = vld [vmem:[#allocation26 + $0x7c4] ss:$8 sps:$4 sm:$0xff]  }
 0x423   :  { %5756 = vmatprep.subr.bf16.mxu1 %v13388_v63  ;;  %v13413_v63 = vld [vmem:[#allocation26 + $0x6d0] ss:$8 sps:$4 sm:$0xff]  }
 0x425   :  { %5718 = vmatpush1.bf16.msra.mxu0 %v13383_v8  ;;  %v13416_v8 = vld [vmem:[#allocation26 + $0x7c0] ss:$8 sps:$4 sm:$0xff]  }
 0x426   :  { %5757 = vmatpush1.bf16.msra.mxu1 %v13386_v23  ;;  %5719 = vmatprep.subr.bf16.mxu0 %v13391_v56  ;;  %v13421_v23 = vld [vmem:[#allocation26 + $0x6e4] ss:$8 sps:$4 sm:$0xff]   ;;  %v13424_v56 = vld [vmem:[#allocation26 + $0x7d4] ss:$8 sps:$4 sm:$0xff]  }
 0x427   :  { %5758 = vmatprep.subr.bf16.mxu1 %v13394_v9  ;;  %v13419_v9 = vld [vmem:[#allocation26 + $0x6e0] ss:$8 sps:$4 sm:$0xff]  }
 0x429   :  { %5720 = vmatpush1.bf16.msra.mxu0 %v13389_v51  ;;  %v13422_v51 = vld [vmem:[#allocation26 + $0x7d0] ss:$8 sps:$4 sm:$0xff]  }
 0x42a   :  { %5759 = vmatpush1.bf16.msra.mxu1 %v13392_v62  ;;  %5721 = vmatprep.subr.bf16.mxu0 %v13397_v25  ;;  %v13427_v62 = vld [vmem:[#allocation26 + $0x6f4] ss:$8 sps:$4 sm:$0xff]   ;;  %v13430_v25 = vld [vmem:[#allocation26 + $0x7e4] ss:$8 sps:$4 sm:$0xff]  }
 0x42b   :  { %5760 = vmatprep.subr.bf16.mxu1 %v13400_v30  ;;  %v13425_v30 = vld [vmem:[#allocation26 + $0x6f0] ss:$8 sps:$4 sm:$0xff]  }
 0x42d   :  { %5722 = vmatpush1.bf16.msra.mxu0 %v13395_v42  ;;  %v13428_v42 = vld [vmem:[#allocation26 + $0x7e0] ss:$8 sps:$4 sm:$0xff]  }
 0x42e   :  { %5761 = vmatpush1.bf16.msra.mxu1 %v13398_v61  ;;  %5723 = vmatprep.subr.bf16.mxu0 %v13403_v36  ;;  %v13433_v61 = vld [vmem:[#allocation26 + $0x804] ss:$8 sps:$4 sm:$0xff]   ;;  %v13436_v36 = vld [vmem:[#allocation26 + $0x7f4] ss:$8 sps:$4 sm:$0xff]  }
 0x42f   :  { %5762 = vmatprep.subr.bf16.mxu1 %v13406_v54  ;;  %v13431_v54 = vld [vmem:[#allocation26 + $0x800] ss:$8 sps:$4 sm:$0xff]  }
 0x431   :  { %5724 = vmatpush1.bf16.msra.mxu0 %v13401_v28  ;;  %v13434_v28 = vld [vmem:[#allocation26 + $0x7f0] ss:$8 sps:$4 sm:$0xff]  }
 0x432   :  { %5763 = vmatpush1.bf16.msra.mxu1 %v13404_v60  ;;  %5725 = vmatprep.subr.bf16.mxu0 %v13409_v44  ;;  %v13439_v60 = vld [vmem:[#allocation26 + $0x814] ss:$8 sps:$4 sm:$0xff]   ;;  %v13442_v44 = vld [vmem:[#allocation26 + $0x904] ss:$8 sps:$4 sm:$0xff]  }
 0x433   :  { %5764 = vmatprep.subr.bf16.mxu1 %v13412_v55  ;;  %v13437_v55 = vld [vmem:[#allocation26 + $0x810] ss:$8 sps:$4 sm:$0xff]  }
 0x435   :  { %5726 = vmatpush1.bf16.msra.mxu0 %v13407_v18  ;;  %v13440_v18 = vld [vmem:[#allocation26 + $0x900] ss:$8 sps:$4 sm:$0xff]  }
 0x436   :  { %5765 = vmatpush1.bf16.msra.mxu1 %v13410_v57  ;;  %5727 = vmatprep.subr.bf16.mxu0 %v13415_v34  ;;  %v13445_v57 = vld [vmem:[#allocation26 + $0x824] ss:$8 sps:$4 sm:$0xff]   ;;  %v13448_v34 = vld [vmem:[#allocation26 + $0x914] ss:$8 sps:$4 sm:$0xff]  }
 0x437   :  { %5766 = vmatprep.subr.bf16.mxu1 %v13418_v5  ;;  %v13443_v5 = vld [vmem:[#allocation26 + $0x820] ss:$8 sps:$4 sm:$0xff]  }
 0x439   :  { %5728 = vmatpush1.bf16.msra.mxu0 %v13413_v63  ;;  %v13446_v63 = vld [vmem:[#allocation26 + $0x910] ss:$8 sps:$4 sm:$0xff]  }
 0x43a   :  { %5767 = vmatpush1.bf16.msra.mxu1 %v13416_v8  ;;  %5729 = vmatprep.subr.bf16.mxu0 %v13421_v23  ;;  %v13451_v8 = vld [vmem:[#allocation26 + $0x834] ss:$8 sps:$4 sm:$0xff]   ;;  %v13452_v23 = vld [vmem:[#allocation26 + $0x920] ss:$8 sps:$4 sm:$0xff]  }
 0x43b   :  { %5768 = vmatprep.subr.bf16.mxu1 %v13424_v56  ;;  %v13457_v56 = vld [vmem:[#allocation26 + $0x844] ss:$8 sps:$4 sm:$0xff]  }
 0x43d   :  { %5730 = vmatpush1.bf16.msra.mxu0 %v13419_v9  ;;  %v13460_v9 = vld [vmem:[#allocation26 + $0x934] ss:$8 sps:$4 sm:$0xff]  }
 0x43e   :  { %5769 = vmatpush1.bf16.msra.mxu1 %v13422_v51  ;;  %5731 = vmatprep.subr.bf16.mxu0 %v13427_v62  ;;  %v13458_v51 = vld [vmem:[#allocation26 + $0x930] ss:$8 sps:$4 sm:$0xff]   ;;  %v13463_v62 = vld [vmem:[#allocation26 + $0x854] ss:$8 sps:$4 sm:$0xff]  }
 0x43f   :  { %5770 = vmatprep.subr.bf16.mxu1 %v13430_v25  ;;  %v13466_v25 = vld [vmem:[#allocation26 + $0x944] ss:$8 sps:$4 sm:$0xff]  }
 0x441   :  { %5732 = vmatpush1.bf16.msra.mxu0 %v13425_v30  ;;  %v13464_v30 = vld [vmem:[#allocation26 + $0x940] ss:$8 sps:$4 sm:$0xff]  }
 0x442   :  { %5771 = vmatpush1.bf16.msra.mxu1 %v13428_v42  ;;  %5783 = vmatprep.subr.bf16.mxu0 %v13433_v61  ;;  %v13469_v42 = vld [vmem:[#allocation26 + $0x864] ss:$8 sps:$4 sm:$0xff]   ;;  %v13472_v61 = vld [vmem:[#allocation26 + $0x954] ss:$8 sps:$4 sm:$0xff]  }
 0x443   :  { %5772 = vmatprep.subr.bf16.mxu1 %v13436_v36 }
 0x444   :  { %5734 = vmatmul.mubr.bf16.vlgmr.msra.gmra.mrb[92].mxu0 %v15721_v49  ;;  %v13454_v49 = vld [vmem:[#allocation26 + $0x924] ss:$8 sps:$4 sm:$0xff]  }
 0x445   :  { %5784 = vmatpush1.bf16.msra.mxu0 %v13431_v54  ;;  %5815 = vmatprep.mubr.bf16.mxu0 %v15762_v53  ;;  %v13449_v53 = vld [vmem:[#allocation26 + $0x830] ss:$8 sps:$4 sm:$0xff]  }
 0x446   :  { %5773 = vmatpush1.bf16.msra.mxu1 %v13434_v28  ;;  %5785 = vmatprep.subr.bf16.mxu0 %v13439_v60  ;;  %v13467_v60 = vld [vmem:[#allocation26 + $0x860] ss:$8 sps:$4 sm:$0xff]  }
 0x447   :  { %5824 = vmatprep.subr.bf16.mxu1 %v13442_v44 }
 0x449   :  { %5775 = vmatmul.mubr.bf16.vlgmr.msra.gmra.mrb[96].mxu1 %v15715_v40  ;;  %5786 = vmatpush1.bf16.msra.mxu0 %v13437_v55  ;;  %v13455_v40 = vld [vmem:[#allocation26 + $0x840] ss:$8 sps:$4 sm:$0xff]  }
 0x44a   :  { %5825 = vmatpush1.bf16.msra.mxu1 %v13440_v18  ;;  %5856 = vmatprep.mubr.bf16.mxu1 %v15757_v58  ;;  %v13461_v58 = vld [vmem:[#allocation26 + $0x850] ss:$8 sps:$4 sm:$0xff]  }
 0x44b   :  { %5787 = vmatprep.subr.bf16.mxu0 %v13445_v57  ;;  %5826 = vmatprep.subr.bf16.mxu1 %v13448_v34  ;;  %v13470_v18 = vld [vmem:[#allocation26 + $0x950] ss:$8 sps:$4 sm:$0xff]   ;;  %v13475_v57 = vld [vmem:[#allocation26 + $0x874] ss:$8 sps:$4 sm:$0xff]  }
 0x44d   :  { %5788 = vmatpush1.bf16.msra.mxu0 %v13443_v5  ;;  %v13478_v5 = vld [vmem:[#allocation26 + $0x964] ss:$8 sps:$4 sm:$0xff]  }
 0x44e   :  { %5827 = vmatpush1.bf16.msra.mxu1 %v13446_v63  ;;  %5789 = vmatprep.subr.bf16.mxu0 %v13451_v8 }
 0x44f   :  { %5828 = vmatprep.subr.bf16.mxu1 %v13454_v49  ;;  %v13476_v49 = vld [vmem:[#allocation26 + $0x960] ss:$8 sps:$4 sm:$0xff]  }
 0x451   :  { %5790 = vmatpush1.bf16.msra.mxu0 %v13449_v53 }
 0x452   :  { %5829 = vmatpush1.bf16.msra.mxu1 %v13452_v23  ;;  %5791 = vmatprep.subr.bf16.mxu0 %v13457_v56  ;;  %v13484_v56 = vld [vmem:[#allocation26 + $0x974] ss:$8 sps:$4 sm:$0xff]  }
 0x453   :  { %5830 = vmatprep.subr.bf16.mxu1 %v13460_v9  ;;  %v13479_v9 = vld [vmem:[#allocation26 + $0x880] ss:$8 sps:$4 sm:$0xff]  }
 0x455   :  { %5792 = vmatpush1.bf16.msra.mxu0 %v13455_v40  ;;  %v13482_v40 = vld [vmem:[#allocation26 + $0x970] ss:$8 sps:$4 sm:$0xff]  }
 0x456   :  { %5831 = vmatpush1.bf16.msra.mxu1 %v13458_v51  ;;  %5793 = vmatprep.subr.bf16.mxu0 %v13463_v62  ;;  %v13487_v51 = vld [vmem:[#allocation26 + $0x894] ss:$8 sps:$4 sm:$0xff]   ;;  %v13490_v62 = vld [vmem:[#allocation26 + $0x984] ss:$8 sps:$4 sm:$0xff]  }
 0x457   :  { %v5530_v36 = vpop.f32.mrb[80].mxu0  ;;  %5832 = vmatprep.subr.bf16.mxu1 %v13466_v25  ;;  %v13485_v25 = vld [vmem:[#allocation26 + $0x890] ss:$8 sps:$4 sm:$0xff]  }
 0x458   :  { %v16041_v54 = vadd.f32 %v5530_v36, %v16032_v52  ;;  %v5532_v28 = vpop.f32.mrb[81].mxu0  ;;  %v13473_v52 = vld [vmem:[#allocation26 + $0x870] ss:$8 sps:$4 sm:$0xff]  }
 0x459   :  { %v16044_v44 = vadd.f32 %v5532_v28, %v16034_v29  ;;  %v5534_v55 = vpop.f32.mrb[82].mxu0  ;;  %5794 = vmatpush1.bf16.msra.mxu0 %v13461_v58  ;;  %v13481_v29 = vld [vmem:[#allocation26 + $0x884] ss:$8 sps:$4 sm:$0xff]   ;;  %v13488_v58 = vld [vmem:[#allocation26 + $0x980] ss:$8 sps:$4 sm:$0xff]  }
 0x45a   :  { %v5535_v34 = vpop.f32.mrb[83].mxu0  ;;  %5833 = vmatpush1.bf16.msra.mxu1 %v13464_v30  ;;  %5795 = vmatprep.subr.bf16.mxu0 %v13469_v42  ;;  %v13493_v30 = vld [vmem:[#allocation26 + $0x8a4] ss:$8 sps:$4 sm:$0xff]   ;;  %v13496_v42 = vld [vmem:[#allocation26 + $0x994] ss:$8 sps:$4 sm:$0xff]  }
 0x45b   :  { %5834 = vmatprep.subr.bf16.mxu1 %v13472_v61  ;;  %v13491_v61 = vld [vmem:[#allocation26 + $0x8a0] ss:$8 sps:$4 sm:$0xff]   ;;  %v13494_v36 = vld [vmem:[#allocation26 + $0x990] ss:$8 sps:$4 sm:$0xff]   ;;  %v13499_v28 = vld [vmem:[#allocation26 + $0x8b4] ss:$8 sps:$4 sm:$0xff]  }
 0x45c   :  { %v16046_v63 = vpop.f32.mrb[84].mxu1  ;;  %v13497_v55 = vld [vmem:[#allocation26 + $0x8b0] ss:$8 sps:$4 sm:$0xff]   ;;  %v13508_v34 = vld [vmem:[#allocation26 + $0x9b4] ss:$8 sps:$4 sm:$0xff]  }
 0x45d   :  { %v16048_v8 = vpop.f32.mrb[85].mxu1  ;;  %5796 = vmatpush1.bf16.msra.mxu0 %v13467_v60  ;;  %v13502_v60 = vld [vmem:[#allocation26 + $0x9a4] ss:$8 sps:$4 sm:$0xff]  }
 0x45e   :  { %v3210_v53 = vpop.f32.mrb[86].mxu1  ;;  %5835 = vmatpush1.bf16.msra.mxu1 %v13470_v18  ;;  %5797 = vmatprep.subr.bf16.mxu0 %v13475_v57  ;;  %v13500_v18 = vld [vmem:[#allocation26 + $0x9a0] ss:$8 sps:$4 sm:$0xff]   ;;  %v13505_v57 = vld [vmem:[#allocation26 + $0x8c4] ss:$8 sps:$4 sm:$0xff]  }
 0x45f   :  { %v3211_v23 = vpop.f32.mrb[87].mxu1  ;;  %5836 = vmatprep.subr.bf16.mxu1 %v13478_v5  ;;  %v13503_v5 = vld [vmem:[#allocation26 + $0x8c0] ss:$8 sps:$4 sm:$0xff]   ;;  %v13514_v53 = vld [vmem:[#allocation26 + $0x9c4] ss:$8 sps:$4 sm:$0xff]  }
 0x460   :  { %v13512_v23 = vld [vmem:[#allocation26 + $0x9c0] ss:$8 sps:$4 sm:$0xff]  }
 0x461   :  { %5798 = vmatpush1.bf16.msra.mxu0 %v13473_v52  ;;  %v13506_v52 = vld [vmem:[#allocation26 + $0x9b0] ss:$8 sps:$4 sm:$0xff]  }
 0x462   :  { %5837 = vmatpush1.bf16.msra.mxu1 %v13476_v49  ;;  %5799 = vmatprep.subr.bf16.mxu0 %v13481_v29  ;;  %v13511_v49 = vld [vmem:[#allocation26 + $0x8d4] ss:$8 sps:$4 sm:$0xff]   ;;  %v13509_v29 = vld [vmem:[#allocation26 + $0x8d0] ss:$8 sps:$4 sm:$0xff]  }
 0x463   :  { %5838 = vmatprep.subr.bf16.mxu1 %v13484_v56  ;;  %v13517_v56 = vld [vmem:[#allocation26 + $0x8e4] ss:$8 sps:$4 sm:$0xff]  }
 0x465   :  { %5800 = vmatpush1.bf16.msra.mxu0 %v13479_v9  ;;  %v13520_v9 = vld [vmem:[#allocation26 + $0x9d4] ss:$8 sps:$4 sm:$0xff]  }
 0x466   :  { %5839 = vmatpush1.bf16.msra.mxu1 %v13482_v40  ;;  %5801 = vmatprep.subr.bf16.mxu0 %v13487_v51  ;;  %v13515_v40 = vld [vmem:[#allocation26 + $0x8e0] ss:$8 sps:$4 sm:$0xff]   ;;  %v13518_v51 = vld [vmem:[#allocation26 + $0x9d0] ss:$8 sps:$4 sm:$0xff]  }
 0x467   :  { %5840 = vmatprep.subr.bf16.mxu1 %v13490_v62  ;;  %v13523_v62 = vld [vmem:[#allocation26 + $0x8f4] ss:$8 sps:$4 sm:$0xff]  }
 0x469   :  { %5802 = vmatpush1.bf16.msra.mxu0 %v13485_v25  ;;  %v13526_v25 = vld [vmem:[#allocation26 + $0x9e4] ss:$8 sps:$4 sm:$0xff]  }
 0x46a   :  { %5841 = vmatpush1.bf16.msra.mxu1 %v13488_v58  ;;  %5803 = vmatprep.subr.bf16.mxu0 %v13493_v30  ;;  %v13521_v58 = vld [vmem:[#allocation26 + $0x8f0] ss:$8 sps:$4 sm:$0xff]   ;;  %v13524_v30 = vld [vmem:[#allocation26 + $0x9e0] ss:$8 sps:$4 sm:$0xff]  }
 0x46b   :  { %5842 = vmatprep.subr.bf16.mxu1 %v13496_v42  ;;  %v13529_v42 = vld [vmem:[#allocation24 + $0x4] ss:$8 sps:$4 sm:$0xff]  }
 0x46d   :  { %5804 = vmatpush1.bf16.msra.mxu0 %v13491_v61  ;;  %v13532_v61 = vld [vmem:[#allocation26 + $0x9f4] ss:$8 sps:$4 sm:$0xff]  }
 0x46e   :  { %5843 = vmatpush1.bf16.msra.mxu1 %v13494_v36  ;;  %5805 = vmatprep.subr.bf16.mxu0 %v13499_v28  ;;  %v13527_v36 = vld [vmem:[#allocation24] ss:$8 sps:$4 sm:$0xff]   ;;  %v13530_v28 = vld [vmem:[#allocation26 + $0x9f0] ss:$8 sps:$4 sm:$0xff]  }
 0x46f   :  { %5844 = vmatprep.subr.bf16.mxu1 %v13502_v60  ;;  %v13535_v60 = vld [vmem:[#allocation24 + $0x14] ss:$8 sps:$4 sm:$0xff]  }
 0x471   :  { %5806 = vmatpush1.bf16.msra.mxu0 %v13497_v55  ;;  %v13538_v55 = vld [vmem:[#allocation24 + $0x104] ss:$8 sps:$4 sm:$0xff]  }
 0x472   :  { %5845 = vmatpush1.bf16.msra.mxu1 %v13500_v18  ;;  %5807 = vmatprep.subr.bf16.mxu0 %v13505_v57  ;;  %v13533_v18 = vld [vmem:[#allocation24 + $0x10] ss:$8 sps:$4 sm:$0xff]   ;;  %v13536_v57 = vld [vmem:[#allocation24 + $0x100] ss:$8 sps:$4 sm:$0xff]  }
 0x473   :  { %5846 = vmatprep.subr.bf16.mxu1 %v13508_v34  ;;  %v13541_v34 = vld [vmem:[#allocation24 + $0x24] ss:$8 sps:$4 sm:$0xff]  }
 0x475   :  { %5808 = vmatpush1.bf16.msra.mxu0 %v13503_v5  ;;  %v13544_v5 = vld [vmem:[#allocation24 + $0x114] ss:$8 sps:$4 sm:$0xff]  }
 0x476   :  { %5847 = vmatpush1.bf16.msra.mxu1 %v13506_v52  ;;  %5809 = vmatprep.subr.bf16.mxu0 %v13511_v49  ;;  %v13539_v52 = vld [vmem:[#allocation24 + $0x20] ss:$8 sps:$4 sm:$0xff]   ;;  %v13542_v49 = vld [vmem:[#allocation24 + $0x110] ss:$8 sps:$4 sm:$0xff]  }
 0x477   :  { %5848 = vmatprep.subr.bf16.mxu1 %v13514_v53  ;;  %v13547_v53 = vld [vmem:[#allocation24 + $0x34] ss:$8 sps:$4 sm:$0xff]  }
 0x479   :  { %5810 = vmatpush1.bf16.msra.mxu0 %v13509_v29  ;;  %v13548_v29 = vld [vmem:[#allocation24 + $0x120] ss:$8 sps:$4 sm:$0xff]  }
 0x47a   :  { %5849 = vmatpush1.bf16.msra.mxu1 %v13512_v23  ;;  %5811 = vmatprep.subr.bf16.mxu0 %v13517_v56  ;;  %v13553_v23 = vld [vmem:[#allocation24 + $0x44] ss:$8 sps:$4 sm:$0xff]   ;;  %v13556_v56 = vld [vmem:[#allocation24 + $0x134] ss:$8 sps:$4 sm:$0xff]  }
 0x47b   :  { %5850 = vmatprep.subr.bf16.mxu1 %v13520_v9  ;;  %v13554_v9 = vld [vmem:[#allocation24 + $0x130] ss:$8 sps:$4 sm:$0xff]  }
 0x47d   :  { %5812 = vmatpush1.bf16.msra.mxu0 %v13515_v40  ;;  %v13559_v40 = vld [vmem:[#allocation24 + $0x54] ss:$8 sps:$4 sm:$0xff]  }
 0x47e   :  { %5851 = vmatpush1.bf16.msra.mxu1 %v13518_v51  ;;  %5813 = vmatprep.subr.bf16.mxu0 %v13523_v62  ;;  %v13557_v51 = vld [vmem:[#allocation24 + $0x50] ss:$8 sps:$4 sm:$0xff]   ;;  %v13560_v62 = vld [vmem:[#allocation24 + $0x140] ss:$8 sps:$4 sm:$0xff]  }
 0x47f   :  { %5852 = vmatprep.subr.bf16.mxu1 %v13526_v25  ;;  %v13565_v25 = vld [vmem:[#allocation24 + $0x64] ss:$8 sps:$4 sm:$0xff]  }
 0x481   :  { %5814 = vmatpush1.bf16.msra.mxu0 %v13521_v58 }
 0x482   :  { %5853 = vmatpush1.bf16.msra.mxu1 %v13524_v30  ;;  %7465 = vmatprep.subr.bf16.mxu0 %v13529_v42  ;;  %v13568_v30 = vld [vmem:[#allocation24 + $0x154] ss:$8 sps:$4 sm:$0xff]  }
 0x483   :  { %5854 = vmatprep.subr.bf16.mxu1 %v13532_v61 }
 0x484   :  { %5816 = vmatmul.mubr.bf16.vlgmr.msra.gmra.mrb[96].mxu0 %v15752_v31  ;;  %v13550_v31 = vld [vmem:[#allocation24 + $0x124] ss:$8 sps:$4 sm:$0xff]  }
 0x485   :  { %7466 = vmatpush1.bf16.msra.mxu0 %v13527_v36  ;;  %7497 = vmatprep.mubr.bf16.mxu0 %v15526_v21  ;;  %v13545_v21 = vld [vmem:[#allocation24 + $0x30] ss:$8 sps:$4 sm:$0xff]  }
 0x486   :  { %5855 = vmatpush1.bf16.msra.mxu1 %v13530_v28  ;;  %7467 = vmatprep.subr.bf16.mxu0 %v13535_v60  ;;  %v13563_v60 = vld [vmem:[#allocation24 + $0x60] ss:$8 sps:$4 sm:$0xff]  }
 0x487   :  { %7506 = vmatprep.subr.bf16.mxu1 %v13538_v55 }
 0x489   :  { %5857 = vmatmul.mubr.bf16.vlgmr.msra.gmra.mrb[100].mxu1 %v15748_v37  ;;  %7468 = vmatpush1.bf16.msra.mxu0 %v13533_v18  ;;  %v13551_v37 = vld [vmem:[#allocation24 + $0x40] ss:$8 sps:$4 sm:$0xff]   ;;  %v13566_v18 = vld [vmem:[#allocation24 + $0x150] ss:$8 sps:$4 sm:$0xff]  }
 0x48a   :  { %7507 = vmatpush1.bf16.msra.mxu1 %v13536_v57  ;;  %7538 = vmatprep.mubr.bf16.mxu1 %v15517_v19  ;;  %v13562_v19 = vld [vmem:[#allocation24 + $0x144] ss:$8 sps:$4 sm:$0xff]   ;;  %v13571_v57 = vld [vmem:[#allocation24 + $0x74] ss:$8 sps:$4 sm:$0xff]  }
 0x48b   :  { %7469 = vmatprep.subr.bf16.mxu0 %v13541_v34  ;;  %7508 = vmatprep.subr.bf16.mxu1 %v13544_v5  ;;  %v13574_v34 = vld [vmem:[#allocation24 + $0x164] ss:$8 sps:$4 sm:$0xff]  }
 0x48d   :  { %7470 = vmatpush1.bf16.msra.mxu0 %v13539_v52 }
 0x48e   :  { %7509 = vmatpush1.bf16.msra.mxu1 %v13542_v49  ;;  %7471 = vmatprep.subr.bf16.mxu0 %v13547_v53  ;;  %v13569_v53 = vld [vmem:[#allocation24 + $0x70] ss:$8 sps:$4 sm:$0xff]  }
 0x48f   :  { %7510 = vmatprep.subr.bf16.mxu1 %v13550_v31 }
 0x491   :  { %7472 = vmatpush1.bf16.msra.mxu0 %v13545_v21  ;;  %v13577_v21 = vld [vmem:[#allocation24 + $0x84] ss:$8 sps:$4 sm:$0xff]  }
 0x492   :  { %7511 = vmatpush1.bf16.msra.mxu1 %v13548_v29  ;;  %7473 = vmatprep.subr.bf16.mxu0 %v13553_v23  ;;  %v13580_v23 = vld [vmem:[#allocation24 + $0x174] ss:$8 sps:$4 sm:$0xff]  }
 0x493   :  { %7512 = vmatprep.subr.bf16.mxu1 %v13556_v56  ;;  %v13575_v56 = vld [vmem:[#allocation24 + $0x80] ss:$8 sps:$4 sm:$0xff]  }
 0x495   :  { %7474 = vmatpush1.bf16.msra.mxu0 %v13551_v37  ;;  %v13578_v37 = vld [vmem:[#allocation24 + $0x170] ss:$8 sps:$4 sm:$0xff]  }
 0x496   :  { %7513 = vmatpush1.bf16.msra.mxu1 %v13554_v9  ;;  %7475 = vmatprep.subr.bf16.mxu0 %v13559_v40  ;;  %v13583_v9 = vld [vmem:[#allocation24 + $0x94] ss:$8 sps:$4 sm:$0xff]   ;;  %v13586_v40 = vld [vmem:[#allocation24 + $0x184] ss:$8 sps:$4 sm:$0xff]  }
 0x497   :  { %v5571_v58 = vpop.f32.mrb[84].mxu0  ;;  %7514 = vmatprep.subr.bf16.mxu1 %v13562_v19  ;;  %v13581_v19 = vld [vmem:[#allocation24 + $0x90] ss:$8 sps:$4 sm:$0xff]  }
 0x498   :  { %v5572_v42 = vadd.f32 %v5571_v58, %v16041_v54  ;;  %v5573_v61 = vpop.f32.mrb[85].mxu0  ;;  %v13587_v58 = vld [vmem:[#allocation24 + $0xa0] ss:$8 sps:$4 sm:$0xff]  }
 0x499   :  { %v5574_v36 = vadd.f32 %v5573_v61, %v16044_v44  ;;  %v5575_v28 = vpop.f32.mrb[86].mxu0  ;;  %7476 = vmatpush1.bf16.msra.mxu0 %v13557_v51  ;;  %v13572_v44 = vld [vmem:[#allocation24 + $0x160] ss:$8 sps:$4 sm:$0xff]   ;;  %v13598_v61 = vld [vmem:[#allocation24 + $0x1a4] ss:$8 sps:$4 sm:$0xff]  }
 0x49a   :  { %v5576_v55 = vpop.f32.mrb[87].mxu0  ;;  %7515 = vmatpush1.bf16.msra.mxu1 %v13560_v62  ;;  %7477 = vmatprep.subr.bf16.mxu0 %v13565_v25  ;;  %v13584_v51 = vld [vmem:[#allocation24 + $0x180] ss:$8 sps:$4 sm:$0xff]   ;;  %v13589_v62 = vld [vmem:[#allocation24 + $0xa4] ss:$8 sps:$4 sm:$0xff]  }
 0x49b   :  { %7516 = vmatprep.subr.bf16.mxu1 %v13568_v30  ;;  %v13592_v25 = vld [vmem:[#allocation24 + $0x194] ss:$8 sps:$4 sm:$0xff]   ;;  %v13590_v30 = vld [vmem:[#allocation24 + $0x190] ss:$8 sps:$4 sm:$0xff]   ;;  %v13596_v28 = vld [vmem:[#allocation24 + $0x1a0] ss:$8 sps:$4 sm:$0xff]  }
 0x49c   :  { %v5612_v5 = vpop.f32.mrb[88].mxu1  ;;  %v13604_v55 = vld [vmem:[#allocation24 + $0x1b4] ss:$8 sps:$4 sm:$0xff]  }
 0x49d   :  { %v16056_v52 = vadd.f32 %v5612_v5, %v5572_v42  ;;  %v5614_v49 = vpop.f32.mrb[89].mxu1  ;;  %7478 = vmatpush1.bf16.msra.mxu0 %v13563_v60  ;;  %v13595_v42 = vld [vmem:[#allocation24 + $0xb4] ss:$8 sps:$4 sm:$0xff]   ;;  %v13601_v60 = vld [vmem:[#allocation24 + $0xc4] ss:$8 sps:$4 sm:$0xff]  }
 0x49e   :  { %v16058_v54 = vadd.f32 %v5614_v49, %v5574_v36  ;;  %v5616_v31 = vpop.f32.mrb[90].mxu1  ;;  %7517 = vmatpush1.bf16.msra.mxu1 %v13566_v18  ;;  %7479 = vmatprep.subr.bf16.mxu0 %v13571_v57  ;;  %v13593_v36 = vld [vmem:[#allocation24 + $0xb0] ss:$8 sps:$4 sm:$0xff]   ;;  %v13599_v18 = vld [vmem:[#allocation24 + $0xc0] ss:$8 sps:$4 sm:$0xff]  }
 0x49f   :  { %v5617_v29 = vpop.f32.mrb[91].mxu1  ;;  %7518 = vmatprep.subr.bf16.mxu1 %v13574_v34  ;;  %v13602_v57 = vld [vmem:[#allocation24 + $0x1b0] ss:$8 sps:$4 sm:$0xff]   ;;  %v13607_v34 = vld [vmem:[#allocation24 + $0xd4] ss:$8 sps:$4 sm:$0xff]  }
 0x4a0   :  { %v13610_v5 = vld [vmem:[#allocation24 + $0x1c4] ss:$8 sps:$4 sm:$0xff]   ;;  %v13605_v49 = vld [vmem:[#allocation24 + $0xd0] ss:$8 sps:$4 sm:$0xff]  }
 0x4a1   :  { %7480 = vmatpush1.bf16.msra.mxu0 %v13569_v53  ;;  %v13608_v53 = vld [vmem:[#allocation24 + $0x1c0] ss:$8 sps:$4 sm:$0xff]   ;;  %v13613_v31 = vld [vmem:[#allocation24 + $0xe4] ss:$8 sps:$4 sm:$0xff]   ;;  %v13614_v29 = vld [vmem:[#allocation24 + $0x1d0] ss:$8 sps:$4 sm:$0xff]  }
 0x4a2   :  { %7519 = vmatpush1.bf16.msra.mxu1 %v13572_v44  ;;  %7481 = vmatprep.subr.bf16.mxu0 %v13577_v21  ;;  %v13616_v44 = vld [vmem:[#allocation24 + $0x1d4] ss:$8 sps:$4 sm:$0xff]   ;;  %v13611_v21 = vld [vmem:[#allocation24 + $0xe0] ss:$8 sps:$4 sm:$0xff]  }
 0x4a3   :  { %7520 = vmatprep.subr.bf16.mxu1 %v13580_v23  ;;  %v13619_v23 = vld [vmem:[#allocation24 + $0xf4] ss:$8 sps:$4 sm:$0xff]  }
 0x4a5   :  { %7482 = vmatpush1.bf16.msra.mxu0 %v13575_v56  ;;  %v13622_v56 = vld [vmem:[#allocation24 + $0x1e4] ss:$8 sps:$4 sm:$0xff]  }
 0x4a6   :  { %7521 = vmatpush1.bf16.msra.mxu1 %v13578_v37  ;;  %7483 = vmatprep.subr.bf16.mxu0 %v13583_v9  ;;  %v13617_v37 = vld [vmem:[#allocation24 + $0xf0] ss:$8 sps:$4 sm:$0xff]   ;;  %v13620_v9 = vld [vmem:[#allocation24 + $0x1e0] ss:$8 sps:$4 sm:$0xff]  }
 0x4a7   :  { %7522 = vmatprep.subr.bf16.mxu1 %v13586_v40  ;;  %v13625_v40 = vld [vmem:[#allocation24 + $0x204] ss:$8 sps:$4 sm:$0xff]  }
 0x4a9   :  { %7484 = vmatpush1.bf16.msra.mxu0 %v13581_v19  ;;  %v13628_v19 = vld [vmem:[#allocation24 + $0x1f4] ss:$8 sps:$4 sm:$0xff]  }
 0x4aa   :  { %7523 = vmatpush1.bf16.msra.mxu1 %v13584_v51  ;;  %7485 = vmatprep.subr.bf16.mxu0 %v13589_v62  ;;  %v13623_v51 = vld [vmem:[#allocation24 + $0x200] ss:$8 sps:$4 sm:$0xff]   ;;  %v13626_v62 = vld [vmem:[#allocation24 + $0x1f0] ss:$8 sps:$4 sm:$0xff]  }
 0x4ab   :  { %7524 = vmatprep.subr.bf16.mxu1 %v13592_v25  ;;  %v13631_v25 = vld [vmem:[#allocation24 + $0x214] ss:$8 sps:$4 sm:$0xff]  }
 0x4ad   :  { %7486 = vmatpush1.bf16.msra.mxu0 %v13587_v58  ;;  %v13634_v58 = vld [vmem:[#allocation24 + $0x304] ss:$8 sps:$4 sm:$0xff]  }
 0x4ae   :  { %7525 = vmatpush1.bf16.msra.mxu1 %v13590_v30  ;;  %7487 = vmatprep.subr.bf16.mxu0 %v13595_v42  ;;  %v13629_v30 = vld [vmem:[#allocation24 + $0x210] ss:$8 sps:$4 sm:$0xff]   ;;  %v13632_v42 = vld [vmem:[#allocation24 + $0x300] ss:$8 sps:$4 sm:$0xff]  }
 0x4af   :  { %7526 = vmatprep.subr.bf16.mxu1 %v13598_v61  ;;  %v13637_v61 = vld [vmem:[#allocation24 + $0x224] ss:$8 sps:$4 sm:$0xff]  }
 0x4b1   :  { %7488 = vmatpush1.bf16.msra.mxu0 %v13593_v36  ;;  %v13640_v36 = vld [vmem:[#allocation24 + $0x314] ss:$8 sps:$4 sm:$0xff]  }
 0x4b2   :  { %7527 = vmatpush1.bf16.msra.mxu1 %v13596_v28  ;;  %7489 = vmatprep.subr.bf16.mxu0 %v13601_v60  ;;  %v13635_v28 = vld [vmem:[#allocation24 + $0x220] ss:$8 sps:$4 sm:$0xff]   ;;  %v13638_v60 = vld [vmem:[#allocation24 + $0x310] ss:$8 sps:$4 sm:$0xff]  }
 0x4b3   :  { %7528 = vmatprep.subr.bf16.mxu1 %v13604_v55  ;;  %v13643_v55 = vld [vmem:[#allocation24 + $0x234] ss:$8 sps:$4 sm:$0xff]  }
 0x4b5   :  { %7490 = vmatpush1.bf16.msra.mxu0 %v13599_v18  ;;  %v13644_v18 = vld [vmem:[#allocation24 + $0x320] ss:$8 sps:$4 sm:$0xff]  }
 0x4b6   :  { %7529 = vmatpush1.bf16.msra.mxu1 %v13602_v57  ;;  %7491 = vmatprep.subr.bf16.mxu0 %v13607_v34  ;;  %v13649_v57 = vld [vmem:[#allocation24 + $0x244] ss:$8 sps:$4 sm:$0xff]   ;;  %v13652_v34 = vld [vmem:[#allocation24 + $0x334] ss:$8 sps:$4 sm:$0xff]  }
 0x4b7   :  { %7530 = vmatprep.subr.bf16.mxu1 %v13610_v5  ;;  %v13650_v5 = vld [vmem:[#allocation24 + $0x330] ss:$8 sps:$4 sm:$0xff]  }
 0x4b9   :  { %7492 = vmatpush1.bf16.msra.mxu0 %v13605_v49  ;;  %v13655_v49 = vld [vmem:[#allocation24 + $0x254] ss:$8 sps:$4 sm:$0xff]  }
 0x4ba   :  { %7531 = vmatpush1.bf16.msra.mxu1 %v13608_v53  ;;  %7493 = vmatprep.subr.bf16.mxu0 %v13613_v31  ;;  %v13653_v53 = vld [vmem:[#allocation24 + $0x250] ss:$8 sps:$4 sm:$0xff]   ;;  %v13656_v31 = vld [vmem:[#allocation24 + $0x340] ss:$8 sps:$4 sm:$0xff]  }
 0x4bb   :  { %7532 = vmatprep.subr.bf16.mxu1 %v13616_v44  ;;  %v13661_v44 = vld [vmem:[#allocation24 + $0x264] ss:$8 sps:$4 sm:$0xff]  }
 0x4bd   :  { %7494 = vmatpush1.bf16.msra.mxu0 %v13611_v21 }
 0x4be   :  { %7533 = vmatpush1.bf16.msra.mxu1 %v13614_v29  ;;  %7495 = vmatprep.subr.bf16.mxu0 %v13619_v23  ;;  %v13664_v29 = vld [vmem:[#allocation24 + $0x354] ss:$8 sps:$4 sm:$0xff]  }
 0x4bf   :  { %7534 = vmatprep.subr.bf16.mxu1 %v13622_v56 }
 0x4c1   :  { %7496 = vmatpush1.bf16.msra.mxu0 %v13617_v37 }
 0x4c2   :  { %7535 = vmatpush1.bf16.msra.mxu1 %v13620_v9  ;;  %7547 = vmatprep.subr.bf16.mxu0 %v13625_v40  ;;  %v13659_v40 = vld [vmem:[#allocation24 + $0x260] ss:$8 sps:$4 sm:$0xff]  }
 0x4c3   :  { %7536 = vmatprep.subr.bf16.mxu1 %v13628_v19 }
 0x4c4   :  { %7498 = vmatmul.mubr.bf16.vlgmr.msra.gmra.mrb[100].mxu0 %v15510_v15  ;;  %v13646_v15 = vld [vmem:[#allocation24 + $0x324] ss:$8 sps:$4 sm:$0xff]  }
 0x4c5   :  { %7548 = vmatpush1.bf16.msra.mxu0 %v13623_v51  ;;  %7579 = vmatprep.mubr.bf16.mxu0 %v15565_v48  ;;  %v13641_v48 = vld [vmem:[#allocation24 + $0x230] ss:$8 sps:$4 sm:$0xff]  }
 0x4c6   :  { %7537 = vmatpush1.bf16.msra.mxu1 %v13626_v62  ;;  %7549 = vmatprep.subr.bf16.mxu0 %v13631_v25  ;;  %v13662_v51 = vld [vmem:[#allocation24 + $0x350] ss:$8 sps:$4 sm:$0xff]   ;;  %v13667_v62 = vld [vmem:[#allocation24 + $0x274] ss:$8 sps:$4 sm:$0xff]   ;;  %v13670_v25 = vld [vmem:[#allocation24 + $0x364] ss:$8 sps:$4 sm:$0xff]  }
 0x4c7   :  { %7588 = vmatprep.subr.bf16.mxu1 %v13634_v58 }
 0x4c9   :  { %7539 = vmatmul.mubr.bf16.vlgmr.msra.gmra.mrb[104].mxu1 %v15506_v11  ;;  %7550 = vmatpush1.bf16.msra.mxu0 %v13629_v30  ;;  %v13647_v11 = vld [vmem:[#allocation24 + $0x240] ss:$8 sps:$4 sm:$0xff]  }
 0x4ca   :  { %7589 = vmatpush1.bf16.msra.mxu1 %v13632_v42  ;;  %7620 = vmatprep.mubr.bf16.mxu1 %v15559_v43  ;;  %v13658_v43 = vld [vmem:[#allocation24 + $0x344] ss:$8 sps:$4 sm:$0xff]  }
 0x4cb   :  { %7551 = vmatprep.subr.bf16.mxu0 %v13637_v61  ;;  %7590 = vmatprep.subr.bf16.mxu1 %v13640_v36  ;;  %v13665_v61 = vld [vmem:[#allocation24 + $0x270] ss:$8 sps:$4 sm:$0xff]  }
 0x4cd   :  { %7552 = vmatpush1.bf16.msra.mxu0 %v13635_v28  ;;  %v13673_v28 = vld [vmem:[#allocation24 + $0x284] ss:$8 sps:$4 sm:$0xff]  }
 0x4ce   :  { %7591 = vmatpush1.bf16.msra.mxu1 %v13638_v60  ;;  %7553 = vmatprep.subr.bf16.mxu0 %v13643_v55  ;;  %v13676_v55 = vld [vmem:[#allocation24 + $0x374] ss:$8 sps:$4 sm:$0xff]  }
 0x4cf   :  { %7592 = vmatprep.subr.bf16.mxu1 %v13646_v15  ;;  %v13671_v15 = vld [vmem:[#allocation24 + $0x280] ss:$8 sps:$4 sm:$0xff]  }
 0x4d1   :  { %7554 = vmatpush1.bf16.msra.mxu0 %v13641_v48  ;;  %v13674_v48 = vld [vmem:[#allocation24 + $0x370] ss:$8 sps:$4 sm:$0xff]  }
 0x4d2   :  { %7593 = vmatpush1.bf16.msra.mxu1 %v13644_v18  ;;  %7555 = vmatprep.subr.bf16.mxu0 %v13649_v57  ;;  %v13679_v18 = vld [vmem:[#allocation24 + $0x294] ss:$8 sps:$4 sm:$0xff]   ;;  %v13682_v57 = vld [vmem:[#allocation24 + $0x384] ss:$8 sps:$4 sm:$0xff]  }
 0x4d3   :  { %7594 = vmatprep.subr.bf16.mxu1 %v13652_v34  ;;  %v13677_v34 = vld [vmem:[#allocation24 + $0x290] ss:$8 sps:$4 sm:$0xff]  }
 0x4d5   :  { %7556 = vmatpush1.bf16.msra.mxu0 %v13647_v11  ;;  %v13680_v11 = vld [vmem:[#allocation24 + $0x380] ss:$8 sps:$4 sm:$0xff]  }
 0x4d6   :  { %7595 = vmatpush1.bf16.msra.mxu1 %v13650_v5  ;;  %7557 = vmatprep.subr.bf16.mxu0 %v13655_v49  ;;  %v13685_v5 = vld [vmem:[#allocation24 + $0x2a4] ss:$8 sps:$4 sm:$0xff]   ;;  %v13688_v49 = vld [vmem:[#allocation24 + $0x394] ss:$8 sps:$4 sm:$0xff]  }
 0x4d7   :  { %v5653_v21 = vpop.f32.mrb[88].mxu0  ;;  %7596 = vmatprep.subr.bf16.mxu1 %v13658_v43  ;;  %v13683_v43 = vld [vmem:[#allocation24 + $0x2a0] ss:$8 sps:$4 sm:$0xff]  }
 0x4d8   :  { %v5654_v23 = vadd.f32 %v5653_v21, %v16056_v52  ;;  %v5655_v56 = vpop.f32.mrb[89].mxu0  ;;  %v13689_v21 = vld [vmem:[#allocation24 + $0x2b0] ss:$8 sps:$4 sm:$0xff]  }
 0x4d9   :  { %v5656_v37 = vadd.f32 %v5655_v56, %v16058_v54  ;;  %v5657_v9 = vpop.f32.mrb[90].mxu0  ;;  %7558 = vmatpush1.bf16.msra.mxu0 %v13653_v53  ;;  %v13668_v54 = vld [vmem:[#allocation24 + $0x360] ss:$8 sps:$4 sm:$0xff]   ;;  %v13686_v53 = vld [vmem:[#allocation24 + $0x390] ss:$8 sps:$4 sm:$0xff]  }
 0x4da   :  { %v5658_v19 = vpop.f32.mrb[91].mxu0  ;;  %7597 = vmatpush1.bf16.msra.mxu1 %v13656_v31  ;;  %7559 = vmatprep.subr.bf16.mxu0 %v13661_v44  ;;  %v13691_v31 = vld [vmem:[#allocation24 + $0x2b4] ss:$8 sps:$4 sm:$0xff]   ;;  %v13694_v44 = vld [vmem:[#allocation24 + $0x3a4] ss:$8 sps:$4 sm:$0xff]  }
 0x4db   :  { %7598 = vmatprep.subr.bf16.mxu1 %v13664_v29  ;;  %v13692_v29 = vld [vmem:[#allocation24 + $0x3a0] ss:$8 sps:$4 sm:$0xff]   ;;  %v13700_v56 = vld [vmem:[#allocation24 + $0x3b4] ss:$8 sps:$4 sm:$0xff]   ;;  %v13698_v9 = vld [vmem:[#allocation24 + $0x3b0] ss:$8 sps:$4 sm:$0xff]  }
 0x4dc   :  { %v5694_v58 = vpop.f32.mrb[92].mxu1  ;;  %v13706_v19 = vld [vmem:[#allocation24 + $0x3c4] ss:$8 sps:$4 sm:$0xff]  }
 0x4dd   :  { %v16066_v30 = vadd.f32 %v5694_v58, %v5654_v23  ;;  %v5696_v42 = vpop.f32.mrb[93].mxu1  ;;  %7560 = vmatpush1.bf16.msra.mxu0 %v13659_v40  ;;  %v13697_v23 = vld [vmem:[#allocation24 + $0x2c4] ss:$8 sps:$4 sm:$0xff]   ;;  %v13703_v40 = vld [vmem:[#allocation24 + $0x2d4] ss:$8 sps:$4 sm:$0xff]  }
 0x4de   :  { %v16068_v52 = vadd.f32 %v5696_v42, %v5656_v37  ;;  %v5698_v36 = vpop.f32.mrb[94].mxu1  ;;  %7599 = vmatpush1.bf16.msra.mxu1 %v13662_v51  ;;  %7561 = vmatprep.subr.bf16.mxu0 %v13667_v62  ;;  %v13695_v37 = vld [vmem:[#allocation24 + $0x2c0] ss:$8 sps:$4 sm:$0xff]   ;;  %v13701_v51 = vld [vmem:[#allocation24 + $0x2d0] ss:$8 sps:$4 sm:$0xff]  }
 0x4df   :  { %v5699_v60 = vpop.f32.mrb[95].mxu1  ;;  %7600 = vmatprep.subr.bf16.mxu1 %v13670_v25  ;;  %v13704_v62 = vld [vmem:[#allocation24 + $0x3c0] ss:$8 sps:$4 sm:$0xff]   ;;  %v13709_v25 = vld [vmem:[#allocation24 + $0x2e4] ss:$8 sps:$4 sm:$0xff]  }
 0x4e0   :  { %v13712_v58 = vld [vmem:[#allocation24 + $0x3d4] ss:$8 sps:$4 sm:$0xff]   ;;  %v13707_v42 = vld [vmem:[#allocation24 + $0x2e0] ss:$8 sps:$4 sm:$0xff]  }
 0x4e1   :  { %7562 = vmatpush1.bf16.msra.mxu0 %v13665_v61  ;;  %v13710_v61 = vld [vmem:[#allocation24 + $0x3d0] ss:$8 sps:$4 sm:$0xff]   ;;  %v13715_v36 = vld [vmem:[#allocation24 + $0x2f4] ss:$8 sps:$4 sm:$0xff]   ;;  %v13716_v60 = vld [vmem:[#allocation24 + $0x3e0] ss:$8 sps:$4 sm:$0xff]  }
 0x4e2   :  { %7601 = vmatpush1.bf16.msra.mxu1 %v13668_v54  ;;  %7563 = vmatprep.subr.bf16.mxu0 %v13673_v28  ;;  %v13718_v54 = vld [vmem:[#allocation24 + $0x3e4] ss:$8 sps:$4 sm:$0xff]   ;;  %v13713_v28 = vld [vmem:[#allocation24 + $0x2f0] ss:$8 sps:$4 sm:$0xff]  }
 0x4e3   :  { %7602 = vmatprep.subr.bf16.mxu1 %v13676_v55  ;;  %v13721_v55 = vld [vmem:[#allocation24 + $0x404] ss:$8 sps:$4 sm:$0xff]  }
 0x4e5   :  { %7564 = vmatpush1.bf16.msra.mxu0 %v13671_v15  ;;  %v13724_v15 = vld [vmem:[#allocation24 + $0x3f4] ss:$8 sps:$4 sm:$0xff]  }
 0x4e6   :  { %7603 = vmatpush1.bf16.msra.mxu1 %v13674_v48  ;;  %7565 = vmatprep.subr.bf16.mxu0 %v13679_v18  ;;  %v13719_v48 = vld [vmem:[#allocation24 + $0x400] ss:$8 sps:$4 sm:$0xff]   ;;  %v13722_v18 = vld [vmem:[#allocation24 + $0x3f0] ss:$8 sps:$4 sm:$0xff]  }
 0x4e7   :  { %7604 = vmatprep.subr.bf16.mxu1 %v13682_v57  ;;  %v13727_v57 = vld [vmem:[#allocation24 + $0x414] ss:$8 sps:$4 sm:$0xff]  }
 0x4e9   :  { %7566 = vmatpush1.bf16.msra.mxu0 %v13677_v34  ;;  %v13730_v34 = vld [vmem:[#allocation24 + $0x504] ss:$8 sps:$4 sm:$0xff]  }
 0x4ea   :  { %7605 = vmatpush1.bf16.msra.mxu1 %v13680_v11  ;;  %7567 = vmatprep.subr.bf16.mxu0 %v13685_v5  ;;  %v13725_v11 = vld [vmem:[#allocation24 + $0x410] ss:$8 sps:$4 sm:$0xff]   ;;  %v13728_v5 = vld [vmem:[#allocation24 + $0x500] ss:$8 sps:$4 sm:$0xff]  }
 0x4eb   :  { %7606 = vmatprep.subr.bf16.mxu1 %v13688_v49  ;;  %v13733_v49 = vld [vmem:[#allocation24 + $0x424] ss:$8 sps:$4 sm:$0xff]  }
 0x4ed   :  { %7568 = vmatpush1.bf16.msra.mxu0 %v13683_v43  ;;  %v13736_v43 = vld [vmem:[#allocation24 + $0x514] ss:$8 sps:$4 sm:$0xff]  }
 0x4ee   :  { %7607 = vmatpush1.bf16.msra.mxu1 %v13686_v53  ;;  %7569 = vmatprep.subr.bf16.mxu0 %v13691_v31  ;;  %v13731_v53 = vld [vmem:[#allocation24 + $0x420] ss:$8 sps:$4 sm:$0xff]   ;;  %v13734_v31 = vld [vmem:[#allocation24 + $0x510] ss:$8 sps:$4 sm:$0xff]  }
 0x4ef   :  { %7608 = vmatprep.subr.bf16.mxu1 %v13694_v44  ;;  %v13739_v44 = vld [vmem:[#allocation24 + $0x434] ss:$8 sps:$4 sm:$0xff]  }
 0x4f1   :  { %7570 = vmatpush1.bf16.msra.mxu0 %v13689_v21  ;;  %v13740_v21 = vld [vmem:[#allocation24 + $0x520] ss:$8 sps:$4 sm:$0xff]  }
 0x4f2   :  { %7609 = vmatpush1.bf16.msra.mxu1 %v13692_v29  ;;  %7571 = vmatprep.subr.bf16.mxu0 %v13697_v23  ;;  %v13745_v29 = vld [vmem:[#allocation24 + $0x444] ss:$8 sps:$4 sm:$0xff]   ;;  %v13748_v23 = vld [vmem:[#allocation24 + $0x534] ss:$8 sps:$4 sm:$0xff]  }
 0x4f3   :  { %7610 = vmatprep.subr.bf16.mxu1 %v13700_v56  ;;  %v13746_v56 = vld [vmem:[#allocation24 + $0x530] ss:$8 sps:$4 sm:$0xff]  }
 0x4f5   :  { %7572 = vmatpush1.bf16.msra.mxu0 %v13695_v37  ;;  %v13751_v37 = vld [vmem:[#allocation24 + $0x454] ss:$8 sps:$4 sm:$0xff]  }
 0x4f6   :  { %7611 = vmatpush1.bf16.msra.mxu1 %v13698_v9  ;;  %7573 = vmatprep.subr.bf16.mxu0 %v13703_v40  ;;  %v13749_v9 = vld [vmem:[#allocation24 + $0x450] ss:$8 sps:$4 sm:$0xff]   ;;  %v13752_v40 = vld [vmem:[#allocation24 + $0x540] ss:$8 sps:$4 sm:$0xff]  }
 0x4f7   :  { %7612 = vmatprep.subr.bf16.mxu1 %v13706_v19  ;;  %v13757_v19 = vld [vmem:[#allocation24 + $0x464] ss:$8 sps:$4 sm:$0xff]  }
 0x4f9   :  { %7574 = vmatpush1.bf16.msra.mxu0 %v13701_v51 }
 0x4fa   :  { %7613 = vmatpush1.bf16.msra.mxu1 %v13704_v62  ;;  %7575 = vmatprep.subr.bf16.mxu0 %v13709_v25  ;;  %v13760_v62 = vld [vmem:[#allocation24 + $0x554] ss:$8 sps:$4 sm:$0xff]  }
 0x4fb   :  { %7614 = vmatprep.subr.bf16.mxu1 %v13712_v58 }
 0x4fd   :  { %7576 = vmatpush1.bf16.msra.mxu0 %v13707_v42 }
 0x4fe   :  { %7615 = vmatpush1.bf16.msra.mxu1 %v13710_v61  ;;  %7577 = vmatprep.subr.bf16.mxu0 %v13715_v36  ;;  %v13755_v36 = vld [vmem:[#allocation24 + $0x460] ss:$8 sps:$4 sm:$0xff]  }
 0x4ff   :  { %7616 = vmatprep.subr.bf16.mxu1 %v13718_v54 }
 0x501   :  { %7578 = vmatpush1.bf16.msra.mxu0 %v13713_v28  ;;  %v13758_v28 = vld [vmem:[#allocation24 + $0x550] ss:$8 sps:$4 sm:$0xff]  }
 0x502   :  { %7617 = vmatpush1.bf16.msra.mxu1 %v13716_v60  ;;  %7629 = vmatprep.subr.bf16.mxu0 %v13721_v55  ;;  %v13763_v60 = vld [vmem:[#allocation24 + $0x474] ss:$8 sps:$4 sm:$0xff]   ;;  %v13766_v55 = vld [vmem:[#allocation24 + $0x564] ss:$8 sps:$4 sm:$0xff]  }
 0x503   :  { %7618 = vmatprep.subr.bf16.mxu1 %v13724_v15 }
 0x504   :  { %7580 = vmatmul.mubr.bf16.vlgmr.msra.gmra.mrb[104].mxu0 %v15553_v39  ;;  %v13742_v39 = vld [vmem:[#allocation24 + $0x524] ss:$8 sps:$4 sm:$0xff]  }
 0x505   :  { %7630 = vmatpush1.bf16.msra.mxu0 %v13719_v48  ;;  %7661 = vmatprep.mubr.bf16.mxu0 %v15620_v38  ;;  %v13737_v38 = vld [vmem:[#allocation24 + $0x430] ss:$8 sps:$4 sm:$0xff]  }
 0x506   :  { %7619 = vmatpush1.bf16.msra.mxu1 %v13722_v18  ;;  %7631 = vmatprep.subr.bf16.mxu0 %v13727_v57  ;;  %v13761_v57 = vld [vmem:[#allocation24 + $0x470] ss:$8 sps:$4 sm:$0xff]  }
 0x507   :  { %7670 = vmatprep.subr.bf16.mxu1 %v13730_v34 }
 0x509   :  { %7621 = vmatmul.mubr.bf16.vlgmr.msra.gmra.mrb[108].mxu1 %v15550_v35  ;;  %7632 = vmatpush1.bf16.msra.mxu0 %v13725_v11  ;;  %v13743_v35 = vld [vmem:[#allocation24 + $0x440] ss:$8 sps:$4 sm:$0xff]   ;;  %v13769_v11 = vld [vmem:[#allocation24 + $0x484] ss:$8 sps:$4 sm:$0xff]  }
 0x50a   :  { %7671 = vmatpush1.bf16.msra.mxu1 %v13728_v5  ;;  %7702 = vmatprep.mubr.bf16.mxu1 %v15610_v33  ;;  %v13754_v33 = vld [vmem:[#allocation24 + $0x544] ss:$8 sps:$4 sm:$0xff]  }
 0x50b   :  { %7633 = vmatprep.subr.bf16.mxu0 %v13733_v49  ;;  %7672 = vmatprep.subr.bf16.mxu1 %v13736_v43  ;;  %v13772_v49 = vld [vmem:[#allocation24 + $0x574] ss:$8 sps:$4 sm:$0xff]   ;;  %v13767_v43 = vld [vmem:[#allocation24 + $0x480] ss:$8 sps:$4 sm:$0xff]  }
 0x50d   :  { %7634 = vmatpush1.bf16.msra.mxu0 %v13731_v53  ;;  %v13770_v53 = vld [vmem:[#allocation24 + $0x570] ss:$8 sps:$4 sm:$0xff]  }
 0x50e   :  { %7673 = vmatpush1.bf16.msra.mxu1 %v13734_v31  ;;  %7635 = vmatprep.subr.bf16.mxu0 %v13739_v44  ;;  %v13775_v31 = vld [vmem:[#allocation24 + $0x494] ss:$8 sps:$4 sm:$0xff]   ;;  %v13778_v44 = vld [vmem:[#allocation24 + $0x584] ss:$8 sps:$4 sm:$0xff]  }
 0x50f   :  { %7674 = vmatprep.subr.bf16.mxu1 %v13742_v39  ;;  %v13773_v39 = vld [vmem:[#allocation24 + $0x490] ss:$8 sps:$4 sm:$0xff]  }
 0x511   :  { %7636 = vmatpush1.bf16.msra.mxu0 %v13737_v38  ;;  %v13776_v38 = vld [vmem:[#allocation24 + $0x580] ss:$8 sps:$4 sm:$0xff]  }
 0x512   :  { %7675 = vmatpush1.bf16.msra.mxu1 %v13740_v21  ;;  %7637 = vmatprep.subr.bf16.mxu0 %v13745_v29  ;;  %v13781_v21 = vld [vmem:[#allocation24 + $0x4a4] ss:$8 sps:$4 sm:$0xff]   ;;  %v13784_v29 = vld [vmem:[#allocation24 + $0x594] ss:$8 sps:$4 sm:$0xff]  }
 0x513   :  { %7676 = vmatprep.subr.bf16.mxu1 %v13748_v23  ;;  %v13779_v23 = vld [vmem:[#allocation24 + $0x4a0] ss:$8 sps:$4 sm:$0xff]  }
 0x515   :  { %7638 = vmatpush1.bf16.msra.mxu0 %v13743_v35  ;;  %v13782_v35 = vld [vmem:[#allocation24 + $0x590] ss:$8 sps:$4 sm:$0xff]  }
 0x516   :  { %7677 = vmatpush1.bf16.msra.mxu1 %v13746_v56  ;;  %7639 = vmatprep.subr.bf16.mxu0 %v13751_v37  ;;  %v13787_v56 = vld [vmem:[#allocation24 + $0x4b4] ss:$8 sps:$4 sm:$0xff]   ;;  %v13790_v37 = vld [vmem:[#allocation24 + $0x5a4] ss:$8 sps:$4 sm:$0xff]  }
 0x517   :  { %v5735_v51 = vpop.f32.mrb[92].mxu0  ;;  %7678 = vmatprep.subr.bf16.mxu1 %v13754_v33  ;;  %v13785_v33 = vld [vmem:[#allocation24 + $0x4b0] ss:$8 sps:$4 sm:$0xff]  }
 0x518   :  { %v5736_v25 = vadd.f32 %v5735_v51, %v16066_v30  ;;  %v5737_v58 = vpop.f32.mrb[93].mxu0  ;;  %v13791_v51 = vld [vmem:[#allocation24 + $0x4c0] ss:$8 sps:$4 sm:$0xff]  }
 0x519   :  { %v5738_v42 = vadd.f32 %v5737_v58, %v16068_v52  ;;  %v5739_v61 = vpop.f32.mrb[94].mxu0  ;;  %7640 = vmatpush1.bf16.msra.mxu0 %v13749_v9  ;;  %v13764_v52 = vld [vmem:[#allocation24 + $0x560] ss:$8 sps:$4 sm:$0xff]   ;;  %v13802_v58 = vld [vmem:[#allocation24 + $0x5c4] ss:$8 sps:$4 sm:$0xff]  }
 0x51a   :  { %v5740_v54 = vpop.f32.mrb[95].mxu0  ;;  %7679 = vmatpush1.bf16.msra.mxu1 %v13752_v40  ;;  %7641 = vmatprep.subr.bf16.mxu0 %v13757_v19  ;;  %v13788_v9 = vld [vmem:[#allocation24 + $0x5a0] ss:$8 sps:$4 sm:$0xff]   ;;  %v13793_v40 = vld [vmem:[#allocation24 + $0x4c4] ss:$8 sps:$4 sm:$0xff]  }
 0x51b   :  { %7680 = vmatprep.subr.bf16.mxu1 %v13760_v62  ;;  %v13796_v19 = vld [vmem:[#allocation24 + $0x5b4] ss:$8 sps:$4 sm:$0xff]   ;;  %v13794_v62 = vld [vmem:[#allocation24 + $0x5b0] ss:$8 sps:$4 sm:$0xff]   ;;  %v13800_v61 = vld [vmem:[#allocation24 + $0x5c0] ss:$8 sps:$4 sm:$0xff]  }
 0x51c   :  { %v5776_v15 = vpop.f32.mrb[96].mxu1  ;;  %v13808_v54 = vld [vmem:[#allocation24 + $0x5d4] ss:$8 sps:$4 sm:$0xff]  }
 0x51d   :  { %v16076_v48 = vadd.f32 %v5776_v15, %v5736_v25  ;;  %v5778_v18 = vpop.f32.mrb[97].mxu1  ;;  %7642 = vmatpush1.bf16.msra.mxu0 %v13755_v36  ;;  %v13799_v25 = vld [vmem:[#allocation24 + $0x4d4] ss:$8 sps:$4 sm:$0xff]   ;;  %v13805_v36 = vld [vmem:[#allocation24 + $0x4e4] ss:$8 sps:$4 sm:$0xff]  }
 0x51e   :  { %v16078_v30 = vadd.f32 %v5778_v18, %v5738_v42  ;;  %v5780_v34 = vpop.f32.mrb[98].mxu1  ;;  %7681 = vmatpush1.bf16.msra.mxu1 %v13758_v28  ;;  %7643 = vmatprep.subr.bf16.mxu0 %v13763_v60  ;;  %v13797_v42 = vld [vmem:[#allocation24 + $0x4d0] ss:$8 sps:$4 sm:$0xff]   ;;  %v13803_v28 = vld [vmem:[#allocation24 + $0x4e0] ss:$8 sps:$4 sm:$0xff]  }
 0x51f   :  { %v5781_v5 = vpop.f32.mrb[99].mxu1  ;;  %7682 = vmatprep.subr.bf16.mxu1 %v13766_v55  ;;  %v13806_v60 = vld [vmem:[#allocation24 + $0x5d0] ss:$8 sps:$4 sm:$0xff]   ;;  %v13811_v55 = vld [vmem:[#allocation24 + $0x4f4] ss:$8 sps:$4 sm:$0xff]  }
 0x520   :  { %v13814_v15 = vld [vmem:[#allocation24 + $0x5e4] ss:$8 sps:$4 sm:$0xff]   ;;  %v13809_v18 = vld [vmem:[#allocation24 + $0x4f0] ss:$8 sps:$4 sm:$0xff]  }
 0x521   :  { %7644 = vmatpush1.bf16.msra.mxu0 %v13761_v57  ;;  %v13812_v57 = vld [vmem:[#allocation24 + $0x5e0] ss:$8 sps:$4 sm:$0xff]   ;;  %v13817_v34 = vld [vmem:[#allocation24 + $0x604] ss:$8 sps:$4 sm:$0xff]   ;;  %v13818_v5 = vld [vmem:[#allocation24 + $0x5f0] ss:$8 sps:$4 sm:$0xff]  }
 0x522   :  { %7683 = vmatpush1.bf16.msra.mxu1 %v13764_v52  ;;  %7645 = vmatprep.subr.bf16.mxu0 %v13769_v11  ;;  %v13820_v52 = vld [vmem:[#allocation24 + $0x5f4] ss:$8 sps:$4 sm:$0xff]   ;;  %v13815_v11 = vld [vmem:[#allocation24 + $0x600] ss:$8 sps:$4 sm:$0xff]  }
 0x523   :  { %7684 = vmatprep.subr.bf16.mxu1 %v13772_v49  ;;  %v13823_v49 = vld [vmem:[#allocation24 + $0x614] ss:$8 sps:$4 sm:$0xff]  }
 0x525   :  { %7646 = vmatpush1.bf16.msra.mxu0 %v13767_v43  ;;  %v13826_v43 = vld [vmem:[#allocation24 + $0x704] ss:$8 sps:$4 sm:$0xff]  }
 0x526   :  { %7685 = vmatpush1.bf16.msra.mxu1 %v13770_v53  ;;  %7647 = vmatprep.subr.bf16.mxu0 %v13775_v31  ;;  %v13821_v53 = vld [vmem:[#allocation24 + $0x610] ss:$8 sps:$4 sm:$0xff]   ;;  %v13824_v31 = vld [vmem:[#allocation24 + $0x700] ss:$8 sps:$4 sm:$0xff]  }
 0x527   :  { %7686 = vmatprep.subr.bf16.mxu1 %v13778_v44  ;;  %v13829_v44 = vld [vmem:[#allocation24 + $0x624] ss:$8 sps:$4 sm:$0xff]  }
 0x529   :  { %7648 = vmatpush1.bf16.msra.mxu0 %v13773_v39  ;;  %v13832_v39 = vld [vmem:[#allocation24 + $0x714] ss:$8 sps:$4 sm:$0xff]  }
 0x52a   :  { %7687 = vmatpush1.bf16.msra.mxu1 %v13776_v38  ;;  %7649 = vmatprep.subr.bf16.mxu0 %v13781_v21  ;;  %v13827_v38 = vld [vmem:[#allocation24 + $0x620] ss:$8 sps:$4 sm:$0xff]   ;;  %v13830_v21 = vld [vmem:[#allocation24 + $0x710] ss:$8 sps:$4 sm:$0xff]  }
 0x52b   :  { %7688 = vmatprep.subr.bf16.mxu1 %v13784_v29  ;;  %v13835_v29 = vld [vmem:[#allocation24 + $0x634] ss:$8 sps:$4 sm:$0xff]  }
 0x52d   :  { %7650 = vmatpush1.bf16.msra.mxu0 %v13779_v23  ;;  %v13836_v23 = vld [vmem:[#allocation24 + $0x720] ss:$8 sps:$4 sm:$0xff]  }
 0x52e   :  { %7689 = vmatpush1.bf16.msra.mxu1 %v13782_v35  ;;  %7651 = vmatprep.subr.bf16.mxu0 %v13787_v56  ;;  %v13841_v35 = vld [vmem:[#allocation24 + $0x644] ss:$8 sps:$4 sm:$0xff]   ;;  %v13844_v56 = vld [vmem:[#allocation24 + $0x734] ss:$8 sps:$4 sm:$0xff]  }
 0x52f   :  { %7690 = vmatprep.subr.bf16.mxu1 %v13790_v37  ;;  %v13842_v37 = vld [vmem:[#allocation24 + $0x730] ss:$8 sps:$4 sm:$0xff]  }
 0x531   :  { %7652 = vmatpush1.bf16.msra.mxu0 %v13785_v33  ;;  %v13847_v33 = vld [vmem:[#allocation24 + $0x654] ss:$8 sps:$4 sm:$0xff]  }
 0x532   :  { %7691 = vmatpush1.bf16.msra.mxu1 %v13788_v9  ;;  %7653 = vmatprep.subr.bf16.mxu0 %v13793_v40  ;;  %v13845_v9 = vld [vmem:[#allocation24 + $0x650] ss:$8 sps:$4 sm:$0xff]   ;;  %v13848_v40 = vld [vmem:[#allocation24 + $0x740] ss:$8 sps:$4 sm:$0xff]  }
 0x533   :  { %7692 = vmatprep.subr.bf16.mxu1 %v13796_v19  ;;  %v13853_v19 = vld [vmem:[#allocation24 + $0x664] ss:$8 sps:$4 sm:$0xff]  }
 0x535   :  { %7654 = vmatpush1.bf16.msra.mxu0 %v13791_v51 }
 0x536   :  { %7693 = vmatpush1.bf16.msra.mxu1 %v13794_v62  ;;  %7655 = vmatprep.subr.bf16.mxu0 %v13799_v25  ;;  %v13856_v62 = vld [vmem:[#allocation24 + $0x754] ss:$8 sps:$4 sm:$0xff]  }
 0x537   :  { %7694 = vmatprep.subr.bf16.mxu1 %v13802_v58 }
 0x539   :  { %7656 = vmatpush1.bf16.msra.mxu0 %v13797_v42 }
 0x53a   :  { %7695 = vmatpush1.bf16.msra.mxu1 %v13800_v61  ;;  %7657 = vmatprep.subr.bf16.mxu0 %v13805_v36  ;;  %v13851_v36 = vld [vmem:[#allocation24 + $0x660] ss:$8 sps:$4 sm:$0xff]  }
 0x53b   :  { %7696 = vmatprep.subr.bf16.mxu1 %v13808_v54 }
 0x53d   :  { %7658 = vmatpush1.bf16.msra.mxu0 %v13803_v28  ;;  %v13854_v28 = vld [vmem:[#allocation24 + $0x750] ss:$8 sps:$4 sm:$0xff]  }
 0x53e   :  { %7697 = vmatpush1.bf16.msra.mxu1 %v13806_v60  ;;  %7659 = vmatprep.subr.bf16.mxu0 %v13811_v55  ;;  %v13859_v60 = vld [vmem:[#allocation24 + $0x674] ss:$8 sps:$4 sm:$0xff]   ;;  %v13862_v55 = vld [vmem:[#allocation24 + $0x764] ss:$8 sps:$4 sm:$0xff]  }
 0x53f   :  { %7698 = vmatprep.subr.bf16.mxu1 %v13814_v15 }
 0x541   :  { %7660 = vmatpush1.bf16.msra.mxu0 %v13809_v18 }
 0x542   :  { %7699 = vmatpush1.bf16.msra.mxu1 %v13812_v57  ;;  %7711 = vmatprep.subr.bf16.mxu0 %v13817_v34  ;;  %v13857_v34 = vld [vmem:[#allocation24 + $0x670] ss:$8 sps:$4 sm:$0xff]  }
 0x543   :  { %7700 = vmatprep.subr.bf16.mxu1 %v13820_v52 }
 0x544   :  { %7662 = vmatmul.mubr.bf16.vlgmr.msra.gmra.mrb[108].mxu0 %v15599_v26  ;;  %v13838_v26 = vld [vmem:[#allocation24 + $0x724] ss:$8 sps:$4 sm:$0xff]  }
 0x545   :  { %7712 = vmatpush1.bf16.msra.mxu0 %v13815_v11  ;;  %7743 = vmatprep.mubr.bf16.mxu0 %v15675_v41  ;;  %v13833_v41 = vld [vmem:[#allocation24 + $0x630] ss:$8 sps:$4 sm:$0xff]   ;;  %v13865_v11 = vld [vmem:[#allocation24 + $0x684] ss:$8 sps:$4 sm:$0xff]  }
 0x546   :  { %7701 = vmatpush1.bf16.msra.mxu1 %v13818_v5  ;;  %7713 = vmatprep.subr.bf16.mxu0 %v13823_v49  ;;  %v13868_v49 = vld [vmem:[#allocation24 + $0x774] ss:$8 sps:$4 sm:$0xff]  }
 0x547   :  { %7752 = vmatprep.subr.bf16.mxu1 %v13826_v43  ;;  %v13863_v43 = vld [vmem:[#allocation24 + $0x680] ss:$8 sps:$4 sm:$0xff]  }
 0x549   :  { %7703 = vmatmul.mubr.bf16.vlgmr.msra.gmra.mrb[112].mxu1 %v15590_v14  ;;  %7714 = vmatpush1.bf16.msra.mxu0 %v13821_v53  ;;  %v13839_v14 = vld [vmem:[#allocation24 + $0x640] ss:$8 sps:$4 sm:$0xff]   ;;  %v13866_v53 = vld [vmem:[#allocation24 + $0x770] ss:$8 sps:$4 sm:$0xff]  }
 0x54a   :  { %7753 = vmatpush1.bf16.msra.mxu1 %v13824_v31  ;;  %7784 = vmatprep.mubr.bf16.mxu1 %v15665_v32  ;;  %v13850_v32 = vld [vmem:[#allocation24 + $0x744] ss:$8 sps:$4 sm:$0xff]   ;;  %v13871_v31 = vld [vmem:[#allocation24 + $0x694] ss:$8 sps:$4 sm:$0xff]  }
 0x54b   :  { %7715 = vmatprep.subr.bf16.mxu0 %v13829_v44  ;;  %7754 = vmatprep.subr.bf16.mxu1 %v13832_v39  ;;  %v13874_v44 = vld [vmem:[#allocation24 + $0x784] ss:$8 sps:$4 sm:$0xff]   ;;  %v13869_v39 = vld [vmem:[#allocation24 + $0x690] ss:$8 sps:$4 sm:$0xff]  }
 0x54d   :  { %7716 = vmatpush1.bf16.msra.mxu0 %v13827_v38  ;;  %v13872_v38 = vld [vmem:[#allocation24 + $0x780] ss:$8 sps:$4 sm:$0xff]  }
 0x54e   :  { %7755 = vmatpush1.bf16.msra.mxu1 %v13830_v21  ;;  %7717 = vmatprep.subr.bf16.mxu0 %v13835_v29  ;;  %v13877_v21 = vld [vmem:[#allocation24 + $0x6a4] ss:$8 sps:$4 sm:$0xff]   ;;  %v13880_v29 = vld [vmem:[#allocation24 + $0x794] ss:$8 sps:$4 sm:$0xff]  }
 0x54f   :  { %7756 = vmatprep.subr.bf16.mxu1 %v13838_v26  ;;  %v13875_v26 = vld [vmem:[#allocation24 + $0x6a0] ss:$8 sps:$4 sm:$0xff]  }
 0x551   :  { %7718 = vmatpush1.bf16.msra.mxu0 %v13833_v41  ;;  %v13878_v41 = vld [vmem:[#allocation24 + $0x790] ss:$8 sps:$4 sm:$0xff]  }
 0x552   :  { %7757 = vmatpush1.bf16.msra.mxu1 %v13836_v23  ;;  %7719 = vmatprep.subr.bf16.mxu0 %v13841_v35  ;;  %v13883_v23 = vld [vmem:[#allocation24 + $0x6b4] ss:$8 sps:$4 sm:$0xff]   ;;  %v13886_v35 = vld [vmem:[#allocation24 + $0x7a4] ss:$8 sps:$4 sm:$0xff]  }
 0x553   :  { %7758 = vmatprep.subr.bf16.mxu1 %v13844_v56  ;;  %v13881_v56 = vld [vmem:[#allocation24 + $0x6b0] ss:$8 sps:$4 sm:$0xff]  }
 0x555   :  { %7720 = vmatpush1.bf16.msra.mxu0 %v13839_v14  ;;  %v13884_v14 = vld [vmem:[#allocation24 + $0x7a0] ss:$8 sps:$4 sm:$0xff]  }
 0x556   :  { %7759 = vmatpush1.bf16.msra.mxu1 %v13842_v37  ;;  %7721 = vmatprep.subr.bf16.mxu0 %v13847_v33  ;;  %v13889_v37 = vld [vmem:[#allocation24 + $0x6c4] ss:$8 sps:$4 sm:$0xff]   ;;  %v13892_v33 = vld [vmem:[#allocation24 + $0x7b4] ss:$8 sps:$4 sm:$0xff]  }
 0x557   :  { %v5817_v51 = vpop.f32.mrb[96].mxu0  ;;  %7760 = vmatprep.subr.bf16.mxu1 %v13850_v32  ;;  %v13887_v32 = vld [vmem:[#allocation24 + $0x6c0] ss:$8 sps:$4 sm:$0xff]  }
 0x558   :  { %v5818_v25 = vadd.f32 %v5817_v51, %v16076_v48  ;;  %v5819_v58 = vpop.f32.mrb[97].mxu0  ;;  %v13893_v51 = vld [vmem:[#allocation24 + $0x6d0] ss:$8 sps:$4 sm:$0xff]  }
 0x559   :  { %v5820_v42 = vadd.f32 %v5819_v58, %v16078_v30  ;;  %v5821_v61 = vpop.f32.mrb[98].mxu0  ;;  %7722 = vmatpush1.bf16.msra.mxu0 %v13845_v9  ;;  %v13860_v30 = vld [vmem:[#allocation24 + $0x760] ss:$8 sps:$4 sm:$0xff]   ;;  %v13890_v9 = vld [vmem:[#allocation24 + $0x7b0] ss:$8 sps:$4 sm:$0xff]  }
 0x55a   :  { %v5822_v54 = vpop.f32.mrb[99].mxu0  ;;  %7761 = vmatpush1.bf16.msra.mxu1 %v13848_v40  ;;  %7723 = vmatprep.subr.bf16.mxu0 %v13853_v19  ;;  %v13895_v40 = vld [vmem:[#allocation24 + $0x6d4] ss:$8 sps:$4 sm:$0xff]   ;;  %v13898_v19 = vld [vmem:[#allocation24 + $0x7c4] ss:$8 sps:$4 sm:$0xff]  }
 0x55b   :  { %7762 = vmatprep.subr.bf16.mxu1 %v13856_v62  ;;  %v13896_v62 = vld [vmem:[#allocation24 + $0x7c0] ss:$8 sps:$4 sm:$0xff]   ;;  %v13904_v58 = vld [vmem:[#allocation24 + $0x7d4] ss:$8 sps:$4 sm:$0xff]   ;;  %v13902_v61 = vld [vmem:[#allocation24 + $0x7d0] ss:$8 sps:$4 sm:$0xff]  }
 0x55c   :  { %v5858_v15 = vpop.f32.mrb[100].mxu1  ;;  %v13910_v54 = vld [vmem:[#allocation24 + $0x7e4] ss:$8 sps:$4 sm:$0xff]  }
 0x55d   :  { %v16086_v18 = vadd.f32 %v5858_v15, %v5818_v25  ;;  %v5860_v57 = vpop.f32.mrb[101].mxu1  ;;  %7724 = vmatpush1.bf16.msra.mxu0 %v13851_v36  ;;  %v13901_v25 = vld [vmem:[#allocation24 + $0x6e4] ss:$8 sps:$4 sm:$0xff]   ;;  %v13907_v36 = vld [vmem:[#allocation24 + $0x6f4] ss:$8 sps:$4 sm:$0xff]  }
 0x55e   :  { %v16088_v48 = vadd.f32 %v5860_v57, %v5820_v42  ;;  %v5862_v52 = vpop.f32.mrb[102].mxu1  ;;  %7763 = vmatpush1.bf16.msra.mxu1 %v13854_v28  ;;  %7725 = vmatprep.subr.bf16.mxu0 %v13859_v60  ;;  %v13899_v42 = vld [vmem:[#allocation24 + $0x6e0] ss:$8 sps:$4 sm:$0xff]   ;;  %v13905_v28 = vld [vmem:[#allocation24 + $0x6f0] ss:$8 sps:$4 sm:$0xff]  }
 0x55f   :  { %v5863_v5 = vpop.f32.mrb[103].mxu1  ;;  %7764 = vmatprep.subr.bf16.mxu1 %v13862_v55  ;;  %v13908_v60 = vld [vmem:[#allocation24 + $0x7e0] ss:$8 sps:$4 sm:$0xff]   ;;  %v13913_v55 = vld [vmem:[#allocation24 + $0x804] ss:$8 sps:$4 sm:$0xff]  }
 0x560   :  { %v13916_v15 = vld [vmem:[#allocation24 + $0x7f4] ss:$8 sps:$4 sm:$0xff]   ;;  %v13911_v57 = vld [vmem:[#allocation24 + $0x800] ss:$8 sps:$4 sm:$0xff]   ;;  %v13917_v5 = vld [vmem:[#allocation24 + $0x810] ss:$8 sps:$4 sm:$0xff]  }
 0x561   :  { %7726 = vmatpush1.bf16.msra.mxu0 %v13857_v34  ;;  %v13914_v34 = vld [vmem:[#allocation24 + $0x7f0] ss:$8 sps:$4 sm:$0xff]   ;;  %v13919_v52 = vld [vmem:[#allocation24 + $0x814] ss:$8 sps:$4 sm:$0xff]  }
 0x562   :  { %7765 = vmatpush1.bf16.msra.mxu1 %v13860_v30  ;;  %7727 = vmatprep.subr.bf16.mxu0 %v13865_v11  ;;  %v13922_v30 = vld [vmem:[#allocation24 + $0x904] ss:$8 sps:$4 sm:$0xff]  }
 0x563   :  { %7766 = vmatprep.subr.bf16.mxu1 %v13868_v49  ;;  %v16502_v11 = vld [vmem:[#allocation49_spill] sm:$0xff] }
 0x564   :  { %v13920_v49 = vld [vmem:[#allocation24 + $0x900] ss:$8 sps:$4 sm:$0xff]  }
 0x565   :  { %7728 = vmatpush1.bf16.msra.mxu0 %v13863_v43  ;;  %v13925_v43 = vld [vmem:[#allocation24 + $0x824] ss:$8 sps:$4 sm:$0xff]  }
 0x566   :  { %7767 = vmatpush1.bf16.msra.mxu1 %v13866_v53  ;;  %7729 = vmatprep.subr.bf16.mxu0 %v13871_v31  ;;  %v13928_v53 = vld [vmem:[#allocation24 + $0x914] ss:$8 sps:$4 sm:$0xff]   ;;  %v16503_v31 = vld [vmem:[#allocation50_spill] sm:$0xff] }
 0x567   :  { %7768 = vmatprep.subr.bf16.mxu1 %v13874_v44  ;;  %v13923_v44 = vld [vmem:[#allocation24 + $0x820] ss:$8 sps:$4 sm:$0xff]  }
 0x569   :  { %7730 = vmatpush1.bf16.msra.mxu0 %v13869_v39  ;;  %v16504_v39 = vld [vmem:[#allocation48_spill] sm:$0xff] }
 0x56a   :  { %7769 = vmatpush1.bf16.msra.mxu1 %v13872_v38  ;;  %7731 = vmatprep.subr.bf16.mxu0 %v13877_v21  ;;  %v13926_v38 = vld [vmem:[#allocation24 + $0x910] ss:$8 sps:$4 sm:$0xff]   ;;  %v13931_v21 = vld [vmem:[#allocation24 + $0x834] ss:$8 sps:$4 sm:$0xff]  }
 0x56b   :  { %7770 = vmatprep.subr.bf16.mxu1 %v13880_v29  ;;  %v13929_v29 = vld [vmem:[#allocation24 + $0x830] ss:$8 sps:$4 sm:$0xff]  }
 0x56d   :  { %7732 = vmatpush1.bf16.msra.mxu0 %v13875_v26  ;;  %v13932_v26 = vld [vmem:[#allocation24 + $0x920] ss:$8 sps:$4 sm:$0xff]  }
 0x56e   :  { %7771 = vmatpush1.bf16.msra.mxu1 %v13878_v41  ;;  %7733 = vmatprep.subr.bf16.mxu0 %v13883_v23  ;;  %v13937_v41 = vld [vmem:[#allocation24 + $0x844] ss:$8 sps:$4 sm:$0xff]   ;;  %v13940_v23 = vld [vmem:[#allocation24 + $0x934] ss:$8 sps:$4 sm:$0xff]  }
 0x56f   :  { %7772 = vmatprep.subr.bf16.mxu1 %v13886_v35  ;;  %v13935_v35 = vld [vmem:[#allocation24 + $0x840] ss:$8 sps:$4 sm:$0xff]  }
 0x571   :  { %7734 = vmatpush1.bf16.msra.mxu0 %v13881_v56  ;;  %v13938_v56 = vld [vmem:[#allocation24 + $0x930] ss:$8 sps:$4 sm:$0xff]  }
 0x572   :  { %7773 = vmatpush1.bf16.msra.mxu1 %v13884_v14  ;;  %7735 = vmatprep.subr.bf16.mxu0 %v13889_v37  ;;  %v13943_v14 = vld [vmem:[#allocation24 + $0x854] ss:$8 sps:$4 sm:$0xff]   ;;  %v13946_v37 = vld [vmem:[#allocation24 + $0x944] ss:$8 sps:$4 sm:$0xff]  }
 0x573   :  { %7774 = vmatprep.subr.bf16.mxu1 %v13892_v33  ;;  %v13941_v33 = vld [vmem:[#allocation24 + $0x850] ss:$8 sps:$4 sm:$0xff]  }
 0x575   :  { %7736 = vmatpush1.bf16.msra.mxu0 %v13887_v32  ;;  %v13944_v32 = vld [vmem:[#allocation24 + $0x940] ss:$8 sps:$4 sm:$0xff]  }
 0x576   :  { %7775 = vmatpush1.bf16.msra.mxu1 %v13890_v9  ;;  %7737 = vmatprep.subr.bf16.mxu0 %v13895_v40  ;;  %v13949_v9 = vld [vmem:[#allocation24 + $0x864] ss:$8 sps:$4 sm:$0xff]  }
 0x577   :  { %7776 = vmatprep.subr.bf16.mxu1 %v13898_v19  ;;  %v13952_v19 = vld [vmem:[#allocation24 + $0x954] ss:$8 sps:$4 sm:$0xff]  }
 0x579   :  { %7738 = vmatpush1.bf16.msra.mxu0 %v13893_v51 }
 0x57a   :  { %7777 = vmatpush1.bf16.msra.mxu1 %v13896_v62  ;;  %7739 = vmatprep.subr.bf16.mxu0 %v13901_v25 }
 0x57b   :  { %7778 = vmatprep.subr.bf16.mxu1 %v13904_v58 }
 0x57d   :  { %7740 = vmatpush1.bf16.msra.mxu0 %v13899_v42  ;;  %v13947_v42 = vld [vmem:[#allocation24 + $0x860] ss:$8 sps:$4 sm:$0xff]  }
 0x57e   :  { %7779 = vmatpush1.bf16.msra.mxu1 %v13902_v61  ;;  %7741 = vmatprep.subr.bf16.mxu0 %v13907_v36  ;;  %v13950_v36 = vld [vmem:[#allocation24 + $0x950] ss:$8 sps:$4 sm:$0xff]  }
 0x57f   :  { %7780 = vmatprep.subr.bf16.mxu1 %v13910_v54  ;;  %v13955_v54 = vld [vmem:[#allocation24 + $0x874] ss:$8 sps:$4 sm:$0xff]  }
 0x581   :  { %7742 = vmatpush1.bf16.msra.mxu0 %v13905_v28  ;;  %v13958_v28 = vld [vmem:[#allocation24 + $0x964] ss:$8 sps:$4 sm:$0xff]  }
 0x582   :  { %7781 = vmatpush1.bf16.msra.mxu1 %v13908_v60  ;;  %7793 = vmatprep.subr.bf16.mxu0 %v13913_v55 }
 0x583   :  { %7782 = vmatprep.subr.bf16.mxu1 %v13916_v15 }
 0x584   :  { %7744 = vmatmul.mubr.bf16.vlgmr.msra.gmra.mrb[112].mxu0 %v15658_v27  ;;  %v13934_v27 = vld [vmem:[#allocation24 + $0x924] ss:$8 sps:$4 sm:$0xff]  }
 0x585   :  { %7794 = vmatpush1.bf16.msra.mxu0 %v13911_v57  ;;  %7825 = vmatprep.mubr.bf16.mxu0 %v16502_v11  ;;  %v13953_v57 = vld [vmem:[#allocation24 + $0x870] ss:$8 sps:$4 sm:$0xff]   ;;  %v13964_v11 = vld [vmem:[#allocation24 + $0x974] ss:$8 sps:$4 sm:$0xff]  }
 0x586   :  { %7783 = vmatpush1.bf16.msra.mxu1 %v13914_v34  ;;  %7795 = vmatprep.subr.bf16.mxu0 %v13919_v52  ;;  %v13961_v52 = vld [vmem:[#allocation24 + $0x884] ss:$8 sps:$4 sm:$0xff]  }
 0x587   :  { %7834 = vmatprep.subr.bf16.mxu1 %v13922_v30 }
 0x589   :  { %7785 = vmatmul.mubr.bf16.vlgmr.msra.gmra.mrb[116].mxu1 %v16503_v31  ;;  %7796 = vmatpush1.bf16.msra.mxu0 %v13917_v5  ;;  %v13959_v5 = vld [vmem:[#allocation24 + $0x880] ss:$8 sps:$4 sm:$0xff]   ;;  %v13965_v31 = vld [vmem:[#allocation24 + $0x890] ss:$8 sps:$4 sm:$0xff]  }
 0x58a   :  { %7835 = vmatpush1.bf16.msra.mxu1 %v13920_v49  ;;  %7866 = vmatprep.mubr.bf16.mxu1 %v16504_v39  ;;  %v13962_v49 = vld [vmem:[#allocation24 + $0x970] ss:$8 sps:$4 sm:$0xff]   ;;  %v13973_v39 = vld [vmem:[#allocation24 + $0x8a4] ss:$8 sps:$4 sm:$0xff]  }
 0x58b   :  { %7797 = vmatprep.subr.bf16.mxu0 %v13925_v43  ;;  %7836 = vmatprep.subr.bf16.mxu1 %v13928_v53  ;;  %v13967_v43 = vld [vmem:[#allocation24 + $0x894] ss:$8 sps:$4 sm:$0xff]   ;;  %v13970_v53 = vld [vmem:[#allocation24 + $0x984] ss:$8 sps:$4 sm:$0xff]  }
 0x58d   :  { %7798 = vmatpush1.bf16.msra.mxu0 %v13923_v44  ;;  %v13968_v44 = vld [vmem:[#allocation24 + $0x980] ss:$8 sps:$4 sm:$0xff]  }
 0x58e   :  { %7837 = vmatpush1.bf16.msra.mxu1 %v13926_v38  ;;  %7799 = vmatprep.subr.bf16.mxu0 %v13931_v21  ;;  %v13976_v38 = vld [vmem:[#allocation24 + $0x994] ss:$8 sps:$4 sm:$0xff]   ;;  %v13971_v21 = vld [vmem:[#allocation24 + $0x8a0] ss:$8 sps:$4 sm:$0xff]  }
 0x58f   :  { %7838 = vmatprep.subr.bf16.mxu1 %v13934_v27  ;;  %v13974_v27 = vld [vmem:[#allocation24 + $0x990] ss:$8 sps:$4 sm:$0xff]  }
 0x591   :  { %7800 = vmatpush1.bf16.msra.mxu0 %v13929_v29  ;;  %v13979_v29 = vld [vmem:[#allocation24 + $0x8b4] ss:$8 sps:$4 sm:$0xff]  }
 0x592   :  { %7839 = vmatpush1.bf16.msra.mxu1 %v13932_v26  ;;  %7801 = vmatprep.subr.bf16.mxu0 %v13937_v41  ;;  %v13982_v26 = vld [vmem:[#allocation24 + $0x9a4] ss:$8 sps:$4 sm:$0xff]   ;;  %v13977_v41 = vld [vmem:[#allocation24 + $0x8b0] ss:$8 sps:$4 sm:$0xff]  }
 0x593   :  { %7840 = vmatprep.subr.bf16.mxu1 %v13940_v23  ;;  %v13980_v23 = vld [vmem:[#allocation24 + $0x9a0] ss:$8 sps:$4 sm:$0xff]  }
 0x595   :  { %7802 = vmatpush1.bf16.msra.mxu0 %v13935_v35  ;;  %v13985_v35 = vld [vmem:[#allocation24 + $0x8c4] ss:$8 sps:$4 sm:$0xff]  }
 0x596   :  { %7841 = vmatpush1.bf16.msra.mxu1 %v13938_v56  ;;  %7803 = vmatprep.subr.bf16.mxu0 %v13943_v14  ;;  %v13988_v56 = vld [vmem:[#allocation24 + $0x9b4] ss:$8 sps:$4 sm:$0xff]   ;;  %v13983_v14 = vld [vmem:[#allocation24 + $0x8c0] ss:$8 sps:$4 sm:$0xff]  }
 0x597   :  { %v7499_v40 = vpop.f32.mrb[100].mxu0  ;;  %7842 = vmatprep.subr.bf16.mxu1 %v13946_v37  ;;  %v13986_v37 = vld [vmem:[#allocation24 + $0x9b0] ss:$8 sps:$4 sm:$0xff]  }
 0x598   :  { %v7500_v51 = vadd.f32 %v7499_v40, %v16086_v18  ;;  %v7501_v62 = vpop.f32.mrb[101].mxu0  ;;  %v13992_v40 = vld [vmem:[#allocation24 + $0x9c0] ss:$8 sps:$4 sm:$0xff]  }
 0x599   :  { %v7502_v25 = vadd.f32 %v7501_v62, %v16088_v48  ;;  %v7503_v58 = vpop.f32.mrb[102].mxu0  ;;  %7804 = vmatpush1.bf16.msra.mxu0 %v13941_v33  ;;  %v13956_v48 = vld [vmem:[#allocation24 + $0x960] ss:$8 sps:$4 sm:$0xff]   ;;  %v13991_v33 = vld [vmem:[#allocation24 + $0x8d4] ss:$8 sps:$4 sm:$0xff]  }
 0x59a   :  { %v7504_v61 = vpop.f32.mrb[103].mxu0  ;;  %7843 = vmatpush1.bf16.msra.mxu1 %v13944_v32  ;;  %7805 = vmatprep.subr.bf16.mxu0 %v13949_v9  ;;  %v13994_v32 = vld [vmem:[#allocation24 + $0x9c4] ss:$8 sps:$4 sm:$0xff]   ;;  %v13989_v9 = vld [vmem:[#allocation24 + $0x8d0] ss:$8 sps:$4 sm:$0xff]  }
 0x59b   :  { %7844 = vmatprep.subr.bf16.mxu1 %v13952_v19  ;;  %v13997_v19 = vld [vmem:[#allocation24 + $0x8e4] ss:$8 sps:$4 sm:$0xff]   ;;  %v13995_v62 = vld [vmem:[#allocation24 + $0x8e0] ss:$8 sps:$4 sm:$0xff]   ;;  %v14003_v58 = vld [vmem:[#allocation24 + $0x8f4] ss:$8 sps:$4 sm:$0xff]  }
 0x59c   :  { %v7540_v60 = vpop.f32.mrb[104].mxu1  ;;  %v14001_v61 = vld [vmem:[#allocation24 + $0x8f0] ss:$8 sps:$4 sm:$0xff]  }
 0x59d   :  { %v16096_v55 = vadd.f32 %v7540_v60, %v7500_v51  ;;  %v7542_v15 = vpop.f32.mrb[105].mxu1  ;;  %7806 = vmatpush1.bf16.msra.mxu0 %v13947_v42  ;;  %v14000_v51 = vld [vmem:[#allocation24 + $0x9d4] ss:$8 sps:$4 sm:$0xff]   ;;  %v14006_v42 = vld [vmem:[#allocation24 + $0x9e4] ss:$8 sps:$4 sm:$0xff]  }
 0x59e   :  { %v16098_v18 = vadd.f32 %v7542_v15, %v7502_v25  ;;  %v7544_v34 = vpop.f32.mrb[106].mxu1  ;;  %7845 = vmatpush1.bf16.msra.mxu1 %v13950_v36  ;;  %7807 = vmatprep.subr.bf16.mxu0 %v13955_v54  ;;  %v13998_v25 = vld [vmem:[#allocation24 + $0x9d0] ss:$8 sps:$4 sm:$0xff]   ;;  %v14004_v36 = vld [vmem:[#allocation24 + $0x9e0] ss:$8 sps:$4 sm:$0xff]  }
 0x59f   :  { %v7545_v30 = vpop.f32.mrb[107].mxu1  ;;  %7846 = vmatprep.subr.bf16.mxu1 %v13958_v28  ;;  %v14009_v54 = vld [vmem:[#allocation30 + $0x4] ss:$8 sps:$4 sm:$0xff]   ;;  %v14012_v28 = vld [vmem:[#allocation24 + $0x9f4] ss:$8 sps:$4 sm:$0xff]  }
 0x5a0   :  { %v14007_v60 = vld [vmem:[#allocation30] ss:$8 sps:$4 sm:$0xff]   ;;  %v14010_v15 = vld [vmem:[#allocation24 + $0x9f0] ss:$8 sps:$4 sm:$0xff]  }
 0x5a1   :  { %7808 = vmatpush1.bf16.msra.mxu0 %v13953_v57  ;;  %v14015_v57 = vld [vmem:[#allocation30 + $0x14] ss:$8 sps:$4 sm:$0xff]   ;;  %v14018_v34 = vld [vmem:[#allocation30 + $0x104] ss:$8 sps:$4 sm:$0xff]   ;;  %v14013_v30 = vld [vmem:[#allocation30 + $0x10] ss:$8 sps:$4 sm:$0xff]  }
 0x5a2   :  { %7847 = vmatpush1.bf16.msra.mxu1 %v13956_v48  ;;  %7809 = vmatprep.subr.bf16.mxu0 %v13961_v52  ;;  %v16505_v48 = vld [vmem:[#allocation47_spill] sm:$0xff]  ;;  %v16506_v52 = vmax.bf16 %v15948_v2, %v15944_v6 }
 0x5a3   :  { %7848 = vmatprep.subr.bf16.mxu1 %v13964_v11  ;;  %v14016_v11 = vld [vmem:[#allocation30 + $0x100] ss:$8 sps:$4 sm:$0xff]   ;;  %v14030_v6 = vld [vmem:[#allocation30 + $0x124] ss:$8 sps:$4 sm:$0xff]   ;;  %v14025_v2 = vld [vmem:[#allocation30 + $0x30] ss:$8 sps:$4 sm:$0xff]  }
 0x5a5   :  { %7810 = vmatpush1.bf16.msra.mxu0 %v13959_v5  ;;  %v14021_v5 = vld [vmem:[#allocation30 + $0x24] ss:$8 sps:$4 sm:$0xff]  }
 0x5a6   :  { %7849 = vmatpush1.bf16.msra.mxu1 %v13962_v49  ;;  %7811 = vmatprep.subr.bf16.mxu0 %v13967_v43  ;;  %v14024_v49 = vld [vmem:[#allocation30 + $0x114] ss:$8 sps:$4 sm:$0xff]   ;;  %v16507_v43 = vld [vmem:[#allocation46_spill] sm:$0xff] }
 0x5a7   :  { %7850 = vmatprep.subr.bf16.mxu1 %v13970_v53  ;;  %v14019_v53 = vld [vmem:[#allocation30 + $0x20] ss:$8 sps:$4 sm:$0xff]  }
 0x5a9   :  { %7812 = vmatpush1.bf16.msra.mxu0 %v13965_v31  ;;  %v16508_v31 = vmax.bf16 %v15969_v13, %v15967_v46  ;;  %v14039_v46 = vld [vmem:[#allocation30 + $0x54] ss:$8 sps:$4 sm:$0xff]   ;;  %v14042_v13 = vld [vmem:[#allocation30 + $0x144] ss:$8 sps:$4 sm:$0xff]  }
 0x5aa   :  { %7851 = vmatpush1.bf16.msra.mxu1 %v13968_v44  ;;  %7813 = vmatprep.subr.bf16.mxu0 %v13973_v39  ;;  %v14022_v44 = vld [vmem:[#allocation30 + $0x110] ss:$8 sps:$4 sm:$0xff]   ;;  %v14027_v39 = vld [vmem:[#allocation30 + $0x34] ss:$8 sps:$4 sm:$0xff]  }
 0x5ab   :  { %7852 = vmatprep.subr.bf16.mxu1 %v13976_v38  ;;  %v14028_v38 = vld [vmem:[#allocation30 + $0x120] ss:$8 sps:$4 sm:$0xff]  }
 0x5ad   :  { %7814 = vmatpush1.bf16.msra.mxu0 %v13971_v21  ;;  %v14033_v21 = vld [vmem:[#allocation30 + $0x44] ss:$8 sps:$4 sm:$0xff]  }
 0x5ae   :  { %7853 = vmatpush1.bf16.msra.mxu1 %v13974_v27  ;;  %7815 = vmatprep.subr.bf16.mxu0 %v13979_v29  ;;  %v14036_v27 = vld [vmem:[#allocation30 + $0x134] ss:$8 sps:$4 sm:$0xff]   ;;  %v14031_v29 = vld [vmem:[#allocation30 + $0x40] ss:$8 sps:$4 sm:$0xff]  }
 0x5af   :  { %7854 = vmatprep.subr.bf16.mxu1 %v13982_v26  ;;  %v14034_v26 = vld [vmem:[#allocation30 + $0x130] ss:$8 sps:$4 sm:$0xff]  }
 0x5b1   :  { %7816 = vmatpush1.bf16.msra.mxu0 %v13977_v41  ;;  %v14037_v41 = vld [vmem:[#allocation30 + $0x50] ss:$8 sps:$4 sm:$0xff]  }
 0x5b2   :  { %7855 = vmatpush1.bf16.msra.mxu1 %v13980_v23  ;;  %7817 = vmatprep.subr.bf16.mxu0 %v13985_v35  ;;  %v14040_v23 = vld [vmem:[#allocation30 + $0x140] ss:$8 sps:$4 sm:$0xff]   ;;  %v14045_v35 = vld [vmem:[#allocation30 + $0x64] ss:$8 sps:$4 sm:$0xff]  }
 0x5b3   :  { %7856 = vmatprep.subr.bf16.mxu1 %v13988_v56 }
 0x5b5   :  { %7818 = vmatpush1.bf16.msra.mxu0 %v13983_v14  ;;  %v14048_v14 = vld [vmem:[#allocation30 + $0x154] ss:$8 sps:$4 sm:$0xff]  }
 0x5b6   :  { %7857 = vmatpush1.bf16.msra.mxu1 %v13986_v37  ;;  %7819 = vmatprep.subr.bf16.mxu0 %v13991_v33 }
 0x5b7   :  { %7858 = vmatprep.subr.bf16.mxu1 %v13994_v32 }
 0x5b9   :  { %7820 = vmatpush1.bf16.msra.mxu0 %v13989_v9 }
 0x5ba   :  { %7859 = vmatpush1.bf16.msra.mxu1 %v13992_v40  ;;  %7821 = vmatprep.subr.bf16.mxu0 %v13997_v19  ;;  %v14043_v40 = vld [vmem:[#allocation30 + $0x60] ss:$8 sps:$4 sm:$0xff]  }
 0x5bb   :  { %7860 = vmatprep.subr.bf16.mxu1 %v14000_v51  ;;  %v14046_v51 = vld [vmem:[#allocation30 + $0x150] ss:$8 sps:$4 sm:$0xff]  }
 0x5bd   :  { %7822 = vmatpush1.bf16.msra.mxu0 %v13995_v62  ;;  %v14051_v62 = vld [vmem:[#allocation30 + $0x74] ss:$8 sps:$4 sm:$0xff]  }
 0x5be   :  { %7861 = vmatpush1.bf16.msra.mxu1 %v13998_v25  ;;  %7823 = vmatprep.subr.bf16.mxu0 %v14003_v58  ;;  %v14054_v25 = vld [vmem:[#allocation30 + $0x164] ss:$8 sps:$4 sm:$0xff]  }
 0x5bf   :  { %7862 = vmatprep.subr.bf16.mxu1 %v14006_v42 }
 0x5c1   :  { %7824 = vmatpush1.bf16.msra.mxu0 %v14001_v61 }
 0x5c2   :  { %7863 = vmatpush1.bf16.msra.mxu1 %v14004_v36  ;;  %9031 = vmatprep.subr.bf16.mxu0 %v14009_v54  ;;  %v14049_v36 = vld [vmem:[#allocation30 + $0x70] ss:$8 sps:$4 sm:$0xff]  }
 0x5c3   :  { %7864 = vmatprep.subr.bf16.mxu1 %v14012_v28  ;;  %v14057_v28 = vld [vmem:[#allocation30 + $0x84] ss:$8 sps:$4 sm:$0xff]  }
 0x5c4   :  { %7826 = vmatmul.mubr.bf16.vlgmr.msra.gmra.mrb[116].mxu0 %v16505_v48  ;;  %v14063_v48 = vld [vmem:[#allocation30 + $0x94] ss:$8 sps:$4 sm:$0xff]  }
 0x5c5   :  { %9032 = vmatpush1.bf16.msra.mxu0 %v14007_v60  ;;  %9063 = vmatprep.mubr.bf16.mxu0 %v16506_v52  ;;  %v14066_v52 = vld [vmem:[#allocation30 + $0x184] ss:$8 sps:$4 sm:$0xff]  }
 0x5c6   :  { %7865 = vmatpush1.bf16.msra.mxu1 %v14010_v15  ;;  %9033 = vmatprep.subr.bf16.mxu0 %v14015_v57  ;;  %v14060_v15 = vld [vmem:[#allocation30 + $0x174] ss:$8 sps:$4 sm:$0xff]   ;;  %v14055_v57 = vld [vmem:[#allocation30 + $0x80] ss:$8 sps:$4 sm:$0xff]  }
 0x5c7   :  { %9072 = vmatprep.subr.bf16.mxu1 %v14018_v34  ;;  %v14058_v34 = vld [vmem:[#allocation30 + $0x170] ss:$8 sps:$4 sm:$0xff]  }
 0x5c9   :  { %7867 = vmatmul.mubr.bf16.vlgmr.msra.gmra.mrb[120].mxu1 %v16507_v43  ;;  %9034 = vmatpush1.bf16.msra.mxu0 %v14013_v30  ;;  %v14061_v30 = vld [vmem:[#allocation30 + $0x90] ss:$8 sps:$4 sm:$0xff]   ;;  %v14067_v43 = vld [vmem:[#allocation30 + $0xa0] ss:$8 sps:$4 sm:$0xff]  }
 0x5ca   :  { %9073 = vmatpush1.bf16.msra.mxu1 %v14016_v11  ;;  %9104 = vmatprep.mubr.bf16.mxu1 %v16508_v31  ;;  %v14064_v11 = vld [vmem:[#allocation30 + $0x180] ss:$8 sps:$4 sm:$0xff]   ;;  %v14075_v31 = vld [vmem:[#allocation30 + $0xb4] ss:$8 sps:$4 sm:$0xff]  }
 0x5cb   :  { %9035 = vmatprep.subr.bf16.mxu0 %v14021_v5  ;;  %9074 = vmatprep.subr.bf16.mxu1 %v14024_v49  ;;  %v14069_v5 = vld [vmem:[#allocation30 + $0xa4] ss:$8 sps:$4 sm:$0xff]   ;;  %v14072_v49 = vld [vmem:[#allocation30 + $0x194] ss:$8 sps:$4 sm:$0xff]  }
 0x5cd   :  { %9036 = vmatpush1.bf16.msra.mxu0 %v14019_v53  ;;  %v14070_v53 = vld [vmem:[#allocation30 + $0x190] ss:$8 sps:$4 sm:$0xff]  }
 0x5ce   :  { %9075 = vmatpush1.bf16.msra.mxu1 %v14022_v44  ;;  %9037 = vmatprep.subr.bf16.mxu0 %v14027_v39  ;;  %v14078_v44 = vld [vmem:[#allocation30 + $0x1a4] ss:$8 sps:$4 sm:$0xff]   ;;  %v14073_v39 = vld [vmem:[#allocation30 + $0xb0] ss:$8 sps:$4 sm:$0xff]  }
 0x5cf   :  { %9076 = vmatprep.subr.bf16.mxu1 %v14030_v6  ;;  %v14076_v6 = vld [vmem:[#allocation30 + $0x1a0] ss:$8 sps:$4 sm:$0xff]  }
 0x5d1   :  { %9038 = vmatpush1.bf16.msra.mxu0 %v14025_v2  ;;  %v14081_v2 = vld [vmem:[#allocation30 + $0xc4] ss:$8 sps:$4 sm:$0xff]  }
 0x5d2   :  { %9077 = vmatpush1.bf16.msra.mxu1 %v14028_v38  ;;  %9039 = vmatprep.subr.bf16.mxu0 %v14033_v21  ;;  %v14084_v38 = vld [vmem:[#allocation30 + $0x1b4] ss:$8 sps:$4 sm:$0xff]   ;;  %v14079_v21 = vld [vmem:[#allocation30 + $0xc0] ss:$8 sps:$4 sm:$0xff]  }
 0x5d3   :  { %9078 = vmatprep.subr.bf16.mxu1 %v14036_v27  ;;  %v14082_v27 = vld [vmem:[#allocation30 + $0x1b0] ss:$8 sps:$4 sm:$0xff]  }
 0x5d5   :  { %9040 = vmatpush1.bf16.msra.mxu0 %v14031_v29  ;;  %v14087_v29 = vld [vmem:[#allocation30 + $0xd4] ss:$8 sps:$4 sm:$0xff]  }
 0x5d6   :  { %9079 = vmatpush1.bf16.msra.mxu1 %v14034_v26  ;;  %9041 = vmatprep.subr.bf16.mxu0 %v14039_v46  ;;  %v14090_v26 = vld [vmem:[#allocation30 + $0x1c4] ss:$8 sps:$4 sm:$0xff]   ;;  %v14085_v46 = vld [vmem:[#allocation30 + $0xd0] ss:$8 sps:$4 sm:$0xff]  }
 0x5d7   :  { %v7581_v56 = vpop.f32.mrb[104].mxu0  ;;  %9080 = vmatprep.subr.bf16.mxu1 %v14042_v13  ;;  %v14088_v13 = vld [vmem:[#allocation30 + $0x1c0] ss:$8 sps:$4 sm:$0xff]  }
 0x5d8   :  { %v7582_v37 = vadd.f32 %v7581_v56, %v16096_v55  ;;  %v7583_v33 = vpop.f32.mrb[105].mxu0  ;;  %v14094_v56 = vld [vmem:[#allocation30 + $0x1d0] ss:$8 sps:$4 sm:$0xff]  }
 0x5d9   :  { %v7584_v32 = vadd.f32 %v7583_v33, %v16098_v18  ;;  %v7585_v9 = vpop.f32.mrb[106].mxu0  ;;  %9042 = vmatpush1.bf16.msra.mxu0 %v14037_v41  ;;  %v14052_v18 = vld [vmem:[#allocation30 + $0x160] ss:$8 sps:$4 sm:$0xff]   ;;  %v14093_v41 = vld [vmem:[#allocation30 + $0xe4] ss:$8 sps:$4 sm:$0xff]  }
 0x5da   :  { %v7586_v19 = vpop.f32.mrb[107].mxu0  ;;  %9081 = vmatpush1.bf16.msra.mxu1 %v14040_v23  ;;  %9043 = vmatprep.subr.bf16.mxu0 %v14045_v35  ;;  %v14096_v23 = vld [vmem:[#allocation30 + $0x1d4] ss:$8 sps:$4 sm:$0xff]   ;;  %v14091_v35 = vld [vmem:[#allocation30 + $0xe0] ss:$8 sps:$4 sm:$0xff]  }
 0x5db   :  { %9082 = vmatprep.subr.bf16.mxu1 %v14048_v14  ;;  %v14099_v14 = vld [vmem:[#allocation30 + $0xf4] ss:$8 sps:$4 sm:$0xff]   ;;  %v14097_v33 = vld [vmem:[#allocation30 + $0xf0] ss:$8 sps:$4 sm:$0xff]   ;;  %v14105_v9 = vld [vmem:[#allocation30 + $0x204] ss:$8 sps:$4 sm:$0xff]  }
 0x5dc   :  { %v7622_v58 = vpop.f32.mrb[108].mxu1  ;;  %v14103_v19 = vld [vmem:[#allocation30 + $0x200] ss:$8 sps:$4 sm:$0xff]  }
 0x5dd   :  { %v16110_v42 = vadd.f32 %v7622_v58, %v7582_v37  ;;  %v7624_v61 = vpop.f32.mrb[109].mxu1  ;;  %9044 = vmatpush1.bf16.msra.mxu0 %v14043_v40  ;;  %v14102_v37 = vld [vmem:[#allocation30 + $0x1e4] ss:$8 sps:$4 sm:$0xff]   ;;  %v14108_v40 = vld [vmem:[#allocation30 + $0x1f4] ss:$8 sps:$4 sm:$0xff]   ;;  %v16509_v58 = vmax.bf16 %v15954_v12, %v15952_v24  ;;  %v16512_v24 = vmax.bf16 %v16006_v22, %v16004_v17 }
 0x5de   :  { %v16112_v55 = vadd.f32 %v7624_v61, %v7584_v32  ;;  %v7626_v54 = vpop.f32.mrb[110].mxu1  ;;  %9083 = vmatpush1.bf16.msra.mxu1 %v14046_v51  ;;  %9045 = vmatprep.subr.bf16.mxu0 %v14051_v62  ;;  %v14100_v32 = vld [vmem:[#allocation30 + $0x1e0] ss:$8 sps:$4 sm:$0xff]   ;;  %v14106_v51 = vld [vmem:[#allocation30 + $0x1f0] ss:$8 sps:$4 sm:$0xff]   ;;  %v16510_v61 = vmax.bf16 %v15986_v47, %v15984_v3 }
 0x5df   :  { %v7627_v60 = vpop.f32.mrb[111].mxu1  ;;  %9084 = vmatprep.subr.bf16.mxu1 %v14054_v25  ;;  %v14111_v62 = vld [vmem:[#allocation30 + $0x214] ss:$8 sps:$4 sm:$0xff]   ;;  %v14114_v25 = vld [vmem:[#allocation30 + $0x304] ss:$8 sps:$4 sm:$0xff]  }
 0x5e0   :  { %v14112_v54 = vld [vmem:[#allocation30 + $0x300] ss:$8 sps:$4 sm:$0xff]   ;;  %v16511_v60 = vmax.bf16 %v15973_v7, %v15971_v20  ;;  %v14118_v47 = vld [vmem:[#allocation30 + $0x310] ss:$8 sps:$4 sm:$0xff]   ;;  %v14123_v12 = vld [vmem:[#allocation30 + $0x234] ss:$8 sps:$4 sm:$0xff]  }
 0x5e1   :  { %9046 = vmatpush1.bf16.msra.mxu0 %v14049_v36  ;;  %v14109_v36 = vld [vmem:[#allocation30 + $0x210] ss:$8 sps:$4 sm:$0xff]   ;;  %v14126_v3 = vld [vmem:[#allocation30 + $0x324] ss:$8 sps:$4 sm:$0xff]   ;;  %v14132_v20 = vld [vmem:[#allocation30 + $0x334] ss:$8 sps:$4 sm:$0xff]  }
 0x5e2   :  { %9085 = vmatpush1.bf16.msra.mxu1 %v14052_v18  ;;  %9047 = vmatprep.subr.bf16.mxu0 %v14057_v28  ;;  %v14117_v18 = vld [vmem:[#allocation30 + $0x224] ss:$8 sps:$4 sm:$0xff]   ;;  %v14120_v28 = vld [vmem:[#allocation30 + $0x314] ss:$8 sps:$4 sm:$0xff]   ;;  %v14127_v7 = vld [vmem:[#allocation30 + $0x240] ss:$8 sps:$4 sm:$0xff]  }
 0x5e3   :  { %9086 = vmatprep.subr.bf16.mxu1 %v14060_v15  ;;  %v14115_v15 = vld [vmem:[#allocation30 + $0x220] ss:$8 sps:$4 sm:$0xff]   ;;  %v14135_v17 = vld [vmem:[#allocation30 + $0x254] ss:$8 sps:$4 sm:$0xff]   ;;  %v14138_v22 = vld [vmem:[#allocation30 + $0x344] ss:$8 sps:$4 sm:$0xff]  }
 0x5e5   :  { %9048 = vmatpush1.bf16.msra.mxu0 %v14055_v57  ;;  %v14121_v57 = vld [vmem:[#allocation30 + $0x230] ss:$8 sps:$4 sm:$0xff]  }
 0x5e6   :  { %9087 = vmatpush1.bf16.msra.mxu1 %v14058_v34  ;;  %9049 = vmatprep.subr.bf16.mxu0 %v14063_v48  ;;  %v14124_v34 = vld [vmem:[#allocation30 + $0x320] ss:$8 sps:$4 sm:$0xff]   ;;  %v14129_v48 = vld [vmem:[#allocation30 + $0x244] ss:$8 sps:$4 sm:$0xff]  }
 0x5e7   :  { %9088 = vmatprep.subr.bf16.mxu1 %v14066_v52  ;;  %v14130_v52 = vld [vmem:[#allocation30 + $0x330] ss:$8 sps:$4 sm:$0xff]  }
 0x5e9   :  { %9050 = vmatpush1.bf16.msra.mxu0 %v14061_v30  ;;  %v14133_v30 = vld [vmem:[#allocation30 + $0x250] ss:$8 sps:$4 sm:$0xff]  }
 0x5ea   :  { %9089 = vmatpush1.bf16.msra.mxu1 %v14064_v11  ;;  %9051 = vmatprep.subr.bf16.mxu0 %v14069_v5  ;;  %v14136_v11 = vld [vmem:[#allocation30 + $0x340] ss:$8 sps:$4 sm:$0xff]   ;;  %v14141_v5 = vld [vmem:[#allocation30 + $0x264] ss:$8 sps:$4 sm:$0xff]  }
 0x5eb   :  { %9090 = vmatprep.subr.bf16.mxu1 %v14072_v49 }
 0x5ed   :  { %9052 = vmatpush1.bf16.msra.mxu0 %v14067_v43  ;;  %v14144_v43 = vld [vmem:[#allocation30 + $0x354] ss:$8 sps:$4 sm:$0xff]  }
 0x5ee   :  { %9091 = vmatpush1.bf16.msra.mxu1 %v14070_v53  ;;  %9053 = vmatprep.subr.bf16.mxu0 %v14075_v31 }
 0x5ef   :  { %9092 = vmatprep.subr.bf16.mxu1 %v14078_v44 }
 0x5f1   :  { %9054 = vmatpush1.bf16.msra.mxu0 %v14073_v39 }
 0x5f2   :  { %9093 = vmatpush1.bf16.msra.mxu1 %v14076_v6  ;;  %9055 = vmatprep.subr.bf16.mxu0 %v14081_v2  ;;  %v14139_v6 = vld [vmem:[#allocation30 + $0x260] ss:$8 sps:$4 sm:$0xff]  }
 0x5f3   :  { %9094 = vmatprep.subr.bf16.mxu1 %v14084_v38  ;;  %v14142_v38 = vld [vmem:[#allocation30 + $0x350] ss:$8 sps:$4 sm:$0xff]  }
 0x5f5   :  { %9056 = vmatpush1.bf16.msra.mxu0 %v14079_v21  ;;  %v14147_v21 = vld [vmem:[#allocation30 + $0x274] ss:$8 sps:$4 sm:$0xff]  }
 0x5f6   :  { %9095 = vmatpush1.bf16.msra.mxu1 %v14082_v27  ;;  %9057 = vmatprep.subr.bf16.mxu0 %v14087_v29  ;;  %v14150_v27 = vld [vmem:[#allocation30 + $0x364] ss:$8 sps:$4 sm:$0xff]  }
 0x5f7   :  { %9096 = vmatprep.subr.bf16.mxu1 %v14090_v26 }
 0x5f9   :  { %9058 = vmatpush1.bf16.msra.mxu0 %v14085_v46 }
 0x5fa   :  { %9097 = vmatpush1.bf16.msra.mxu1 %v14088_v13  ;;  %9059 = vmatprep.subr.bf16.mxu0 %v14093_v41  ;;  %v14145_v13 = vld [vmem:[#allocation30 + $0x270] ss:$8 sps:$4 sm:$0xff]  }
 0x5fb   :  { %9098 = vmatprep.subr.bf16.mxu1 %v14096_v23  ;;  %v14153_v23 = vld [vmem:[#allocation30 + $0x284] ss:$8 sps:$4 sm:$0xff]  }
 0x5fd   :  { %9060 = vmatpush1.bf16.msra.mxu0 %v14091_v35 }
 0x5fe   :  { %9099 = vmatpush1.bf16.msra.mxu1 %v14094_v56  ;;  %9061 = vmatprep.subr.bf16.mxu0 %v14099_v14  ;;  %v14156_v56 = vld [vmem:[#allocation30 + $0x374] ss:$8 sps:$4 sm:$0xff]   ;;  %v14151_v14 = vld [vmem:[#allocation30 + $0x280] ss:$8 sps:$4 sm:$0xff]  }
 0x5ff   :  { %9100 = vmatprep.subr.bf16.mxu1 %v14102_v37  ;;  %v14154_v37 = vld [vmem:[#allocation30 + $0x370] ss:$8 sps:$4 sm:$0xff]  }
 0x601   :  { %9062 = vmatpush1.bf16.msra.mxu0 %v14097_v33  ;;  %v14159_v33 = vld [vmem:[#allocation30 + $0x294] ss:$8 sps:$4 sm:$0xff]  }
 0x602   :  { %9101 = vmatpush1.bf16.msra.mxu1 %v14100_v32  ;;  %9113 = vmatprep.subr.bf16.mxu0 %v14105_v9  ;;  %v14162_v32 = vld [vmem:[#allocation30 + $0x384] ss:$8 sps:$4 sm:$0xff]   ;;  %v14157_v9 = vld [vmem:[#allocation30 + $0x290] ss:$8 sps:$4 sm:$0xff]  }
 0x603   :  { %9102 = vmatprep.subr.bf16.mxu1 %v14108_v40  ;;  %v14160_v40 = vld [vmem:[#allocation30 + $0x380] ss:$8 sps:$4 sm:$0xff]  }
 0x604   :  { %9064 = vmatmul.mubr.bf16.vlgmr.msra.gmra.mrb[120].mxu0 %v16509_v58  ;;  %v14171_v58 = vld [vmem:[#allocation30 + $0x2b4] ss:$8 sps:$4 sm:$0xff]  }
 0x605   :  { %9114 = vmatpush1.bf16.msra.mxu0 %v14103_v19  ;;  %9145 = vmatprep.mubr.bf16.mxu0 %v16510_v61  ;;  %v14165_v19 = vld [vmem:[#allocation30 + $0x2a4] ss:$8 sps:$4 sm:$0xff]  }
 0x606   :  { %9103 = vmatpush1.bf16.msra.mxu1 %v14106_v51  ;;  %9115 = vmatprep.subr.bf16.mxu0 %v14111_v62  ;;  %v14168_v51 = vld [vmem:[#allocation30 + $0x394] ss:$8 sps:$4 sm:$0xff]   ;;  %v14163_v62 = vld [vmem:[#allocation30 + $0x2a0] ss:$8 sps:$4 sm:$0xff]   ;;  %v14174_v61 = vld [vmem:[#allocation30 + $0x3a4] ss:$8 sps:$4 sm:$0xff]  }
 0x607   :  { %9154 = vmatprep.subr.bf16.mxu1 %v14114_v25  ;;  %v14166_v25 = vld [vmem:[#allocation30 + $0x390] ss:$8 sps:$4 sm:$0xff]  }
 0x609   :  { %9105 = vmatmul.mubr.bf16.vlgmr.msra.gmra.mrb[124].mxu1 %v16511_v60  ;;  %9116 = vmatpush1.bf16.msra.mxu0 %v14109_v36  ;;  %v14169_v36 = vld [vmem:[#allocation30 + $0x2b0] ss:$8 sps:$4 sm:$0xff]   ;;  %v14175_v60 = vld [vmem:[#allocation30 + $0x2c0] ss:$8 sps:$4 sm:$0xff]  }
 0x60a   :  { %9155 = vmatpush1.bf16.msra.mxu1 %v14112_v54  ;;  %9186 = vmatprep.mubr.bf16.mxu1 %v16512_v24  ;;  %v14172_v54 = vld [vmem:[#allocation30 + $0x3a0] ss:$8 sps:$4 sm:$0xff]   ;;  %v14183_v24 = vld [vmem:[#allocation30 + $0x2d4] ss:$8 sps:$4 sm:$0xff]  }
 0x60b   :  { %9117 = vmatprep.subr.bf16.mxu0 %v14117_v18  ;;  %9156 = vmatprep.subr.bf16.mxu1 %v14120_v28  ;;  %v14177_v18 = vld [vmem:[#allocation30 + $0x2c4] ss:$8 sps:$4 sm:$0xff]   ;;  %v14180_v28 = vld [vmem:[#allocation30 + $0x3b4] ss:$8 sps:$4 sm:$0xff]  }
 0x60d   :  { %9118 = vmatpush1.bf16.msra.mxu0 %v14115_v15  ;;  %v14178_v15 = vld [vmem:[#allocation30 + $0x3b0] ss:$8 sps:$4 sm:$0xff]  }
 0x60e   :  { %9157 = vmatpush1.bf16.msra.mxu1 %v14118_v47  ;;  %9119 = vmatprep.subr.bf16.mxu0 %v14123_v12  ;;  %v14186_v47 = vld [vmem:[#allocation30 + $0x3c4] ss:$8 sps:$4 sm:$0xff]   ;;  %v14181_v12 = vld [vmem:[#allocation30 + $0x2d0] ss:$8 sps:$4 sm:$0xff]  }
 0x60f   :  { %9158 = vmatprep.subr.bf16.mxu1 %v14126_v3  ;;  %v14184_v3 = vld [vmem:[#allocation30 + $0x3c0] ss:$8 sps:$4 sm:$0xff]  }
 0x611   :  { %9120 = vmatpush1.bf16.msra.mxu0 %v14121_v57  ;;  %v14189_v57 = vld [vmem:[#allocation30 + $0x2e4] ss:$8 sps:$4 sm:$0xff]  }
 0x612   :  { %9159 = vmatpush1.bf16.msra.mxu1 %v14124_v34  ;;  %9121 = vmatprep.subr.bf16.mxu0 %v14129_v48  ;;  %v14192_v34 = vld [vmem:[#allocation30 + $0x3d4] ss:$8 sps:$4 sm:$0xff]   ;;  %v14187_v48 = vld [vmem:[#allocation30 + $0x2e0] ss:$8 sps:$4 sm:$0xff]  }
 0x613   :  { %9160 = vmatprep.subr.bf16.mxu1 %v14132_v20  ;;  %v14190_v20 = vld [vmem:[#allocation30 + $0x3d0] ss:$8 sps:$4 sm:$0xff]  }
 0x615   :  { %9122 = vmatpush1.bf16.msra.mxu0 %v14127_v7  ;;  %v14195_v7 = vld [vmem:[#allocation30 + $0x2f4] ss:$8 sps:$4 sm:$0xff]  }
 0x616   :  { %9161 = vmatpush1.bf16.msra.mxu1 %v14130_v52  ;;  %9123 = vmatprep.subr.bf16.mxu0 %v14135_v17  ;;  %v14198_v52 = vld [vmem:[#allocation30 + $0x3e4] ss:$8 sps:$4 sm:$0xff]   ;;  %v14193_v17 = vld [vmem:[#allocation30 + $0x2f0] ss:$8 sps:$4 sm:$0xff]  }
 0x617   :  { %v7663_v49 = vpop.f32.mrb[108].mxu0  ;;  %9162 = vmatprep.subr.bf16.mxu1 %v14138_v22  ;;  %v14196_v22 = vld [vmem:[#allocation30 + $0x3e0] ss:$8 sps:$4 sm:$0xff]  }
 0x618   :  { %v7664_v53 = vadd.f32 %v7663_v49, %v16110_v42  ;;  %v7665_v31 = vpop.f32.mrb[109].mxu0  ;;  %v14202_v49 = vld [vmem:[#allocation30 + $0x3f0] ss:$8 sps:$4 sm:$0xff]  }
 0x619   :  { %v7666_v44 = vadd.f32 %v7665_v31, %v16112_v55  ;;  %v7667_v39 = vpop.f32.mrb[110].mxu0  ;;  %9124 = vmatpush1.bf16.msra.mxu0 %v14133_v30  ;;  %v14148_v55 = vld [vmem:[#allocation30 + $0x360] ss:$8 sps:$4 sm:$0xff]   ;;  %v14201_v30 = vld [vmem:[#allocation30 + $0x404] ss:$8 sps:$4 sm:$0xff]   ;;  %v16513_v31 = vmax.bf16 %v15990_v59, %v15988_v10 }
 0x61a   :  { %v7668_v2 = vpop.f32.mrb[111].mxu0  ;;  %9163 = vmatpush1.bf16.msra.mxu1 %v14136_v11  ;;  %9125 = vmatprep.subr.bf16.mxu0 %v14141_v5  ;;  %v14204_v11 = vld [vmem:[#allocation30 + $0x3f4] ss:$8 sps:$4 sm:$0xff]   ;;  %v14199_v5 = vld [vmem:[#allocation30 + $0x400] ss:$8 sps:$4 sm:$0xff]  }
 0x61b   :  { %9164 = vmatprep.subr.bf16.mxu1 %v14144_v43  ;;  %v14207_v43 = vld [vmem:[#allocation30 + $0x414] ss:$8 sps:$4 sm:$0xff]   ;;  %v14208_v39 = vld [vmem:[#allocation29] ss:$8 sps:$4 sm:$0xff]  }
 0x61c   :  { %v7704_v29 = vpop.f32.mrb[112].mxu1  ;;  %v14216_v2 = vld [vmem:[#allocation29 + $0x14] ss:$8 sps:$4 sm:$0xff]   ;;  %v16517_v10 = vld [vmem:[#allocation54_spill] sm:$0xff] }
 0x61d   :  { %v16128_v26 = vadd.f32 %v7704_v29, %v7664_v53  ;;  %v7706_v46 = vpop.f32.mrb[113].mxu1  ;;  %9126 = vmatpush1.bf16.msra.mxu0 %v14139_v6  ;;  %v14210_v53 = vld [vmem:[#allocation29 + $0x4] ss:$8 sps:$4 sm:$0xff]   ;;  %v14211_v29 = vld [vmem:[#allocation30 + $0x420] ss:$8 sps:$4 sm:$0xff]  }
 0x61e   :  { %v16130_v42 = vadd.f32 %v7706_v46, %v7666_v44  ;;  %v7708_v41 = vpop.f32.mrb[114].mxu1  ;;  %9165 = vmatpush1.bf16.msra.mxu1 %v14142_v38  ;;  %9127 = vmatprep.subr.bf16.mxu0 %v14147_v21  ;;  %v14205_v44 = vld [vmem:[#allocation30 + $0x410] ss:$8 sps:$4 sm:$0xff]   ;;  %v14213_v6 = vld [vmem:[#allocation30 + $0x424] ss:$8 sps:$4 sm:$0xff]   ;;  %v16518_v59 = vld [vmem:[#allocation53_spill] sm:$0xff] }
 0x61f   :  { %v7709_v35 = vpop.f32.mrb[115].mxu1  ;;  %9166 = vmatprep.subr.bf16.mxu1 %v14150_v27  ;;  %v16514_v38 = vld [vmem:[#allocation72_spill] sm:$0xff]  ;;  %v16515_v21 = vld [vmem:[#allocation71_spill] sm:$0xff]  ;;  %v16519_v46 = vmax.bf16 %v16517_v10, %v16518_v59  ;;  %v14220_v41 = vld [vmem:[#allocation29 + $0x20] ss:$8 sps:$4 sm:$0xff]  }
 0x620   :  { %v16516_v27 = vmax.bf16 %v16514_v38, %v16515_v21  ;;  %v14223_v35 = vld [vmem:[#allocation30 + $0x440] ss:$8 sps:$4 sm:$0xff]   ;;  %v14274_v38 = vld [vmem:[#allocation29 + $0xb0] ss:$8 sps:$4 sm:$0xff]   ;;  %v14279_v21 = vld [vmem:[#allocation30 + $0x4d4] ss:$8 sps:$4 sm:$0xff]  }
 0x621   :  { %9128 = vmatpush1.bf16.msra.mxu0 %v14145_v13  ;;  %v14217_v13 = vld [vmem:[#allocation30 + $0x430] ss:$8 sps:$4 sm:$0xff]   ;;  %v14280_v10 = vld [vmem:[#allocation29 + $0xc0] ss:$8 sps:$4 sm:$0xff]   ;;  %v14285_v59 = vld [vmem:[#allocation30 + $0x4e4] ss:$8 sps:$4 sm:$0xff]  }
 0x622   :  { %9167 = vmatpush1.bf16.msra.mxu1 %v14148_v55  ;;  %9129 = vmatprep.subr.bf16.mxu0 %v14153_v23  ;;  %v14225_v55 = vld [vmem:[#allocation30 + $0x444] ss:$8 sps:$4 sm:$0xff]   ;;  %v14228_v23 = vld [vmem:[#allocation29 + $0x34] ss:$8 sps:$4 sm:$0xff]  }
 0x623   :  { %9168 = vmatprep.subr.bf16.mxu1 %v14156_v56  ;;  %v14226_v56 = vld [vmem:[#allocation29 + $0x30] ss:$8 sps:$4 sm:$0xff]  }
 0x625   :  { %9130 = vmatpush1.bf16.msra.mxu0 %v14151_v14  ;;  %v14231_v14 = vld [vmem:[#allocation30 + $0x454] ss:$8 sps:$4 sm:$0xff]  }
 0x626   :  { %9169 = vmatpush1.bf16.msra.mxu1 %v14154_v37  ;;  %9131 = vmatprep.subr.bf16.mxu0 %v14159_v33  ;;  %v14234_v37 = vld [vmem:[#allocation29 + $0x44] ss:$8 sps:$4 sm:$0xff]   ;;  %v14229_v33 = vld [vmem:[#allocation30 + $0x450] ss:$8 sps:$4 sm:$0xff]  }
 0x627   :  { %9170 = vmatprep.subr.bf16.mxu1 %v14162_v32  ;;  %v14232_v32 = vld [vmem:[#allocation29 + $0x40] ss:$8 sps:$4 sm:$0xff]  }
 0x629   :  { %9132 = vmatpush1.bf16.msra.mxu0 %v14157_v9  ;;  %v14237_v9 = vld [vmem:[#allocation30 + $0x464] ss:$8 sps:$4 sm:$0xff]  }
 0x62a   :  { %9171 = vmatpush1.bf16.msra.mxu1 %v14160_v40  ;;  %9133 = vmatprep.subr.bf16.mxu0 %v14165_v19  ;;  %v14240_v19 = vld [vmem:[#allocation29 + $0x54] ss:$8 sps:$4 sm:$0xff]  }
 0x62b   :  { %9172 = vmatprep.subr.bf16.mxu1 %v14168_v51 }
 0x62d   :  { %9134 = vmatpush1.bf16.msra.mxu0 %v14163_v62 }
 0x62e   :  { %9173 = vmatpush1.bf16.msra.mxu1 %v14166_v25  ;;  %9135 = vmatprep.subr.bf16.mxu0 %v14171_v58 }
 0x62f   :  { %9174 = vmatprep.subr.bf16.mxu1 %v14174_v61  ;;  %v14235_v61 = vld [vmem:[#allocation30 + $0x460] ss:$8 sps:$4 sm:$0xff]  }
 0x631   :  { %9136 = vmatpush1.bf16.msra.mxu0 %v14169_v36 }
 0x632   :  { %9175 = vmatpush1.bf16.msra.mxu1 %v14172_v54  ;;  %9137 = vmatprep.subr.bf16.mxu0 %v14177_v18  ;;  %v14238_v54 = vld [vmem:[#allocation29 + $0x50] ss:$8 sps:$4 sm:$0xff]   ;;  %v14243_v18 = vld [vmem:[#allocation30 + $0x474] ss:$8 sps:$4 sm:$0xff]  }
 0x633   :  { %9176 = vmatprep.subr.bf16.mxu1 %v14180_v28  ;;  %v14246_v28 = vld [vmem:[#allocation29 + $0x64] ss:$8 sps:$4 sm:$0xff]  }
 0x635   :  { %9138 = vmatpush1.bf16.msra.mxu0 %v14175_v60 }
 0x636   :  { %9177 = vmatpush1.bf16.msra.mxu1 %v14178_v15  ;;  %9139 = vmatprep.subr.bf16.mxu0 %v14183_v24 }
 0x637   :  { %9178 = vmatprep.subr.bf16.mxu1 %v14186_v47  ;;  %v14241_v47 = vld [vmem:[#allocation30 + $0x470] ss:$8 sps:$4 sm:$0xff]  }
 0x639   :  { %9140 = vmatpush1.bf16.msra.mxu0 %v14181_v12 }
 0x63a   :  { %9179 = vmatpush1.bf16.msra.mxu1 %v14184_v3  ;;  %9141 = vmatprep.subr.bf16.mxu0 %v14189_v57  ;;  %v14249_v3 = vld [vmem:[#allocation30 + $0x484] ss:$8 sps:$4 sm:$0xff]  }
 0x63b   :  { %9180 = vmatprep.subr.bf16.mxu1 %v14192_v34  ;;  %v14252_v34 = vld [vmem:[#allocation29 + $0x74] ss:$8 sps:$4 sm:$0xff]  }
 0x63d   :  { %9142 = vmatpush1.bf16.msra.mxu0 %v14187_v48  ;;  %v14247_v48 = vld [vmem:[#allocation30 + $0x480] ss:$8 sps:$4 sm:$0xff]  }
 0x63e   :  { %9181 = vmatpush1.bf16.msra.mxu1 %v14190_v20  ;;  %9143 = vmatprep.subr.bf16.mxu0 %v14195_v7  ;;  %v14250_v20 = vld [vmem:[#allocation29 + $0x70] ss:$8 sps:$4 sm:$0xff]   ;;  %v14255_v7 = vld [vmem:[#allocation30 + $0x494] ss:$8 sps:$4 sm:$0xff]  }
 0x63f   :  { %9182 = vmatprep.subr.bf16.mxu1 %v14198_v52  ;;  %v14258_v52 = vld [vmem:[#allocation29 + $0x84] ss:$8 sps:$4 sm:$0xff]  }
 0x641   :  { %9144 = vmatpush1.bf16.msra.mxu0 %v14193_v17  ;;  %v14253_v17 = vld [vmem:[#allocation30 + $0x490] ss:$8 sps:$4 sm:$0xff]  }
 0x642   :  { %9183 = vmatpush1.bf16.msra.mxu1 %v14196_v22  ;;  %9195 = vmatprep.subr.bf16.mxu0 %v14201_v30  ;;  %v14256_v22 = vld [vmem:[#allocation29 + $0x80] ss:$8 sps:$4 sm:$0xff]   ;;  %v14261_v30 = vld [vmem:[#allocation30 + $0x4a4] ss:$8 sps:$4 sm:$0xff]  }
 0x643   :  { %9184 = vmatprep.subr.bf16.mxu1 %v14204_v11  ;;  %v14264_v11 = vld [vmem:[#allocation29 + $0x94] ss:$8 sps:$4 sm:$0xff]  }
 0x644   :  { %9146 = vmatmul.mubr.bf16.vlgmr.msra.gmra.mrb[124].mxu0 %v16513_v31  ;;  %v14265_v31 = vld [vmem:[#allocation30 + $0x4b0] ss:$8 sps:$4 sm:$0xff]  }
 0x645   :  { %9196 = vmatpush1.bf16.msra.mxu0 %v14199_v5  ;;  %9227 = vmatprep.mubr.bf16.mxu0 %v8070_v16  ;;  %v14222_v16 = vld [vmem:[#allocation29 + $0x24] ss:$8 sps:$4 sm:$0xff]   ;;  %v14259_v5 = vld [vmem:[#allocation30 + $0x4a0] ss:$8 sps:$4 sm:$0xff]  }
 0x646   :  { %9185 = vmatpush1.bf16.msra.mxu1 %v14202_v49  ;;  %9197 = vmatprep.subr.bf16.mxu0 %v14207_v43  ;;  %v14262_v49 = vld [vmem:[#allocation29 + $0x90] ss:$8 sps:$4 sm:$0xff]   ;;  %v14267_v43 = vld [vmem:[#allocation30 + $0x4b4] ss:$8 sps:$4 sm:$0xff]  }
 0x647   :  { %10036 = vmatprep.subr.bf16.mxu1 %v14210_v53  ;;  %v14270_v53 = vld [vmem:[#allocation29 + $0xa4] ss:$8 sps:$4 sm:$0xff]  }
 0x649   :  { %9187 = vmatmul.mubr.bf16.vlgmr.msra.gmra.mrb[128].mxu1 %v16516_v27  ;;  %9198 = vmatpush1.bf16.msra.mxu0 %v14205_v44  ;;  %v14268_v44 = vld [vmem:[#allocation29 + $0xa0] ss:$8 sps:$4 sm:$0xff]   ;;  %v14282_v27 = vld [vmem:[#allocation29 + $0xc4] ss:$8 sps:$4 sm:$0xff]  }
 0x64a   :  { %10037 = vmatpush1.bf16.msra.mxu1 %v14208_v39  ;;  %10068 = vmatprep.mubr.bf16.mxu1 %v16519_v46  ;;  %v14273_v39 = vld [vmem:[#allocation30 + $0x4c4] ss:$8 sps:$4 sm:$0xff]   ;;  %v14288_v46 = vld [vmem:[#allocation29 + $0xd4] ss:$8 sps:$4 sm:$0xff]  }
 0x64b   :  { %9199 = vmatprep.subr.bf16.mxu0 %v14213_v6  ;;  %10038 = vmatprep.subr.bf16.mxu1 %v14216_v2  ;;  %v14276_v6 = vld [vmem:[#allocation29 + $0xb4] ss:$8 sps:$4 sm:$0xff]   ;;  %v14271_v2 = vld [vmem:[#allocation30 + $0x4c0] ss:$8 sps:$4 sm:$0xff]  }
 0x64d   :  { %9200 = vmatpush1.bf16.msra.mxu0 %v14211_v29  ;;  %v14277_v29 = vld [vmem:[#allocation30 + $0x4d0] ss:$8 sps:$4 sm:$0xff]  }
 0x64e   :  { %10039 = vmatpush1.bf16.msra.mxu1 %v14214_v0  ;;  %9201 = vmatprep.subr.bf16.mxu0 %v14219_v1  ;;  %v14283_v0 = vld [vmem:[#allocation30 + $0x4e0] ss:$8 sps:$4 sm:$0xff]   ;;  %v14286_v1 = vld [vmem:[#allocation29 + $0xd0] ss:$8 sps:$4 sm:$0xff]  }
 0x64f   :  { %10040 = vmatprep.subr.bf16.mxu1 %v14222_v16  ;;  %v14291_v16 = vld [vmem:[#allocation30 + $0x4f4] ss:$8 sps:$4 sm:$0xff]  }
 0x651   :  { %9202 = vmatpush1.bf16.msra.mxu0 %v14217_v13  ;;  %v14294_v13 = vld [vmem:[#allocation29 + $0xe4] ss:$8 sps:$4 sm:$0xff]  }
 0x652   :  { %10041 = vmatpush1.bf16.msra.mxu1 %v14220_v41  ;;  %9203 = vmatprep.subr.bf16.mxu0 %v14225_v55  ;;  %v14289_v41 = vld [vmem:[#allocation30 + $0x4f0] ss:$8 sps:$4 sm:$0xff]   ;;  %v14292_v55 = vld [vmem:[#allocation29 + $0xe0] ss:$8 sps:$4 sm:$0xff]  }
 0x653   :  { %10042 = vmatprep.subr.bf16.mxu1 %v14228_v23  ;;  %v14297_v23 = vld [vmem:[#allocation29 + $0x104] ss:$8 sps:$4 sm:$0xff]  }
 0x655   :  { %9204 = vmatpush1.bf16.msra.mxu0 %v14223_v35  ;;  %v14300_v35 = vld [vmem:[#allocation29 + $0xf4] ss:$8 sps:$4 sm:$0xff]  }
 0x656   :  { %10043 = vmatpush1.bf16.msra.mxu1 %v14226_v56  ;;  %9205 = vmatprep.subr.bf16.mxu0 %v14231_v14  ;;  %v14295_v56 = vld [vmem:[#allocation29 + $0x100] ss:$8 sps:$4 sm:$0xff]   ;;  %v14298_v14 = vld [vmem:[#allocation29 + $0xf0] ss:$8 sps:$4 sm:$0xff]  }
 0x657   :  { %v7745_v40 = vpop.f32.mrb[112].mxu0  ;;  %10044 = vmatprep.subr.bf16.mxu1 %v14234_v37  ;;  %v14303_v37 = vld [vmem:[#allocation29 + $0x114] ss:$8 sps:$4 sm:$0xff]  }
 0x658   :  { %v7746_v51 = vadd.f32 %v7745_v40, %v16128_v26  ;;  %v7747_v62 = vpop.f32.mrb[113].mxu0 }
 0x659   :  { %v7748_v25 = vadd.f32 %v7747_v62, %v16130_v42  ;;  %v7749_v58 = vpop.f32.mrb[114].mxu0  ;;  %9206 = vmatpush1.bf16.msra.mxu0 %v14229_v33  ;;  %v14244_v42 = vld [vmem:[#allocation29 + $0x60] ss:$8 sps:$4 sm:$0xff]   ;;  %v14306_v33 = vld [vmem:[#allocation29 + $0x204] ss:$8 sps:$4 sm:$0xff]  }
 0x65a   :  { %v7750_v36 = vpop.f32.mrb[115].mxu0  ;;  %10045 = vmatpush1.bf16.msra.mxu1 %v14232_v32  ;;  %9207 = vmatprep.subr.bf16.mxu0 %v14237_v9  ;;  %v16520_v32 = vld [vmem:[#allocation58_spill] sm:$0xff]  ;;  %v16521_v9 = vld [vmem:[#allocation57_spill] sm:$0xff]  ;;  %v16523_v58 = vld [vmem:[#allocation52_spill] sm:$0xff] }
 0x65b   :  { %10046 = vmatprep.subr.bf16.mxu1 %v14240_v19  ;;  %v16522_v40 = vmax.bf16 %v16520_v32, %v16521_v9  ;;  %v14301_v19 = vld [vmem:[#allocation29 + $0x110] ss:$8 sps:$4 sm:$0xff]   ;;  %v14309_v62 = vld [vmem:[#allocation29 + $0x124] ss:$8 sps:$4 sm:$0xff]   ;;  %v14364_v32 = vld [vmem:[#allocation29 + $0x2a0] ss:$8 sps:$4 sm:$0xff]  }
 0x65c   :  { %v7786_v60 = vpop.f32.mrb[116].mxu1  ;;  %v14369_v9 = vld [vmem:[#allocation29 + $0x1c4] ss:$8 sps:$4 sm:$0xff]  }
 0x65d   :  { %v16146_v15 = vadd.f32 %v7786_v60, %v7746_v51  ;;  %v7788_v24 = vpop.f32.mrb[117].mxu1  ;;  %9208 = vmatpush1.bf16.msra.mxu0 %v14235_v61  ;;  %v14304_v51 = vld [vmem:[#allocation29 + $0x200] ss:$8 sps:$4 sm:$0xff]   ;;  %v16524_v61 = vld [vmem:[#allocation51_spill] sm:$0xff] }
 0x65e   :  { %v16148_v26 = vadd.f32 %v7788_v24, %v7748_v25  ;;  %v7790_v12 = vpop.f32.mrb[118].mxu1  ;;  %10047 = vmatpush1.bf16.msra.mxu1 %v14238_v54  ;;  %9209 = vmatprep.subr.bf16.mxu0 %v14243_v18  ;;  %v14312_v25 = vld [vmem:[#allocation29 + $0x214] ss:$8 sps:$4 sm:$0xff]   ;;  %v16525_v36 = vmax.bf16 %v16523_v58, %v16524_v61  ;;  %v14307_v54 = vld [vmem:[#allocation29 + $0x120] ss:$8 sps:$4 sm:$0xff]  }
 0x65f   :  { %v7791_v57 = vpop.f32.mrb[119].mxu1  ;;  %10048 = vmatprep.subr.bf16.mxu1 %v14246_v28  ;;  %v14310_v18 = vld [vmem:[#allocation29 + $0x210] ss:$8 sps:$4 sm:$0xff]   ;;  %v14315_v28 = vld [vmem:[#allocation29 + $0x134] ss:$8 sps:$4 sm:$0xff]  }
 0x660   :  { %v14318_v60 = vld [vmem:[#allocation29 + $0x224] ss:$8 sps:$4 sm:$0xff]   ;;  %v14313_v24 = vld [vmem:[#allocation29 + $0x130] ss:$8 sps:$4 sm:$0xff]   ;;  %v14376_v61 = vld [vmem:[#allocation29 + $0x2c0] ss:$8 sps:$4 sm:$0xff]  }
 0x661   :  { %9210 = vmatpush1.bf16.msra.mxu0 %v14241_v47  ;;  %v14316_v47 = vld [vmem:[#allocation29 + $0x220] ss:$8 sps:$4 sm:$0xff]   ;;  %v14321_v12 = vld [vmem:[#allocation29 + $0x144] ss:$8 sps:$4 sm:$0xff]   ;;  %v14322_v57 = vld [vmem:[#allocation29 + $0x230] ss:$8 sps:$4 sm:$0xff]  }
 0x662   :  { %10049 = vmatpush1.bf16.msra.mxu1 %v14244_v42  ;;  %9211 = vmatprep.subr.bf16.mxu0 %v14249_v3  ;;  %v14324_v42 = vld [vmem:[#allocation29 + $0x234] ss:$8 sps:$4 sm:$0xff]   ;;  %v14319_v3 = vld [vmem:[#allocation29 + $0x140] ss:$8 sps:$4 sm:$0xff]   ;;  %v14373_v58 = vld [vmem:[#allocation29 + $0x1d0] ss:$8 sps:$4 sm:$0xff]  }
 0x663   :  { %10050 = vmatprep.subr.bf16.mxu1 %v14252_v34  ;;  %v14327_v34 = vld [vmem:[#allocation29 + $0x154] ss:$8 sps:$4 sm:$0xff]  }
 0x665   :  { %9212 = vmatpush1.bf16.msra.mxu0 %v14247_v48  ;;  %v14330_v48 = vld [vmem:[#allocation29 + $0x244] ss:$8 sps:$4 sm:$0xff]  }
 0x666   :  { %10051 = vmatpush1.bf16.msra.mxu1 %v14250_v20  ;;  %9213 = vmatprep.subr.bf16.mxu0 %v14255_v7  ;;  %v14325_v20 = vld [vmem:[#allocation29 + $0x150] ss:$8 sps:$4 sm:$0xff]   ;;  %v14328_v7 = vld [vmem:[#allocation29 + $0x240] ss:$8 sps:$4 sm:$0xff]  }
 0x667   :  { %10052 = vmatprep.subr.bf16.mxu1 %v14258_v52  ;;  %v14333_v52 = vld [vmem:[#allocation29 + $0x164] ss:$8 sps:$4 sm:$0xff]  }
 0x669   :  { %9214 = vmatpush1.bf16.msra.mxu0 %v14253_v17 }
 0x66a   :  { %10053 = vmatpush1.bf16.msra.mxu1 %v14256_v22  ;;  %9215 = vmatprep.subr.bf16.mxu0 %v14261_v30  ;;  %v14336_v22 = vld [vmem:[#allocation29 + $0x254] ss:$8 sps:$4 sm:$0xff]  }
 0x66b   :  { %10054 = vmatprep.subr.bf16.mxu1 %v14264_v11 }
 0x66d   :  { %9216 = vmatpush1.bf16.msra.mxu0 %v14259_v5 }
 0x66e   :  { %10055 = vmatpush1.bf16.msra.mxu1 %v14262_v49  ;;  %9217 = vmatprep.subr.bf16.mxu0 %v14267_v43  ;;  %v14331_v43 = vld [vmem:[#allocation29 + $0x160] ss:$8 sps:$4 sm:$0xff]  }
 0x66f   :  { %10056 = vmatprep.subr.bf16.mxu1 %v14270_v53 }
 0x671   :  { %9218 = vmatpush1.bf16.msra.mxu0 %v14265_v31  ;;  %v14334_v31 = vld [vmem:[#allocation29 + $0x250] ss:$8 sps:$4 sm:$0xff]  }
 0x672   :  { %10057 = vmatpush1.bf16.msra.mxu1 %v14268_v44  ;;  %9219 = vmatprep.subr.bf16.mxu0 %v14273_v39  ;;  %v14339_v44 = vld [vmem:[#allocation29 + $0x174] ss:$8 sps:$4 sm:$0xff]   ;;  %v14342_v39 = vld [vmem:[#allocation29 + $0x264] ss:$8 sps:$4 sm:$0xff]  }
 0x673   :  { %10058 = vmatprep.subr.bf16.mxu1 %v14276_v6 }
 0x675   :  { %9220 = vmatpush1.bf16.msra.mxu0 %v14271_v2 }
 0x676   :  { %10059 = vmatpush1.bf16.msra.mxu1 %v14274_v38  ;;  %9221 = vmatprep.subr.bf16.mxu0 %v14279_v21  ;;  %v14337_v21 = vld [vmem:[#allocation29 + $0x170] ss:$8 sps:$4 sm:$0xff]  }
 0x677   :  { %10060 = vmatprep.subr.bf16.mxu1 %v14282_v27 }
 0x679   :  { %9222 = vmatpush1.bf16.msra.mxu0 %v14277_v29  ;;  %v14345_v29 = vld [vmem:[#allocation29 + $0x184] ss:$8 sps:$4 sm:$0xff]  }
 0x67a   :  { %10061 = vmatpush1.bf16.msra.mxu1 %v14280_v10  ;;  %9223 = vmatprep.subr.bf16.mxu0 %v14285_v59  ;;  %v14348_v59 = vld [vmem:[#allocation29 + $0x274] ss:$8 sps:$4 sm:$0xff]  }
 0x67b   :  { %10062 = vmatprep.subr.bf16.mxu1 %v14288_v46  ;;  %v14343_v46 = vld [vmem:[#allocation29 + $0x180] ss:$8 sps:$4 sm:$0xff]  }
 0x67d   :  { %9224 = vmatpush1.bf16.msra.mxu0 %v14283_v0  ;;  %v14346_v0 = vld [vmem:[#allocation29 + $0x270] ss:$8 sps:$4 sm:$0xff]  }
 0x67e   :  { %10063 = vmatpush1.bf16.msra.mxu1 %v14286_v1  ;;  %9225 = vmatprep.subr.bf16.mxu0 %v14291_v16  ;;  %v14351_v1 = vld [vmem:[#allocation29 + $0x194] ss:$8 sps:$4 sm:$0xff]   ;;  %v14354_v16 = vld [vmem:[#allocation29 + $0x284] ss:$8 sps:$4 sm:$0xff]  }
 0x67f   :  { %10064 = vmatprep.subr.bf16.mxu1 %v14294_v13  ;;  %v14349_v13 = vld [vmem:[#allocation29 + $0x190] ss:$8 sps:$4 sm:$0xff]  }
 0x681   :  { %9226 = vmatpush1.bf16.msra.mxu0 %v14289_v41  ;;  %v14352_v41 = vld [vmem:[#allocation29 + $0x280] ss:$8 sps:$4 sm:$0xff]  }
 0x682   :  { %10065 = vmatpush1.bf16.msra.mxu1 %v14292_v55  ;;  %10077 = vmatprep.subr.bf16.mxu0 %v14297_v23  ;;  %v14357_v55 = vld [vmem:[#allocation29 + $0x1a4] ss:$8 sps:$4 sm:$0xff]   ;;  %v14360_v23 = vld [vmem:[#allocation29 + $0x294] ss:$8 sps:$4 sm:$0xff]  }
 0x683   :  { %10066 = vmatprep.subr.bf16.mxu1 %v14300_v35  ;;  %v14355_v35 = vld [vmem:[#allocation29 + $0x1a0] ss:$8 sps:$4 sm:$0xff]  }
 0x684   :  { %9228 = vmatmul.mubr.bf16.vlgmr.msra.gmra.mrb[128].mxu0 %v8069_v45  ;;  %v16528_v45 = vmax.bf16 %v16526_v4, %v16527_v50  ;;  %v14379_v4 = vld [vmem:[#allocation29 + $0x1e0] ss:$8 sps:$4 sm:$0xff]   ;;  %v14382_v50 = vld [vmem:[#allocation29 + $0x2d0] ss:$8 sps:$4 sm:$0xff]  }
 0x685   :  { %10078 = vmatpush1.bf16.msra.mxu0 %v14295_v56  ;;  %10109 = vmatprep.mubr.bf16.mxu0 %v16522_v40  ;;  %v14358_v56 = vld [vmem:[#allocation29 + $0x290] ss:$8 sps:$4 sm:$0xff]   ;;  %v14372_v40 = vld [vmem:[#allocation29 + $0x2b4] ss:$8 sps:$4 sm:$0xff]  }
 0x686   :  { %10067 = vmatpush1.bf16.msra.mxu1 %v14298_v14  ;;  %10079 = vmatprep.subr.bf16.mxu0 %v14303_v37  ;;  %v14363_v14 = vld [vmem:[#allocation29 + $0x1b4] ss:$8 sps:$4 sm:$0xff]   ;;  %v14366_v37 = vld [vmem:[#allocation29 + $0x2a4] ss:$8 sps:$4 sm:$0xff]  }
 0x687   :  { %10118 = vmatprep.subr.bf16.mxu1 %v14306_v33  ;;  %v14361_v33 = vld [vmem:[#allocation29 + $0x1b0] ss:$8 sps:$4 sm:$0xff]  }
 0x689   :  { %10069 = vmatmul.mubr.bf16.vlgmr.msra.gmra.mrb[132].mxu1 %v16525_v36  ;;  %10080 = vmatpush1.bf16.msra.mxu0 %v14301_v19  ;;  %v14367_v19 = vld [vmem:[#allocation29 + $0x1c0] ss:$8 sps:$4 sm:$0xff]   ;;  %v14381_v36 = vld [vmem:[#allocation29 + $0x1e4] ss:$8 sps:$4 sm:$0xff]  }
 0x68a   :  { %10119 = vmatpush1.bf16.msra.mxu1 %v14304_v51  ;;  %10150 = vmatprep.mubr.bf16.mxu1 %v16528_v45  ;;  %v14370_v51 = vld [vmem:[#allocation29 + $0x2b0] ss:$8 sps:$4 sm:$0xff]   ;;  %v14387_v45 = vld [vmem:[#allocation29 + $0x1f4] ss:$8 sps:$4 sm:$0xff]  }
 0x68b   :  { %10081 = vmatprep.subr.bf16.mxu0 %v14309_v62  ;;  %10120 = vmatprep.subr.bf16.mxu1 %v14312_v25  ;;  %v14375_v62 = vld [vmem:[#allocation29 + $0x1d4] ss:$8 sps:$4 sm:$0xff]   ;;  %v14378_v25 = vld [vmem:[#allocation29 + $0x2c4] ss:$8 sps:$4 sm:$0xff]  }
 0x68d   :  { %10082 = vmatpush1.bf16.msra.mxu0 %v14307_v54  ;;  %v14384_v54 = vld [vmem:[#allocation29 + $0x2d4] ss:$8 sps:$4 sm:$0xff]  }
 0x68e   :  { %10121 = vmatpush1.bf16.msra.mxu1 %v14310_v18  ;;  %10083 = vmatprep.subr.bf16.mxu0 %v14315_v28  ;;  %v14390_v18 = vld [vmem:[#allocation29 + $0x2e4] ss:$8 sps:$4 sm:$0xff]   ;;  %v14385_v28 = vld [vmem:[#allocation29 + $0x1f0] ss:$8 sps:$4 sm:$0xff]  }
 0x68f   :  { %10122 = vmatprep.subr.bf16.mxu1 %v14318_v60  ;;  %v14388_v60 = vld [vmem:[#allocation29 + $0x2e0] ss:$8 sps:$4 sm:$0xff]  }
 0x691   :  { %10084 = vmatpush1.bf16.msra.mxu0 %v14313_v24  ;;  %v14393_v24 = vld [vmem:[#allocation29 + $0x304] ss:$8 sps:$4 sm:$0xff]  }
 0x692   :  { %10123 = vmatpush1.bf16.msra.mxu1 %v14316_v47  ;;  %10085 = vmatprep.subr.bf16.mxu0 %v14321_v12  ;;  %v14396_v47 = vld [vmem:[#allocation29 + $0x2f4] ss:$8 sps:$4 sm:$0xff]   ;;  %v14391_v12 = vld [vmem:[#allocation29 + $0x300] ss:$8 sps:$4 sm:$0xff]  }
 0x693   :  { %10124 = vmatprep.subr.bf16.mxu1 %v14324_v42  ;;  %v14394_v42 = vld [vmem:[#allocation29 + $0x2f0] ss:$8 sps:$4 sm:$0xff]  }
 0x695   :  { %10086 = vmatpush1.bf16.msra.mxu0 %v14319_v3  ;;  %v14399_v3 = vld [vmem:[#allocation29 + $0x314] ss:$8 sps:$4 sm:$0xff]  }
 0x696   :  { %10125 = vmatpush1.bf16.msra.mxu1 %v14322_v57  ;;  %10087 = vmatprep.subr.bf16.mxu0 %v14327_v34  ;;  %v14402_v57 = vld [vmem:[#allocation29 + $0x404] ss:$8 sps:$4 sm:$0xff]   ;;  %v16529_v34 = vld [vmem:[#allocation56_spill] sm:$0xff] }
 0x697   :  { %v7827_v17 = vpop.f32.mrb[116].mxu0  ;;  %10126 = vmatprep.subr.bf16.mxu1 %v14330_v48  ;;  %v16530_v48 = vld [vmem:[#allocation55_spill] sm:$0xff] }
 0x698   :  { %v7828_v30 = vadd.f32 %v7827_v17, %v16146_v15  ;;  %v7829_v11 = vpop.f32.mrb[117].mxu0 }
 0x699   :  { %v7830_v5 = vadd.f32 %v7829_v11, %v16148_v26  ;;  %v7831_v49 = vpop.f32.mrb[118].mxu0  ;;  %10088 = vmatpush1.bf16.msra.mxu0 %v14325_v20  ;;  %v14340_v26 = vld [vmem:[#allocation29 + $0x260] ss:$8 sps:$4 sm:$0xff]   ;;  %v16531_v20 = vmax.bf16 %v16529_v34, %v16530_v48  ;;  %v14405_v11 = vld [vmem:[#allocation29 + $0x324] ss:$8 sps:$4 sm:$0xff]  }
 0x69a   :  { %v7832_v53 = vpop.f32.mrb[119].mxu0  ;;  %10127 = vmatpush1.bf16.msra.mxu1 %v14328_v7  ;;  %10089 = vmatprep.subr.bf16.mxu0 %v14333_v52  ;;  %v16532_v7 = vld [vmem:[#allocation66_spill] sm:$0xff]  ;;  %v16533_v52 = vld [vmem:[#allocation65_spill] sm:$0xff]  ;;  %v16535_v49 = vld [vmem:[#allocation60_spill] sm:$0xff] }
 0x69b   :  { %10128 = vmatprep.subr.bf16.mxu1 %v14336_v22  ;;  %v16534_v17 = vmax.bf16 %v16532_v7, %v16533_v52  ;;  %v14397_v22 = vld [vmem:[#allocation29 + $0x310] ss:$8 sps:$4 sm:$0xff]   ;;  %v14459_v34 = vld [vmem:[#allocation29 + $0x3b4] ss:$8 sps:$4 sm:$0xff]   ;;  %v14462_v48 = vld [vmem:[#allocation29 + $0x4a4] ss:$8 sps:$4 sm:$0xff]  }
 0x69c   :  { %v7868_v6 = vpop.f32.mrb[120].mxu1  ;;  %v14457_v7 = vld [vmem:[#allocation29 + $0x3b0] ss:$8 sps:$4 sm:$0xff]   ;;  %v14460_v52 = vld [vmem:[#allocation29 + $0x4a0] ss:$8 sps:$4 sm:$0xff]  }
 0x69d   :  { %v16164_v2 = vadd.f32 %v7868_v6, %v7828_v30  ;;  %v7870_v38 = vpop.f32.mrb[121].mxu1  ;;  %10090 = vmatpush1.bf16.msra.mxu0 %v14331_v43  ;;  %v14400_v30 = vld [vmem:[#allocation29 + $0x400] ss:$8 sps:$4 sm:$0xff]   ;;  %v16536_v43 = vld [vmem:[#allocation59_spill] sm:$0xff] }
 0x69e   :  { %v16166_v15 = vadd.f32 %v7870_v38, %v7830_v5  ;;  %v7872_v27 = vpop.f32.mrb[122].mxu1  ;;  %10129 = vmatpush1.bf16.msra.mxu1 %v14334_v31  ;;  %10091 = vmatprep.subr.bf16.mxu0 %v14339_v44  ;;  %v14408_v5 = vld [vmem:[#allocation29 + $0x414] ss:$8 sps:$4 sm:$0xff]   ;;  %v16537_v53 = vmax.bf16 %v16535_v49, %v16536_v43  ;;  %v14403_v31 = vld [vmem:[#allocation29 + $0x320] ss:$8 sps:$4 sm:$0xff]  }
 0x69f   :  { %v7873_v10 = vpop.f32.mrb[123].mxu1  ;;  %10130 = vmatprep.subr.bf16.mxu1 %v14342_v39  ;;  %v16538_v44 = vld [vmem:[#allocation69_spill] sm:$0xff]  ;;  %v16539_v39 = vld [vmem:[#allocation70_spill] sm:$0xff]  ;;  %v14406_v38 = vld [vmem:[#allocation29 + $0x410] ss:$8 sps:$4 sm:$0xff]  }
 0x6a0   :  { %v16540_v6 = vmax.bf16 %v16538_v44, %v16539_v39  ;;  %v14414_v27 = vld [vmem:[#allocation29 + $0x424] ss:$8 sps:$4 sm:$0xff]   ;;  %v14471_v49 = vld [vmem:[#allocation29 + $0x3d4] ss:$8 sps:$4 sm:$0xff]   ;;  %v14469_v44 = vld [vmem:[#allocation29 + $0x3d0] ss:$8 sps:$4 sm:$0xff]  }
 0x6a1   :  { %10092 = vmatpush1.bf16.msra.mxu0 %v14337_v21  ;;  %v14411_v21 = vld [vmem:[#allocation29 + $0x334] ss:$8 sps:$4 sm:$0xff]   ;;  %v14417_v10 = vld [vmem:[#allocation29 + $0x344] ss:$8 sps:$4 sm:$0xff]   ;;  %v14472_v39 = vld [vmem:[#allocation29 + $0x4c0] ss:$8 sps:$4 sm:$0xff]  }
 0x6a2   :  { %10131 = vmatpush1.bf16.msra.mxu1 %v14340_v26  ;;  %10093 = vmatprep.subr.bf16.mxu0 %v14345_v29  ;;  %v14409_v26 = vld [vmem:[#allocation29 + $0x330] ss:$8 sps:$4 sm:$0xff]   ;;  %v14412_v29 = vld [vmem:[#allocation29 + $0x420] ss:$8 sps:$4 sm:$0xff]   ;;  %v14474_v43 = vld [vmem:[#allocation29 + $0x4c4] ss:$8 sps:$4 sm:$0xff]  }
 0x6a3   :  { %10132 = vmatprep.subr.bf16.mxu1 %v14348_v59  ;;  %v14420_v59 = vld [vmem:[#allocation29 + $0x434] ss:$8 sps:$4 sm:$0xff]  }
 0x6a5   :  { %10094 = vmatpush1.bf16.msra.mxu0 %v14343_v46  ;;  %v14415_v46 = vld [vmem:[#allocation29 + $0x340] ss:$8 sps:$4 sm:$0xff]  }
 0x6a6   :  { %10133 = vmatpush1.bf16.msra.mxu1 %v14346_v0  ;;  %10095 = vmatprep.subr.bf16.mxu0 %v14351_v1  ;;  %v14418_v0 = vld [vmem:[#allocation29 + $0x430] ss:$8 sps:$4 sm:$0xff]   ;;  %v14423_v1 = vld [vmem:[#allocation29 + $0x354] ss:$8 sps:$4 sm:$0xff]  }
 0x6a7   :  { %10134 = vmatprep.subr.bf16.mxu1 %v14354_v16  ;;  %v14426_v16 = vld [vmem:[#allocation29 + $0x444] ss:$8 sps:$4 sm:$0xff]  }
 0x6a9   :  { %10096 = vmatpush1.bf16.msra.mxu0 %v14349_v13  ;;  %v14421_v13 = vld [vmem:[#allocation29 + $0x350] ss:$8 sps:$4 sm:$0xff]  }
 0x6aa   :  { %10135 = vmatpush1.bf16.msra.mxu1 %v14352_v41  ;;  %10097 = vmatprep.subr.bf16.mxu0 %v14357_v55  ;;  %v14424_v41 = vld [vmem:[#allocation29 + $0x440] ss:$8 sps:$4 sm:$0xff]   ;;  %v14429_v55 = vld [vmem:[#allocation29 + $0x364] ss:$8 sps:$4 sm:$0xff]  }
 0x6ab   :  { %10136 = vmatprep.subr.bf16.mxu1 %v14360_v23 }
 0x6ad   :  { %10098 = vmatpush1.bf16.msra.mxu0 %v14355_v35  ;;  %v14432_v35 = vld [vmem:[#allocation29 + $0x454] ss:$8 sps:$4 sm:$0xff]  }
 0x6ae   :  { %10137 = vmatpush1.bf16.msra.mxu1 %v14358_v56  ;;  %10099 = vmatprep.subr.bf16.mxu0 %v14363_v14 }
 0x6af   :  { %10138 = vmatprep.subr.bf16.mxu1 %v14366_v37  ;;  %v14427_v37 = vld [vmem:[#allocation29 + $0x360] ss:$8 sps:$4 sm:$0xff]  }
 0x6b1   :  { %10100 = vmatpush1.bf16.msra.mxu0 %v14361_v33 }
 0x6b2   :  { %10139 = vmatpush1.bf16.msra.mxu1 %v14364_v32  ;;  %10101 = vmatprep.subr.bf16.mxu0 %v14369_v9  ;;  %v14430_v32 = vld [vmem:[#allocation29 + $0x450] ss:$8 sps:$4 sm:$0xff]   ;;  %v14435_v9 = vld [vmem:[#allocation29 + $0x374] ss:$8 sps:$4 sm:$0xff]  }
 0x6b3   :  { %10140 = vmatprep.subr.bf16.mxu1 %v14372_v40  ;;  %v14438_v40 = vld [vmem:[#allocation29 + $0x464] ss:$8 sps:$4 sm:$0xff]  }
 0x6b5   :  { %10102 = vmatpush1.bf16.msra.mxu0 %v14367_v19 }
 0x6b6   :  { %10141 = vmatpush1.bf16.msra.mxu1 %v14370_v51  ;;  %10103 = vmatprep.subr.bf16.mxu0 %v14375_v62 }
 0x6b7   :  { %10142 = vmatprep.subr.bf16.mxu1 %v14378_v25  ;;  %v14433_v25 = vld [vmem:[#allocation29 + $0x370] ss:$8 sps:$4 sm:$0xff]  }
 0x6b9   :  { %10104 = vmatpush1.bf16.msra.mxu0 %v14373_v58 }
 0x6ba   :  { %10143 = vmatpush1.bf16.msra.mxu1 %v14376_v61  ;;  %10105 = vmatprep.subr.bf16.mxu0 %v14381_v36  ;;  %v14436_v36 = vld [vmem:[#allocation29 + $0x460] ss:$8 sps:$4 sm:$0xff]  }
 0x6bb   :  { %10144 = vmatprep.subr.bf16.mxu1 %v14384_v54  ;;  %v14441_v54 = vld [vmem:[#allocation29 + $0x384] ss:$8 sps:$4 sm:$0xff]  }
 0x6bd   :  { %10106 = vmatpush1.bf16.msra.mxu0 %v14379_v4 }
 0x6be   :  { %10145 = vmatpush1.bf16.msra.mxu1 %v14382_v50  ;;  %10107 = vmatprep.subr.bf16.mxu0 %v14387_v45  ;;  %v14444_v50 = vld [vmem:[#allocation29 + $0x474] ss:$8 sps:$4 sm:$0xff]   ;;  %v14439_v45 = vld [vmem:[#allocation29 + $0x380] ss:$8 sps:$4 sm:$0xff]  }
 0x6bf   :  { %10146 = vmatprep.subr.bf16.mxu1 %v14390_v18  ;;  %v14442_v18 = vld [vmem:[#allocation29 + $0x470] ss:$8 sps:$4 sm:$0xff]  }
 0x6c1   :  { %10108 = vmatpush1.bf16.msra.mxu0 %v14385_v28  ;;  %v14447_v28 = vld [vmem:[#allocation29 + $0x394] ss:$8 sps:$4 sm:$0xff]  }
 0x6c2   :  { %10147 = vmatpush1.bf16.msra.mxu1 %v14388_v60  ;;  %10159 = vmatprep.subr.bf16.mxu0 %v14393_v24  ;;  %v14450_v60 = vld [vmem:[#allocation29 + $0x484] ss:$8 sps:$4 sm:$0xff]   ;;  %v14445_v24 = vld [vmem:[#allocation29 + $0x390] ss:$8 sps:$4 sm:$0xff]  }
 0x6c3   :  { %10148 = vmatprep.subr.bf16.mxu1 %v14396_v47  ;;  %v14448_v47 = vld [vmem:[#allocation29 + $0x480] ss:$8 sps:$4 sm:$0xff]  }
 0x6c4   :  { %10110 = vmatmul.mubr.bf16.vlgmr.msra.gmra.mrb[132].mxu0 %v16531_v20  ;;  %v2677_v20 = vlaneseq }
 0x6c5   :  { %10160 = vmatpush1.bf16.msra.mxu0 %v14391_v12  ;;  %10191 = vmatprep.mubr.bf16.mxu0 %v16534_v17  ;;  %v14453_v12 = vld [vmem:[#allocation29 + $0x3a4] ss:$8 sps:$4 sm:$0xff]  }
 0x6c6   :  { %10149 = vmatpush1.bf16.msra.mxu1 %v14394_v42  ;;  %10161 = vmatprep.subr.bf16.mxu0 %v14399_v3  ;;  %v14456_v42 = vld [vmem:[#allocation29 + $0x494] ss:$8 sps:$4 sm:$0xff]   ;;  %v14451_v3 = vld [vmem:[#allocation29 + $0x3a0] ss:$8 sps:$4 sm:$0xff]   ;;  %v14465_v17 = vld [vmem:[#allocation29 + $0x3c4] ss:$8 sps:$4 sm:$0xff]  }
 0x6c7   :  { %10200 = vmatprep.subr.bf16.mxu1 %v14402_v57  ;;  %v14454_v57 = vld [vmem:[#allocation29 + $0x490] ss:$8 sps:$4 sm:$0xff]  }
 0x6c9   :  { %10151 = vmatmul.mubr.bf16.vlgmr.msra.gmra.mrb[136].mxu1 %v16537_v53  ;;  %10162 = vmatpush1.bf16.msra.mxu0 %v14397_v22  ;;  %v14468_v22 = vld [vmem:[#allocation29 + $0x4b4] ss:$8 sps:$4 sm:$0xff]  }
 0x6ca   :  { %10201 = vmatpush1.bf16.msra.mxu1 %v14400_v30  ;;  %10232 = vmatprep.mubr.bf16.mxu1 %v16540_v6  ;;  %v16184_v30 = vshrl.u32 %v2677_v20, 7  ;;  %v16186_v53 = vld [vmem:[#allocation27] sm:$0x3]  ;;  %v14477_v6 = vld [vmem:[#allocation29 + $0x3e4] ss:$8 sps:$4 sm:$0xff]  }
 0x6cb   :  { %10163 = vmatprep.subr.bf16.mxu0 %v14405_v11  ;;  %10202 = vmatprep.subr.bf16.mxu1 %v14408_v5  ;;  %v14463_v11 = vld [vmem:[#allocation29 + $0x3c0] ss:$8 sps:$4 sm:$0xff]   ;;  %v14466_v5 = vld [vmem:[#allocation29 + $0x4b0] ss:$8 sps:$4 sm:$0xff]  }
 0x6cc   :  { %v14509_v20 = vld [vmem:[%s16409_s20 + $0x28] sm:$0xff]  }
 0x6cd   :  { %10164 = vmatpush1.bf16.msra.mxu0 %v14403_v31  ;;  %v16189_v31 = vsub.s32 1, %v16184_v30 }
 0x6ce   :  { %10203 = vmatpush1.bf16.msra.mxu1 %v14406_v38  ;;  %10165 = vmatprep.subr.bf16.mxu0 %v14411_v21  ;;  %v14480_v21 = vld [vmem:[#allocation29 + $0x4d4] ss:$8 sps:$4 sm:$0xff]  }
 0x6cf   :  { %10204 = vmatprep.subr.bf16.mxu1 %v14414_v27  ;;  %v7884_v38 = vrot.slane %v16186_v53, %v16189_v31  ;;  %v16193_v27 = vld [vmem:[#allocation23] sm:$0x3] }
 0x6d1   :  { %10166 = vmatpush1.bf16.msra.mxu0 %v14409_v26  ;;  %v14475_v26 = vld [vmem:[#allocation29 + $0x3e0] ss:$8 sps:$4 sm:$0xff]  }
 0x6d2   :  { %10205 = vmatpush1.bf16.msra.mxu1 %v14412_v29  ;;  %10167 = vmatprep.subr.bf16.mxu0 %v14417_v10  ;;  %v14478_v29 = vld [vmem:[#allocation29 + $0x4d0] ss:$8 sps:$4 sm:$0xff]   ;;  %v14483_v10 = vld [vmem:[#allocation29 + $0x3f4] ss:$8 sps:$4 sm:$0xff]  }
 0x6d3   :  { %10206 = vmatprep.subr.bf16.mxu1 %v14420_v59  ;;  %v7888_v59 = vadd.f32 %v7884_v38, %v16166_v15  ;;  %v14491_v15 = vld [vmem:[%s16409_s20] sm:$0xff]   ;;  %v14518_v38 = vld [vmem:[%s16408_s19 + $0x70] sm:$0xff]  }
 0x6d5   :  { %10168 = vmatpush1.bf16.msra.mxu0 %v14415_v46  ;;  %v14486_v46 = vld [vmem:[#allocation29 + $0x4e4] ss:$8 sps:$4 sm:$0xff]  }
 0x6d6   :  { %10207 = vmatpush1.bf16.msra.mxu1 %v14418_v0  ;;  %10169 = vmatprep.subr.bf16.mxu0 %v14423_v1  ;;  %v2684_v0 = vrot.slane %v16193_v27, %v16189_v31  ;;  %v14481_v1 = vld [vmem:[#allocation29 + $0x3f0] ss:$8 sps:$4 sm:$0xff]  }
 0x6d7   :  { %v9065_v23 = vpop.f32.mrb[120].mxu0  ;;  %10208 = vmatprep.subr.bf16.mxu1 %v14426_v16  ;;  %v14484_v16 = vld [vmem:[#allocation29 + $0x4e0] ss:$8 sps:$4 sm:$0xff]  }
 0x6d8   :  { %v9067_v56 = vpop.f32.mrb[121].mxu0 }
 0x6d9   :  { %v9069_v14 = vpop.f32.mrb[122].mxu0  ;;  %10170 = vmatpush1.bf16.msra.mxu0 %v14421_v13  ;;  %v14487_v13 = vld [vmem:[%s16409_s20 + $0x40] sm:$0xff]  }
 0x6da   :  { %v9070_v33 = vpop.f32.mrb[123].mxu0  ;;  %10209 = vmatpush1.bf16.msra.mxu1 %v14424_v41  ;;  %10171 = vmatprep.subr.bf16.mxu0 %v14429_v55  ;;  %v7890_v41 = vmax.f32 %v7888_v59, 0.0  ;;  %v14490_v55 = vld [vmem:[#allocation29 + $0x4f4] ss:$8 sps:$4 sm:$0xff]  }
 0x6db   :  { %10210 = vmatprep.subr.bf16.mxu1 %v14432_v35  ;;  %v14488_v35 = vld [vmem:[#allocation29 + $0x4f0] ss:$8 sps:$4 sm:$0xff]  }
 0x6dc   :  { %v9106_v19 = vpop.f32.mrb[124].mxu1  ;;  %v10292_v14 = vpack.c.bf16 %v7890_v41, %v7890_v41  ;;  %v14523_v41 = vld [vmem:[%s16410_s21] sm:$0xff]  }
 0x6dd   :  { %v16180_v51 = vadd.f32 %v9106_v19, %v9065_v23  ;;  %v9108_v62 = vpop.f32.mrb[125].mxu1  ;;  %10172 = vmatpush1.bf16.msra.mxu0 %v14427_v37  ;;  %v12749_v23 = vadd.f32 %v16048_v8, %v2684_v0  ;;  %v14494_v37 = vld [vmem:[%s16408_s19 + $0x40] sm:$0xff]   ;;  %v16541_v8 = vld [vmem:[#allocation64_spill] sm:$0xff] }
 0x6de   :  { %v16182_v58 = vadd.f32 %v9108_v62, %v9067_v56  ;;  %v9110_v61 = vpop.f32.mrb[126].mxu1  ;;  %10211 = vmatpush1.bf16.msra.mxu1 %v14430_v32  ;;  %10173 = vmatprep.subr.bf16.mxu0 %v14435_v9  ;;  %v14492_v56 = vld [vmem:[%s16409_s20 + $0x48] sm:$0xff]   ;;  %v14495_v19 = vld [vmem:[%s16408_s19] sm:$0xff]   ;;  %v14496_v62 = vld [vmem:[%s16409_s20 + $0x50] sm:$0xff]  }
 0x6df   :  { %v9111_v4 = vpop.f32.mrb[127].mxu1  ;;  %10212 = vmatprep.subr.bf16.mxu1 %v14438_v40  ;;  %v3214_v33 = vmax.f32 %v12749_v23, 0.0  ;;  %v16542_v32 = vld [vmem:[#allocation63_spill] sm:$0xff] }
 0x6e0   :  { %v16543_v9 = vmax.bf16 %v16541_v8, %v16542_v32  ;;  %v14493_v40 = vld [vmem:[%s16409_s20 + $0x8] sm:$0xff]   ;;  %v14529_v8 = vld [vmem:[%s16410_s21 + $0x18] sm:$0xff]  }
 0x6e1   :  { %10174 = vmatpush1.bf16.msra.mxu0 %v14433_v25  ;;  %v14498_v25 = vld [vmem:[%s16408_s19 + $0x48] sm:$0xff]   ;;  %v10258_v61 = vpack.c.bf16 %v3214_v33, %v3214_v33  ;;  %v14528_v33 = vld [vmem:[%s16410_s21 + $0x58] sm:$0xff]  }
 0x6e2   :  { %10213 = vmatpush1.bf16.msra.mxu1 %v14436_v36  ;;  %10175 = vmatprep.subr.bf16.mxu0 %v14441_v54  ;;  %v16544_v36 = vld [vmem:[#allocation68_spill] sm:$0xff]  ;;  %v16545_v54 = vld [vmem:[#allocation67_spill] sm:$0xff] }
 0x6e3   :  { %10214 = vmatprep.subr.bf16.mxu1 %v14444_v50  ;;  %v16546_v4 = vmax.bf16 %v16544_v36, %v16545_v54  ;;  %v14497_v50 = vld [vmem:[%s16409_s20 + $0x10] sm:$0xff]   ;;  %v14524_v23 = vld [vmem:[%s16410_s21 + $0x48] sm:$0xff]  }
 0x6e4   :  { %v14532_v54 = vld [vmem:[%s16410_s21 + $0x68] sm:$0xff]  }
 0x6e5   :  { %10176 = vmatpush1.bf16.msra.mxu0 %v14439_v45  ;;  %v14499_v45 = vld [vmem:[%s16408_s19 + $0x8] sm:$0xff]  }
 0x6e6   :  { %10215 = vmatpush1.bf16.msra.mxu1 %v14442_v18  ;;  %10177 = vmatprep.subr.bf16.mxu0 %v14447_v28  ;;  %v14500_v18 = vld [vmem:[%s16409_s20 + $0x58] sm:$0xff]   ;;  %v14502_v28 = vld [vmem:[%s16408_s19 + $0x50] sm:$0xff]  }
 0x6e7   :  { %10216 = vmatprep.subr.bf16.mxu1 %v14450_v60  ;;  %v14501_v60 = vld [vmem:[%s16409_s20 + $0x18] sm:$0xff]  }
 0x6e9   :  { %10178 = vmatpush1.bf16.msra.mxu0 %v14445_v24  ;;  %v14503_v24 = vld [vmem:[%s16408_s19 + $0x10] sm:$0xff]  }
 0x6ea   :  { %10217 = vmatpush1.bf16.msra.mxu1 %v14448_v47  ;;  %10179 = vmatprep.subr.bf16.mxu0 %v14453_v12  ;;  %v14504_v47 = vld [vmem:[%s16409_s20 + $0x60] sm:$0xff]   ;;  %v14506_v12 = vld [vmem:[%s16408_s19 + $0x58] sm:$0xff]  }
 0x6eb   :  { %10218 = vmatprep.subr.bf16.mxu1 %v14456_v42  ;;  %v14505_v42 = vld [vmem:[%s16409_s20 + $0x20] sm:$0xff]  }
 0x6ed   :  { %10180 = vmatpush1.bf16.msra.mxu0 %v14451_v3  ;;  %v14507_v3 = vld [vmem:[%s16408_s19 + $0x18] sm:$0xff]  }
 0x6ee   :  { %10219 = vmatpush1.bf16.msra.mxu1 %v14454_v57  ;;  %10181 = vmatprep.subr.bf16.mxu0 %v14459_v34  ;;  %v14508_v57 = vld [vmem:[%s16409_s20 + $0x68] sm:$0xff]   ;;  %v14510_v34 = vld [vmem:[%s16408_s19 + $0x60] sm:$0xff]  }
 0x6ef   :  { %10220 = vmatprep.subr.bf16.mxu1 %v14462_v48  ;;  %v16266_v48 = vsub.s32 0, %v16184_v30  ;;  %v14514_v30 = vld [vmem:[%s16408_s19 + $0x68] sm:$0xff]  }
 0x6f1   :  { %10182 = vmatpush1.bf16.msra.mxu0 %v14457_v7  ;;  %v7880_v7 = vrot.slane %v16186_v53, %v16266_v48  ;;  %v14513_v53 = vld [vmem:[%s16409_s20 + $0x30] sm:$0xff]  }
 0x6f2   :  { %10221 = vmatpush1.bf16.msra.mxu1 %v14460_v52  ;;  %10183 = vmatprep.subr.bf16.mxu0 %v14465_v17  ;;  %v14511_v52 = vld [vmem:[%s16408_s19 + $0x20] sm:$0xff]   ;;  %v14512_v17 = vld [vmem:[%s16409_s20 + $0x70] sm:$0xff]  }
 0x6f3   :  { %10222 = vmatprep.subr.bf16.mxu1 %v14468_v22 }
 0x6f5   :  { %10184 = vmatpush1.bf16.msra.mxu0 %v14463_v11 }
 0x6f6   :  { %10223 = vmatpush1.bf16.msra.mxu1 %v14466_v5  ;;  %10185 = vmatprep.subr.bf16.mxu0 %v14471_v49 }
 0x6f7   :  { %10224 = vmatprep.subr.bf16.mxu1 %v14474_v43 }
 0x6f9   :  { %10186 = vmatpush1.bf16.msra.mxu0 %v14469_v44  ;;  %v7887_v44 = vadd.f32 %v7880_v7, %v16164_v2  ;;  %v15027_v7 = vmov 0.0|0.0  }
 0x6fa   :  { %10225 = vmatpush1.bf16.msra.mxu1 %v14472_v39  ;;  %10187 = vmatprep.subr.bf16.mxu0 %v14477_v6  ;;  %v14515_v6 = vld [vmem:[%s16408_s19 + $0x28] sm:$0xff]  }
 0x6fb   :  { %10226 = vmatprep.subr.bf16.mxu1 %v14480_v21 }
 0x6fd   :  { %10188 = vmatpush1.bf16.msra.mxu0 %v14475_v26 }
 0x6fe   :  { %10227 = vmatpush1.bf16.msra.mxu1 %v14478_v29  ;;  %10189 = vmatprep.subr.bf16.mxu0 %v14483_v10  ;;  %v14517_v29 = vld [vmem:[%s16409_s20 + $0x38] sm:$0xff]   ;;  %v7889_v10 = vmax.f32 %v7887_v44, 0.0 }
 0x6ff   :  { %10228 = vmatprep.subr.bf16.mxu1 %v14486_v46 }
 0x701   :  { %10190 = vmatpush1.bf16.msra.mxu0 %v14481_v1 }
 0x702   :  { %10229 = vmatpush1.bf16.msra.mxu1 %v14484_v16  ;;  %12512 = vmatprep.subr.bf16.mxu0 %v14487_v13  ;;  %v14520_v16 = vld [vmem:[%s16408_s19 + $0x78] sm:$0xff]   ;;  %v14522_v13 = vld [vmem:[%s16410_s21 + $0x40] sm:$0xff]  }
 0x703   :  { %10230 = vmatprep.subr.bf16.mxu1 %v14490_v55  ;;  %v10291_v55 = vpack.c.bf16 %v7889_v10, %v7889_v10 }
 0x704   :  { %10192 = vmatmul.mubr.bf16.vlgmr.msra.gmra.mrb[136].mxu0 %v16543_v9  ;;  %v14530_v9 = vld [vmem:[%s16410_s21 + $0x60] sm:$0xff]  }
 0x705   :  { %12513 = vmatpush3.bf16.msra.mxu0 %v14491_v15  ;;  %10453 = vmatprep.mubr.bf16.mxu0 %v10292_v14 }
 0x706   :  { %10231 = vmatpush1.bf16.msra.mxu1 %v14488_v35  ;;  %12514 = vmatprep.subr.bf16.mxu0 %v14492_v56  ;;  %v14525_v35 = vld [vmem:[%s16410_s21 + $0x8] sm:$0xff]   ;;  %v14526_v56 = vld [vmem:[%s16410_s21 + $0x50] sm:$0xff]  }
 0x707   :  { %12534 = vmatprep.subr.bf16.mxu1 %v14494_v37  ;;  %v14527_v37 = vld [vmem:[%s16410_s21 + $0x10] sm:$0xff]  }
 0x709   :  { %10233 = vmatmul.mubr.bf16.vlgmr.msra.gmra.mrb[140].mxu1 %v16546_v4  ;;  %12515 = vmatpush3.bf16.msra.mxu0 %v14493_v40 }
 0x70a   :  { %12535 = vmatpush3.bf16.msra.mxu1 %v14495_v19  ;;  %10589 = vmatprep.mubr.bf16.mxu1 %v10258_v61 }
 0x70b   :  { %12516 = vmatprep.subr.bf16.mxu0 %v14496_v62  ;;  %12536 = vmatprep.subr.bf16.mxu1 %v14498_v25  ;;  %v14531_v62 = vld [vmem:[%s16410_s21 + $0x20] sm:$0xff]  }
 0x70d   :  { %12517 = vmatpush3.bf16.msra.mxu0 %v14497_v50  ;;  %v14533_v50 = vld [vmem:[%s16410_s21 + $0x28] sm:$0xff]  }
 0x70e   :  { %12537 = vmatpush3.bf16.msra.mxu1 %v14499_v45  ;;  %12518 = vmatprep.subr.bf16.mxu0 %v14500_v18 }
 0x70f   :  { %12538 = vmatprep.subr.bf16.mxu1 %v14502_v28 }
 0x711   :  { %12519 = vmatpush3.bf16.msra.mxu0 %v14501_v60 }
 0x712   :  { %12539 = vmatpush3.bf16.msra.mxu1 %v14503_v24  ;;  %12520 = vmatprep.subr.bf16.mxu0 %v14504_v47  ;;  %v14534_v47 = vld [vmem:[%s16410_s21 + $0x70] sm:$0xff]  }
 0x713   :  { %12540 = vmatprep.subr.bf16.mxu1 %v14506_v12  ;;  %v14535_v12 = vld [vmem:[%s16410_s21 + $0x30] sm:$0xff]  }
 0x715   :  { %12521 = vmatpush3.bf16.msra.mxu0 %v14505_v42  ;;  %v14536_v42 = vld [vmem:[%s16410_s21 + $0x78] sm:$0xff]  }
 0x716   :  { %12541 = vmatpush3.bf16.msra.mxu1 %v14507_v3  ;;  %12522 = vmatprep.subr.bf16.mxu0 %v14508_v57  ;;  %v14537_v3 = vld [vmem:[%s16410_s21 + $0x38] sm:$0xff]   ;;  %v10776_v57 = vld [vmem:[%s16547_s29] sm:$0xff] }
 0x717   :  { %v9147_v22 = vpop.f32.mrb[124].mxu0  ;;  %12542 = vmatprep.subr.bf16.mxu1 %v14510_v34  ;;  %v10777_v34 = vld [vmem:[%s16547_s29 + $0x8] sm:$0xff] }
 0x718   :  { %v9148_v11 = vadd.f32 %v9147_v22, %v16180_v51  ;;  %v9149_v5 = vpop.f32.mrb[125].mxu0  ;;  %v14516_v51 = vld [vmem:[%s16409_s20 + $0x78] sm:$0xff]  }
 0x719   :  { %v9150_v49 = vadd.f32 %v9149_v5, %v16182_v58  ;;  %v9151_v43 = vpop.f32.mrb[126].mxu0  ;;  %12523 = vmatpush3.bf16.msra.mxu0 %v14509_v20  ;;  %v2680_v58 = vrot.slane %v16193_v27, %v16266_v48  ;;  %v14519_v27 = vld [vmem:[%s16408_s19 + $0x30] sm:$0xff]  }
 0x71a   :  { %v9152_v39 = vpop.f32.mrb[127].mxu0  ;;  %12543 = vmatpush3.bf16.msra.mxu1 %v14511_v52  ;;  %12524 = vmatprep.subr.bf16.mxu0 %v14512_v17  ;;  %v10778_v20 = vld [vmem:[%s16547_s29 + $0x10] sm:$0xff]  ;;  %v12731_v52 = vpack.c.bf16 %v10777_v34, %v10776_v57  ;;  %v10779_v17 = vld [vmem:[%s16547_s29 + $0x18] sm:$0xff] }
 0x71b   :  { %12544 = vmatprep.subr.bf16.mxu1 %v14514_v30  ;;  %v12748_v0 = vadd.f32 %v16046_v63, %v2680_v58  ;;  %v14521_v63 = vld [vmem:[%s16408_s19 + $0x38] sm:$0xff]   ;;  %v12734_v22 = vpack.c.bf16 %v10779_v17, %v10778_v20  ;;  %v12216_v20 = vld [vmem:[#allocation3] ss:$0 sm:$0xff] }
 0x71c   :  { %v9188_v2 = vpop.f32.mrb[128].mxu1 }
 0x71d   :  { %v9189_v21 = vadd.f32 %v9188_v2, %v9148_v11  ;;  %v9190_v26 = vpop.f32.mrb[129].mxu1  ;;  %12525 = vmatpush3.bf16.msra.mxu0 %v14513_v53  ;;  %v3213_v15 = vmax.f32 %v12748_v0, 0.0 }
 0x71e   :  { %v9191_v59 = vadd.f32 %v9190_v26, %v9150_v49  ;;  %v9192_v46 = vpop.f32.mrb[130].mxu1  ;;  %12545 = vmatpush3.bf16.msra.mxu1 %v14515_v6  ;;  %12526 = vmatprep.subr.bf16.mxu0 %v14516_v51 }
 0x71f   :  { %v9193_v1 = vpop.f32.mrb[131].mxu1  ;;  %12546 = vmatprep.subr.bf16.mxu1 %v14518_v38  ;;  %v10257_v14 = vpack.c.bf16 %v3213_v15, %v3213_v15 }
 0x721   :  { %12527 = vmatpush3.bf16.msra.mxu0 %v14517_v29  ;;  %v10241_v29 = vld [vmem:[#allocation32] sm:$0x3] }
 0x722   :  { %12547 = vmatpush3.bf16.msra.mxu1 %v14519_v27  ;;  %12556 = vmatprep.subr.bf16.mxu0 %v14522_v13  ;;  %v10246_v27 = vrot.slane %v10241_v29, %v16266_v48  ;;  %v10250_v1 = vrot.slane %v10241_v29, %v16189_v31 }
 0x723   :  { %12548 = vmatprep.subr.bf16.mxu1 %v14520_v16 }
 0x724   :  { %10454 = vmatmul.mubr.bf16.vlgmr.msra.gmra.mrb[140].mxu0 %v10291_v55 }
 0x725   :  { %12557 = vmatpush3.bf16.msra.mxu0 %v14523_v41 }
 0x726   :  { %12549 = vmatpush3.bf16.msra.mxu1 %v14521_v63  ;;  %12558 = vmatprep.subr.bf16.mxu0 %v14524_v23 }
 0x727   :  { %12730 = vmatprep.subr.bf16.mxu1 %v15027_v7 }
 0x729   :  { %10590 = vmatmul.mubr.bf16.vlgmr.msra.gmra.mrb[144].mxu1 %v10257_v14  ;;  %12559 = vmatpush3.bf16.msra.mxu0 %v14525_v35 }
 0x72a   :  { %12560 = vmatprep.subr.bf16.mxu0 %v14526_v56  ;;  %12732 = vmatpush3.bf16.msra.mxu1 %v12731_v52 }
 0x72b   :  { %12733 = vmatprep.subr.bf16.mxu1 %v15027_v7 }
 0x72d   :  { %12561 = vmatpush3.bf16.msra.mxu0 %v14527_v37 }
 0x72e   :  { %12562 = vmatprep.subr.bf16.mxu0 %v14528_v33  ;;  %12735 = vmatpush3.bf16.msra.mxu1 %v12734_v22 }
 0x72f   :  { %12736 = vmatprep.subr.bf16.mxu1 %v15027_v7 }
 0x731   :  { %12563 = vmatpush3.bf16.msra.mxu0 %v14529_v8 }
 0x732   :  { %12564 = vmatprep.subr.bf16.mxu0 %v14530_v9 }
 0x735   :  { %12565 = vmatpush3.bf16.msra.mxu0 %v14531_v62 }
 0x736   :  { %12566 = vmatprep.subr.bf16.mxu0 %v14532_v54  ;;  %v10781_v54 = vld [vmem:[%s16547_s29 + $0x28] sm:$0xff] }
 0x739   :  { %12567 = vmatpush3.bf16.msra.mxu0 %v14533_v50  ;;  %v10782_v50 = vld [vmem:[%s16547_s29 + $0x30] sm:$0xff] }
 0x73a   :  { %12568 = vmatprep.subr.bf16.mxu0 %v14534_v47 }
 0x73d   :  { %12569 = vmatpush3.bf16.msra.mxu0 %v14535_v12 }
 0x73e   :  { %12570 = vmatprep.subr.bf16.mxu0 %v14536_v42  ;;  %v12215_v42 = vld [vmem:[#allocation33] ss:$0 sm:$0xff] }
 0x741   :  { %12571 = vmatpush3.bf16.msra.mxu0 %v14537_v3 }
 0x757   :  { %v9229_v32 = vpop.f32.mrb[128].mxu0 }
 0x758   :  { %v9230_v40 = vadd.f32 %v9229_v32, %v9189_v21  ;;  %v9231_v19 = vpop.f32.mrb[129].mxu0 }
 0x759   :  { %v9232_v25 = vadd.f32 %v9231_v19, %v9191_v59  ;;  %v9233_v61 = vpop.f32.mrb[130].mxu0 }
 0x75a   :  { %v9234_v36 = vpop.f32.mrb[131].mxu0 }
 0x75b   :  { %v10780_v36 = vld [vmem:[%s16547_s29 + $0x20] sm:$0xff] }
 0x75c   :  { %v10070_v4 = vpop.f32.mrb[132].mxu1 }
 0x75d   :  { %v10071_v45 = vadd.f32 %v10070_v4, %v9230_v40  ;;  %v10072_v18 = vpop.f32.mrb[133].mxu1  ;;  %v12737_v4 = vpack.c.bf16 %v10781_v54, %v10780_v36 }
 0x75e   :  { %v10073_v28 = vadd.f32 %v10072_v18, %v9232_v25  ;;  %v10074_v60 = vpop.f32.mrb[134].mxu1 }
 0x75f   :  { %v10075_v24 = vpop.f32.mrb[135].mxu1  ;;  %12738 = vmatpush3.bf16.msra.mxu1 %v12737_v4 }
 0x760   :  { %12739 = vmatprep.subr.bf16.mxu1 %v15027_v7 }
 0x797   :  { %v10111_v30 = vpop.f32.mrb[132].mxu0 }
 0x798   :  { %v10112_v11 = vadd.f32 %v10111_v30, %v10071_v45  ;;  %v10113_v5 = vpop.f32.mrb[133].mxu0  ;;  %v10783_v45 = vld [vmem:[%s16547_s29 + $0x38] sm:$0xff] }
 0x799   :  { %v10114_v49 = vadd.f32 %v10113_v5, %v10073_v28  ;;  %v10115_v43 = vpop.f32.mrb[134].mxu0  ;;  %v12740_v18 = vpack.c.bf16 %v10783_v45, %v10782_v50  ;;  %v15029_v28 = vmov 0.0  }
 0x79a   :  { %v10116_v53 = vpop.f32.mrb[135].mxu0  ;;  %12727 = vmatprep.mubr.msk.f32.mxu1 %vm15028_vm3, %v15029_v28 }
 0x79b   :  { %12741 = vmatpush3.bf16.msra.mxu1 %v12740_v18 }
 0x79c   :  { %v10152_v44 = vpop.f32.mrb[136].mxu1 }
 0x79d   :  { %v10153_v39 = vadd.f32 %v10152_v44, %v10112_v11  ;;  %v10154_v6 = vpop.f32.mrb[137].mxu1 }
 0x79e   :  { %v10155_v51 = vadd.f32 %v10154_v6, %v10114_v49  ;;  %v10156_v58 = vpop.f32.mrb[138].mxu1 }
 0x79f   :  { %v10157_v38 = vpop.f32.mrb[139].mxu1 }
 0x7d7   :  { %v10193_v2 = vpop.f32.mrb[136].mxu0 }
 0x7d8   :  { %v10194_v21 = vadd.f32 %v10193_v2, %v10153_v39  ;;  %v10195_v26 = vpop.f32.mrb[137].mxu0 }
 0x7d9   :  { %v10196_v10 = vadd.f32 %v10195_v26, %v10155_v51  ;;  %v10197_v59 = vpop.f32.mrb[138].mxu0 }
 0x7da   :  { %v10198_v46 = vpop.f32.mrb[139].mxu0 }
 0x7dc   :  { %v10234_v0 = vpop.f32.mrb[140].mxu1 }
 0x7dd   :  { %v10235_v16 = vadd.f32 %v10234_v0, %v10194_v21  ;;  %v10236_v13 = vpop.f32.mrb[141].mxu1 }
 0x7de   :  { %v10237_v41 = vadd.f32 %v10236_v13, %v10196_v10  ;;  %v10238_v55 = vpop.f32.mrb[142].mxu1 }
 0x7df   :  { %v10253_v63 = vadd.f32 %v10246_v27, %v10235_v16  ;;  %v10239_v23 = vpop.f32.mrb[143].mxu1 }
 0x7e0   :  { %v10254_v15 = vadd.f32 %v10250_v1, %v10237_v41 }
 0x7e1   :  { %v10255_v35 = vmax.f32 %v10253_v63, 0.0 }
 0x7e2   :  { %v10256_v56 = vmax.f32 %v10254_v15, 0.0 }
 0x7e3   :  { %v10597_v37 = vpack.c.bf16 %v10255_v35, %v10255_v35 }
 0x7e4   :  { %v10598_v14 = vpack.c.bf16 %v10256_v56, %v10256_v56 }
 0x7e6   :  { %10759 = vmatprep.mubr.bf16.mxu0 %v10598_v14 }
 0x7e7   :  { %10760 = vmatmul.mubr.bf16.vlgmr.msra.gmra.mrb[144].mxu0 %v10597_v37 }
 0x7f7   :  { %v12528_v33 = vpop.f32.mrb[140].mxu0 }
 0x7f8   :  { %v12529_v8 = vpop.f32.mrb[141].mxu0 }
 0x7f9   :  { %v12530_v32 = vadd.f32 %v12529_v8, %v12528_v33  ;;  %v12531_v48 = vpop.f32.mrb[142].mxu0 }
 0x7fa   :  { %v12532_v9 = vpop.f32.mrb[143].mxu0 }
 0x7fc   :  { %v12550_v40 = vpop.f32.mrb[144].mxu1 }
 0x7fd   :  { %v12551_v31 = vpop.f32.mrb[145].mxu1 }
 0x7fe   :  { %v12552_v19 = vadd.f32 %v12551_v31, %v12550_v40  ;;  %v12553_v62 = vpop.f32.mrb[146].mxu1 }
 0x7ff   :  { %v12554_v25 = vpop.f32.mrb[147].mxu1 }
 0x800   :  { %v10592_v61 = vadd.f32 %v12552_v19, %v12530_v32 }
 0x8ba   :  { %v12572_v60 = vpop.f32.mrb[144].mxu0 }
 0x8bb   :  { %v12573_v24 = vpop.f32.mrb[145].mxu0 }
 0x8bc   :  { %v12574_v47 = vadd.f32 %v12573_v24, %v12572_v60  ;;  %v12575_v12 = vpop.f32.mrb[146].mxu0 }
 0x8bd   :  { %v12576_v3 = vpop.f32.mrb[147].mxu0 }
 0x8be   :  { %v10767_v57 = vadd.f32 %v12574_v47, %v10592_v61 }
 0x8c0   :  { %v10775_v34 = vadd.f32 %v12215_v42, %v10767_v57 }
 0x8c2   :  { %12728 = vmatmul.mubr.msk.f32.vlgmr.msra.gmra.mrb[148].mxu1 %vm10791_vm4, %v10775_v34 }
 0x995   :  { %v10861_v7 = vpop.f32.mrb[148].mxu1 }
 0x996   :  { %v10862_v52 = vadd.f32 %v12216_v20, %v10861_v7  ;;  %v12729_v17 = vpop.f32.mrb[149].mxu1 }
 0x998   :  { %v10865_v22 = vand.u32 2147483647, %v10862_v52 }
 0x99a   :  { %v10866_v30 = vadd.f32 1.0, %v10865_v22 }
 0x99c   :  { %14538 = vrcp.f32 %v10866_v30 }
 0x9a6   :  { %v14539_v11 = vpop.eup %14538 }
 0x9a7   :  { %v10868_v5 = vmul.f32 %v14539_v11, %v10862_v52 }
 0x9a9   :  { %10870 = vst.msk [vmem:[%s16548_s18] sm:$0xff] %vm10869_vm5, %v10868_v5 }
 0x9aa   :  { %10875 = vsyncpa [#allocation5], 1 }
 0x9ab   :  { %10876 = vsyncpa [#allocation7], 1 }
 0x9ac   :  { %10877 = vsyncpa [#allocation10], 1 }
 0x9ad   :  { %10878 = vsyncpa [#allocation13], 1 }
 0x9ae   :  { %10879 = vsyncpa [#allocation16], 1 }
 0x9af   :  { %10880 = vsyncpa [#allocation19], 1 }
 0x9b0   :  { %10881 = vsyncpa [#allocation22], 1 }
 0x9b1   :  { %10882 = vsyncpa [#allocation25], 1 }
 0x9b2   :  { %10883 = vsyncpa [#allocation28], 1 }
 0x9b3   :  { %10884 = vsyncpa [#allocation31], 1 }
 0x9b4   :  { %10885 = vsyncpa [#allocation34], 1 }

</bundles_post_ra>
